<compile_context>
chip_gen: v7x
topology: tpu7x:2x2x1
jax: 0.10.0
libtpu: 0.0.40
codegen_flags: <defaults>
</compile_context>

<pallas_src>
import numpy as np
import jax
import jax.numpy as jnp
from jax import lax
from jax.experimental import pallas as pl
from jax.experimental.pallas import tpu as pltpu

HPARAMS = dict(
    input_channels=4,
    hidden=32,
    topo_size=8,
    nb_node_layer=2,
    nb_edge_layer=2,
    gnn_hidden_activation="ReLU",
    layernorm=True,
    aggregation="sum_max",   # concatenation_factor = 2
    radius=1.0,
    n_graph_iters=2,
)

LN_EPS = 1e-5  # torch.nn.LayerNorm default


# ---------------------------------------------------------------------------
# deterministic parameter construction (shapes from GeneratorGNN.__init__)
# ---------------------------------------------------------------------------
def mlp_init(key, dims):
    """Params for make_mlp(dims[0], dims[1:], output_activation=None, layer_norm=True).

    Per hidden layer: [W, b, ln_gamma, ln_beta]; final layer: [W, b].
    W is stored (fan_in, fan_out) so the kernel computes v @ W + b
    (identical to torch Linear's x @ W.T + b).
    """
    params = []
    keys = jax.random.split(key, len(dims) - 1)
    for li in range(len(dims) - 1):
        fi, fo = dims[li], dims[li + 1]
        kw, kb, kg, kl = jax.random.split(keys[li], 4)
        params.append(jax.random.normal(kw, (fi, fo), jnp.float32) / np.sqrt(fi))
        params.append(0.1 * jax.random.normal(kb, (1, fo), jnp.float32))
        if li < len(dims) - 2:  # hidden layer -> LayerNorm params
            params.append(1.0 + 0.1 * jax.random.normal(kg, (1, fo), jnp.float32))
            params.append(0.1 * jax.random.normal(kl, (1, fo), jnp.float32))
    return params


def init_generator_gnn_params(key, hp):
    C, H, T = hp["input_channels"], hp["hidden"], hp["topo_size"]
    nn_, ne_ = hp["nb_node_layer"], hp["nb_edge_layer"]
    assert hp["aggregation"] == "sum_max" and nn_ == 2 and ne_ == 2
    ks = jax.random.split(key, 6)
    groups = [
        mlp_init(ks[0], [C] + [H] * nn_),                 # node_encoder
        mlp_init(ks[1], [H] + [H] * nn_ + [T]),           # topo_encoder
        mlp_init(ks[2], [2 * H + 2 * T] + [H] * ne_),     # edge_net
        mlp_init(ks[3], [3 * H] + [H] * nn_),             # feature_net
        mlp_init(ks[4], [T + 2 * H] + [H] * nn_ + [T]),   # topo_net
        mlp_init(ks[5], [H] + [H] * nn_ + [C]),           # features_out
    ]
    sizes = [len(g) for g in groups]
    flat = [p for g in groups for p in g]
    return flat, sizes


# ---------------------------------------------------------------------------
# in-kernel math helpers (operate on loaded jnp values)
# ---------------------------------------------------------------------------
def _relu(v):
    return jnp.maximum(v, 0.0)


def _layernorm(v, g, b):
    mu = jnp.mean(v, axis=-1, keepdims=True)
    c = v - mu
    var = jnp.mean(c * c, axis=-1, keepdims=True)
    return c * lax.rsqrt(var + LN_EPS) * g + b


def _bf16(v):
    return v.astype(jnp.bfloat16)


def _dotb(v, w_bf16):
    # bf16 operands on the MXU, f32 accumulation (v5e-safe: only dot inputs are bf16)
    return jnp.dot(_bf16(v), w_bf16, preferred_element_type=jnp.float32)


def _linear(v, w, b):
    return _dotb(v, _bf16(w)) + b


def _mlp(v, plist):
    """plist = [W, b, g, bl] * n_hidden + [W, b]  (make_mlp with output_activation=None)."""
    i = 0
    while len(plist) - i > 2:
        w, b, g, bl = plist[i:i + 4]
        i += 4
        v = _relu(_layernorm(_linear(v, w, b), g, bl))
    w, b = plist[i:i + 2]
    return _linear(v, w, b)


# ---------------------------------------------------------------------------
# Pallas forward
# ---------------------------------------------------------------------------
def generator_gnn_forward(x_in, batch, params_flat, group_sizes, hp, ti=8):
    N, C = x_in.shape
    H, T = hp["hidden"], hp["topo_size"]
    r2 = float(hp["radius"]) ** 2
    n_iters = int(hp["n_graph_iters"])
    n_params = len(params_flat)
    offs = np.cumsum([0] + list(group_sizes))

    assert N % 8 == 0, "pad node count to a multiple of 8"
    TI = min(int(ti), N)              # targets per inner-loop step (sublane-aligned)
    assert N % TI == 0
    n_blocks = N // TI
    static_inner = n_blocks <= 8      # fully unroll tiny inner loops at trace time

    # glue (plain JAX): batch id as column / row vectors. The (N,N) pair mask and the
    # radius adjacency are built entirely in-kernel, so no N^2 input is streamed.
    bc = batch.astype(jnp.int32).reshape(N, 1)
    br = batch.astype(jnp.int32).reshape(1, N)

    def kernel(*refs):
        x_ref, bc_ref, br_ref = refs[0], refs[1], refs[2]
        pref = refs[3:3 + n_params]
        out_x_ref = refs[3 + n_params]
        adj_ref = refs[4 + n_params]
        mask_s, a_s, mx_s, sum_s = refs[5 + n_params:9 + n_params]

        pv = [p[...] for p in pref]
        enc_p = pv[offs[0]:offs[1]]
        tenc_p = pv[offs[1]:offs[2]]
        edge_p = pv[offs[2]:offs[3]]
        feat_p = pv[offs[3]:offs[4]]
        tnet_p = pv[offs[4]:offs[5]]
        outh_p = pv[offs[5]:offs[6]]

        # same-graph & not-self mask (replaces torch_cluster batch handling)
        row_id = lax.broadcasted_iota(jnp.int32, (N, N), 0)
        col_id = lax.broadcasted_iota(jnp.int32, (N, N), 1)
        pair = ((bc_ref[...] == br_ref[...]) & (row_id != col_id)).astype(jnp.float32)

        ones_1t = jnp.ones((1, T), jnp.float32)

        def radius_mask(topo):
            # squared distances via one gram matmul (MXU), clamped for cancellation
            tsq = topo * topo
            sq_col = jnp.sum(tsq, axis=-1, keepdims=True)                     # (N,1)
            sq_row = lax.dot_general(ones_1t, tsq, (((1,), (1,)), ((), ())),
                                     preferred_element_type=jnp.float32)     # (1,N)
            gram = lax.dot_general(topo, topo, (((1,), (1,)), ((), ())),
                                   preferred_element_type=jnp.float32)       # (N,N)
            dist2 = jnp.maximum(sq_col + sq_row - 2.0 * gram, 0.0)
            return jnp.where(dist2 <= r2, pair, 0.0)

        # ---- GeneratorGNN encoders ----
        x = _mlp(x_ref[...], enc_p)          # (N, H)
        topo = _mlp(x, tenc_p)               # (N, T)

        # ---- hoisted weight splits / bf16 casts (loop invariant) ----
        # edge_net layer-0 input blocks: [x_start | x_end | topo_start | topo_end]
        We0, be0, ge0, ble0, We1, be1 = edge_p
        W_xs = _bf16(We0[0:H, :])
        W_xe = _bf16(We0[H:2 * H, :])
        W_ts = _bf16(We0[2 * H:2 * H + T, :])
        W_te = _bf16(We0[2 * H + T:2 * H + 2 * T, :])
        We1_b3 = jnp.broadcast_to(_bf16(We1), (TI, H, H))   # batched MXU operand

        # feature_net layer-0 input blocks: [x | max | sum]
        Wf0, bf0, gf0, blf0, Wf1, bf1 = feat_p
        Wf_x = _bf16(Wf0[0:H, :])
        Wf_mx = _bf16(Wf0[H:2 * H, :])
        Wf_sm = _bf16(Wf0[2 * H:3 * H, :])
        Wf1b = _bf16(Wf1)

        # topo_net layer-0 input blocks: [topo | max | sum]
        Wt0, bt0, gt0, blt0, Wt1, bt1, gt1, blt1, Wt2, bt2 = tnet_p
        Wt_t = _bf16(Wt0[0:T, :])
        Wt_mx = _bf16(Wt0[T:T + H, :])
        Wt_sm = _bf16(Wt0[T + H:T + 2 * H, :])
        Wt1b = _bf16(Wt1)
        Wt2b = _bf16(Wt2)

        # ---- ParticleNet: n_graph_iters message steps ----
        for _ in range(n_iters):
            # radius_graph of the current topo: mask[i,j]=1 <=> edge j -> i
            mask_s[...] = radius_mask(topo)
            # end-node (target) and start-node (source) parts of edge_net layer-0
            a_s[...] = _dotb(x, W_xe) + _dotb(topo, W_te) + be0     # (N,H)
            b_part = _dotb(x, W_xs) + _dotb(topo, W_ts)             # (N,H)

            def process_block(r0):
                a_blk = a_s[pl.ds(r0, TI), :]                       # (TI,H)
                m_blk = mask_s[pl.ds(r0, TI), :]                    # (TI,N)
                # all candidate edges j -> (targets in this block)
                pre = a_blk[:, None, :] + b_part[None, :, :]        # (TI,N,H)
                h = _relu(_layernorm(pre, ge0, ble0))               # f32
                m3 = m_blk[:, :, None]                              # (TI,N,1)
                deg = jnp.sum(m_blk, axis=1, keepdims=True)         # (TI,1)
                # scatter_add: sum commutes with edge_net's final linear -> aggregate
                # h first, then one tiny (TI,H)@(H,H) matmul.
                hsum = jnp.sum(h * m3, axis=1)                      # (TI,H)
                s = (jnp.dot(hsum, We1, preferred_element_type=jnp.float32)
                     + deg * be1)                                   # (TI,H)
                # scatter_max: needs per-edge features -> batched bf16 MXU matmul
                g3 = jnp.einsum('tnh,thk->tnk', _bf16(h), We1_b3,
                                preferred_element_type=jnp.float32)  # (TI,N,H)
                mx = jnp.max(jnp.where(m3 > 0.0, g3, -jnp.inf), axis=1) + be1
                mx = jnp.where(deg > 0.0, mx, 0.0)   # nodes with no edges -> 0
                mx_s[pl.ds(r0, TI), :] = mx
                sum_s[pl.ds(r0, TI), :] = s

            if static_inner:
                for b in range(n_blocks):            # fully unrolled, static slices
                    process_block(b * TI)
            else:
                def body(b, carry):
                    process_block(pl.multiple_of(b * TI, TI))
                    return carry
                lax.fori_loop(0, n_blocks, body, 0, unroll=4)

            mx = mx_s[...]                            # scatter_max messages (N,H)
            sm = sum_s[...]                           # scatter_add messages (N,H)

            # feature_net on [x | max | sum] (no concatenation: split weights)
            zf = _dotb(x, Wf_x) + _dotb(mx, Wf_mx) + _dotb(sm, Wf_sm) + bf0
            zf = _relu(_layernorm(zf, gf0, blf0))
            x_out = _dotb(zf, Wf1b) + bf1
            # topo_net on [topo | max | sum]
            zt = _dotb(topo, Wt_t) + _dotb(mx, Wt_mx) + _dotb(sm, Wt_sm) + bt0
            zt = _relu(_layernorm(zt, gt0, blt0))
            zt = _relu(_layernorm(_dotb(zt, Wt1b) + bt1, gt1, blt1))
            topo_out = _dotb(zt, Wt2b) + bt2

            x = x_out + x
            tsum = topo + topo_out
            nrm = jnp.sqrt(jnp.sum(tsum * tsum, axis=-1, keepdims=True))
            topo = tsum / jnp.maximum(nrm, 1e-12)     # F.normalize(dim=1)

        # ---- features_out head ----
        out_x_ref[...] = _mlp(x, outh_p)

        # ---- final radius_graph adjacency of the final topo ----
        adj_ref[...] = radius_mask(topo)

    # rough VMEM residency estimate -> raise the scoped limit accordingly
    # (NOTE: for large N on v7x the (N,N) mask/adjacency should move to a row-tiled,
    #  multi-call pipeline; this single-call design targets fully-resident sizes.)
    param_bytes = sum(int(np.prod(p.shape)) * 4 for p in params_flat)
    live_bytes = (4 * (2 * N * N + 6 * N * H + N * C + 2 * N)
                  + param_bytes + 4 * TI * N * H * 3)
    vmem_limit = int(min(64 * 2**20, max(32 * 2**20, 4 * live_bytes)))

    vmem_spec = pl.BlockSpec(memory_space=pltpu.MemorySpace.VMEM)
    fwd = pl.pallas_call(
        kernel,
        out_shape=(jax.ShapeDtypeStruct((N, C), jnp.float32),     # features_out(x)
                   jax.ShapeDtypeStruct((N, N), jnp.float32)),    # dense edge_index
        in_specs=[vmem_spec] * (3 + n_params),
        out_specs=(vmem_spec, vmem_spec),
        scratch_shapes=[
            pltpu.VMEM((N, N), jnp.float32),        # mask_s : radius+pair mask
            pltpu.VMEM((N, H), jnp.float32),        # a_s    : per-target edge pre-act
            pltpu.VMEM((N, H), jnp.float32),        # mx_s   : scatter_max messages
            pltpu.VMEM((N, H), jnp.float32),        # sum_s  : scatter_add messages
        ],
        compiler_params=pltpu.CompilerParams(vmem_limit_bytes=vmem_limit),
    )
    return fwd(x_in, bc, br, *params_flat)


# ---------------------------------------------------------------------------
if __name__ == "__main__":
    hp = HPARAMS
    N = 16  # nodes (two graphs of 8 nodes each)
    key = jax.random.PRNGKey(0)
    kx, kp = jax.random.split(key)

    x = jax.random.normal(kx, (N, hp["input_channels"]), jnp.float32)
    batch = jnp.array([0] * (N // 2) + [1] * (N // 2), dtype=jnp.int32)
    params_flat, group_sizes = init_generator_gnn_params(kp, hp)

    x_out, adj = generator_gnn_forward(x, batch, params_flat, group_sizes, hp)
    jax.block_until_ready((x_out, adj))

    # recover a torch-style edge_index [2, E] from the dense adjacency (host-side glue)
    a = np.asarray(adj)
    tgt, src = np.nonzero(a)                  # adj[i, j] = 1  <=>  edge start=j, end=i
    edge_index = np.stack([src, tgt], axis=0)

    assert x_out.shape == (N, hp["input_channels"])
    assert np.all(np.isfinite(np.asarray(x_out)))
    assert edge_index.shape[0] == 2
    print("KERNEL_OK")
</pallas_src>

<mosaic_0001>
module attributes {stable_mosaic.version = 11 : i64} {
  func.func @kernel(%arg0: memref<16x4xf32, #tpu.memory_space<vmem>>, %arg1: memref<16x1xi32, #tpu.memory_space<vmem>>, %arg2: memref<1x16xi32, #tpu.memory_space<vmem>>, %arg3: memref<4x32xf32, #tpu.memory_space<vmem>>, %arg4: memref<1x32xf32, #tpu.memory_space<vmem>>, %arg5: memref<1x32xf32, #tpu.memory_space<vmem>>, %arg6: memref<1x32xf32, #tpu.memory_space<vmem>>, %arg7: memref<32x32xf32, #tpu.memory_space<vmem>>, %arg8: memref<1x32xf32, #tpu.memory_space<vmem>>, %arg9: memref<32x32xf32, #tpu.memory_space<vmem>>, %arg10: memref<1x32xf32, #tpu.memory_space<vmem>>, %arg11: memref<1x32xf32, #tpu.memory_space<vmem>>, %arg12: memref<1x32xf32, #tpu.memory_space<vmem>>, %arg13: memref<32x32xf32, #tpu.memory_space<vmem>>, %arg14: memref<1x32xf32, #tpu.memory_space<vmem>>, %arg15: memref<1x32xf32, #tpu.memory_space<vmem>>, %arg16: memref<1x32xf32, #tpu.memory_space<vmem>>, %arg17: memref<32x8xf32, #tpu.memory_space<vmem>>, %arg18: memref<1x8xf32, #tpu.memory_space<vmem>>, %arg19: memref<80x32xf32, #tpu.memory_space<vmem>>, %arg20: memref<1x32xf32, #tpu.memory_space<vmem>>, %arg21: memref<1x32xf32, #tpu.memory_space<vmem>>, %arg22: memref<1x32xf32, #tpu.memory_space<vmem>>, %arg23: memref<32x32xf32, #tpu.memory_space<vmem>>, %arg24: memref<1x32xf32, #tpu.memory_space<vmem>>, %arg25: memref<96x32xf32, #tpu.memory_space<vmem>>, %arg26: memref<1x32xf32, #tpu.memory_space<vmem>>, %arg27: memref<1x32xf32, #tpu.memory_space<vmem>>, %arg28: memref<1x32xf32, #tpu.memory_space<vmem>>, %arg29: memref<32x32xf32, #tpu.memory_space<vmem>>, %arg30: memref<1x32xf32, #tpu.memory_space<vmem>>, %arg31: memref<72x32xf32, #tpu.memory_space<vmem>>, %arg32: memref<1x32xf32, #tpu.memory_space<vmem>>, %arg33: memref<1x32xf32, #tpu.memory_space<vmem>>, %arg34: memref<1x32xf32, #tpu.memory_space<vmem>>, %arg35: memref<32x32xf32, #tpu.memory_space<vmem>>, %arg36: memref<1x32xf32, #tpu.memory_space<vmem>>, %arg37: memref<1x32xf32, #tpu.memory_space<vmem>>, %arg38: memref<1x32xf32, #tpu.memory_space<vmem>>, %arg39: memref<32x8xf32, #tpu.memory_space<vmem>>, %arg40: memref<1x8xf32, #tpu.memory_space<vmem>>, %arg41: memref<32x32xf32, #tpu.memory_space<vmem>>, %arg42: memref<1x32xf32, #tpu.memory_space<vmem>>, %arg43: memref<1x32xf32, #tpu.memory_space<vmem>>, %arg44: memref<1x32xf32, #tpu.memory_space<vmem>>, %arg45: memref<32x32xf32, #tpu.memory_space<vmem>>, %arg46: memref<1x32xf32, #tpu.memory_space<vmem>>, %arg47: memref<1x32xf32, #tpu.memory_space<vmem>>, %arg48: memref<1x32xf32, #tpu.memory_space<vmem>>, %arg49: memref<32x4xf32, #tpu.memory_space<vmem>>, %arg50: memref<1x4xf32, #tpu.memory_space<vmem>>, %arg51: memref<16x4xf32, #tpu.memory_space<vmem>>, %arg52: memref<16x16xf32, #tpu.memory_space<vmem>>, %arg53: memref<16x16xf32, #tpu.memory_space<vmem>>, %arg54: memref<16x32xf32, #tpu.memory_space<vmem>>, %arg55: memref<16x32xf32, #tpu.memory_space<vmem>>, %arg56: memref<16x32xf32, #tpu.memory_space<vmem>>) attributes {dimension_semantics = [], scalar_prefetch = 0 : i64, scratch_operands = 4 : i64, tpu.core_type = #tpu.core_type<tc>} {
    %c0 = arith.constant 0 : index
    %c0_0 = arith.constant 0 : index
    %0 = vector.load %arg3[%c0, %c0_0] : memref<4x32xf32, #tpu.memory_space<vmem>>, vector<4x32xf32>
    %c0_1 = arith.constant 0 : index
    %c0_2 = arith.constant 0 : index
    %1 = vector.load %arg4[%c0_1, %c0_2] : memref<1x32xf32, #tpu.memory_space<vmem>>, vector<1x32xf32>
    %c0_3 = arith.constant 0 : index
    %c0_4 = arith.constant 0 : index
    %2 = vector.load %arg5[%c0_3, %c0_4] : memref<1x32xf32, #tpu.memory_space<vmem>>, vector<1x32xf32>
    %c0_5 = arith.constant 0 : index
    %c0_6 = arith.constant 0 : index
    %3 = vector.load %arg6[%c0_5, %c0_6] : memref<1x32xf32, #tpu.memory_space<vmem>>, vector<1x32xf32>
    %c0_7 = arith.constant 0 : index
    %c0_8 = arith.constant 0 : index
    %4 = vector.load %arg7[%c0_7, %c0_8] : memref<32x32xf32, #tpu.memory_space<vmem>>, vector<32x32xf32>
    %c0_9 = arith.constant 0 : index
    %c0_10 = arith.constant 0 : index
    %5 = vector.load %arg8[%c0_9, %c0_10] : memref<1x32xf32, #tpu.memory_space<vmem>>, vector<1x32xf32>
    %c0_11 = arith.constant 0 : index
    %c0_12 = arith.constant 0 : index
    %6 = vector.load %arg9[%c0_11, %c0_12] : memref<32x32xf32, #tpu.memory_space<vmem>>, vector<32x32xf32>
    %c0_13 = arith.constant 0 : index
    %c0_14 = arith.constant 0 : index
    %7 = vector.load %arg10[%c0_13, %c0_14] : memref<1x32xf32, #tpu.memory_space<vmem>>, vector<1x32xf32>
    %c0_15 = arith.constant 0 : index
    %c0_16 = arith.constant 0 : index
    %8 = vector.load %arg11[%c0_15, %c0_16] : memref<1x32xf32, #tpu.memory_space<vmem>>, vector<1x32xf32>
    %c0_17 = arith.constant 0 : index
    %c0_18 = arith.constant 0 : index
    %9 = vector.load %arg12[%c0_17, %c0_18] : memref<1x32xf32, #tpu.memory_space<vmem>>, vector<1x32xf32>
    %c0_19 = arith.constant 0 : index
    %c0_20 = arith.constant 0 : index
    %10 = vector.load %arg13[%c0_19, %c0_20] : memref<32x32xf32, #tpu.memory_space<vmem>>, vector<32x32xf32>
    %c0_21 = arith.constant 0 : index
    %c0_22 = arith.constant 0 : index
    %11 = vector.load %arg14[%c0_21, %c0_22] : memref<1x32xf32, #tpu.memory_space<vmem>>, vector<1x32xf32>
    %c0_23 = arith.constant 0 : index
    %c0_24 = arith.constant 0 : index
    %12 = vector.load %arg15[%c0_23, %c0_24] : memref<1x32xf32, #tpu.memory_space<vmem>>, vector<1x32xf32>
    %c0_25 = arith.constant 0 : index
    %c0_26 = arith.constant 0 : index
    %13 = vector.load %arg16[%c0_25, %c0_26] : memref<1x32xf32, #tpu.memory_space<vmem>>, vector<1x32xf32>
    %c0_27 = arith.constant 0 : index
    %c0_28 = arith.constant 0 : index
    %14 = vector.load %arg17[%c0_27, %c0_28] : memref<32x8xf32, #tpu.memory_space<vmem>>, vector<32x8xf32>
    %c0_29 = arith.constant 0 : index
    %c0_30 = arith.constant 0 : index
    %15 = vector.load %arg18[%c0_29, %c0_30] : memref<1x8xf32, #tpu.memory_space<vmem>>, vector<1x8xf32>
    %c0_31 = arith.constant 0 : index
    %c0_32 = arith.constant 0 : index
    %16 = vector.load %arg19[%c0_31, %c0_32] : memref<80x32xf32, #tpu.memory_space<vmem>>, vector<80x32xf32>
    %c0_33 = arith.constant 0 : index
    %c0_34 = arith.constant 0 : index
    %17 = vector.load %arg20[%c0_33, %c0_34] : memref<1x32xf32, #tpu.memory_space<vmem>>, vector<1x32xf32>
    %c0_35 = arith.constant 0 : index
    %c0_36 = arith.constant 0 : index
    %18 = vector.load %arg21[%c0_35, %c0_36] : memref<1x32xf32, #tpu.memory_space<vmem>>, vector<1x32xf32>
    %c0_37 = arith.constant 0 : index
    %c0_38 = arith.constant 0 : index
    %19 = vector.load %arg22[%c0_37, %c0_38] : memref<1x32xf32, #tpu.memory_space<vmem>>, vector<1x32xf32>
    %c0_39 = arith.constant 0 : index
    %c0_40 = arith.constant 0 : index
    %20 = vector.load %arg23[%c0_39, %c0_40] : memref<32x32xf32, #tpu.memory_space<vmem>>, vector<32x32xf32>
    %c0_41 = arith.constant 0 : index
    %c0_42 = arith.constant 0 : index
    %21 = vector.load %arg24[%c0_41, %c0_42] : memref<1x32xf32, #tpu.memory_space<vmem>>, vector<1x32xf32>
    %c0_43 = arith.constant 0 : index
    %c0_44 = arith.constant 0 : index
    %22 = vector.load %arg25[%c0_43, %c0_44] : memref<96x32xf32, #tpu.memory_space<vmem>>, vector<96x32xf32>
    %c0_45 = arith.constant 0 : index
    %c0_46 = arith.constant 0 : index
    %23 = vector.load %arg26[%c0_45, %c0_46] : memref<1x32xf32, #tpu.memory_space<vmem>>, vector<1x32xf32>
    %c0_47 = arith.constant 0 : index
    %c0_48 = arith.constant 0 : index
    %24 = vector.load %arg27[%c0_47, %c0_48] : memref<1x32xf32, #tpu.memory_space<vmem>>, vector<1x32xf32>
    %c0_49 = arith.constant 0 : index
    %c0_50 = arith.constant 0 : index
    %25 = vector.load %arg28[%c0_49, %c0_50] : memref<1x32xf32, #tpu.memory_space<vmem>>, vector<1x32xf32>
    %c0_51 = arith.constant 0 : index
    %c0_52 = arith.constant 0 : index
    %26 = vector.load %arg29[%c0_51, %c0_52] : memref<32x32xf32, #tpu.memory_space<vmem>>, vector<32x32xf32>
    %c0_53 = arith.constant 0 : index
    %c0_54 = arith.constant 0 : index
    %27 = vector.load %arg30[%c0_53, %c0_54] : memref<1x32xf32, #tpu.memory_space<vmem>>, vector<1x32xf32>
    %c0_55 = arith.constant 0 : index
    %c0_56 = arith.constant 0 : index
    %28 = vector.load %arg31[%c0_55, %c0_56] : memref<72x32xf32, #tpu.memory_space<vmem>>, vector<72x32xf32>
    %c0_57 = arith.constant 0 : index
    %c0_58 = arith.constant 0 : index
    %29 = vector.load %arg32[%c0_57, %c0_58] : memref<1x32xf32, #tpu.memory_space<vmem>>, vector<1x32xf32>
    %c0_59 = arith.constant 0 : index
    %c0_60 = arith.constant 0 : index
    %30 = vector.load %arg33[%c0_59, %c0_60] : memref<1x32xf32, #tpu.memory_space<vmem>>, vector<1x32xf32>
    %c0_61 = arith.constant 0 : index
    %c0_62 = arith.constant 0 : index
    %31 = vector.load %arg34[%c0_61, %c0_62] : memref<1x32xf32, #tpu.memory_space<vmem>>, vector<1x32xf32>
    %c0_63 = arith.constant 0 : index
    %c0_64 = arith.constant 0 : index
    %32 = vector.load %arg35[%c0_63, %c0_64] : memref<32x32xf32, #tpu.memory_space<vmem>>, vector<32x32xf32>
    %c0_65 = arith.constant 0 : index
    %c0_66 = arith.constant 0 : index
    %33 = vector.load %arg36[%c0_65, %c0_66] : memref<1x32xf32, #tpu.memory_space<vmem>>, vector<1x32xf32>
    %c0_67 = arith.constant 0 : index
    %c0_68 = arith.constant 0 : index
    %34 = vector.load %arg37[%c0_67, %c0_68] : memref<1x32xf32, #tpu.memory_space<vmem>>, vector<1x32xf32>
    %c0_69 = arith.constant 0 : index
    %c0_70 = arith.constant 0 : index
    %35 = vector.load %arg38[%c0_69, %c0_70] : memref<1x32xf32, #tpu.memory_space<vmem>>, vector<1x32xf32>
    %c0_71 = arith.constant 0 : index
    %c0_72 = arith.constant 0 : index
    %36 = vector.load %arg39[%c0_71, %c0_72] : memref<32x8xf32, #tpu.memory_space<vmem>>, vector<32x8xf32>
    %c0_73 = arith.constant 0 : index
    %c0_74 = arith.constant 0 : index
    %37 = vector.load %arg40[%c0_73, %c0_74] : memref<1x8xf32, #tpu.memory_space<vmem>>, vector<1x8xf32>
    %c0_75 = arith.constant 0 : index
    %c0_76 = arith.constant 0 : index
    %38 = vector.load %arg41[%c0_75, %c0_76] : memref<32x32xf32, #tpu.memory_space<vmem>>, vector<32x32xf32>
    %c0_77 = arith.constant 0 : index
    %c0_78 = arith.constant 0 : index
    %39 = vector.load %arg42[%c0_77, %c0_78] : memref<1x32xf32, #tpu.memory_space<vmem>>, vector<1x32xf32>
    %c0_79 = arith.constant 0 : index
    %c0_80 = arith.constant 0 : index
    %40 = vector.load %arg43[%c0_79, %c0_80] : memref<1x32xf32, #tpu.memory_space<vmem>>, vector<1x32xf32>
    %c0_81 = arith.constant 0 : index
    %c0_82 = arith.constant 0 : index
    %41 = vector.load %arg44[%c0_81, %c0_82] : memref<1x32xf32, #tpu.memory_space<vmem>>, vector<1x32xf32>
    %c0_83 = arith.constant 0 : index
    %c0_84 = arith.constant 0 : index
    %42 = vector.load %arg45[%c0_83, %c0_84] : memref<32x32xf32, #tpu.memory_space<vmem>>, vector<32x32xf32>
    %c0_85 = arith.constant 0 : index
    %c0_86 = arith.constant 0 : index
    %43 = vector.load %arg46[%c0_85, %c0_86] : memref<1x32xf32, #tpu.memory_space<vmem>>, vector<1x32xf32>
    %c0_87 = arith.constant 0 : index
    %c0_88 = arith.constant 0 : index
    %44 = vector.load %arg47[%c0_87, %c0_88] : memref<1x32xf32, #tpu.memory_space<vmem>>, vector<1x32xf32>
    %c0_89 = arith.constant 0 : index
    %c0_90 = arith.constant 0 : index
    %45 = vector.load %arg48[%c0_89, %c0_90] : memref<1x32xf32, #tpu.memory_space<vmem>>, vector<1x32xf32>
    %c0_91 = arith.constant 0 : index
    %c0_92 = arith.constant 0 : index
    %46 = vector.load %arg49[%c0_91, %c0_92] : memref<32x4xf32, #tpu.memory_space<vmem>>, vector<32x4xf32>
    %c0_93 = arith.constant 0 : index
    %c0_94 = arith.constant 0 : index
    %47 = vector.load %arg50[%c0_93, %c0_94] : memref<1x4xf32, #tpu.memory_space<vmem>>, vector<1x4xf32>
    %48 = tpu.iota {dimensions = array<i32: 0>} : vector<16x16xi32>
    %49 = tpu.iota {dimensions = array<i32: 1>} : vector<16x16xi32>
    %c0_95 = arith.constant 0 : index
    %c0_96 = arith.constant 0 : index
    %50 = vector.load %arg1[%c0_95, %c0_96] : memref<16x1xi32, #tpu.memory_space<vmem>>, vector<16x1xi32>
    %c0_97 = arith.constant 0 : index
    %c0_98 = arith.constant 0 : index
    %51 = vector.load %arg2[%c0_97, %c0_98] : memref<1x16xi32, #tpu.memory_space<vmem>>, vector<1x16xi32>
    %52 = vector.broadcast %50 : vector<16x1xi32> to vector<16x16xi32>
    %53 = vector.broadcast %51 : vector<1x16xi32> to vector<16x16xi32>
    %54 = arith.cmpi eq, %52, %53 : vector<16x16xi32>
    %55 = arith.cmpi ne, %48, %49 : vector<16x16xi32>
    %56 = arith.andi %54, %55 : vector<16x16xi1>
    %57 = arith.extui %56 : vector<16x16xi1> to vector<16x16xi32>
    %58 = arith.sitofp %57 : vector<16x16xi32> to vector<16x16xf32>
    %cst = arith.constant 1.000000e+00 : f32
    %59 = vector.broadcast %cst : f32 to vector<1x8xf32>
    %c0_99 = arith.constant 0 : index
    %c0_100 = arith.constant 0 : index
    %60 = vector.load %arg0[%c0_99, %c0_100] : memref<16x4xf32, #tpu.memory_space<vmem>>, vector<16x4xf32>
    %61 = arith.truncf %0 : vector<4x32xf32> to vector<4x32xbf16>
    %62 = arith.truncf %60 : vector<16x4xf32> to vector<16x4xbf16>
    %cst_101 = arith.constant dense<0.000000e+00> : vector<16x32xf32>
    %63 = tpu.matmul %62, %61, %cst_101 {dimension_numbers = #tpu.dot_dimension_numbers<[1], [0], [0], [1], [0, 0, 1, 1], [], []>} : vector<16x4xbf16>, vector<4x32xbf16>, vector<16x32xf32> -> vector<16x32xf32>
    %64 = vector.broadcast %1 : vector<1x32xf32> to vector<16x32xf32>
    %65 = arith.addf %63, %64 : vector<16x32xf32>
    %cst_102 = arith.constant dense<0.000000e+00> : vector<16xf32>
    %66 = vector.multi_reduction <add>, %65, %cst_102 [1] : vector<16x32xf32> to vector<16xf32>
    %67 = vector.shape_cast %66 : vector<16xf32> to vector<16x1xf32>
    %cst_103 = arith.constant 3.200000e+01 : f32
    %68 = vector.broadcast %cst_103 : f32 to vector<16x1xf32>
    %69 = arith.divf %67, %68 : vector<16x1xf32>
    %70 = vector.broadcast %69 : vector<16x1xf32> to vector<16x32xf32>
    %71 = arith.subf %65, %70 : vector<16x32xf32>
    %72 = arith.mulf %71, %71 : vector<16x32xf32>
    %cst_104 = arith.constant dense<0.000000e+00> : vector<16xf32>
    %73 = vector.multi_reduction <add>, %72, %cst_104 [1] : vector<16x32xf32> to vector<16xf32>
    %74 = vector.shape_cast %73 : vector<16xf32> to vector<16x1xf32>
    %cst_105 = arith.constant 3.200000e+01 : f32
    %75 = vector.broadcast %cst_105 : f32 to vector<16x1xf32>
    %76 = arith.divf %74, %75 : vector<16x1xf32>
    %cst_106 = arith.constant 9.99999974E-6 : f32
    %77 = vector.broadcast %cst_106 : f32 to vector<16x1xf32>
    %78 = arith.addf %76, %77 : vector<16x1xf32>
    %79 = math.rsqrt %78 : vector<16x1xf32>
    %80 = vector.broadcast %79 : vector<16x1xf32> to vector<16x32xf32>
    %81 = arith.mulf %71, %80 : vector<16x32xf32>
    %82 = vector.broadcast %2 : vector<1x32xf32> to vector<16x32xf32>
    %83 = arith.mulf %81, %82 : vector<16x32xf32>
    %84 = vector.broadcast %3 : vector<1x32xf32> to vector<16x32xf32>
    %85 = arith.addf %83, %84 : vector<16x32xf32>
    %cst_107 = arith.constant 0.000000e+00 : f32
    %86 = vector.broadcast %cst_107 : f32 to vector<16x32xf32>
    %87 = arith.maximumf %85, %86 : vector<16x32xf32>
    %88 = arith.truncf %4 : vector<32x32xf32> to vector<32x32xbf16>
    %89 = arith.truncf %87 : vector<16x32xf32> to vector<16x32xbf16>
    %cst_108 = arith.constant dense<0.000000e+00> : vector<16x32xf32>
    %90 = tpu.matmul %89, %88, %cst_108 {dimension_numbers = #tpu.dot_dimension_numbers<[1], [0], [0], [1], [0, 0, 1, 1], [], []>} : vector<16x32xbf16>, vector<32x32xbf16>, vector<16x32xf32> -> vector<16x32xf32>
    %91 = vector.broadcast %5 : vector<1x32xf32> to vector<16x32xf32>
    %92 = arith.addf %90, %91 : vector<16x32xf32>
    %93 = arith.truncf %6 : vector<32x32xf32> to vector<32x32xbf16>
    %94 = arith.truncf %92 : vector<16x32xf32> to vector<16x32xbf16>
    %cst_109 = arith.constant dense<0.000000e+00> : vector<16x32xf32>
    %95 = tpu.matmul %94, %93, %cst_109 {dimension_numbers = #tpu.dot_dimension_numbers<[1], [0], [0], [1], [0, 0, 1, 1], [], []>} : vector<16x32xbf16>, vector<32x32xbf16>, vector<16x32xf32> -> vector<16x32xf32>
    %96 = vector.broadcast %7 : vector<1x32xf32> to vector<16x32xf32>
    %97 = arith.addf %95, %96 : vector<16x32xf32>
    %cst_110 = arith.constant dense<0.000000e+00> : vector<16xf32>
    %98 = vector.multi_reduction <add>, %97, %cst_110 [1] : vector<16x32xf32> to vector<16xf32>
    %99 = vector.shape_cast %98 : vector<16xf32> to vector<16x1xf32>
    %cst_111 = arith.constant 3.200000e+01 : f32
    %100 = vector.broadcast %cst_111 : f32 to vector<16x1xf32>
    %101 = arith.divf %99, %100 : vector<16x1xf32>
    %102 = vector.broadcast %101 : vector<16x1xf32> to vector<16x32xf32>
    %103 = arith.subf %97, %102 : vector<16x32xf32>
    %104 = arith.mulf %103, %103 : vector<16x32xf32>
    %cst_112 = arith.constant dense<0.000000e+00> : vector<16xf32>
    %105 = vector.multi_reduction <add>, %104, %cst_112 [1] : vector<16x32xf32> to vector<16xf32>
    %106 = vector.shape_cast %105 : vector<16xf32> to vector<16x1xf32>
    %cst_113 = arith.constant 3.200000e+01 : f32
    %107 = vector.broadcast %cst_113 : f32 to vector<16x1xf32>
    %108 = arith.divf %106, %107 : vector<16x1xf32>
    %cst_114 = arith.constant 9.99999974E-6 : f32
    %109 = vector.broadcast %cst_114 : f32 to vector<16x1xf32>
    %110 = arith.addf %108, %109 : vector<16x1xf32>
    %111 = math.rsqrt %110 : vector<16x1xf32>
    %112 = vector.broadcast %111 : vector<16x1xf32> to vector<16x32xf32>
    %113 = arith.mulf %103, %112 : vector<16x32xf32>
    %114 = vector.broadcast %8 : vector<1x32xf32> to vector<16x32xf32>
    %115 = arith.mulf %113, %114 : vector<16x32xf32>
    %116 = vector.broadcast %9 : vector<1x32xf32> to vector<16x32xf32>
    %117 = arith.addf %115, %116 : vector<16x32xf32>
    %cst_115 = arith.constant 0.000000e+00 : f32
    %118 = vector.broadcast %cst_115 : f32 to vector<16x32xf32>
    %119 = arith.maximumf %117, %118 : vector<16x32xf32>
    %120 = arith.truncf %10 : vector<32x32xf32> to vector<32x32xbf16>
    %121 = arith.truncf %119 : vector<16x32xf32> to vector<16x32xbf16>
    %cst_116 = arith.constant dense<0.000000e+00> : vector<16x32xf32>
    %122 = tpu.matmul %121, %120, %cst_116 {dimension_numbers = #tpu.dot_dimension_numbers<[1], [0], [0], [1], [0, 0, 1, 1], [], []>} : vector<16x32xbf16>, vector<32x32xbf16>, vector<16x32xf32> -> vector<16x32xf32>
    %123 = vector.broadcast %11 : vector<1x32xf32> to vector<16x32xf32>
    %124 = arith.addf %122, %123 : vector<16x32xf32>
    %cst_117 = arith.constant dense<0.000000e+00> : vector<16xf32>
    %125 = vector.multi_reduction <add>, %124, %cst_117 [1] : vector<16x32xf32> to vector<16xf32>
    %126 = vector.shape_cast %125 : vector<16xf32> to vector<16x1xf32>
    %cst_118 = arith.constant 3.200000e+01 : f32
    %127 = vector.broadcast %cst_118 : f32 to vector<16x1xf32>
    %128 = arith.divf %126, %127 : vector<16x1xf32>
    %129 = vector.broadcast %128 : vector<16x1xf32> to vector<16x32xf32>
    %130 = arith.subf %124, %129 : vector<16x32xf32>
    %131 = arith.mulf %130, %130 : vector<16x32xf32>
    %cst_119 = arith.constant dense<0.000000e+00> : vector<16xf32>
    %132 = vector.multi_reduction <add>, %131, %cst_119 [1] : vector<16x32xf32> to vector<16xf32>
    %133 = vector.shape_cast %132 : vector<16xf32> to vector<16x1xf32>
    %cst_120 = arith.constant 3.200000e+01 : f32
    %134 = vector.broadcast %cst_120 : f32 to vector<16x1xf32>
    %135 = arith.divf %133, %134 : vector<16x1xf32>
    %cst_121 = arith.constant 9.99999974E-6 : f32
    %136 = vector.broadcast %cst_121 : f32 to vector<16x1xf32>
    %137 = arith.addf %135, %136 : vector<16x1xf32>
    %138 = math.rsqrt %137 : vector<16x1xf32>
    %139 = vector.broadcast %138 : vector<16x1xf32> to vector<16x32xf32>
    %140 = arith.mulf %130, %139 : vector<16x32xf32>
    %141 = vector.broadcast %12 : vector<1x32xf32> to vector<16x32xf32>
    %142 = arith.mulf %140, %141 : vector<16x32xf32>
    %143 = vector.broadcast %13 : vector<1x32xf32> to vector<16x32xf32>
    %144 = arith.addf %142, %143 : vector<16x32xf32>
    %cst_122 = arith.constant 0.000000e+00 : f32
    %145 = vector.broadcast %cst_122 : f32 to vector<16x32xf32>
    %146 = arith.maximumf %144, %145 : vector<16x32xf32>
    %147 = arith.truncf %14 : vector<32x8xf32> to vector<32x8xbf16>
    %148 = arith.truncf %146 : vector<16x32xf32> to vector<16x32xbf16>
    %cst_123 = arith.constant dense<0.000000e+00> : vector<16x8xf32>
    %149 = tpu.matmul %148, %147, %cst_123 {dimension_numbers = #tpu.dot_dimension_numbers<[1], [0], [0], [1], [0, 0, 1, 1], [], []>} : vector<16x32xbf16>, vector<32x8xbf16>, vector<16x8xf32> -> vector<16x8xf32>
    %150 = vector.broadcast %15 : vector<1x8xf32> to vector<16x8xf32>
    %151 = arith.addf %149, %150 : vector<16x8xf32>
    %152 = vector.extract_strided_slice %16 {offsets = [0, 0], sizes = [32, 32], strides = [1, 1]} : vector<80x32xf32> to vector<32x32xf32>
    %153 = arith.truncf %152 : vector<32x32xf32> to vector<32x32xbf16>
    %154 = vector.extract_strided_slice %16 {offsets = [32, 0], sizes = [32, 32], strides = [1, 1]} : vector<80x32xf32> to vector<32x32xf32>
    %155 = arith.truncf %154 : vector<32x32xf32> to vector<32x32xbf16>
    %156 = vector.extract_strided_slice %16 {offsets = [64, 0], sizes = [8, 32], strides = [1, 1]} : vector<80x32xf32> to vector<8x32xf32>
    %157 = arith.truncf %156 : vector<8x32xf32> to vector<8x32xbf16>
    %158 = vector.extract_strided_slice %16 {offsets = [72, 0], sizes = [8, 32], strides = [1, 1]} : vector<80x32xf32> to vector<8x32xf32>
    %159 = arith.truncf %158 : vector<8x32xf32> to vector<8x32xbf16>
    %160 = arith.truncf %20 : vector<32x32xf32> to vector<32x32xbf16>
    %161 = vector.shape_cast %160 : vector<32x32xbf16> to vector<1x32x32xbf16>
    %162 = vector.broadcast %161 : vector<1x32x32xbf16> to vector<8x32x32xbf16>
    %163 = vector.extract_strided_slice %22 {offsets = [0, 0], sizes = [32, 32], strides = [1, 1]} : vector<96x32xf32> to vector<32x32xf32>
    %164 = arith.truncf %163 : vector<32x32xf32> to vector<32x32xbf16>
    %165 = vector.extract_strided_slice %22 {offsets = [32, 0], sizes = [32, 32], strides = [1, 1]} : vector<96x32xf32> to vector<32x32xf32>
    %166 = arith.truncf %165 : vector<32x32xf32> to vector<32x32xbf16>
    %167 = vector.extract_strided_slice %22 {offsets = [64, 0], sizes = [32, 32], strides = [1, 1]} : vector<96x32xf32> to vector<32x32xf32>
    %168 = arith.truncf %167 : vector<32x32xf32> to vector<32x32xbf16>
    %169 = arith.truncf %26 : vector<32x32xf32> to vector<32x32xbf16>
    %170 = vector.extract_strided_slice %28 {offsets = [0, 0], sizes = [8, 32], strides = [1, 1]} : vector<72x32xf32> to vector<8x32xf32>
    %171 = arith.truncf %170 : vector<8x32xf32> to vector<8x32xbf16>
    %172 = vector.extract_strided_slice %28 {offsets = [8, 0], sizes = [32, 32], strides = [1, 1]} : vector<72x32xf32> to vector<32x32xf32>
    %173 = arith.truncf %172 : vector<32x32xf32> to vector<32x32xbf16>
    %174 = vector.extract_strided_slice %28 {offsets = [40, 0], sizes = [32, 32], strides = [1, 1]} : vector<72x32xf32> to vector<32x32xf32>
    %175 = arith.truncf %174 : vector<32x32xf32> to vector<32x32xbf16>
    %176 = arith.truncf %32 : vector<32x32xf32> to vector<32x32xbf16>
    %177 = arith.truncf %36 : vector<32x8xf32> to vector<32x8xbf16>
    %178 = arith.mulf %151, %151 : vector<16x8xf32>
    %cst_124 = arith.constant dense<0.000000e+00> : vector<16xf32>
    %179 = vector.multi_reduction <add>, %178, %cst_124 [1] : vector<16x8xf32> to vector<16xf32>
    %180 = vector.shape_cast %179 : vector<16xf32> to vector<16x1xf32>
    %cst_125 = arith.constant dense<0.000000e+00> : vector<1x16xf32>
    %181 = tpu.matmul %59, %178, %cst_125 {dimension_numbers = #tpu.dot_dimension_numbers<[1], [1], [0], [0], [0, 0, 1, 0], [], []>} : vector<1x8xf32>, vector<16x8xf32>, vector<1x16xf32> -> vector<1x16xf32>
    %cst_126 = arith.constant dense<0.000000e+00> : vector<16x16xf32>
    %182 = tpu.matmul %151, %151, %cst_126 {dimension_numbers = #tpu.dot_dimension_numbers<[1], [1], [0], [0], [0, 0, 1, 0], [], []>} : vector<16x8xf32>, vector<16x8xf32>, vector<16x16xf32> -> vector<16x16xf32>
    %183 = vector.broadcast %180 : vector<16x1xf32> to vector<16x16xf32>
    %184 = vector.broadcast %181 : vector<1x16xf32> to vector<16x16xf32>
    %185 = arith.addf %183, %184 : vector<16x16xf32>
    %cst_127 = arith.constant 2.000000e+00 : f32
    %186 = vector.broadcast %cst_127 : f32 to vector<16x16xf32>
    %187 = arith.mulf %186, %182 : vector<16x16xf32>
    %188 = arith.subf %185, %187 : vector<16x16xf32>
    %cst_128 = arith.constant 0.000000e+00 : f32
    %189 = vector.broadcast %cst_128 : f32 to vector<16x16xf32>
    %190 = arith.maximumf %188, %189 : vector<16x16xf32>
    %cst_129 = arith.constant 1.000000e+00 : f32
    %191 = vector.broadcast %cst_129 : f32 to vector<16x16xf32>
    %192 = arith.cmpf ole, %190, %191 : vector<16x16xf32>
    %cst_130 = arith.constant 0.000000e+00 : f32
    %193 = vector.broadcast %cst_130 : f32 to vector<16x16xf32>
    %194 = arith.select %192, %58, %193 : vector<16x16xi1>, vector<16x16xf32>
    %c0_131 = arith.constant 0 : index
    %c0_132 = arith.constant 0 : index
    %195 = vector.load %arg53[%c0_131, %c0_132] : memref<16x16xf32, #tpu.memory_space<vmem>>, vector<16x16xf32>
    tpu.vector_store %arg53[%c0_131, %c0_132], %194 {strides = array<i32>} : memref<16x16xf32, #tpu.memory_space<vmem>>, vector<16x16xf32>,
    %196 = arith.truncf %92 : vector<16x32xf32> to vector<16x32xbf16>
    %cst_133 = arith.constant dense<0.000000e+00> : vector<16x32xf32>
    %197 = tpu.matmul %196, %155, %cst_133 {dimension_numbers = #tpu.dot_dimension_numbers<[1], [0], [0], [1], [0, 0, 1, 1], [], []>} : vector<16x32xbf16>, vector<32x32xbf16>, vector<16x32xf32> -> vector<16x32xf32>
    %198 = arith.truncf %151 : vector<16x8xf32> to vector<16x8xbf16>
    %cst_134 = arith.constant dense<0.000000e+00> : vector<16x32xf32>
    %199 = tpu.matmul %198, %159, %cst_134 {dimension_numbers = #tpu.dot_dimension_numbers<[1], [0], [0], [1], [0, 0, 1, 1], [], []>} : vector<16x8xbf16>, vector<8x32xbf16>, vector<16x32xf32> -> vector<16x32xf32>
    %200 = arith.addf %197, %199 : vector<16x32xf32>
    %201 = vector.broadcast %17 : vector<1x32xf32> to vector<16x32xf32>
    %202 = arith.addf %200, %201 : vector<16x32xf32>
    %c0_135 = arith.constant 0 : index
    %c0_136 = arith.constant 0 : index
    %203 = vector.load %arg54[%c0_135, %c0_136] : memref<16x32xf32, #tpu.memory_space<vmem>>, vector<16x32xf32>
    tpu.vector_store %arg54[%c0_135, %c0_136], %202 {strides = array<i32>} : memref<16x32xf32, #tpu.memory_space<vmem>>, vector<16x32xf32>,
    %204 = arith.truncf %92 : vector<16x32xf32> to vector<16x32xbf16>
    %cst_137 = arith.constant dense<0.000000e+00> : vector<16x32xf32>
    %205 = tpu.matmul %204, %153, %cst_137 {dimension_numbers = #tpu.dot_dimension_numbers<[1], [0], [0], [1], [0, 0, 1, 1], [], []>} : vector<16x32xbf16>, vector<32x32xbf16>, vector<16x32xf32> -> vector<16x32xf32>
    %206 = arith.truncf %151 : vector<16x8xf32> to vector<16x8xbf16>
    %cst_138 = arith.constant dense<0.000000e+00> : vector<16x32xf32>
    %207 = tpu.matmul %206, %157, %cst_138 {dimension_numbers = #tpu.dot_dimension_numbers<[1], [0], [0], [1], [0, 0, 1, 1], [], []>} : vector<16x8xbf16>, vector<8x32xbf16>, vector<16x32xf32> -> vector<16x32xf32>
    %208 = arith.addf %205, %207 : vector<16x32xf32>
    %c0_139 = arith.constant 0 : index
    %c0_140 = arith.constant 0 : index
    %209 = vector.load %arg54[%c0_139, %c0_140] : memref<16x32xf32, #tpu.memory_space<vmem>>, vector<8x32xf32>
    %c0_141 = arith.constant 0 : index
    %c0_142 = arith.constant 0 : index
    %210 = vector.load %arg53[%c0_141, %c0_142] : memref<16x16xf32, #tpu.memory_space<vmem>>, vector<8x16xf32>
    %211 = vector.shape_cast %209 : vector<8x32xf32> to vector<8x1x32xf32>
    %212 = vector.shape_cast %208 : vector<16x32xf32> to vector<1x16x32xf32>
    %213 = vector.broadcast %211 : vector<8x1x32xf32> to vector<8x16x32xf32>
    %214 = vector.broadcast %212 : vector<1x16x32xf32> to vector<8x16x32xf32>
    %215 = arith.addf %213, %214 : vector<8x16x32xf32>
    %cst_143 = arith.constant dense<0.000000e+00> : vector<8x16xf32>
    %216 = vector.multi_reduction <add>, %215, %cst_143 [2] : vector<8x16x32xf32> to vector<8x16xf32>
    %217 = vector.shape_cast %216 : vector<8x16xf32> to vector<8x16x1xf32>
    %cst_144 = arith.constant 3.200000e+01 : f32
    %218 = vector.broadcast %cst_144 : f32 to vector<8x16x1xf32>
    %219 = arith.divf %217, %218 : vector<8x16x1xf32>
    %220 = vector.broadcast %219 : vector<8x16x1xf32> to vector<8x16x32xf32>
    %221 = arith.subf %215, %220 : vector<8x16x32xf32>
    %222 = arith.mulf %221, %221 : vector<8x16x32xf32>
    %cst_145 = arith.constant dense<0.000000e+00> : vector<8x16xf32>
    %223 = vector.multi_reduction <add>, %222, %cst_145 [2] : vector<8x16x32xf32> to vector<8x16xf32>
    %224 = vector.shape_cast %223 : vector<8x16xf32> to vector<8x16x1xf32>
    %cst_146 = arith.constant 3.200000e+01 : f32
    %225 = vector.broadcast %cst_146 : f32 to vector<8x16x1xf32>
    %226 = arith.divf %224, %225 : vector<8x16x1xf32>
    %cst_147 = arith.constant 9.99999974E-6 : f32
    %227 = vector.broadcast %cst_147 : f32 to vector<8x16x1xf32>
    %228 = arith.addf %226, %227 : vector<8x16x1xf32>
    %229 = math.rsqrt %228 : vector<8x16x1xf32>
    %230 = vector.broadcast %229 : vector<8x16x1xf32> to vector<8x16x32xf32>
    %231 = arith.mulf %221, %230 : vector<8x16x32xf32>
    %232 = vector.shape_cast %18 : vector<1x32xf32> to vector<1x1x32xf32>
    %233 = vector.broadcast %232 : vector<1x1x32xf32> to vector<8x16x32xf32>
    %234 = arith.mulf %231, %233 : vector<8x16x32xf32>
    %235 = vector.shape_cast %19 : vector<1x32xf32> to vector<1x1x32xf32>
    %236 = vector.broadcast %235 : vector<1x1x32xf32> to vector<8x16x32xf32>
    %237 = arith.addf %234, %236 : vector<8x16x32xf32>
    %cst_148 = arith.constant 0.000000e+00 : f32
    %238 = vector.broadcast %cst_148 : f32 to vector<8x16x32xf32>
    %239 = arith.maximumf %237, %238 : vector<8x16x32xf32>
    %240 = vector.shape_cast %210 : vector<8x16xf32> to vector<8x16x1xf32>
    %cst_149 = arith.constant dense<0.000000e+00> : vector<8xf32>
    %241 = vector.multi_reduction <add>, %210, %cst_149 [1] : vector<8x16xf32> to vector<8xf32>
    %242 = vector.shape_cast %241 : vector<8xf32> to vector<8x1xf32>
    %243 = vector.broadcast %240 : vector<8x16x1xf32> to vector<8x16x32xf32>
    %244 = arith.mulf %239, %243 : vector<8x16x32xf32>
    %cst_150 = arith.constant dense<0.000000e+00> : vector<8x32xf32>
    %245 = vector.multi_reduction <add>, %244, %cst_150 [1] : vector<8x16x32xf32> to vector<8x32xf32>
    %cst_151 = arith.constant dense<0.000000e+00> : vector<8x32xf32>
    %246 = tpu.matmul %245, %20, %cst_151 {dimension_numbers = #tpu.dot_dimension_numbers<[1], [0], [0], [1], [0, 0, 1, 1], [], []>} : vector<8x32xf32>, vector<32x32xf32>, vector<8x32xf32> -> vector<8x32xf32>
    %247 = vector.broadcast %242 : vector<8x1xf32> to vector<8x32xf32>
    %248 = vector.broadcast %21 : vector<1x32xf32> to vector<8x32xf32>
    %249 = arith.mulf %247, %248 : vector<8x32xf32>
    %250 = arith.addf %246, %249 : vector<8x32xf32>
    %251 = arith.truncf %239 : vector<8x16x32xf32> to vector<8x16x32xbf16>
    "tpu.trace_start"() <{level = 10 : i32, message = "tnh,thk->tnk"}> : () -> ()
    %cst_152 = arith.constant dense<0.000000e+00> : vector<8x16x32xf32>
    %252 = tpu.matmul %251, %162, %cst_152 {dimension_numbers = #tpu.dot_dimension_numbers<[2], [1], [1], [2], [0, 0, 0, 1, 1, 2], [0], [0]>} : vector<8x16x32xbf16>, vector<8x32x32xbf16>, vector<8x16x32xf32> -> vector<8x16x32xf32>
    %cst_153 = arith.constant 0.000000e+00 : f32
    "tpu.trace_stop"() : () -> ()
    %253 = vector.broadcast %cst_153 : f32 to vector<8x16x1xf32>
    %254 = arith.cmpf ogt, %240, %253 : vector<8x16x1xf32>
    %cst_154 = arith.constant 0xFF800000 : f32
    %255 = vector.shape_cast %254 : vector<8x16x1xi1> to vector<8x16x1xi1>
    %256 = vector.broadcast %255 : vector<8x16x1xi1> to vector<8x16x32xi1>
    %257 = vector.broadcast %cst_154 : f32 to vector<8x16x32xf32>
    %258 = arith.select %256, %252, %257 : vector<8x16x32xi1>, vector<8x16x32xf32>
    %cst_155 = arith.constant dense<0xFF800000> : vector<8x32xf32>
    %259 = vector.multi_reduction <maximumf>, %258, %cst_155 [1] : vector<8x16x32xf32> to vector<8x32xf32>
    %260 = vector.broadcast %21 : vector<1x32xf32> to vector<8x32xf32>
    %261 = arith.addf %259, %260 : vector<8x32xf32>
    %cst_156 = arith.constant 0.000000e+00 : f32
    %262 = vector.broadcast %cst_156 : f32 to vector<8x1xf32>
    %263 = arith.cmpf ogt, %242, %262 : vector<8x1xf32>
    %cst_157 = arith.constant 0.000000e+00 : f32
    %264 = vector.shape_cast %263 : vector<8x1xi1> to vector<8x1xi1>
    %265 = vector.broadcast %264 : vector<8x1xi1> to vector<8x32xi1>
    %266 = vector.broadcast %cst_157 : f32 to vector<8x32xf32>
    %267 = arith.select %265, %261, %266 : vector<8x32xi1>, vector<8x32xf32>
    %c0_158 = arith.constant 0 : index
    %c0_159 = arith.constant 0 : index
    %268 = vector.load %arg55[%c0_158, %c0_159] : memref<16x32xf32, #tpu.memory_space<vmem>>, vector<8x32xf32>
    tpu.vector_store %arg55[%c0_158, %c0_159], %267 {strides = array<i32>} : memref<16x32xf32, #tpu.memory_space<vmem>>, vector<8x32xf32>,
    %c0_160 = arith.constant 0 : index
    %c0_161 = arith.constant 0 : index
    %269 = vector.load %arg56[%c0_160, %c0_161] : memref<16x32xf32, #tpu.memory_space<vmem>>, vector<8x32xf32>
    tpu.vector_store %arg56[%c0_160, %c0_161], %250 {strides = array<i32>} : memref<16x32xf32, #tpu.memory_space<vmem>>, vector<8x32xf32>,
    %c8 = arith.constant 8 : index
    %c0_162 = arith.constant 0 : index
    %270 = vector.load %arg54[%c8, %c0_162] : memref<16x32xf32, #tpu.memory_space<vmem>>, vector<8x32xf32>
    %c8_163 = arith.constant 8 : index
    %c0_164 = arith.constant 0 : index
    %271 = vector.load %arg53[%c8_163, %c0_164] : memref<16x16xf32, #tpu.memory_space<vmem>>, vector<8x16xf32>
    %272 = vector.shape_cast %270 : vector<8x32xf32> to vector<8x1x32xf32>
    %273 = vector.shape_cast %208 : vector<16x32xf32> to vector<1x16x32xf32>
    %274 = vector.broadcast %272 : vector<8x1x32xf32> to vector<8x16x32xf32>
    %275 = vector.broadcast %273 : vector<1x16x32xf32> to vector<8x16x32xf32>
    %276 = arith.addf %274, %275 : vector<8x16x32xf32>
    %cst_165 = arith.constant dense<0.000000e+00> : vector<8x16xf32>
    %277 = vector.multi_reduction <add>, %276, %cst_165 [2] : vector<8x16x32xf32> to vector<8x16xf32>
    %278 = vector.shape_cast %277 : vector<8x16xf32> to vector<8x16x1xf32>
    %cst_166 = arith.constant 3.200000e+01 : f32
    %279 = vector.broadcast %cst_166 : f32 to vector<8x16x1xf32>
    %280 = arith.divf %278, %279 : vector<8x16x1xf32>
    %281 = vector.broadcast %280 : vector<8x16x1xf32> to vector<8x16x32xf32>
    %282 = arith.subf %276, %281 : vector<8x16x32xf32>
    %283 = arith.mulf %282, %282 : vector<8x16x32xf32>
    %cst_167 = arith.constant dense<0.000000e+00> : vector<8x16xf32>
    %284 = vector.multi_reduction <add>, %283, %cst_167 [2] : vector<8x16x32xf32> to vector<8x16xf32>
    %285 = vector.shape_cast %284 : vector<8x16xf32> to vector<8x16x1xf32>
    %cst_168 = arith.constant 3.200000e+01 : f32
    %286 = vector.broadcast %cst_168 : f32 to vector<8x16x1xf32>
    %287 = arith.divf %285, %286 : vector<8x16x1xf32>
    %cst_169 = arith.constant 9.99999974E-6 : f32
    %288 = vector.broadcast %cst_169 : f32 to vector<8x16x1xf32>
    %289 = arith.addf %287, %288 : vector<8x16x1xf32>
    %290 = math.rsqrt %289 : vector<8x16x1xf32>
    %291 = vector.broadcast %290 : vector<8x16x1xf32> to vector<8x16x32xf32>
    %292 = arith.mulf %282, %291 : vector<8x16x32xf32>
    %293 = vector.shape_cast %18 : vector<1x32xf32> to vector<1x1x32xf32>
    %294 = vector.broadcast %293 : vector<1x1x32xf32> to vector<8x16x32xf32>
    %295 = arith.mulf %292, %294 : vector<8x16x32xf32>
    %296 = vector.shape_cast %19 : vector<1x32xf32> to vector<1x1x32xf32>
    %297 = vector.broadcast %296 : vector<1x1x32xf32> to vector<8x16x32xf32>
    %298 = arith.addf %295, %297 : vector<8x16x32xf32>
    %cst_170 = arith.constant 0.000000e+00 : f32
    %299 = vector.broadcast %cst_170 : f32 to vector<8x16x32xf32>
    %300 = arith.maximumf %298, %299 : vector<8x16x32xf32>
    %301 = vector.shape_cast %271 : vector<8x16xf32> to vector<8x16x1xf32>
    %cst_171 = arith.constant dense<0.000000e+00> : vector<8xf32>
    %302 = vector.multi_reduction <add>, %271, %cst_171 [1] : vector<8x16xf32> to vector<8xf32>
    %303 = vector.shape_cast %302 : vector<8xf32> to vector<8x1xf32>
    %304 = vector.broadcast %301 : vector<8x16x1xf32> to vector<8x16x32xf32>
    %305 = arith.mulf %300, %304 : vector<8x16x32xf32>
    %cst_172 = arith.constant dense<0.000000e+00> : vector<8x32xf32>
    %306 = vector.multi_reduction <add>, %305, %cst_172 [1] : vector<8x16x32xf32> to vector<8x32xf32>
    %cst_173 = arith.constant dense<0.000000e+00> : vector<8x32xf32>
    %307 = tpu.matmul %306, %20, %cst_173 {dimension_numbers = #tpu.dot_dimension_numbers<[1], [0], [0], [1], [0, 0, 1, 1], [], []>} : vector<8x32xf32>, vector<32x32xf32>, vector<8x32xf32> -> vector<8x32xf32>
    %308 = vector.broadcast %303 : vector<8x1xf32> to vector<8x32xf32>
    %309 = vector.broadcast %21 : vector<1x32xf32> to vector<8x32xf32>
    %310 = arith.mulf %308, %309 : vector<8x32xf32>
    %311 = arith.addf %307, %310 : vector<8x32xf32>
    %312 = arith.truncf %300 : vector<8x16x32xf32> to vector<8x16x32xbf16>
    "tpu.trace_start"() <{level = 10 : i32, message = "tnh,thk->tnk"}> : () -> ()
    %cst_174 = arith.constant dense<0.000000e+00> : vector<8x16x32xf32>
    %313 = tpu.matmul %312, %162, %cst_174 {dimension_numbers = #tpu.dot_dimension_numbers<[2], [1], [1], [2], [0, 0, 0, 1, 1, 2], [0], [0]>} : vector<8x16x32xbf16>, vector<8x32x32xbf16>, vector<8x16x32xf32> -> vector<8x16x32xf32>
    %cst_175 = arith.constant 0.000000e+00 : f32
    "tpu.trace_stop"() : () -> ()
    %314 = vector.broadcast %cst_175 : f32 to vector<8x16x1xf32>
    %315 = arith.cmpf ogt, %301, %314 : vector<8x16x1xf32>
    %cst_176 = arith.constant 0xFF800000 : f32
    %316 = vector.shape_cast %315 : vector<8x16x1xi1> to vector<8x16x1xi1>
    %317 = vector.broadcast %316 : vector<8x16x1xi1> to vector<8x16x32xi1>
    %318 = vector.broadcast %cst_176 : f32 to vector<8x16x32xf32>
    %319 = arith.select %317, %313, %318 : vector<8x16x32xi1>, vector<8x16x32xf32>
    %cst_177 = arith.constant dense<0xFF800000> : vector<8x32xf32>
    %320 = vector.multi_reduction <maximumf>, %319, %cst_177 [1] : vector<8x16x32xf32> to vector<8x32xf32>
    %321 = vector.broadcast %21 : vector<1x32xf32> to vector<8x32xf32>
    %322 = arith.addf %320, %321 : vector<8x32xf32>
    %cst_178 = arith.constant 0.000000e+00 : f32
    %323 = vector.broadcast %cst_178 : f32 to vector<8x1xf32>
    %324 = arith.cmpf ogt, %303, %323 : vector<8x1xf32>
    %cst_179 = arith.constant 0.000000e+00 : f32
    %325 = vector.shape_cast %324 : vector<8x1xi1> to vector<8x1xi1>
    %326 = vector.broadcast %325 : vector<8x1xi1> to vector<8x32xi1>
    %327 = vector.broadcast %cst_179 : f32 to vector<8x32xf32>
    %328 = arith.select %326, %322, %327 : vector<8x32xi1>, vector<8x32xf32>
    %c8_180 = arith.constant 8 : index
    %c0_181 = arith.constant 0 : index
    %329 = vector.load %arg55[%c8_180, %c0_181] : memref<16x32xf32, #tpu.memory_space<vmem>>, vector<8x32xf32>
    tpu.vector_store %arg55[%c8_180, %c0_181], %328 {strides = array<i32>} : memref<16x32xf32, #tpu.memory_space<vmem>>, vector<8x32xf32>,
    %c8_182 = arith.constant 8 : index
    %c0_183 = arith.constant 0 : index
    %330 = vector.load %arg56[%c8_182, %c0_183] : memref<16x32xf32, #tpu.memory_space<vmem>>, vector<8x32xf32>
    tpu.vector_store %arg56[%c8_182, %c0_183], %311 {strides = array<i32>} : memref<16x32xf32, #tpu.memory_space<vmem>>, vector<8x32xf32>,
    %c0_184 = arith.constant 0 : index
    %c0_185 = arith.constant 0 : index
    %331 = vector.load %arg55[%c0_184, %c0_185] : memref<16x32xf32, #tpu.memory_space<vmem>>, vector<16x32xf32>
    %c0_186 = arith.constant 0 : index
    %c0_187 = arith.constant 0 : index
    %332 = vector.load %arg56[%c0_186, %c0_187] : memref<16x32xf32, #tpu.memory_space<vmem>>, vector<16x32xf32>
    %333 = arith.truncf %92 : vector<16x32xf32> to vector<16x32xbf16>
    %cst_188 = arith.constant dense<0.000000e+00> : vector<16x32xf32>
    %334 = tpu.matmul %333, %164, %cst_188 {dimension_numbers = #tpu.dot_dimension_numbers<[1], [0], [0], [1], [0, 0, 1, 1], [], []>} : vector<16x32xbf16>, vector<32x32xbf16>, vector<16x32xf32> -> vector<16x32xf32>
    %335 = arith.truncf %331 : vector<16x32xf32> to vector<16x32xbf16>
    %cst_189 = arith.constant dense<0.000000e+00> : vector<16x32xf32>
    %336 = tpu.matmul %335, %166, %cst_189 {dimension_numbers = #tpu.dot_dimension_numbers<[1], [0], [0], [1], [0, 0, 1, 1], [], []>} : vector<16x32xbf16>, vector<32x32xbf16>, vector<16x32xf32> -> vector<16x32xf32>
    %337 = arith.addf %334, %336 : vector<16x32xf32>
    %338 = arith.truncf %332 : vector<16x32xf32> to vector<16x32xbf16>
    %cst_190 = arith.constant dense<0.000000e+00> : vector<16x32xf32>
    %339 = tpu.matmul %338, %168, %cst_190 {dimension_numbers = #tpu.dot_dimension_numbers<[1], [0], [0], [1], [0, 0, 1, 1], [], []>} : vector<16x32xbf16>, vector<32x32xbf16>, vector<16x32xf32> -> vector<16x32xf32>
    %340 = arith.addf %337, %339 : vector<16x32xf32>
    %341 = vector.broadcast %23 : vector<1x32xf32> to vector<16x32xf32>
    %342 = arith.addf %340, %341 : vector<16x32xf32>
    %cst_191 = arith.constant dense<0.000000e+00> : vector<16xf32>
    %343 = vector.multi_reduction <add>, %342, %cst_191 [1] : vector<16x32xf32> to vector<16xf32>
    %344 = vector.shape_cast %343 : vector<16xf32> to vector<16x1xf32>
    %cst_192 = arith.constant 3.200000e+01 : f32
    %345 = vector.broadcast %cst_192 : f32 to vector<16x1xf32>
    %346 = arith.divf %344, %345 : vector<16x1xf32>
    %347 = vector.broadcast %346 : vector<16x1xf32> to vector<16x32xf32>
    %348 = arith.subf %342, %347 : vector<16x32xf32>
    %349 = arith.mulf %348, %348 : vector<16x32xf32>
    %cst_193 = arith.constant dense<0.000000e+00> : vector<16xf32>
    %350 = vector.multi_reduction <add>, %349, %cst_193 [1] : vector<16x32xf32> to vector<16xf32>
    %351 = vector.shape_cast %350 : vector<16xf32> to vector<16x1xf32>
    %cst_194 = arith.constant 3.200000e+01 : f32
    %352 = vector.broadcast %cst_194 : f32 to vector<16x1xf32>
    %353 = arith.divf %351, %352 : vector<16x1xf32>
    %cst_195 = arith.constant 9.99999974E-6 : f32
    %354 = vector.broadcast %cst_195 : f32 to vector<16x1xf32>
    %355 = arith.addf %353, %354 : vector<16x1xf32>
    %356 = math.rsqrt %355 : vector<16x1xf32>
    %357 = vector.broadcast %356 : vector<16x1xf32> to vector<16x32xf32>
    %358 = arith.mulf %348, %357 : vector<16x32xf32>
    %359 = vector.broadcast %24 : vector<1x32xf32> to vector<16x32xf32>
    %360 = arith.mulf %358, %359 : vector<16x32xf32>
    %361 = vector.broadcast %25 : vector<1x32xf32> to vector<16x32xf32>
    %362 = arith.addf %360, %361 : vector<16x32xf32>
    %cst_196 = arith.constant 0.000000e+00 : f32
    %363 = vector.broadcast %cst_196 : f32 to vector<16x32xf32>
    %364 = arith.maximumf %362, %363 : vector<16x32xf32>
    %365 = arith.truncf %364 : vector<16x32xf32> to vector<16x32xbf16>
    %cst_197 = arith.constant dense<0.000000e+00> : vector<16x32xf32>
    %366 = tpu.matmul %365, %169, %cst_197 {dimension_numbers = #tpu.dot_dimension_numbers<[1], [0], [0], [1], [0, 0, 1, 1], [], []>} : vector<16x32xbf16>, vector<32x32xbf16>, vector<16x32xf32> -> vector<16x32xf32>
    %367 = vector.broadcast %27 : vector<1x32xf32> to vector<16x32xf32>
    %368 = arith.addf %366, %367 : vector<16x32xf32>
    %369 = arith.truncf %151 : vector<16x8xf32> to vector<16x8xbf16>
    %cst_198 = arith.constant dense<0.000000e+00> : vector<16x32xf32>
    %370 = tpu.matmul %369, %171, %cst_198 {dimension_numbers = #tpu.dot_dimension_numbers<[1], [0], [0], [1], [0, 0, 1, 1], [], []>} : vector<16x8xbf16>, vector<8x32xbf16>, vector<16x32xf32> -> vector<16x32xf32>
    %371 = arith.truncf %331 : vector<16x32xf32> to vector<16x32xbf16>
    %cst_199 = arith.constant dense<0.000000e+00> : vector<16x32xf32>
    %372 = tpu.matmul %371, %173, %cst_199 {dimension_numbers = #tpu.dot_dimension_numbers<[1], [0], [0], [1], [0, 0, 1, 1], [], []>} : vector<16x32xbf16>, vector<32x32xbf16>, vector<16x32xf32> -> vector<16x32xf32>
    %373 = arith.addf %370, %372 : vector<16x32xf32>
    %374 = arith.truncf %332 : vector<16x32xf32> to vector<16x32xbf16>
    %cst_200 = arith.constant dense<0.000000e+00> : vector<16x32xf32>
    %375 = tpu.matmul %374, %175, %cst_200 {dimension_numbers = #tpu.dot_dimension_numbers<[1], [0], [0], [1], [0, 0, 1, 1], [], []>} : vector<16x32xbf16>, vector<32x32xbf16>, vector<16x32xf32> -> vector<16x32xf32>
    %376 = arith.addf %373, %375 : vector<16x32xf32>
    %377 = vector.broadcast %29 : vector<1x32xf32> to vector<16x32xf32>
    %378 = arith.addf %376, %377 : vector<16x32xf32>
    %cst_201 = arith.constant dense<0.000000e+00> : vector<16xf32>
    %379 = vector.multi_reduction <add>, %378, %cst_201 [1] : vector<16x32xf32> to vector<16xf32>
    %380 = vector.shape_cast %379 : vector<16xf32> to vector<16x1xf32>
    %cst_202 = arith.constant 3.200000e+01 : f32
    %381 = vector.broadcast %cst_202 : f32 to vector<16x1xf32>
    %382 = arith.divf %380, %381 : vector<16x1xf32>
    %383 = vector.broadcast %382 : vector<16x1xf32> to vector<16x32xf32>
    %384 = arith.subf %378, %383 : vector<16x32xf32>
    %385 = arith.mulf %384, %384 : vector<16x32xf32>
    %cst_203 = arith.constant dense<0.000000e+00> : vector<16xf32>
    %386 = vector.multi_reduction <add>, %385, %cst_203 [1] : vector<16x32xf32> to vector<16xf32>
    %387 = vector.shape_cast %386 : vector<16xf32> to vector<16x1xf32>
    %cst_204 = arith.constant 3.200000e+01 : f32
    %388 = vector.broadcast %cst_204 : f32 to vector<16x1xf32>
    %389 = arith.divf %387, %388 : vector<16x1xf32>
    %cst_205 = arith.constant 9.99999974E-6 : f32
    %390 = vector.broadcast %cst_205 : f32 to vector<16x1xf32>
    %391 = arith.addf %389, %390 : vector<16x1xf32>
    %392 = math.rsqrt %391 : vector<16x1xf32>
    %393 = vector.broadcast %392 : vector<16x1xf32> to vector<16x32xf32>
    %394 = arith.mulf %384, %393 : vector<16x32xf32>
    %395 = vector.broadcast %30 : vector<1x32xf32> to vector<16x32xf32>
    %396 = arith.mulf %394, %395 : vector<16x32xf32>
    %397 = vector.broadcast %31 : vector<1x32xf32> to vector<16x32xf32>
    %398 = arith.addf %396, %397 : vector<16x32xf32>
    %cst_206 = arith.constant 0.000000e+00 : f32
    %399 = vector.broadcast %cst_206 : f32 to vector<16x32xf32>
    %400 = arith.maximumf %398, %399 : vector<16x32xf32>
    %401 = arith.truncf %400 : vector<16x32xf32> to vector<16x32xbf16>
    %cst_207 = arith.constant dense<0.000000e+00> : vector<16x32xf32>
    %402 = tpu.matmul %401, %176, %cst_207 {dimension_numbers = #tpu.dot_dimension_numbers<[1], [0], [0], [1], [0, 0, 1, 1], [], []>} : vector<16x32xbf16>, vector<32x32xbf16>, vector<16x32xf32> -> vector<16x32xf32>
    %403 = vector.broadcast %33 : vector<1x32xf32> to vector<16x32xf32>
    %404 = arith.addf %402, %403 : vector<16x32xf32>
    %cst_208 = arith.constant dense<0.000000e+00> : vector<16xf32>
    %405 = vector.multi_reduction <add>, %404, %cst_208 [1] : vector<16x32xf32> to vector<16xf32>
    %406 = vector.shape_cast %405 : vector<16xf32> to vector<16x1xf32>
    %cst_209 = arith.constant 3.200000e+01 : f32
    %407 = vector.broadcast %cst_209 : f32 to vector<16x1xf32>
    %408 = arith.divf %406, %407 : vector<16x1xf32>
    %409 = vector.broadcast %408 : vector<16x1xf32> to vector<16x32xf32>
    %410 = arith.subf %404, %409 : vector<16x32xf32>
    %411 = arith.mulf %410, %410 : vector<16x32xf32>
    %cst_210 = arith.constant dense<0.000000e+00> : vector<16xf32>
    %412 = vector.multi_reduction <add>, %411, %cst_210 [1] : vector<16x32xf32> to vector<16xf32>
    %413 = vector.shape_cast %412 : vector<16xf32> to vector<16x1xf32>
    %cst_211 = arith.constant 3.200000e+01 : f32
    %414 = vector.broadcast %cst_211 : f32 to vector<16x1xf32>
    %415 = arith.divf %413, %414 : vector<16x1xf32>
    %cst_212 = arith.constant 9.99999974E-6 : f32
    %416 = vector.broadcast %cst_212 : f32 to vector<16x1xf32>
    %417 = arith.addf %415, %416 : vector<16x1xf32>
    %418 = math.rsqrt %417 : vector<16x1xf32>
    %419 = vector.broadcast %418 : vector<16x1xf32> to vector<16x32xf32>
    %420 = arith.mulf %410, %419 : vector<16x32xf32>
    %421 = vector.broadcast %34 : vector<1x32xf32> to vector<16x32xf32>
    %422 = arith.mulf %420, %421 : vector<16x32xf32>
    %423 = vector.broadcast %35 : vector<1x32xf32> to vector<16x32xf32>
    %424 = arith.addf %422, %423 : vector<16x32xf32>
    %cst_213 = arith.constant 0.000000e+00 : f32
    %425 = vector.broadcast %cst_213 : f32 to vector<16x32xf32>
    %426 = arith.maximumf %424, %425 : vector<16x32xf32>
    %427 = arith.truncf %426 : vector<16x32xf32> to vector<16x32xbf16>
    %cst_214 = arith.constant dense<0.000000e+00> : vector<16x8xf32>
    %428 = tpu.matmul %427, %177, %cst_214 {dimension_numbers = #tpu.dot_dimension_numbers<[1], [0], [0], [1], [0, 0, 1, 1], [], []>} : vector<16x32xbf16>, vector<32x8xbf16>, vector<16x8xf32> -> vector<16x8xf32>
    %429 = vector.broadcast %37 : vector<1x8xf32> to vector<16x8xf32>
    %430 = arith.addf %428, %429 : vector<16x8xf32>
    %431 = arith.addf %368, %92 : vector<16x32xf32>
    %432 = arith.addf %151, %430 : vector<16x8xf32>
    %433 = arith.mulf %432, %432 : vector<16x8xf32>
    %cst_215 = arith.constant dense<0.000000e+00> : vector<16xf32>
    %434 = vector.multi_reduction <add>, %433, %cst_215 [1] : vector<16x8xf32> to vector<16xf32>
    %435 = vector.shape_cast %434 : vector<16xf32> to vector<16x1xf32>
    %436 = math.sqrt %435 : vector<16x1xf32>
    %cst_216 = arith.constant 9.99999996E-13 : f32
    %437 = vector.broadcast %cst_216 : f32 to vector<16x1xf32>
    %438 = arith.maximumf %436, %437 : vector<16x1xf32>
    %439 = vector.broadcast %438 : vector<16x1xf32> to vector<16x8xf32>
    %440 = arith.divf %432, %439 : vector<16x8xf32>
    %441 = arith.mulf %440, %440 : vector<16x8xf32>
    %cst_217 = arith.constant dense<0.000000e+00> : vector<16xf32>
    %442 = vector.multi_reduction <add>, %441, %cst_217 [1] : vector<16x8xf32> to vector<16xf32>
    %443 = vector.shape_cast %442 : vector<16xf32> to vector<16x1xf32>
    %cst_218 = arith.constant dense<0.000000e+00> : vector<1x16xf32>
    %444 = tpu.matmul %59, %441, %cst_218 {dimension_numbers = #tpu.dot_dimension_numbers<[1], [1], [0], [0], [0, 0, 1, 0], [], []>} : vector<1x8xf32>, vector<16x8xf32>, vector<1x16xf32> -> vector<1x16xf32>
    %cst_219 = arith.constant dense<0.000000e+00> : vector<16x16xf32>
    %445 = tpu.matmul %440, %440, %cst_219 {dimension_numbers = #tpu.dot_dimension_numbers<[1], [1], [0], [0], [0, 0, 1, 0], [], []>} : vector<16x8xf32>, vector<16x8xf32>, vector<16x16xf32> -> vector<16x16xf32>
    %446 = vector.broadcast %443 : vector<16x1xf32> to vector<16x16xf32>
    %447 = vector.broadcast %444 : vector<1x16xf32> to vector<16x16xf32>
    %448 = arith.addf %446, %447 : vector<16x16xf32>
    %cst_220 = arith.constant 2.000000e+00 : f32
    %449 = vector.broadcast %cst_220 : f32 to vector<16x16xf32>
    %450 = arith.mulf %449, %445 : vector<16x16xf32>
    %451 = arith.subf %448, %450 : vector<16x16xf32>
    %cst_221 = arith.constant 0.000000e+00 : f32
    %452 = vector.broadcast %cst_221 : f32 to vector<16x16xf32>
    %453 = arith.maximumf %451, %452 : vector<16x16xf32>
    %cst_222 = arith.constant 1.000000e+00 : f32
    %454 = vector.broadcast %cst_222 : f32 to vector<16x16xf32>
    %455 = arith.cmpf ole, %453, %454 : vector<16x16xf32>
    %cst_223 = arith.constant 0.000000e+00 : f32
    %456 = vector.broadcast %cst_223 : f32 to vector<16x16xf32>
    %457 = arith.select %455, %58, %456 : vector<16x16xi1>, vector<16x16xf32>
    %c0_224 = arith.constant 0 : index
    %c0_225 = arith.constant 0 : index
    %458 = vector.load %arg53[%c0_224, %c0_225] : memref<16x16xf32, #tpu.memory_space<vmem>>, vector<16x16xf32>
    tpu.vector_store %arg53[%c0_224, %c0_225], %457 {strides = array<i32>} : memref<16x16xf32, #tpu.memory_space<vmem>>, vector<16x16xf32>,
    %459 = arith.truncf %431 : vector<16x32xf32> to vector<16x32xbf16>
    %cst_226 = arith.constant dense<0.000000e+00> : vector<16x32xf32>
    %460 = tpu.matmul %459, %155, %cst_226 {dimension_numbers = #tpu.dot_dimension_numbers<[1], [0], [0], [1], [0, 0, 1, 1], [], []>} : vector<16x32xbf16>, vector<32x32xbf16>, vector<16x32xf32> -> vector<16x32xf32>
    %461 = arith.truncf %440 : vector<16x8xf32> to vector<16x8xbf16>
    %cst_227 = arith.constant dense<0.000000e+00> : vector<16x32xf32>
    %462 = tpu.matmul %461, %159, %cst_227 {dimension_numbers = #tpu.dot_dimension_numbers<[1], [0], [0], [1], [0, 0, 1, 1], [], []>} : vector<16x8xbf16>, vector<8x32xbf16>, vector<16x32xf32> -> vector<16x32xf32>
    %463 = arith.addf %460, %462 : vector<16x32xf32>
    %464 = vector.broadcast %17 : vector<1x32xf32> to vector<16x32xf32>
    %465 = arith.addf %463, %464 : vector<16x32xf32>
    %c0_228 = arith.constant 0 : index
    %c0_229 = arith.constant 0 : index
    %466 = vector.load %arg54[%c0_228, %c0_229] : memref<16x32xf32, #tpu.memory_space<vmem>>, vector<16x32xf32>
    tpu.vector_store %arg54[%c0_228, %c0_229], %465 {strides = array<i32>} : memref<16x32xf32, #tpu.memory_space<vmem>>, vector<16x32xf32>,
    %467 = arith.truncf %431 : vector<16x32xf32> to vector<16x32xbf16>
    %cst_230 = arith.constant dense<0.000000e+00> : vector<16x32xf32>
    %468 = tpu.matmul %467, %153, %cst_230 {dimension_numbers = #tpu.dot_dimension_numbers<[1], [0], [0], [1], [0, 0, 1, 1], [], []>} : vector<16x32xbf16>, vector<32x32xbf16>, vector<16x32xf32> -> vector<16x32xf32>
    %469 = arith.truncf %440 : vector<16x8xf32> to vector<16x8xbf16>
    %cst_231 = arith.constant dense<0.000000e+00> : vector<16x32xf32>
    %470 = tpu.matmul %469, %157, %cst_231 {dimension_numbers = #tpu.dot_dimension_numbers<[1], [0], [0], [1], [0, 0, 1, 1], [], []>} : vector<16x8xbf16>, vector<8x32xbf16>, vector<16x32xf32> -> vector<16x32xf32>
    %471 = arith.addf %468, %470 : vector<16x32xf32>
    %c0_232 = arith.constant 0 : index
    %c0_233 = arith.constant 0 : index
    %472 = vector.load %arg54[%c0_232, %c0_233] : memref<16x32xf32, #tpu.memory_space<vmem>>, vector<8x32xf32>
    %c0_234 = arith.constant 0 : index
    %c0_235 = arith.constant 0 : index
    %473 = vector.load %arg53[%c0_234, %c0_235] : memref<16x16xf32, #tpu.memory_space<vmem>>, vector<8x16xf32>
    %474 = vector.shape_cast %472 : vector<8x32xf32> to vector<8x1x32xf32>
    %475 = vector.shape_cast %471 : vector<16x32xf32> to vector<1x16x32xf32>
    %476 = vector.broadcast %474 : vector<8x1x32xf32> to vector<8x16x32xf32>
    %477 = vector.broadcast %475 : vector<1x16x32xf32> to vector<8x16x32xf32>
    %478 = arith.addf %476, %477 : vector<8x16x32xf32>
    %cst_236 = arith.constant dense<0.000000e+00> : vector<8x16xf32>
    %479 = vector.multi_reduction <add>, %478, %cst_236 [2] : vector<8x16x32xf32> to vector<8x16xf32>
    %480 = vector.shape_cast %479 : vector<8x16xf32> to vector<8x16x1xf32>
    %cst_237 = arith.constant 3.200000e+01 : f32
    %481 = vector.broadcast %cst_237 : f32 to vector<8x16x1xf32>
    %482 = arith.divf %480, %481 : vector<8x16x1xf32>
    %483 = vector.broadcast %482 : vector<8x16x1xf32> to vector<8x16x32xf32>
    %484 = arith.subf %478, %483 : vector<8x16x32xf32>
    %485 = arith.mulf %484, %484 : vector<8x16x32xf32>
    %cst_238 = arith.constant dense<0.000000e+00> : vector<8x16xf32>
    %486 = vector.multi_reduction <add>, %485, %cst_238 [2] : vector<8x16x32xf32> to vector<8x16xf32>
    %487 = vector.shape_cast %486 : vector<8x16xf32> to vector<8x16x1xf32>
    %cst_239 = arith.constant 3.200000e+01 : f32
    %488 = vector.broadcast %cst_239 : f32 to vector<8x16x1xf32>
    %489 = arith.divf %487, %488 : vector<8x16x1xf32>
    %cst_240 = arith.constant 9.99999974E-6 : f32
    %490 = vector.broadcast %cst_240 : f32 to vector<8x16x1xf32>
    %491 = arith.addf %489, %490 : vector<8x16x1xf32>
    %492 = math.rsqrt %491 : vector<8x16x1xf32>
    %493 = vector.broadcast %492 : vector<8x16x1xf32> to vector<8x16x32xf32>
    %494 = arith.mulf %484, %493 : vector<8x16x32xf32>
    %495 = vector.shape_cast %18 : vector<1x32xf32> to vector<1x1x32xf32>
    %496 = vector.broadcast %495 : vector<1x1x32xf32> to vector<8x16x32xf32>
    %497 = arith.mulf %494, %496 : vector<8x16x32xf32>
    %498 = vector.shape_cast %19 : vector<1x32xf32> to vector<1x1x32xf32>
    %499 = vector.broadcast %498 : vector<1x1x32xf32> to vector<8x16x32xf32>
    %500 = arith.addf %497, %499 : vector<8x16x32xf32>
    %cst_241 = arith.constant 0.000000e+00 : f32
    %501 = vector.broadcast %cst_241 : f32 to vector<8x16x32xf32>
    %502 = arith.maximumf %500, %501 : vector<8x16x32xf32>
    %503 = vector.shape_cast %473 : vector<8x16xf32> to vector<8x16x1xf32>
    %cst_242 = arith.constant dense<0.000000e+00> : vector<8xf32>
    %504 = vector.multi_reduction <add>, %473, %cst_242 [1] : vector<8x16xf32> to vector<8xf32>
    %505 = vector.shape_cast %504 : vector<8xf32> to vector<8x1xf32>
    %506 = vector.broadcast %503 : vector<8x16x1xf32> to vector<8x16x32xf32>
    %507 = arith.mulf %502, %506 : vector<8x16x32xf32>
    %cst_243 = arith.constant dense<0.000000e+00> : vector<8x32xf32>
    %508 = vector.multi_reduction <add>, %507, %cst_243 [1] : vector<8x16x32xf32> to vector<8x32xf32>
    %cst_244 = arith.constant dense<0.000000e+00> : vector<8x32xf32>
    %509 = tpu.matmul %508, %20, %cst_244 {dimension_numbers = #tpu.dot_dimension_numbers<[1], [0], [0], [1], [0, 0, 1, 1], [], []>} : vector<8x32xf32>, vector<32x32xf32>, vector<8x32xf32> -> vector<8x32xf32>
    %510 = vector.broadcast %505 : vector<8x1xf32> to vector<8x32xf32>
    %511 = vector.broadcast %21 : vector<1x32xf32> to vector<8x32xf32>
    %512 = arith.mulf %510, %511 : vector<8x32xf32>
    %513 = arith.addf %509, %512 : vector<8x32xf32>
    %514 = arith.truncf %502 : vector<8x16x32xf32> to vector<8x16x32xbf16>
    "tpu.trace_start"() <{level = 10 : i32, message = "tnh,thk->tnk"}> : () -> ()
    %cst_245 = arith.constant dense<0.000000e+00> : vector<8x16x32xf32>
    %515 = tpu.matmul %514, %162, %cst_245 {dimension_numbers = #tpu.dot_dimension_numbers<[2], [1], [1], [2], [0, 0, 0, 1, 1, 2], [0], [0]>} : vector<8x16x32xbf16>, vector<8x32x32xbf16>, vector<8x16x32xf32> -> vector<8x16x32xf32>
    %cst_246 = arith.constant 0.000000e+00 : f32
    "tpu.trace_stop"() : () -> ()
    %516 = vector.broadcast %cst_246 : f32 to vector<8x16x1xf32>
    %517 = arith.cmpf ogt, %503, %516 : vector<8x16x1xf32>
    %cst_247 = arith.constant 0xFF800000 : f32
    %518 = vector.shape_cast %517 : vector<8x16x1xi1> to vector<8x16x1xi1>
    %519 = vector.broadcast %518 : vector<8x16x1xi1> to vector<8x16x32xi1>
    %520 = vector.broadcast %cst_247 : f32 to vector<8x16x32xf32>
    %521 = arith.select %519, %515, %520 : vector<8x16x32xi1>, vector<8x16x32xf32>
    %cst_248 = arith.constant dense<0xFF800000> : vector<8x32xf32>
    %522 = vector.multi_reduction <maximumf>, %521, %cst_248 [1] : vector<8x16x32xf32> to vector<8x32xf32>
    %523 = vector.broadcast %21 : vector<1x32xf32> to vector<8x32xf32>
    %524 = arith.addf %522, %523 : vector<8x32xf32>
    %cst_249 = arith.constant 0.000000e+00 : f32
    %525 = vector.broadcast %cst_249 : f32 to vector<8x1xf32>
    %526 = arith.cmpf ogt, %505, %525 : vector<8x1xf32>
    %cst_250 = arith.constant 0.000000e+00 : f32
    %527 = vector.shape_cast %526 : vector<8x1xi1> to vector<8x1xi1>
    %528 = vector.broadcast %527 : vector<8x1xi1> to vector<8x32xi1>
    %529 = vector.broadcast %cst_250 : f32 to vector<8x32xf32>
    %530 = arith.select %528, %524, %529 : vector<8x32xi1>, vector<8x32xf32>
    %c0_251 = arith.constant 0 : index
    %c0_252 = arith.constant 0 : index
    %531 = vector.load %arg55[%c0_251, %c0_252] : memref<16x32xf32, #tpu.memory_space<vmem>>, vector<8x32xf32>
    tpu.vector_store %arg55[%c0_251, %c0_252], %530 {strides = array<i32>} : memref<16x32xf32, #tpu.memory_space<vmem>>, vector<8x32xf32>,
    %c0_253 = arith.constant 0 : index
    %c0_254 = arith.constant 0 : index
    %532 = vector.load %arg56[%c0_253, %c0_254] : memref<16x32xf32, #tpu.memory_space<vmem>>, vector<8x32xf32>
    tpu.vector_store %arg56[%c0_253, %c0_254], %513 {strides = array<i32>} : memref<16x32xf32, #tpu.memory_space<vmem>>, vector<8x32xf32>,
    %c8_255 = arith.constant 8 : index
    %c0_256 = arith.constant 0 : index
    %533 = vector.load %arg54[%c8_255, %c0_256] : memref<16x32xf32, #tpu.memory_space<vmem>>, vector<8x32xf32>
    %c8_257 = arith.constant 8 : index
    %c0_258 = arith.constant 0 : index
    %534 = vector.load %arg53[%c8_257, %c0_258] : memref<16x16xf32, #tpu.memory_space<vmem>>, vector<8x16xf32>
    %535 = vector.shape_cast %533 : vector<8x32xf32> to vector<8x1x32xf32>
    %536 = vector.shape_cast %471 : vector<16x32xf32> to vector<1x16x32xf32>
    %537 = vector.broadcast %535 : vector<8x1x32xf32> to vector<8x16x32xf32>
    %538 = vector.broadcast %536 : vector<1x16x32xf32> to vector<8x16x32xf32>
    %539 = arith.addf %537, %538 : vector<8x16x32xf32>
    %cst_259 = arith.constant dense<0.000000e+00> : vector<8x16xf32>
    %540 = vector.multi_reduction <add>, %539, %cst_259 [2] : vector<8x16x32xf32> to vector<8x16xf32>
    %541 = vector.shape_cast %540 : vector<8x16xf32> to vector<8x16x1xf32>
    %cst_260 = arith.constant 3.200000e+01 : f32
    %542 = vector.broadcast %cst_260 : f32 to vector<8x16x1xf32>
    %543 = arith.divf %541, %542 : vector<8x16x1xf32>
    %544 = vector.broadcast %543 : vector<8x16x1xf32> to vector<8x16x32xf32>
    %545 = arith.subf %539, %544 : vector<8x16x32xf32>
    %546 = arith.mulf %545, %545 : vector<8x16x32xf32>
    %cst_261 = arith.constant dense<0.000000e+00> : vector<8x16xf32>
    %547 = vector.multi_reduction <add>, %546, %cst_261 [2] : vector<8x16x32xf32> to vector<8x16xf32>
    %548 = vector.shape_cast %547 : vector<8x16xf32> to vector<8x16x1xf32>
    %cst_262 = arith.constant 3.200000e+01 : f32
    %549 = vector.broadcast %cst_262 : f32 to vector<8x16x1xf32>
    %550 = arith.divf %548, %549 : vector<8x16x1xf32>
    %cst_263 = arith.constant 9.99999974E-6 : f32
    %551 = vector.broadcast %cst_263 : f32 to vector<8x16x1xf32>
    %552 = arith.addf %550, %551 : vector<8x16x1xf32>
    %553 = math.rsqrt %552 : vector<8x16x1xf32>
    %554 = vector.broadcast %553 : vector<8x16x1xf32> to vector<8x16x32xf32>
    %555 = arith.mulf %545, %554 : vector<8x16x32xf32>
    %556 = vector.shape_cast %18 : vector<1x32xf32> to vector<1x1x32xf32>
    %557 = vector.broadcast %556 : vector<1x1x32xf32> to vector<8x16x32xf32>
    %558 = arith.mulf %555, %557 : vector<8x16x32xf32>
    %559 = vector.shape_cast %19 : vector<1x32xf32> to vector<1x1x32xf32>
    %560 = vector.broadcast %559 : vector<1x1x32xf32> to vector<8x16x32xf32>
    %561 = arith.addf %558, %560 : vector<8x16x32xf32>
    %cst_264 = arith.constant 0.000000e+00 : f32
    %562 = vector.broadcast %cst_264 : f32 to vector<8x16x32xf32>
    %563 = arith.maximumf %561, %562 : vector<8x16x32xf32>
    %564 = vector.shape_cast %534 : vector<8x16xf32> to vector<8x16x1xf32>
    %cst_265 = arith.constant dense<0.000000e+00> : vector<8xf32>
    %565 = vector.multi_reduction <add>, %534, %cst_265 [1] : vector<8x16xf32> to vector<8xf32>
    %566 = vector.shape_cast %565 : vector<8xf32> to vector<8x1xf32>
    %567 = vector.broadcast %564 : vector<8x16x1xf32> to vector<8x16x32xf32>
    %568 = arith.mulf %563, %567 : vector<8x16x32xf32>
    %cst_266 = arith.constant dense<0.000000e+00> : vector<8x32xf32>
    %569 = vector.multi_reduction <add>, %568, %cst_266 [1] : vector<8x16x32xf32> to vector<8x32xf32>
    %cst_267 = arith.constant dense<0.000000e+00> : vector<8x32xf32>
    %570 = tpu.matmul %569, %20, %cst_267 {dimension_numbers = #tpu.dot_dimension_numbers<[1], [0], [0], [1], [0, 0, 1, 1], [], []>} : vector<8x32xf32>, vector<32x32xf32>, vector<8x32xf32> -> vector<8x32xf32>
    %571 = vector.broadcast %566 : vector<8x1xf32> to vector<8x32xf32>
    %572 = vector.broadcast %21 : vector<1x32xf32> to vector<8x32xf32>
    %573 = arith.mulf %571, %572 : vector<8x32xf32>
    %574 = arith.addf %570, %573 : vector<8x32xf32>
    %575 = arith.truncf %563 : vector<8x16x32xf32> to vector<8x16x32xbf16>
    "tpu.trace_start"() <{level = 10 : i32, message = "tnh,thk->tnk"}> : () -> ()
    %cst_268 = arith.constant dense<0.000000e+00> : vector<8x16x32xf32>
    %576 = tpu.matmul %575, %162, %cst_268 {dimension_numbers = #tpu.dot_dimension_numbers<[2], [1], [1], [2], [0, 0, 0, 1, 1, 2], [0], [0]>} : vector<8x16x32xbf16>, vector<8x32x32xbf16>, vector<8x16x32xf32> -> vector<8x16x32xf32>
    %cst_269 = arith.constant 0.000000e+00 : f32
    "tpu.trace_stop"() : () -> ()
    %577 = vector.broadcast %cst_269 : f32 to vector<8x16x1xf32>
    %578 = arith.cmpf ogt, %564, %577 : vector<8x16x1xf32>
    %cst_270 = arith.constant 0xFF800000 : f32
    %579 = vector.shape_cast %578 : vector<8x16x1xi1> to vector<8x16x1xi1>
    %580 = vector.broadcast %579 : vector<8x16x1xi1> to vector<8x16x32xi1>
    %581 = vector.broadcast %cst_270 : f32 to vector<8x16x32xf32>
    %582 = arith.select %580, %576, %581 : vector<8x16x32xi1>, vector<8x16x32xf32>
    %cst_271 = arith.constant dense<0xFF800000> : vector<8x32xf32>
    %583 = vector.multi_reduction <maximumf>, %582, %cst_271 [1] : vector<8x16x32xf32> to vector<8x32xf32>
    %584 = vector.broadcast %21 : vector<1x32xf32> to vector<8x32xf32>
    %585 = arith.addf %583, %584 : vector<8x32xf32>
    %cst_272 = arith.constant 0.000000e+00 : f32
    %586 = vector.broadcast %cst_272 : f32 to vector<8x1xf32>
    %587 = arith.cmpf ogt, %566, %586 : vector<8x1xf32>
    %cst_273 = arith.constant 0.000000e+00 : f32
    %588 = vector.shape_cast %587 : vector<8x1xi1> to vector<8x1xi1>
    %589 = vector.broadcast %588 : vector<8x1xi1> to vector<8x32xi1>
    %590 = vector.broadcast %cst_273 : f32 to vector<8x32xf32>
    %591 = arith.select %589, %585, %590 : vector<8x32xi1>, vector<8x32xf32>
    %c8_274 = arith.constant 8 : index
    %c0_275 = arith.constant 0 : index
    %592 = vector.load %arg55[%c8_274, %c0_275] : memref<16x32xf32, #tpu.memory_space<vmem>>, vector<8x32xf32>
    tpu.vector_store %arg55[%c8_274, %c0_275], %591 {strides = array<i32>} : memref<16x32xf32, #tpu.memory_space<vmem>>, vector<8x32xf32>,
    %c8_276 = arith.constant 8 : index
    %c0_277 = arith.constant 0 : index
    %593 = vector.load %arg56[%c8_276, %c0_277] : memref<16x32xf32, #tpu.memory_space<vmem>>, vector<8x32xf32>
    tpu.vector_store %arg56[%c8_276, %c0_277], %574 {strides = array<i32>} : memref<16x32xf32, #tpu.memory_space<vmem>>, vector<8x32xf32>,
    %c0_278 = arith.constant 0 : index
    %c0_279 = arith.constant 0 : index
    %594 = vector.load %arg55[%c0_278, %c0_279] : memref<16x32xf32, #tpu.memory_space<vmem>>, vector<16x32xf32>
    %c0_280 = arith.constant 0 : index
    %c0_281 = arith.constant 0 : index
    %595 = vector.load %arg56[%c0_280, %c0_281] : memref<16x32xf32, #tpu.memory_space<vmem>>, vector<16x32xf32>
    %596 = arith.truncf %431 : vector<16x32xf32> to vector<16x32xbf16>
    %cst_282 = arith.constant dense<0.000000e+00> : vector<16x32xf32>
    %597 = tpu.matmul %596, %164, %cst_282 {dimension_numbers = #tpu.dot_dimension_numbers<[1], [0], [0], [1], [0, 0, 1, 1], [], []>} : vector<16x32xbf16>, vector<32x32xbf16>, vector<16x32xf32> -> vector<16x32xf32>
    %598 = arith.truncf %594 : vector<16x32xf32> to vector<16x32xbf16>
    %cst_283 = arith.constant dense<0.000000e+00> : vector<16x32xf32>
    %599 = tpu.matmul %598, %166, %cst_283 {dimension_numbers = #tpu.dot_dimension_numbers<[1], [0], [0], [1], [0, 0, 1, 1], [], []>} : vector<16x32xbf16>, vector<32x32xbf16>, vector<16x32xf32> -> vector<16x32xf32>
    %600 = arith.addf %597, %599 : vector<16x32xf32>
    %601 = arith.truncf %595 : vector<16x32xf32> to vector<16x32xbf16>
    %cst_284 = arith.constant dense<0.000000e+00> : vector<16x32xf32>
    %602 = tpu.matmul %601, %168, %cst_284 {dimension_numbers = #tpu.dot_dimension_numbers<[1], [0], [0], [1], [0, 0, 1, 1], [], []>} : vector<16x32xbf16>, vector<32x32xbf16>, vector<16x32xf32> -> vector<16x32xf32>
    %603 = arith.addf %600, %602 : vector<16x32xf32>
    %604 = vector.broadcast %23 : vector<1x32xf32> to vector<16x32xf32>
    %605 = arith.addf %603, %604 : vector<16x32xf32>
    %cst_285 = arith.constant dense<0.000000e+00> : vector<16xf32>
    %606 = vector.multi_reduction <add>, %605, %cst_285 [1] : vector<16x32xf32> to vector<16xf32>
    %607 = vector.shape_cast %606 : vector<16xf32> to vector<16x1xf32>
    %cst_286 = arith.constant 3.200000e+01 : f32
    %608 = vector.broadcast %cst_286 : f32 to vector<16x1xf32>
    %609 = arith.divf %607, %608 : vector<16x1xf32>
    %610 = vector.broadcast %609 : vector<16x1xf32> to vector<16x32xf32>
    %611 = arith.subf %605, %610 : vector<16x32xf32>
    %612 = arith.mulf %611, %611 : vector<16x32xf32>
    %cst_287 = arith.constant dense<0.000000e+00> : vector<16xf32>
    %613 = vector.multi_reduction <add>, %612, %cst_287 [1] : vector<16x32xf32> to vector<16xf32>
    %614 = vector.shape_cast %613 : vector<16xf32> to vector<16x1xf32>
    %cst_288 = arith.constant 3.200000e+01 : f32
    %615 = vector.broadcast %cst_288 : f32 to vector<16x1xf32>
    %616 = arith.divf %614, %615 : vector<16x1xf32>
    %cst_289 = arith.constant 9.99999974E-6 : f32
    %617 = vector.broadcast %cst_289 : f32 to vector<16x1xf32>
    %618 = arith.addf %616, %617 : vector<16x1xf32>
    %619 = math.rsqrt %618 : vector<16x1xf32>
    %620 = vector.broadcast %619 : vector<16x1xf32> to vector<16x32xf32>
    %621 = arith.mulf %611, %620 : vector<16x32xf32>
    %622 = vector.broadcast %24 : vector<1x32xf32> to vector<16x32xf32>
    %623 = arith.mulf %621, %622 : vector<16x32xf32>
    %624 = vector.broadcast %25 : vector<1x32xf32> to vector<16x32xf32>
    %625 = arith.addf %623, %624 : vector<16x32xf32>
    %cst_290 = arith.constant 0.000000e+00 : f32
    %626 = vector.broadcast %cst_290 : f32 to vector<16x32xf32>
    %627 = arith.maximumf %625, %626 : vector<16x32xf32>
    %628 = arith.truncf %627 : vector<16x32xf32> to vector<16x32xbf16>
    %cst_291 = arith.constant dense<0.000000e+00> : vector<16x32xf32>
    %629 = tpu.matmul %628, %169, %cst_291 {dimension_numbers = #tpu.dot_dimension_numbers<[1], [0], [0], [1], [0, 0, 1, 1], [], []>} : vector<16x32xbf16>, vector<32x32xbf16>, vector<16x32xf32> -> vector<16x32xf32>
    %630 = vector.broadcast %27 : vector<1x32xf32> to vector<16x32xf32>
    %631 = arith.addf %629, %630 : vector<16x32xf32>
    %632 = arith.truncf %440 : vector<16x8xf32> to vector<16x8xbf16>
    %cst_292 = arith.constant dense<0.000000e+00> : vector<16x32xf32>
    %633 = tpu.matmul %632, %171, %cst_292 {dimension_numbers = #tpu.dot_dimension_numbers<[1], [0], [0], [1], [0, 0, 1, 1], [], []>} : vector<16x8xbf16>, vector<8x32xbf16>, vector<16x32xf32> -> vector<16x32xf32>
    %634 = arith.truncf %594 : vector<16x32xf32> to vector<16x32xbf16>
    %cst_293 = arith.constant dense<0.000000e+00> : vector<16x32xf32>
    %635 = tpu.matmul %634, %173, %cst_293 {dimension_numbers = #tpu.dot_dimension_numbers<[1], [0], [0], [1], [0, 0, 1, 1], [], []>} : vector<16x32xbf16>, vector<32x32xbf16>, vector<16x32xf32> -> vector<16x32xf32>
    %636 = arith.addf %633, %635 : vector<16x32xf32>
    %637 = arith.truncf %595 : vector<16x32xf32> to vector<16x32xbf16>
    %cst_294 = arith.constant dense<0.000000e+00> : vector<16x32xf32>
    %638 = tpu.matmul %637, %175, %cst_294 {dimension_numbers = #tpu.dot_dimension_numbers<[1], [0], [0], [1], [0, 0, 1, 1], [], []>} : vector<16x32xbf16>, vector<32x32xbf16>, vector<16x32xf32> -> vector<16x32xf32>
    %639 = arith.addf %636, %638 : vector<16x32xf32>
    %640 = vector.broadcast %29 : vector<1x32xf32> to vector<16x32xf32>
    %641 = arith.addf %639, %640 : vector<16x32xf32>
    %cst_295 = arith.constant dense<0.000000e+00> : vector<16xf32>
    %642 = vector.multi_reduction <add>, %641, %cst_295 [1] : vector<16x32xf32> to vector<16xf32>
    %643 = vector.shape_cast %642 : vector<16xf32> to vector<16x1xf32>
    %cst_296 = arith.constant 3.200000e+01 : f32
    %644 = vector.broadcast %cst_296 : f32 to vector<16x1xf32>
    %645 = arith.divf %643, %644 : vector<16x1xf32>
    %646 = vector.broadcast %645 : vector<16x1xf32> to vector<16x32xf32>
    %647 = arith.subf %641, %646 : vector<16x32xf32>
    %648 = arith.mulf %647, %647 : vector<16x32xf32>
    %cst_297 = arith.constant dense<0.000000e+00> : vector<16xf32>
    %649 = vector.multi_reduction <add>, %648, %cst_297 [1] : vector<16x32xf32> to vector<16xf32>
    %650 = vector.shape_cast %649 : vector<16xf32> to vector<16x1xf32>
    %cst_298 = arith.constant 3.200000e+01 : f32
    %651 = vector.broadcast %cst_298 : f32 to vector<16x1xf32>
    %652 = arith.divf %650, %651 : vector<16x1xf32>
    %cst_299 = arith.constant 9.99999974E-6 : f32
    %653 = vector.broadcast %cst_299 : f32 to vector<16x1xf32>
    %654 = arith.addf %652, %653 : vector<16x1xf32>
    %655 = math.rsqrt %654 : vector<16x1xf32>
    %656 = vector.broadcast %655 : vector<16x1xf32> to vector<16x32xf32>
    %657 = arith.mulf %647, %656 : vector<16x32xf32>
    %658 = vector.broadcast %30 : vector<1x32xf32> to vector<16x32xf32>
    %659 = arith.mulf %657, %658 : vector<16x32xf32>
    %660 = vector.broadcast %31 : vector<1x32xf32> to vector<16x32xf32>
    %661 = arith.addf %659, %660 : vector<16x32xf32>
    %cst_300 = arith.constant 0.000000e+00 : f32
    %662 = vector.broadcast %cst_300 : f32 to vector<16x32xf32>
    %663 = arith.maximumf %661, %662 : vector<16x32xf32>
    %664 = arith.truncf %663 : vector<16x32xf32> to vector<16x32xbf16>
    %cst_301 = arith.constant dense<0.000000e+00> : vector<16x32xf32>
    %665 = tpu.matmul %664, %176, %cst_301 {dimension_numbers = #tpu.dot_dimension_numbers<[1], [0], [0], [1], [0, 0, 1, 1], [], []>} : vector<16x32xbf16>, vector<32x32xbf16>, vector<16x32xf32> -> vector<16x32xf32>
    %666 = vector.broadcast %33 : vector<1x32xf32> to vector<16x32xf32>
    %667 = arith.addf %665, %666 : vector<16x32xf32>
    %cst_302 = arith.constant dense<0.000000e+00> : vector<16xf32>
    %668 = vector.multi_reduction <add>, %667, %cst_302 [1] : vector<16x32xf32> to vector<16xf32>
    %669 = vector.shape_cast %668 : vector<16xf32> to vector<16x1xf32>
    %cst_303 = arith.constant 3.200000e+01 : f32
    %670 = vector.broadcast %cst_303 : f32 to vector<16x1xf32>
    %671 = arith.divf %669, %670 : vector<16x1xf32>
    %672 = vector.broadcast %671 : vector<16x1xf32> to vector<16x32xf32>
    %673 = arith.subf %667, %672 : vector<16x32xf32>
    %674 = arith.mulf %673, %673 : vector<16x32xf32>
    %cst_304 = arith.constant dense<0.000000e+00> : vector<16xf32>
    %675 = vector.multi_reduction <add>, %674, %cst_304 [1] : vector<16x32xf32> to vector<16xf32>
    %676 = vector.shape_cast %675 : vector<16xf32> to vector<16x1xf32>
    %cst_305 = arith.constant 3.200000e+01 : f32
    %677 = vector.broadcast %cst_305 : f32 to vector<16x1xf32>
    %678 = arith.divf %676, %677 : vector<16x1xf32>
    %cst_306 = arith.constant 9.99999974E-6 : f32
    %679 = vector.broadcast %cst_306 : f32 to vector<16x1xf32>
    %680 = arith.addf %678, %679 : vector<16x1xf32>
    %681 = math.rsqrt %680 : vector<16x1xf32>
    %682 = vector.broadcast %681 : vector<16x1xf32> to vector<16x32xf32>
    %683 = arith.mulf %673, %682 : vector<16x32xf32>
    %684 = vector.broadcast %34 : vector<1x32xf32> to vector<16x32xf32>
    %685 = arith.mulf %683, %684 : vector<16x32xf32>
    %686 = vector.broadcast %35 : vector<1x32xf32> to vector<16x32xf32>
    %687 = arith.addf %685, %686 : vector<16x32xf32>
    %cst_307 = arith.constant 0.000000e+00 : f32
    %688 = vector.broadcast %cst_307 : f32 to vector<16x32xf32>
    %689 = arith.maximumf %687, %688 : vector<16x32xf32>
    %690 = arith.truncf %689 : vector<16x32xf32> to vector<16x32xbf16>
    %cst_308 = arith.constant dense<0.000000e+00> : vector<16x8xf32>
    %691 = tpu.matmul %690, %177, %cst_308 {dimension_numbers = #tpu.dot_dimension_numbers<[1], [0], [0], [1], [0, 0, 1, 1], [], []>} : vector<16x32xbf16>, vector<32x8xbf16>, vector<16x8xf32> -> vector<16x8xf32>
    %692 = vector.broadcast %37 : vector<1x8xf32> to vector<16x8xf32>
    %693 = arith.addf %691, %692 : vector<16x8xf32>
    %694 = arith.addf %631, %431 : vector<16x32xf32>
    %695 = arith.addf %440, %693 : vector<16x8xf32>
    %696 = arith.mulf %695, %695 : vector<16x8xf32>
    %cst_309 = arith.constant dense<0.000000e+00> : vector<16xf32>
    %697 = vector.multi_reduction <add>, %696, %cst_309 [1] : vector<16x8xf32> to vector<16xf32>
    %698 = vector.shape_cast %697 : vector<16xf32> to vector<16x1xf32>
    %699 = math.sqrt %698 : vector<16x1xf32>
    %cst_310 = arith.constant 9.99999996E-13 : f32
    %700 = vector.broadcast %cst_310 : f32 to vector<16x1xf32>
    %701 = arith.maximumf %699, %700 : vector<16x1xf32>
    %702 = vector.broadcast %701 : vector<16x1xf32> to vector<16x8xf32>
    %703 = arith.divf %695, %702 : vector<16x8xf32>
    %704 = arith.truncf %38 : vector<32x32xf32> to vector<32x32xbf16>
    %705 = arith.truncf %694 : vector<16x32xf32> to vector<16x32xbf16>
    %cst_311 = arith.constant dense<0.000000e+00> : vector<16x32xf32>
    %706 = tpu.matmul %705, %704, %cst_311 {dimension_numbers = #tpu.dot_dimension_numbers<[1], [0], [0], [1], [0, 0, 1, 1], [], []>} : vector<16x32xbf16>, vector<32x32xbf16>, vector<16x32xf32> -> vector<16x32xf32>
    %707 = vector.broadcast %39 : vector<1x32xf32> to vector<16x32xf32>
    %708 = arith.addf %706, %707 : vector<16x32xf32>
    %cst_312 = arith.constant dense<0.000000e+00> : vector<16xf32>
    %709 = vector.multi_reduction <add>, %708, %cst_312 [1] : vector<16x32xf32> to vector<16xf32>
    %710 = vector.shape_cast %709 : vector<16xf32> to vector<16x1xf32>
    %cst_313 = arith.constant 3.200000e+01 : f32
    %711 = vector.broadcast %cst_313 : f32 to vector<16x1xf32>
    %712 = arith.divf %710, %711 : vector<16x1xf32>
    %713 = vector.broadcast %712 : vector<16x1xf32> to vector<16x32xf32>
    %714 = arith.subf %708, %713 : vector<16x32xf32>
    %715 = arith.mulf %714, %714 : vector<16x32xf32>
    %cst_314 = arith.constant dense<0.000000e+00> : vector<16xf32>
    %716 = vector.multi_reduction <add>, %715, %cst_314 [1] : vector<16x32xf32> to vector<16xf32>
    %717 = vector.shape_cast %716 : vector<16xf32> to vector<16x1xf32>
    %cst_315 = arith.constant 3.200000e+01 : f32
    %718 = vector.broadcast %cst_315 : f32 to vector<16x1xf32>
    %719 = arith.divf %717, %718 : vector<16x1xf32>
    %cst_316 = arith.constant 9.99999974E-6 : f32
    %720 = vector.broadcast %cst_316 : f32 to vector<16x1xf32>
    %721 = arith.addf %719, %720 : vector<16x1xf32>
    %722 = math.rsqrt %721 : vector<16x1xf32>
    %723 = vector.broadcast %722 : vector<16x1xf32> to vector<16x32xf32>
    %724 = arith.mulf %714, %723 : vector<16x32xf32>
    %725 = vector.broadcast %40 : vector<1x32xf32> to vector<16x32xf32>
    %726 = arith.mulf %724, %725 : vector<16x32xf32>
    %727 = vector.broadcast %41 : vector<1x32xf32> to vector<16x32xf32>
    %728 = arith.addf %726, %727 : vector<16x32xf32>
    %cst_317 = arith.constant 0.000000e+00 : f32
    %729 = vector.broadcast %cst_317 : f32 to vector<16x32xf32>
    %730 = arith.maximumf %728, %729 : vector<16x32xf32>
    %731 = arith.truncf %42 : vector<32x32xf32> to vector<32x32xbf16>
    %732 = arith.truncf %730 : vector<16x32xf32> to vector<16x32xbf16>
    %cst_318 = arith.constant dense<0.000000e+00> : vector<16x32xf32>
    %733 = tpu.matmul %732, %731, %cst_318 {dimension_numbers = #tpu.dot_dimension_numbers<[1], [0], [0], [1], [0, 0, 1, 1], [], []>} : vector<16x32xbf16>, vector<32x32xbf16>, vector<16x32xf32> -> vector<16x32xf32>
    %734 = vector.broadcast %43 : vector<1x32xf32> to vector<16x32xf32>
    %735 = arith.addf %733, %734 : vector<16x32xf32>
    %cst_319 = arith.constant dense<0.000000e+00> : vector<16xf32>
    %736 = vector.multi_reduction <add>, %735, %cst_319 [1] : vector<16x32xf32> to vector<16xf32>
    %737 = vector.shape_cast %736 : vector<16xf32> to vector<16x1xf32>
    %cst_320 = arith.constant 3.200000e+01 : f32
    %738 = vector.broadcast %cst_320 : f32 to vector<16x1xf32>
    %739 = arith.divf %737, %738 : vector<16x1xf32>
    %740 = vector.broadcast %739 : vector<16x1xf32> to vector<16x32xf32>
    %741 = arith.subf %735, %740 : vector<16x32xf32>
    %742 = arith.mulf %741, %741 : vector<16x32xf32>
    %cst_321 = arith.constant dense<0.000000e+00> : vector<16xf32>
    %743 = vector.multi_reduction <add>, %742, %cst_321 [1] : vector<16x32xf32> to vector<16xf32>
    %744 = vector.shape_cast %743 : vector<16xf32> to vector<16x1xf32>
    %cst_322 = arith.constant 3.200000e+01 : f32
    %745 = vector.broadcast %cst_322 : f32 to vector<16x1xf32>
    %746 = arith.divf %744, %745 : vector<16x1xf32>
    %cst_323 = arith.constant 9.99999974E-6 : f32
    %747 = vector.broadcast %cst_323 : f32 to vector<16x1xf32>
    %748 = arith.addf %746, %747 : vector<16x1xf32>
    %749 = math.rsqrt %748 : vector<16x1xf32>
    %750 = vector.broadcast %749 : vector<16x1xf32> to vector<16x32xf32>
    %751 = arith.mulf %741, %750 : vector<16x32xf32>
    %752 = vector.broadcast %44 : vector<1x32xf32> to vector<16x32xf32>
    %753 = arith.mulf %751, %752 : vector<16x32xf32>
    %754 = vector.broadcast %45 : vector<1x32xf32> to vector<16x32xf32>
    %755 = arith.addf %753, %754 : vector<16x32xf32>
    %cst_324 = arith.constant 0.000000e+00 : f32
    %756 = vector.broadcast %cst_324 : f32 to vector<16x32xf32>
    %757 = arith.maximumf %755, %756 : vector<16x32xf32>
    %758 = arith.truncf %46 : vector<32x4xf32> to vector<32x4xbf16>
    %759 = arith.truncf %757 : vector<16x32xf32> to vector<16x32xbf16>
    %cst_325 = arith.constant dense<0.000000e+00> : vector<16x4xf32>
    %760 = tpu.matmul %759, %758, %cst_325 {dimension_numbers = #tpu.dot_dimension_numbers<[1], [0], [0], [1], [0, 0, 1, 1], [], []>} : vector<16x32xbf16>, vector<32x4xbf16>, vector<16x4xf32> -> vector<16x4xf32>
    %761 = vector.broadcast %47 : vector<1x4xf32> to vector<16x4xf32>
    %762 = arith.addf %760, %761 : vector<16x4xf32>
    %c0_326 = arith.constant 0 : index
    %c0_327 = arith.constant 0 : index
    %763 = vector.load %arg51[%c0_326, %c0_327] : memref<16x4xf32, #tpu.memory_space<vmem>>, vector<16x4xf32>
    tpu.vector_store %arg51[%c0_326, %c0_327], %762 {strides = array<i32>} : memref<16x4xf32, #tpu.memory_space<vmem>>, vector<16x4xf32>,
    %764 = arith.mulf %703, %703 : vector<16x8xf32>
    %cst_328 = arith.constant dense<0.000000e+00> : vector<16xf32>
    %765 = vector.multi_reduction <add>, %764, %cst_328 [1] : vector<16x8xf32> to vector<16xf32>
    %766 = vector.shape_cast %765 : vector<16xf32> to vector<16x1xf32>
    %cst_329 = arith.constant dense<0.000000e+00> : vector<1x16xf32>
    %767 = tpu.matmul %59, %764, %cst_329 {dimension_numbers = #tpu.dot_dimension_numbers<[1], [1], [0], [0], [0, 0, 1, 0], [], []>} : vector<1x8xf32>, vector<16x8xf32>, vector<1x16xf32> -> vector<1x16xf32>
    %cst_330 = arith.constant dense<0.000000e+00> : vector<16x16xf32>
    %768 = tpu.matmul %703, %703, %cst_330 {dimension_numbers = #tpu.dot_dimension_numbers<[1], [1], [0], [0], [0, 0, 1, 0], [], []>} : vector<16x8xf32>, vector<16x8xf32>, vector<16x16xf32> -> vector<16x16xf32>
    %769 = vector.broadcast %766 : vector<16x1xf32> to vector<16x16xf32>
    %770 = vector.broadcast %767 : vector<1x16xf32> to vector<16x16xf32>
    %771 = arith.addf %769, %770 : vector<16x16xf32>
    %cst_331 = arith.constant 2.000000e+00 : f32
    %772 = vector.broadcast %cst_331 : f32 to vector<16x16xf32>
    %773 = arith.mulf %772, %768 : vector<16x16xf32>
    %774 = arith.subf %771, %773 : vector<16x16xf32>
    %cst_332 = arith.constant 0.000000e+00 : f32
    %775 = vector.broadcast %cst_332 : f32 to vector<16x16xf32>
    %776 = arith.maximumf %774, %775 : vector<16x16xf32>
    %cst_333 = arith.constant 1.000000e+00 : f32
    %777 = vector.broadcast %cst_333 : f32 to vector<16x16xf32>
    %778 = arith.cmpf ole, %776, %777 : vector<16x16xf32>
    %cst_334 = arith.constant 0.000000e+00 : f32
    %779 = vector.broadcast %cst_334 : f32 to vector<16x16xf32>
    %780 = arith.select %778, %58, %779 : vector<16x16xi1>, vector<16x16xf32>
    %c0_335 = arith.constant 0 : index
    %c0_336 = arith.constant 0 : index
    %781 = vector.load %arg52[%c0_335, %c0_336] : memref<16x16xf32, #tpu.memory_space<vmem>>, vector<16x16xf32>
    tpu.vector_store %arg52[%c0_335, %c0_336], %780 {strides = array<i32>} : memref<16x16xf32, #tpu.memory_space<vmem>>, vector<16x16xf32>,
    return
  }
}

</mosaic_0001>

<bundles_post_ra>
// kernel: tpu_custom_call.1
= control target key start
LH: loop header
LB: loop body
LE: loop exit
PB: predicated region body
PF: predicated region fallthrough
CT: control target
= control target key end

     0   :  { %s9435_s6 = smov 1   ;;  %s9436_s10 = smov 2   ;;  %s12719_s0 = inlined_call_operand.smem [shape: u32[53], index: -1, kind: input, shape index: {}] }
   0x1   :  { %s9512_s5 = sld [smem:[%s12719_s0]]   ;;  %s9437_s14 = smov 3  }
   0x2   :  { %s9517_s9 = sld [smem:[%s12719_s0 + %s9435_s6]]   ;;  %s9438_s18 = smov 4  }
   0x3   :  { %s9522_s13 = sld [smem:[%s12719_s0 + %s9436_s10]]   ;;  %s9439_s22 = smov 5  }
   0x4   :  { %s9527_s17 = sld [smem:[%s12719_s0 + %s9437_s14]]   ;;  %s9440_s26 = smov 6  }
   0x5   :  { %s9532_s21 = sld [smem:[%s12719_s0 + %s9438_s18]]   ;;  %s9441_s30 = smov 7  }
   0x6   :  { %s9537_s25 = sld [smem:[%s12719_s0 + %s9439_s22]]   ;;  %s9442_s4 = smov 8  }
   0x7   :  { %s9542_s29 = sld [smem:[%s12719_s0 + %s9440_s26]]   ;;  %s9443_s10 = smov 9  }
   0x8   :  { %12902 = sst [smem:[#allocation27_spill]] %s9517_s9  ;;  %s9444_s15 = smov 10  }
   0x9   :  { %12903 = sst [smem:[#allocation28_spill]] %s9522_s13  ;;  %s9445_s20 = smov 11  }
   0xa   :  { %s9547_s3 = sld [smem:[%s12719_s0 + %s9441_s30]]   ;;  %s9446_s26 = smov 12  }
   0xb   :  { %s9552_s8 = sld [smem:[%s12719_s0 + %s9442_s4]]   ;;  %s9447_s1 = smov 13  }
   0xc   :  { %s9557_s14 = sld [smem:[%s12719_s0 + %s9443_s10]]   ;;  %s9448_s7 = smov 14  }
   0xd   :  { %s9562_s19 = sld [smem:[%s12719_s0 + %s9444_s15]]   ;;  %s9449_s15 = smov 15  }
   0xe   :  { %s9567_s24 = sld [smem:[%s12719_s0 + %s9445_s20]]   ;;  %s9450_s22 = smov 16  }
   0xf   :  { %s9572_s30 = sld [smem:[%s12719_s0 + %s9446_s26]]   ;;  %s9451_s28 = smov 17  }
  0x10   :  { %s9577_s6 = sld [smem:[%s12719_s0 + %s9447_s1]]  }
  0x11   :  { %12904 = sst [smem:[#allocation29_spill]] %s9552_s8 }
  0x12   :  { %s9582_s12 = sld [smem:[%s12719_s0 + %s9448_s7]]   ;;  %s9452_s7 = smov 18  }
  0x13   :  { %12905 = sst [smem:[#allocation30_spill]] %s9562_s19 }
  0x14   :  { %12906 = sst [smem:[#allocation31_spill]] %s9567_s24 }
  0x15   :  { %12907 = sst [smem:[#allocation32_spill]] %s9572_s30 }
  0x16   :  { %12908 = sst [smem:[#allocation33_spill]] %s9577_s6 }
  0x17   :  { %s9587_s20 = sld [smem:[%s12719_s0 + %s9449_s15]]   ;;  %s9453_s15 = smov 19  }
  0x18   :  { %12909 = sst [smem:[#allocation34_spill]] %s9582_s12 }
  0x19   :  { %s9592_s27 = sld [smem:[%s12719_s0 + %s9450_s22]]   ;;  %s9454_s22 = smov 20  }
  0x1a   :  { %s9597_s4 = sld [smem:[%s12719_s0 + %s9451_s28]]   ;;  %s9455_s28 = smov 21  }
  0x1b   :  { %s9602_s13 = sld [smem:[%s12719_s0 + %s9452_s7]]   ;;  %s9456_s7 = smov 22  }
  0x1c   :  { %s9617_s9 = sld [smem:[%s12719_s0 + %s9455_s28]]   ;;  %s9459_s28 = smov 25  }
  0x1d   :  { %12910 = sst [smem:[#allocation35_spill]] %s9587_s20 }
  0x1e   :  { %s9607_s20 = sld [smem:[%s12719_s0 + %s9453_s15]]   ;;  %s9457_s15 = smov 23  }
  0x1f   :  { %12911 = sst [smem:[#allocation36_spill]] %s9592_s27 }
  0x20   :  { %12912 = sst [smem:[#allocation37_spill]] %s9597_s4 }
  0x21   :  { %12913 = sst [smem:[#allocation38_spill]] %s9602_s13 }
  0x22   :  { %s9612_s27 = sld [smem:[%s12719_s0 + %s9454_s22]]   ;;  %s9458_s22 = smov 24  }
  0x23   :  { %12916 = sst [smem:[#allocation41_spill]] %s9617_s9 }
  0x24   :  { %12914 = sst [smem:[#allocation39_spill]] %s9607_s20 }
  0x25   :  { %s9622_s13 = sld [smem:[%s12719_s0 + %s9456_s7]]   ;;  %s9460_s7 = smov 26  }
  0x26   :  { %s9627_s20 = sld [smem:[%s12719_s0 + %s9457_s15]]   ;;  %s9461_s15 = smov 27  }
  0x27   :  { %s9637_s9 = sld [smem:[%s12719_s0 + %s9459_s28]]   ;;  %s9463_s28 = smov 29  }
  0x28   :  { %12915 = sst [smem:[#allocation40_spill]] %s9612_s27 }
  0x29   :  { %s9632_s27 = sld [smem:[%s12719_s0 + %s9458_s22]]   ;;  %s9462_s22 = smov 28  }
  0x2b   :  { %12917 = sst [smem:[#allocation42_spill]] %s9622_s13 }
  0x2c   :  { %12918 = sst [smem:[#allocation43_spill]] %s9627_s20 }
  0x2d   :  { %12920 = sst [smem:[#allocation45_spill]] %s9637_s9 }
  0x2e   :  { %s9642_s13 = sld [smem:[%s12719_s0 + %s9460_s7]]   ;;  %s9464_s7 = smov 30  }
  0x2f   :  { %12919 = sst [smem:[#allocation44_spill]] %s9632_s27 }
  0x30   :  { %s9647_s20 = sld [smem:[%s12719_s0 + %s9461_s15]]   ;;  %s9465_s15 = smov 31  }
  0x31   :  { %s9652_s27 = sld [smem:[%s12719_s0 + %s9462_s22]]   ;;  %s9466_s22 = smov 32  }
  0x32   :  { %s9657_s9 = sld [smem:[%s12719_s0 + %s9463_s28]]   ;;  %s9467_s28 = smov 33  }
  0x34   :  { %12921 = sst [smem:[#allocation46_spill]] %s9642_s13 }
  0x35   :  { %s9662_s13 = sld [smem:[%s12719_s0 + %s9464_s7]]   ;;  %s9468_s7 = smov 34  }
  0x36   :  { %12922 = sst [smem:[#allocation47_spill]] %s9647_s20 }
  0x37   :  { %12923 = sst [smem:[#allocation48_spill]] %s9652_s27 }
  0x38   :  { %12924 = sst [smem:[#allocation49_spill]] %s9657_s9 }
  0x39   :  { %s9667_s20 = sld [smem:[%s12719_s0 + %s9465_s15]]   ;;  %s9469_s15 = smov 35  }
  0x3a   :  { %s9672_s27 = sld [smem:[%s12719_s0 + %s9466_s22]]   ;;  %s9470_s22 = smov 36  }
  0x3b   :  { %12925 = sst [smem:[#allocation50_spill]] %s9662_s13 }
  0x3c   :  { %s9677_s9 = sld [smem:[%s12719_s0 + %s9467_s28]]   ;;  %s9471_s28 = smov 37  }
  0x3d   :  { %s9682_s13 = sld [smem:[%s12719_s0 + %s9468_s7]]   ;;  %s9472_s7 = smov 38  }
  0x3f   :  { %12926 = sst [smem:[#allocation51_spill]] %s9667_s20 }
  0x40   :  { %12927 = sst [smem:[#allocation52_spill]] %s9672_s27 }
  0x41   :  { %s9687_s20 = sld [smem:[%s12719_s0 + %s9469_s15]]   ;;  %s9473_s15 = smov 39  }
  0x42   :  { %12928 = sst [smem:[#allocation53_spill]] %s9677_s9 }
  0x43   :  { %12929 = sst [smem:[#allocation54_spill]] %s9682_s13 }
  0x44   :  { %s9692_s27 = sld [smem:[%s12719_s0 + %s9470_s22]]   ;;  %s9474_s22 = smov 40  }
  0x45   :  { %s9697_s9 = sld [smem:[%s12719_s0 + %s9471_s28]]   ;;  %s9475_s28 = smov 41  }
  0x46   :  { %s9702_s13 = sld [smem:[%s12719_s0 + %s9472_s7]]   ;;  %s9476_s7 = smov 42  }
  0x47   :  { %12930 = sst [smem:[#allocation55_spill]] %s9687_s20 }
  0x48   :  { %s9707_s20 = sld [smem:[%s12719_s0 + %s9473_s15]]   ;;  %s9477_s15 = smov 43  }
  0x4a   :  { %12931 = sst [smem:[#allocation56_spill]] %s9692_s27 }
  0x4b   :  { %12932 = sst [smem:[#allocation57_spill]] %s9697_s9 }
  0x4c   :  { %12933 = sst [smem:[#allocation58_spill]] %s9702_s13 }
  0x4d   :  { %s9712_s27 = sld [smem:[%s12719_s0 + %s9474_s22]]   ;;  %s9478_s22 = smov 44  }
  0x4e   :  { %12934 = sst [smem:[#allocation59_spill]] %s9707_s20 }
  0x4f   :  { %s9717_s9 = sld [smem:[%s12719_s0 + %s9475_s28]]   ;;  %s9479_s28 = smov 45  }
  0x50   :  { %s9722_s13 = sld [smem:[%s12719_s0 + %s9476_s7]]   ;;  %s9480_s7 = smov 46  }
  0x51   :  { %s9727_s20 = sld [smem:[%s12719_s0 + %s9477_s15]]   ;;  %s9481_s15 = smov 47  }
  0x52   :  { %s9732_s4 = sld [smem:[%s12719_s0 + %s9478_s22]]   ;;  %s9482_s22 = smov 48  }
  0x53   :  { %s9742_s12 = sld [smem:[%s12719_s0 + %s9480_s7]]   ;;  %s9484_s7 = smov 50  }
  0x54   :  { %s9747_s30 = sld [smem:[%s12719_s0 + %s9481_s15]]   ;;  %s9485_s15 = smov 51  }
  0x55   :  { %12935 = sst [smem:[#allocation60_spill]] %s9717_s9 }
  0x56   :  { %s9737_s9 = sld [smem:[%s12719_s0 + %s9479_s28]]   ;;  %s9483_s28 = smov 49  }
  0x57   :  { %s9752_s24 = sld [smem:[%s12719_s0 + %s9482_s22]]   ;;  %s9486_s22 = smov 52  }
  0x58   :  { %s9762_s6 = sld [smem:[%s12719_s0 + %s9484_s7]]  }
  0x59   :  { %s9767_s19 = sld [smem:[%s12719_s0 + %s9485_s15]]  }
  0x5a   :  { %s9772_s8 = sld [smem:[%s12719_s0 + %s9486_s22]]  }
  0x5c   :  { %12936 = sst [smem:[#allocation61_spill]] %s9737_s9 }
  0x5d   :  { %s9757_s9 = sld [smem:[%s12719_s0 + %s9483_s28]]  }
  0x5e   :  { %111 = vsyncpa [#allocation7], 0 }
  0x5f   :  { %112 = vsyncpa [#allocation10], 0 }
  0x60   :  { %113 = vsyncpa [#allocation13], 0 }
  0x61   :  { %114 = vsyncpa [#allocation16], 0 }
  0x62   :  { %115 = vsyncpa [#allocation19], 0 }
  0x63   :  { %116 = vsyncpa [#allocation8], 0  ;;  %s9487_s28 = smov [#allocation9]   ;;  %s9488_s2 = smov [#allocation12]  }
  0x64   :  { %s215_s1 = sshll.u32 %s9487_s28, 4  ;;  %s235_s7 = sshll.u32 %s9488_s2, 4  ;;  %s216_s1 = int_to_ptr.vmem [resolvable:$true] %s215_s1  ;;  %s236_s7 = int_to_ptr.vmem [resolvable:$true] %s235_s7 }
  0x65   :  { %s9225_s10 = scalar_lea.hbm %s9722_s13, 16 }
  0x66   :  { %p9226_p0 = scmp.ne.s32.totalorder %s9722_s13, %s9225_s10  ;;  %p9229_p1 = scmp.lt.u32.totalorder %s9225_s10, %s9722_s13 }
  0x68   :  { %p9231_p2 = pnand %p9229_p1, %p9226_p0 }
  0x6a   :  { %9234 = shalt.err (!%p9231_p2)
}
  0x6b   :  { %s9235_s0 = scalar_lea.vmem %s216_s1, 16  ;;  %s9239_s11 = scalar_lea.vmem %s216_s1, 32 }
  0x6c   :  { %p9236_p3 = scmp.ne.s32.totalorder %s216_s1, %s9235_s0  ;;  %p9240_p4 = scmp.lt.s32.totalorder %s216_s1, %s216_s1 }
  0x6d   :  { %p9241_p5 = scmp.lt.s32.totalorder %s9239_s11, %s9235_s0 }
  0x6f   :  { %p9242_p6 = por %p9241_p5, %p9240_p4 }
  0x71   :  { %p9243_p7 = pnand %p9242_p6, %p9236_p3 }
  0x73   :  { %9246 = shalt.err (!%p9243_p7)
}
  0x74   :  { %218 = dma.hbm_to_vmem [thread:$0]  %s9722_s13, 16, %s216_s1, [#allocation10]  }
  0x75   :  { %s9247_s15 = scalar_lea.hbm %s9732_s4, 16 }
  0x76   :  { %p9248_p8 = scmp.ne.s32.totalorder %s9732_s4, %s9247_s15  ;;  %p9251_p9 = scmp.lt.u32.totalorder %s9247_s15, %s9732_s4 }
  0x78   :  { %p9253_p10 = pnand %p9251_p9, %p9248_p8 }
  0x7a   :  { %9256 = shalt.err (!%p9253_p10)
}
  0x7b   :  { %s9257_s16 = scalar_lea.vmem %s236_s7, 16  ;;  %s9261_s18 = scalar_lea.vmem %s236_s7, 32 }
  0x7c   :  { %p9258_p11 = scmp.ne.s32.totalorder %s236_s7, %s9257_s16  ;;  %p9262_p12 = scmp.lt.s32.totalorder %s236_s7, %s236_s7 }
  0x7d   :  { %p9263_p13 = scmp.lt.s32.totalorder %s9261_s18, %s9257_s16 }
  0x7f   :  { %p9264_p0 = por %p9263_p13, %p9262_p12 }
  0x81   :  { %p9265_p1 = pnand %p9264_p0, %p9258_p11 }
  0x83   :  { %9268 = shalt.err (!%p9265_p1)
}
  0x84   :  { %238 = dma.hbm_to_vmem [thread:$0]  %s9732_s4, 16, %s236_s7, [#allocation13]  }
  0x85   :  { %s9489_s22 = smov [#allocation15]   ;;  %s9490_s23 = smov [#allocation6]  }
  0x86   :  { %s257_s13 = sshll.u32 %s9489_s22, 4  ;;  %s203_s26 = sshll.u32 %s9490_s23, 4  ;;  %s258_s13 = int_to_ptr.vmem [resolvable:$true] %s257_s13  ;;  %s204_s26 = int_to_ptr.vmem [resolvable:$true] %s203_s26 }
  0x87   :  { %s9269_s28 = scalar_lea.hbm %s9747_s30, 16 }
  0x88   :  { %p9270_p2 = scmp.ne.s32.totalorder %s9747_s30, %s9269_s28  ;;  %p9273_p3 = scmp.lt.u32.totalorder %s9269_s28, %s9747_s30 }
  0x8a   :  { %p9275_p4 = pnand %p9273_p3, %p9270_p2 }
  0x8c   :  { %9278 = shalt.err (!%p9275_p4)
}
  0x8d   :  { %s9279_s1 = scalar_lea.vmem %s258_s13, 16  ;;  %s9283_s2 = scalar_lea.vmem %s258_s13, 32 }
  0x8e   :  { %p9280_p5 = scmp.ne.s32.totalorder %s258_s13, %s9279_s1  ;;  %p9284_p6 = scmp.lt.s32.totalorder %s258_s13, %s258_s13 }
  0x8f   :  { %p9285_p7 = scmp.lt.s32.totalorder %s9283_s2, %s9279_s1 }
  0x91   :  { %p9286_p8 = por %p9285_p7, %p9284_p6 }
  0x93   :  { %p9287_p9 = pnand %p9286_p8, %p9280_p5 }
  0x95   :  { %9290 = shalt.err (!%p9287_p9)
}
  0x96   :  { %260 = dma.hbm_to_vmem [thread:$0]  %s9747_s30, 16, %s258_s13, [#allocation16]  }
  0x97   :  { %s9291_s4 = scalar_lea.hbm %s9712_s27, 16 }
  0x98   :  { %p9292_p10 = scmp.ne.s32.totalorder %s9712_s27, %s9291_s4  ;;  %p9295_p11 = scmp.lt.u32.totalorder %s9291_s4, %s9712_s27 }
  0x9a   :  { %p9297_p12 = pnand %p9295_p11, %p9292_p10 }
  0x9c   :  { %9300 = shalt.err (!%p9297_p12)
}
  0x9d   :  { %s9301_s7 = scalar_lea.vmem %s204_s26, 16  ;;  %s9305_s10 = scalar_lea.vmem %s204_s26, 32 }
  0x9e   :  { %p9302_p13 = scmp.ne.s32.totalorder %s204_s26, %s9301_s7  ;;  %p9306_p0 = scmp.lt.s32.totalorder %s204_s26, %s204_s26 }
  0x9f   :  { %p9307_p1 = scmp.lt.s32.totalorder %s9305_s10, %s9301_s7 }
  0xa1   :  { %p9308_p2 = por %p9307_p1, %p9306_p0 }
  0xa3   :  { %p9309_p3 = pnand %p9308_p2, %p9302_p13 }
  0xa5   :  { %9312 = shalt.err (!%p9309_p3)
}
  0xa6   :  { %206 = dma.hbm_to_vmem [thread:$0]  %s9712_s27, 16, %s204_s26, [#allocation7]  }
  0xa7   :  { %s9491_s0 = smov [#allocation11]   ;;  %s9492_s11 = smov [#allocation14]  }
  0xa8   :  { %s225_s30 = sshll.u32 %s9491_s0, 4  ;;  %s247_s15 = sshll.u32 %s9492_s11, 4  ;;  %s226_s30 = int_to_ptr.vmem [resolvable:$true] %s225_s30  ;;  %s248_s15 = int_to_ptr.vmem [resolvable:$true] %s247_s15 }
  0xa9   :  { %s9313_s16 = scalar_lea.hbm %s9727_s20, 16 }
  0xaa   :  { %p9314_p4 = scmp.ne.s32.totalorder %s9727_s20, %s9313_s16  ;;  %p9317_p5 = scmp.lt.u32.totalorder %s9313_s16, %s9727_s20 }
  0xac   :  { %p9319_p6 = pnand %p9317_p5, %p9314_p4 }
  0xae   :  { %9322 = shalt.err (!%p9319_p6)
}
  0xaf   :  { %s9323_s18 = scalar_lea.vmem %s226_s30, 16  ;;  %s9327_s22 = scalar_lea.vmem %s226_s30, 32 }
  0xb0   :  { %p9324_p7 = scmp.ne.s32.totalorder %s226_s30, %s9323_s18  ;;  %p9328_p8 = scmp.lt.s32.totalorder %s226_s30, %s226_s30 }
  0xb1   :  { %p9329_p9 = scmp.lt.s32.totalorder %s9327_s22, %s9323_s18 }
  0xb3   :  { %p9330_p10 = por %p9329_p9, %p9328_p8 }
  0xb5   :  { %p9331_p11 = pnand %p9330_p10, %p9324_p7 }
  0xb7   :  { %9334 = shalt.err (!%p9331_p11)
}
  0xb8   :  { %228 = dma.hbm_to_vmem [thread:$0]  %s9727_s20, 16, %s226_s30, [#allocation10]  }
  0xb9   :  { %s9335_s27 = scalar_lea.hbm %s9742_s12, 16 }
  0xba   :  { %p9336_p12 = scmp.ne.s32.totalorder %s9742_s12, %s9335_s27  ;;  %p9339_p13 = scmp.lt.u32.totalorder %s9335_s27, %s9742_s12 }
  0xbc   :  { %p9341_p0 = pnand %p9339_p13, %p9336_p12 }
  0xbe   :  { %9344 = shalt.err (!%p9341_p0)
}
  0xbf   :  { %s9345_s13 = scalar_lea.vmem %s248_s15, 16  ;;  %s9349_s23 = scalar_lea.vmem %s248_s15, 32 }
  0xc0   :  { %p9346_p1 = scmp.ne.s32.totalorder %s248_s15, %s9345_s13  ;;  %p9350_p2 = scmp.lt.s32.totalorder %s248_s15, %s248_s15 }
  0xc1   :  { %p9351_p3 = scmp.lt.s32.totalorder %s9349_s23, %s9345_s13 }
  0xc3   :  { %p9352_p4 = por %p9351_p3, %p9350_p2 }
  0xc5   :  { %p9353_p5 = pnand %p9352_p4, %p9346_p1 }
  0xc7   :  { %9356 = shalt.err (!%p9353_p5)
}
  0xc8   :  { %250 = dma.hbm_to_vmem [thread:$0]  %s9742_s12, 16, %s248_s15, [#allocation13]  }
  0xc9   :  { %s9493_s26 = smov [#allocation17]   ;;  %s9494_s28 = smov [#allocation18]  }
  0xca   :  { %s267_s20 = sshll.u32 %s9493_s26, 4  ;;  %s279_s1 = sshll.u32 %s9494_s28, 4  ;;  %s268_s20 = int_to_ptr.vmem [resolvable:$true] %s267_s20  ;;  %s280_s1 = int_to_ptr.vmem [resolvable:$true] %s279_s1 }
  0xcb   :  { %s9357_s2 = scalar_lea.hbm %s9752_s24, 16 }
  0xcc   :  { %p9358_p6 = scmp.ne.s32.totalorder %s9752_s24, %s9357_s2  ;;  %p9361_p7 = scmp.lt.u32.totalorder %s9357_s2, %s9752_s24 }
  0xce   :  { %p9363_p8 = pnand %p9361_p7, %p9358_p6 }
  0xd0   :  { %9366 = shalt.err (!%p9363_p8)
}
  0xd1   :  { %s9367_s4 = scalar_lea.vmem %s268_s20, 16  ;;  %s9371_s7 = scalar_lea.vmem %s268_s20, 32 }
  0xd2   :  { %p9368_p9 = scmp.ne.s32.totalorder %s268_s20, %s9367_s4  ;;  %p9372_p10 = scmp.lt.s32.totalorder %s268_s20, %s268_s20 }
  0xd3   :  { %p9373_p11 = scmp.lt.s32.totalorder %s9371_s7, %s9367_s4 }
  0xd5   :  { %p9374_p12 = por %p9373_p11, %p9372_p10 }
  0xd7   :  { %p9375_p13 = pnand %p9374_p12, %p9368_p9 }
  0xd9   :  { %9378 = shalt.err (!%p9375_p13)
}
  0xda   :  { %270 = dma.hbm_to_vmem [thread:$0]  %s9752_s24, 16, %s268_s20, [#allocation16]  }
  0xdb   :  { %s9379_s12 = scalar_lea.hbm %s9762_s6, 16 }
  0xdc   :  { %p9380_p0 = scmp.ne.s32.totalorder %s9762_s6, %s9379_s12  ;;  %p9383_p1 = scmp.lt.u32.totalorder %s9379_s12, %s9762_s6 }
  0xde   :  { %p9385_p2 = pnand %p9383_p1, %p9380_p0 }
  0xe0   :  { %9388 = shalt.err (!%p9385_p2)
}
  0xe1   :  { %s9389_s10 = scalar_lea.vmem %s280_s1, 16  ;;  %s9393_s0 = scalar_lea.vmem %s280_s1, 32 }
  0xe2   :  { %p9390_p3 = scmp.ne.s32.totalorder %s280_s1, %s9389_s10  ;;  %p9394_p4 = scmp.lt.s32.totalorder %s280_s1, %s280_s1 }
  0xe3   :  { %p9395_p5 = scmp.lt.s32.totalorder %s9393_s0, %s9389_s10 }
  0xe5   :  { %p9396_p6 = por %p9395_p5, %p9394_p4 }
  0xe7   :  { %p9397_p7 = pnand %p9396_p6, %p9390_p3 }
  0xe9   :  { %9400 = shalt.err (!%p9397_p7)
}
  0xea   :  { %282 = dma.hbm_to_vmem [thread:$0]  %s9762_s6, 16, %s280_s1, [#allocation19]  }
  0xeb   :  { %9423 = dma.done.wait [#allocation7], 16  }
  0xec   :  { %9424 = vsyncadd [#allocation7], 4294967280 }
  0xed   :  { %9425 = dma.done.wait [#allocation10], 32  }
  0xee   :  { %9426 = vsyncadd [#allocation10], 4294967264 }
  0xef   :  { %9427 = dma.done.wait [#allocation13], 32  }
  0xf0   :  { %9428 = vsyncadd [#allocation13], 4294967264 }
  0xf1   :  { %9429 = dma.done.wait [#allocation16], 32  }
  0xf2   :  { %9430 = vsyncadd [#allocation16], 4294967264 }
  0xf3   :  { %9431 = dma.done.wait [#allocation19], 16  }
  0xf4   :  { %9432 = vsyncadd [#allocation19], 4294967280  ;;  %v12750_v0 = vmov 0.0   ;;  %vm9496_vm0 = vmmov 0   ;;  %v308_v1 = vld [vmem:[%s9527_s17] sm:$0xf] }
  0xf5   :  { %8283 = vmatprep.subr.bf16.mxu0 %v12750_v0  ;;  %8285 = vmatprep.mubr.msk.bf16.mxu0 %vm9496_vm0, %v12750_v0  ;;  %vm459_vm1 = vcmask 1041408   ;;  %v445_v2 = vld [vmem:[%s9512_s5] sm:$0xff]  ;;  %v446_v3 = vld [vmem:[%s9512_s5 + $0x8] sm:$0xff]  ;;  %v447_v4 = vpack.c.bf16 %v308_v1, %v308_v1  ;;  %vm12834_vm2 = vcmask 31744   ;;  %vm504_vm3 = vcmask 261120   ;;  %v314_v28 = vld [vmem:[%s9547_s3 + $0x10] sm:$0xff] }
  0xf6   :  { %8289 = vmatprep.subr.bf16.mxu1 %v12750_v0  ;;  %8293 = vmatprep.mubr.msk.bf16.mxu1 %vm9496_vm0, %v12750_v0  ;;  %v448_v6 = vpack.c.bf16 %v446_v3, %v445_v2  ;;  %v7927_v7 = vld [vmem:[%s9532_s21] ss:$0 sm:$0xff]  ;;  %v313_v27 = vld [vmem:[%s9547_s3 + $0x8] sm:$0xff]  ;;  %v315_v30 = vld [vmem:[%s9547_s3 + $0x18] sm:$0xff]  ;;  %s12937_s5 = sld [smem:[#allocation29_spill]]  ;;  %s12938_s17 = sld [smem:[#allocation30_spill]] }
  0xf7   :  { %v461_v5 = vsel %vm459_vm1, %v447_v4, 0  ;;  %v312_v26 = vld [vmem:[%s9547_s3] sm:$0xff]  ;;  %v551_v31 = vpack.c.bf16 %v315_v30, %v314_v28  ;;  %v318_v52 = vld [vmem:[%s9557_s14 + $0x8] sm:$0xff]  ;;  %v319_v54 = vld [vmem:[%s9557_s14 + $0x10] sm:$0xff]  ;;  %s12942_s21 = sld [smem:[#allocation33_spill]]  ;;  %s12945_s3 = sld [smem:[#allocation34_spill]] }
  0xf8   :  { %8284 = vmatpush3.bf16.msra.mxu0 %v461_v5  ;;  %v550_v29 = vpack.c.bf16 %v313_v27, %v312_v26  ;;  %v7929_v39 = vld [vmem:[%s9537_s25] ss:$0 sm:$0xff]  ;;  %v320_v55 = vld [vmem:[%s9557_s14 + $0x18] sm:$0xff]  ;;  %s12943_s25 = sld [smem:[#allocation31_spill]]  ;;  %s12947_s24 = sld [smem:[#allocation27_spill]]  ;;  %vm877_vm4 = vcmask 64512  }
  0xf9   :  { %8297 = vmatprep.subr.bf16.mxu0 %v12750_v0  ;;  %v7930_v43 = vld [vmem:[%s9542_s29] ss:$0 sm:$0xff]  ;;  %v604_v56 = vpack.c.bf16 %v320_v55, %v319_v54  ;;  %s12944_s29 = sld [smem:[#allocation32_spill]]  ;;  %s12948_s6 = sld [smem:[#allocation35_spill]]  ;;  %vm9896_vm5 = vmpackc.low %vm877_vm4, %vm877_vm4  ;;  %vm1067_vm6 = vcmask 1043456   ;;  %vm12835_vm13 = vcmask 130048  }
  0xfa   :  { %8290 = vmatpush3.bf16.msra.mxu1 %v550_v29  ;;  %v317_v51 = vld [vmem:[%s9557_s14] sm:$0xff]  ;;  %s12946_s14 = sld [smem:[#allocation37_spill]]  ;;  %s12949_s30 = sld [smem:[#allocation36_spill]]  ;;  %vm1818_vm1 = vcmask 1041409  }
  0xfb   :  { %8286 = vmatmul.mubr.msk.bf16.vlgmr.msra.gmra.mrb[0].mxu0 %vm12834_vm2, %v448_v6  ;;  %8291 = vmatprep.subr.bf16.mxu1 %v12750_v0  ;;  %v603_v53 = vpack.c.bf16 %v318_v52, %v317_v51  ;;  %s12950_s11 = sld [smem:[#allocation38_spill]]  ;;  %s12951_s15 = sld [smem:[#allocation39_spill]] }
  0xfc   :  { %8301 = vmatprep.mubr.msk.bf16.mxu0 %vm9496_vm0, %v12750_v0  ;;  %v7931_v57 = vld [vmem:[%s12937_s5] ss:$0 sm:$0xff]  ;;  %s12963_s16 = sld [smem:[#allocation28_spill]]  ;;  %s12966_s18 = sld [smem:[#allocation40_spill]] }
  0xfd   :  { %8298 = vmatpush3.bf16.msra.mxu0 %v603_v53  ;;  %v7933_v2 = vld [vmem:[%s12938_s17] ss:$0 sm:$0xff]  ;;  %s12998_s22 = sld [smem:[#allocation43_spill]]  ;;  %s13008_s27 = sld [smem:[#allocation41_spill]] }
  0xfe   :  { %8292 = vmatpush3.bf16.msra.mxu1 %v551_v31  ;;  %8299 = vmatprep.subr.bf16.mxu0 %v12750_v0  ;;  %s13009_s13 = sld [smem:[#allocation42_spill]]  ;;  %s13046_s23 = sld [smem:[#allocation45_spill]] }
  0xff   :  { %8305 = vmatprep.subr.bf16.mxu1 %v12750_v0  ;;  %s13059_s26 = sld [smem:[#allocation44_spill]]  ;;  %s13071_s20 = sld [smem:[#allocation51_spill]] }
 0x100   :  { %s13077_s28 = sld [smem:[#allocation46_spill]]  ;;  %s13079_s1 = sld [smem:[#allocation49_spill]] }
 0x101   :  { %8300 = vmatpush3.bf16.msra.mxu0 %v604_v56  ;;  %s13081_s2 = sld [smem:[#allocation47_spill]]  ;;  %s13083_s4 = sld [smem:[#allocation48_spill]] }
 0x102   :  { %8313 = vmatprep.subr.bf16.mxu0 %v12750_v0  ;;  %s13084_s7 = sld [smem:[#allocation52_spill]]  ;;  %s13087_s12 = sld [smem:[#allocation55_spill]] }
 0x103   :  { %s13089_s10 = sld [smem:[#allocation53_spill]]  ;;  %s13091_s0 = sld [smem:[#allocation54_spill]] }
 0x104   :  { %s13093_s5 = sld [smem:[#allocation56_spill]]  ;;  %s13094_s17 = sld [smem:[#allocation59_spill]] }
 0x1ce   :  { %v497_v8 = vpop.f32.mrb[0].mxu0 }
 0x1cf   :  { %v498_v9 = vadd.f32 %v7927_v7, %v497_v8  ;;  %v8287_v10 = vpop.f32.mrb[1].mxu0 }
 0x1d0   :  { %v500_v11 = vpop.f32.mrb[2].mxu0 }
 0x1d1   :  { %v501_v12 = vadd.f32 %v7927_v7, %v500_v11  ;;  %v8288_v13 = vpop.f32.mrb[3].mxu0  ;;  %v505_v14 = vsel %vm504_vm3, %v498_v9, 0.0 }
 0x1d2   :  { %506 = vadd.xlane.f32.xlu0 %v505_v14 }
 0x1d3   :  { %v508_v15 = vsel %vm504_vm3, %v501_v12, 0.0 }
 0x1d6   :  { %509 = vadd.xlane.f32.xlu0 %v508_v15 }
 0x25f   :  { %v507_v16 = vpop.xlane.xlu0 %506 }
 0x260   :  { %v512_v17 = vmul.f32 0.03125, %v507_v16 }
 0x262   :  { %v514_v18 = vsub.f32 %v498_v9, %v512_v17 }
 0x263   :  { %v510_v19 = vpop.xlane.xlu0 %509 }
 0x264   :  { %v513_v20 = vmul.f32 0.03125, %v510_v19  ;;  %v516_v21 = vmul.f32 %v514_v18, %v514_v18 }
 0x266   :  { %v515_v22 = vsub.f32 %v501_v12, %v513_v20  ;;  %v518_v23 = vsel %vm504_vm3, %v516_v21, 0.0  ;;  %v324_v21 = vld [vmem:[%s12942_s21] sm:$0xff] }
 0x267   :  { %519 = vadd.xlane.f32.xlu1 %v518_v23 }
 0x268   :  { %v517_v24 = vmul.f32 %v515_v22, %v515_v22 }
 0x26a   :  { %v521_v25 = vsel %vm504_vm3, %v517_v24, 0.0  ;;  %v326_v24 = vld [vmem:[%s12942_s21 + $0x10] sm:$0xff] }
 0x26b   :  { %522 = vadd.xlane.f32.xlu1 %v521_v25  ;;  %v327_v25 = vld [vmem:[%s12942_s21 + $0x18] sm:$0xff] }
 0x26c   :  { %v701_v26 = vpack.c.bf16 %v327_v25, %v326_v24  ;;  %v7940_v24 = vld [vmem:[%s12949_s30] ss:$0 sm:$0xff] }
 0x2f4   :  { %v520_v32 = vpop.xlane.xlu1 %519 }
 0x2f5   :  { %v524_v33 = vmul.f32 0.03125, %v520_v32 }
 0x2f7   :  { %v526_v34 = vadd.f32 1e-05, %v524_v33 }
 0x2f8   :  { %v523_v35 = vpop.xlane.xlu1 %522 }
 0x2f9   :  { %9020 = vrsqrt.f32 %v526_v34  ;;  %v525_v36 = vmul.f32 0.03125, %v523_v35  ;;  %v7935_v34 = vld [vmem:[%s12943_s25] ss:$0 sm:$0xff]  ;;  %s13097_s25 = sld [smem:[#allocation58_spill]] }
 0x2fb   :  { %v527_v37 = vadd.f32 1e-05, %v525_v36 }
 0x2fd   :  { %9022 = vrsqrt.f32 %v527_v37  ;;  %v7936_v37 = vld [vmem:[%s12944_s29] ss:$0 sm:$0xff]  ;;  %s13102_s29 = sld [smem:[#allocation50_spill]] }
 0x303   :  { %v9021_v38 = vpop.eup %9020 }
 0x304   :  { %v530_v40 = vmul.f32 %v9021_v38, %v514_v18 }
 0x306   :  { %v538_v41 = vmul.f32 %v7929_v39, %v530_v40 }
 0x307   :  { %v9023_v42 = vpop.eup %9022 }
 0x308   :  { %v531_v44 = vmul.f32 %v9023_v42, %v515_v22  ;;  %v546_v46 = vadd.f32 %v7930_v43, %v538_v41  ;;  %v325_v22 = vld [vmem:[%s12942_s21 + $0x8] sm:$0xff]  ;;  %s13095_s21 = sld [smem:[#allocation57_spill]] }
 0x309   :  { %v700_v23 = vpack.c.bf16 %v325_v22, %v324_v21  ;;  %v7939_v21 = vld [vmem:[%s12948_s6] ss:$0 sm:$0xff] }
 0x30a   :  { %v539_v45 = vmul.f32 %v7929_v39, %v531_v44  ;;  %v548_v48 = vmax.f32 %v546_v46, 0.0  ;;  %v7937_v46 = vld [vmem:[%s12945_s3] ss:$0 sm:$0xff]  ;;  %s13229_s3 = sld [smem:[#allocation60_spill]] }
 0x30c   :  { %v547_v47 = vadd.f32 %v7930_v43, %v539_v45 }
 0x30e   :  { %v549_v49 = vmax.f32 %v547_v47, 0.0 }
 0x310   :  { %v552_v50 = vpack.c.bf16 %v549_v49, %v548_v48 }
 0x312   :  { %8294 = vmatmul.mubr.msk.bf16.vlgmr.msra.gmra.mrb[0].mxu1 %vm504_vm3, %v552_v50 }
 0x313   :  { %8309 = vmatprep.mubr.msk.bf16.mxu1 %vm9496_vm0, %v12750_v0  ;;  %8306 = vmatpush3.bf16.msra.mxu1 %v700_v23 }
 0x314   :  { %8307 = vmatprep.subr.bf16.mxu1 %v12750_v0 }
 0x317   :  { %8308 = vmatpush3.bf16.msra.mxu1 %v701_v26 }
 0x3e5   :  { %v596_v58 = vpop.f32.mrb[0].mxu1 }
 0x3e6   :  { %v8295_v59 = vpop.f32.mrb[1].mxu1  ;;  %v9842_v61 = vadd.f32 %v7931_v57, %v596_v58 }
 0x3e7   :  { %v599_v60 = vpop.f32.mrb[2].mxu1 }
 0x3e8   :  { %12939 = vst [vmem:[#allocation62_spill] sm:$0xff] %v9842_v61  ;;  %v9844_v62 = vadd.f32 %v7931_v57, %v599_v60  ;;  %v8296_v63 = vpop.f32.mrb[3].mxu1 }
 0x3ea   :  { %12940 = vst [vmem:[#allocation63_spill] sm:$0xff] %v9844_v62  ;;  %v9848_v1 = vpack.c.bf16 %v9844_v62, %v9842_v61 }
 0x3ec   :  { %12941 = vst [vmem:[#allocation64_spill] sm:$0xff] %v9848_v1  ;;  %8302 = vmatmul.mubr.msk.bf16.vlgmr.msra.gmra.mrb[4].mxu0 %vm504_vm3, %v9848_v1 }
 0x3ed   :  { %8317 = vmatprep.mubr.msk.bf16.mxu0 %vm9496_vm0, %v12750_v0 }
 0x4bf   :  { %v649_v3 = vpop.f32.mrb[4].mxu0 }
 0x4c0   :  { %v650_v4 = vadd.f32 %v7933_v2, %v649_v3  ;;  %v8303_v5 = vpop.f32.mrb[5].mxu0 }
 0x4c1   :  { %v652_v6 = vpop.f32.mrb[6].mxu0  ;;  %v331_v5 = vld [vmem:[%s12946_s14] sm:$0xff] }
 0x4c2   :  { %v653_v7 = vadd.f32 %v7933_v2, %v652_v6  ;;  %v8304_v8 = vpop.f32.mrb[7].mxu0  ;;  %v656_v9 = vsel %vm504_vm3, %v650_v4, 0.0  ;;  %v332_v6 = vld [vmem:[%s12946_s14 + $0x8] sm:$0xff] }
 0x4c3   :  { %657 = vadd.xlane.f32.xlu0 %v656_v9  ;;  %v333_v8 = vld [vmem:[%s12946_s14 + $0x10] sm:$0xff]  ;;  %v334_v9 = vld [vmem:[%s12946_s14 + $0x18] sm:$0xff]  ;;  %s13230_s14 = sld [smem:[#allocation61_spill]] }
 0x4c4   :  { %v659_v10 = vsel %vm504_vm3, %v653_v7, 0.0 }
 0x4c5   :  { %660 = vadd.xlane.f32.xlu1 %v659_v10  ;;  %v798_v10 = vpack.c.bf16 %v334_v9, %v333_v8 }
 0x550   :  { %v658_v11 = vpop.xlane.xlu0 %657 }
 0x551   :  { %v662_v12 = vmul.f32 0.03125, %v658_v11  ;;  %v422_v11 = vld [vmem:[%s12947_s24] sm:$0xff] }
 0x552   :  { %v661_v13 = vpop.xlane.xlu1 %660 }
 0x553   :  { %v664_v14 = vsub.f32 %v650_v4, %v662_v12  ;;  %v663_v15 = vmul.f32 0.03125, %v661_v13  ;;  %v423_v12 = vld [vmem:[%s12947_s24 + $0x8] sm:$0xff]  ;;  %v9497_v13 = vmov 0  }
 0x554   :  { %9014 = vset.pattern.permute.xlu1 %v9497_v13  ;;  %9015 = vset.pattern.permute.xlu0 %v9497_v13 }
 0x555   :  { %v665_v16 = vsub.f32 %v653_v7, %v663_v15  ;;  %v666_v17 = vmul.f32 %v664_v14, %v664_v14  ;;  %v797_v7 = vpack.c.bf16 %v332_v6, %v331_v5  ;;  %v339_v5 = vld [vmem:[%s12951_s15 + $0x18] sm:$0xff] }
 0x557   :  { %v668_v18 = vsel %vm504_vm3, %v666_v17, 0.0  ;;  %v667_v19 = vmul.f32 %v665_v16, %v665_v16  ;;  %8314 = vmatpush3.bf16.msra.mxu0 %v797_v7  ;;  %v417_v7 = vlaneseq }
 0x558   :  { %669 = vadd.xlane.f32.xlu0 %v668_v18  ;;  %8315 = vmatprep.subr.bf16.mxu0 %v12750_v0 }
 0x559   :  { %v671_v20 = vsel %vm504_vm3, %v667_v19, 0.0  ;;  %v9978_v8 = vshrl.u32 %v417_v7, 7  ;;  %v421_v13 = vand.u32 127, %v417_v7 }
 0x55a   :  { %672 = vadd.xlane.f32.xlu1 %v671_v20 }
 0x55b   :  { %8316 = vmatpush3.bf16.msra.mxu0 %v798_v10  ;;  %vm437_vm9 = vcmp.ne.s32.totalorder %v9978_v8, %v421_v13 }
 0x5e5   :  { %v670_v27 = vpop.xlane.xlu0 %669 }
 0x5e6   :  { %v674_v28 = vmul.f32 0.03125, %v670_v27 }
 0x5e7   :  { %v673_v29 = vpop.xlane.xlu1 %672 }
 0x5e8   :  { %v676_v30 = vadd.f32 1e-05, %v674_v28  ;;  %v675_v31 = vmul.f32 0.03125, %v673_v29 }
 0x5ea   :  { %9024 = vrsqrt.f32 %v676_v30  ;;  %v677_v32 = vadd.f32 1e-05, %v675_v31 }
 0x5ec   :  { %9026 = vrsqrt.f32 %v677_v32 }
 0x5f4   :  { %v9025_v33 = vpop.eup %9024 }
 0x5f5   :  { %v680_v35 = vmul.f32 %v9025_v33, %v664_v14  ;;  %v12748_v33 = vmov 0.0|0.0  }
 0x5f6   :  { %v9027_v36 = vpop.eup %9026  ;;  %8883 = vmatprep.subr.bf16.mxu1 %v12748_v33 }
 0x5f7   :  { %v688_v38 = vmul.f32 %v7935_v34, %v680_v35  ;;  %v681_v39 = vmul.f32 %v9027_v36, %v665_v16 }
 0x5f9   :  { %v689_v40 = vmul.f32 %v7935_v34, %v681_v39  ;;  %v696_v41 = vadd.f32 %v7936_v37, %v688_v38  ;;  %v7941_v34 = vld [vmem:[%s12950_s11] ss:$0 sm:$0xff] }
 0x5fb   :  { %v697_v42 = vadd.f32 %v7936_v37, %v689_v40  ;;  %v698_v43 = vmax.f32 %v696_v41, 0.0 }
 0x5fd   :  { %v699_v44 = vmax.f32 %v697_v42, 0.0  ;;  %v12954_v42 = vmov 0 }
 0x5fe   :  { %v12955_v42 = vsel %vm9896_vm5, 4294967295, %v12954_v42 }
 0x5ff   :  { %v702_v45 = vpack.c.bf16 %v699_v44, %v698_v43  ;;  %12956 = vst [vmem:[#allocation67_spill] sm:$0xff] %v12955_v42 }
 0x601   :  { %8310 = vmatmul.mubr.msk.bf16.vlgmr.msra.gmra.mrb[4].mxu1 %vm504_vm3, %v702_v45 }
 0x602   :  { %8325 = vmatprep.mubr.msk.f32.mxu1 %vm9496_vm0, %v12750_v0 }
 0x6d4   :  { %v746_v47 = vpop.f32.mrb[4].mxu1 }
 0x6d5   :  { %v747_v48 = vadd.f32 %v7937_v46, %v746_v47  ;;  %v8311_v49 = vpop.f32.mrb[5].mxu1 }
 0x6d6   :  { %v749_v50 = vpop.f32.mrb[6].mxu1  ;;  %v340_v49 = vld [vmem:[%s12951_s15 + $0x20] sm:$0xff] }
 0x6d7   :  { %v750_v51 = vadd.f32 %v7937_v46, %v749_v50  ;;  %v8312_v52 = vpop.f32.mrb[7].mxu1  ;;  %v753_v53 = vsel %vm504_vm3, %v747_v48, 0.0  ;;  %v341_v50 = vld [vmem:[%s12951_s15 + $0x28] sm:$0xff] }
 0x6d8   :  { %754 = vadd.xlane.f32.xlu0 %v753_v53  ;;  %v344_v52 = vld [vmem:[%s12951_s15 + $0x40] sm:$0xff]  ;;  %v9922_v53 = vpack.c.bf16 %v341_v50, %v340_v49 }
 0x6d9   :  { %v756_v54 = vsel %vm504_vm3, %v750_v51, 0.0 }
 0x6da   :  { %757 = vadd.xlane.f32.xlu1 %v756_v54  ;;  %12958 = vst [vmem:[#allocation69_spill] sm:$0xff] %v9922_v53  ;;  %v342_v54 = vld [vmem:[%s12951_s15 + $0x30] sm:$0xff] }
 0x765   :  { %v755_v55 = vpop.xlane.xlu0 %754 }
 0x766   :  { %v759_v56 = vmul.f32 0.03125, %v755_v55  ;;  %v343_v55 = vld [vmem:[%s12951_s15 + $0x38] sm:$0xff] }
 0x767   :  { %v758_v57 = vpop.xlane.xlu1 %757 }
 0x768   :  { %v761_v58 = vsub.f32 %v747_v48, %v759_v56  ;;  %v760_v59 = vmul.f32 0.03125, %v758_v57  ;;  %v345_v48 = vld [vmem:[%s12951_s15 + $0x48] sm:$0xff]  ;;  %v854_v57 = vpack.c.bf16 %v344_v52, %v344_v52 }
 0x76a   :  { %v762_v60 = vsub.f32 %v750_v51, %v760_v59  ;;  %v763_v63 = vmul.f32 %v761_v58, %v761_v58  ;;  %v855_v51 = vpack.c.bf16 %v345_v48, %v345_v48  ;;  %v9934_v59 = vpack.c.bf16 %v343_v55, %v342_v54 }
 0x76b   :  { %v9500_v54 = vmov 1966171168  }
 0x76c   :  { %v765_v2 = vsel %vm504_vm3, %v763_v63, 0.0  ;;  %v764_v3 = vmul.f32 %v762_v60, %v762_v60  ;;  %v9927_v56 = vsel %vm1067_vm6, %v855_v51, 0  ;;  %12960 = vst [vmem:[#allocation71_spill] sm:$0xff] %v9934_v59  ;;  %v336_v63 = vld [vmem:[%s12951_s15] sm:$0xff]  ;;  %v1253_v55 = vunpack.c.l.s4 %v9500_v54 }
 0x76d   :  { %766 = vadd.xlane.f32.xlu0 %v765_v2  ;;  %12959 = vst [vmem:[#allocation70_spill] sm:$0xff] %v9927_v56  ;;  %v337_v2 = vld [vmem:[%s12951_s15 + $0x8] sm:$0xff] }
 0x76e   :  { %v768_v4 = vsel %vm504_vm3, %v764_v3, 0.0  ;;  %v9960_v3 = vpack.c.bf16 %v337_v2, %v336_v63  ;;  %v10003_v63 = vsub.s32 3, %v9978_v8  ;;  %v10006_v2 = vsub.s32 1, %v9978_v8 }
 0x76f   :  { %769 = vadd.xlane.f32.xlu1 %v768_v4  ;;  %v338_v4 = vld [vmem:[%s12951_s15 + $0x10] sm:$0xff] }
 0x770   :  { %12962 = vst [vmem:[#allocation73_spill] sm:$0xff] %v9960_v3  ;;  %v9967_v6 = vpack.c.bf16 %v339_v5, %v338_v4  ;;  %12969 = vst [vmem:[#allocation78_spill] sm:$0xff] %v10003_v63  ;;  %v1254_v4 = vunpack.c.0.s8 %v1253_v55 }
 0x771   :  { %12970 = vst [vmem:[#allocation79_spill] sm:$0xff] %v10006_v2 }
 0x772   :  { %12964 = vst [vmem:[#allocation74_spill] sm:$0xff] %v9967_v6 }
 0x780   :  { %426 = vperm.xlu1 %9014, %v422_v11   ;;  %v9981_v11 = vsub.s32 0, %v9978_v8 }
 0x782   :  { %12965 = vst [vmem:[#allocation75_spill] sm:$0xff] %v9981_v11 }
 0x783   :  { %429 = vperm.xlu0 %9015, %v423_v12   ;;  %v419_v12 = vadd.s32 8, %v9978_v8 }
 0x785   :  { %vm438_vm7 = vcmp.ne.s32.totalorder %v419_v12, %v421_v13 }
 0x7fa   :  { %v767_v14 = vpop.xlane.xlu0 %766 }
 0x7fb   :  { %v771_v15 = vmul.f32 0.03125, %v767_v14  ;;  %v7924_v14 = vld [vmem:[%s12963_s16] ss:$0 sm:$0xff] }
 0x7fc   :  { %v770_v16 = vpop.xlane.xlu1 %769 }
 0x7fd   :  { %v773_v17 = vadd.f32 1e-05, %v771_v15  ;;  %v772_v18 = vmul.f32 0.03125, %v770_v16 }
 0x7ff   :  { %9028 = vrsqrt.f32 %v773_v17  ;;  %v774_v19 = vadd.f32 1e-05, %v772_v18 }
 0x800   :  { %v427_v10 = vpop.permute.xlu1 %426 }
 0x801   :  { %9030 = vrsqrt.f32 %v774_v19  ;;  %vm435_vm10 = vcmp.eq.s32.totalorder %v427_v10, %v7924_v14 }
 0x802   :  { %v430_v9 = vpop.permute.xlu0 %429  ;;  %vm439_vm11 = vmand %vm435_vm10, %vm437_vm9  ;;  %vm1824_vm9 = vcmask 1044484   ;;  %vm1826_vm10 = vcmask 1045509  }
 0x803   :  { %vm436_vm8 = vcmp.eq.s32.totalorder %v430_v9, %v7924_v14  ;;  %v10011_v9 = vsub.s32 4, %v9978_v8 }
 0x804   :  { %vm440_vm12 = vmand %vm436_vm8, %vm438_vm7  ;;  %vm1820_vm7 = vcmask 1042434   ;;  %vm1822_vm8 = vcmask 1043459  }
 0x805   :  { %12971 = vst [vmem:[#allocation80_spill] sm:$0xff] %v10011_v9 }
 0x809   :  { %v9029_v20 = vpop.eup %9028 }
 0x80a   :  { %v777_v22 = vmul.f32 %v9029_v20, %v761_v58  ;;  %v12746_v58 = vmov 1.0  }
 0x80b   :  { %v9031_v23 = vpop.eup %9030 }
 0x80c   :  { %v785_v25 = vmul.f32 %v7939_v21, %v777_v22  ;;  %v778_v26 = vmul.f32 %v9031_v23, %v762_v60  ;;  %v9943_v60 = vsel %vm1067_vm6, %v854_v57, 0 }
 0x80d   :  { %12961 = vst [vmem:[#allocation72_spill] sm:$0xff] %v9943_v60 }
 0x80e   :  { %v786_v27 = vmul.f32 %v7939_v21, %v778_v26  ;;  %v793_v28 = vadd.f32 %v7940_v24, %v785_v25 }
 0x810   :  { %v794_v29 = vadd.f32 %v7940_v24, %v786_v27  ;;  %v795_v30 = vmax.f32 %v793_v28, 0.0 }
 0x812   :  { %v796_v31 = vmax.f32 %v794_v29, 0.0 }
 0x814   :  { %v799_v32 = vpack.c.bf16 %v796_v31, %v795_v30 }
 0x816   :  { %8318 = vmatmul.mubr.msk.bf16.vlgmr.msra.gmra.mrb[8].mxu0 %vm504_vm3, %v799_v32 }
 0x8e9   :  { %v843_v35 = vpop.f32.mrb[8].mxu0 }
 0x8ea   :  { %v9886_v36 = vadd.f32 %v7941_v34, %v843_v35  ;;  %v8319_v37 = vpop.f32.mrb[9].mxu0  ;;  %v7952_v35 = vld [vmem:[%s12966_s18] ss:$0 sm:$0xff] }
 0x8eb   :  { %v846_v38 = vpop.f32.mrb[10].mxu0 }
 0x8ec   :  { %12952 = vst [vmem:[#allocation65_spill] sm:$0xff] %v9886_v36  ;;  %v9888_v39 = vadd.f32 %v7941_v34, %v846_v38  ;;  %v8320_v40 = vpop.f32.mrb[11].mxu0  ;;  %8332 = vmatprep.mubr.msk.f32.mxu0 %vm877_vm4, %v9886_v36  ;;  %v875_v41 = vmul.f32 %v9886_v36, %v9886_v36 }
 0x8ee   :  { %12953 = vst [vmem:[#allocation66_spill] sm:$0xff] %v9888_v39  ;;  %v9902_v43 = vpack.c.bf16 %v9888_v39, %v9886_v36  ;;  %v878_v44 = vsel %vm877_vm4, %v875_v41, 0.0  ;;  %v876_v45 = vmul.f32 %v9888_v39, %v9888_v39 }
 0x8ef   :  { %879 = vadd.xlane.f32.xlu0 %v878_v44  ;;  %v9993_v44 = vsel %vm439_vm11, 1.0, %v12750_v0  ;;  %vm1828_vm11 = vcmask 1046534  }
 0x8f0   :  { %12957 = vst [vmem:[#allocation68_spill] sm:$0xff] %v9902_v43  ;;  %8889 = vmatprep.subr.msk.bf16.mxu0 %vm9896_vm5, %v9902_v43  ;;  %v881_v46 = vsel %vm877_vm4, %v876_v45, 0.0  ;;  %v8884_v47 = vpack.c.bf16 %v876_v45, %v875_v41  ;;  %v9990_v41 = vsel %vm440_vm12, 1.0, %v12750_v0  ;;  %12968 = vst [vmem:[#allocation77_spill] sm:$0xff] %v9993_v44  ;;  %vm1830_vm12 = vcmask 1047559  }
 0x8f1   :  { %8892 = vmatpush3.bf16.xpose.msk.msra.mxu0 %vm9896_vm5, %v9902_v43  ;;  %882 = vadd.xlane.f32.xlu1 %v881_v46  ;;  %12967 = vst [vmem:[#allocation76_spill] sm:$0xff] %v9990_v41 }
 0x8f2   :  { %8886 = vmatpush3.bf16.xpose.msk.msra.mxu1 %vm9896_vm5, %v8884_v47  ;;  %8341 = vmatprep.subr.bf16.mxu0 %v12750_v0 }
 0x8f3   :  { %8335 = vmatprep.subr.bf16.mxu1 %v12750_v0 }
 0x8f8   :  { %8333 = vmatmul.mubr.msk.f32.vlgmr.msra.gmra.mrb[12].mxu0 %vm877_vm4, %v9888_v39 }
 0x8f9   :  { %8326 = vmatmul.mubr.msk.f32.vlgmr.msra.gmra.mrb[8].mxu1 %vm877_vm4, %v12746_v58  ;;  %8342 = vmatpush3.bf16.msra.mxu0 %v9922_v53 }
 0x8fa   :  { %8336 = vmatpush3.bf16.msra.mxu1 %v9927_v56  ;;  %8337 = vmatprep.mubr.msk.bf16.mxu1 %vm9496_vm0, %v12750_v0 }
 0x8fb   :  { %8343 = vmatprep.subr.bf16.mxu0 %v12750_v0  ;;  %8345 = vmatprep.mubr.msk.bf16.mxu0 %vm9496_vm0, %v12750_v0 }
 0x8fc   :  { %8349 = vmatprep.subr.bf16.mxu1 %v12750_v0 }
 0x8fd   :  { %8338 = vmatmul.mubr.msk.bf16.vlgmr.msra.gmra.mrb[12].mxu1 %vm877_vm4, %v9902_v43  ;;  %8344 = vmatpush3.bf16.msra.mxu0 %v9934_v59 }
 0x8fe   :  { %8350 = vmatpush3.bf16.msra.mxu1 %v9943_v60  ;;  %8351 = vmatprep.mubr.msk.bf16.mxu1 %vm9496_vm0, %v12750_v0 }
 0x8ff   :  { %8355 = vmatprep.subr.bf16.mxu1 %v12750_v0  ;;  %8893 = vmatprep.subr.bf16.mxu0 %v12748_v33 }
 0x900   :  { %8346 = vmatmul.mubr.msk.bf16.vlgmr.msra.gmra.mrb[16].mxu0 %vm504_vm3, %v9848_v1 }
 0x901   :  { %8371 = vmatprep.mubr.msk.f32.mxu0 %vm9496_vm0, %v12750_v0 }
 0x905   :  { %8352 = vmatmul.mubr.msk.bf16.vlgmr.msra.gmra.mrb[16].mxu1 %vm877_vm4, %v9902_v43 }
 0x906   :  { %8356 = vmatpush3.bf16.msra.mxu1 %v9960_v3  ;;  %8359 = vmatprep.mubr.msk.bf16.mxu1 %vm9496_vm0, %v12750_v0 }
 0x907   :  { %8357 = vmatprep.subr.bf16.mxu1 %v12750_v0 }
 0x90a   :  { %8358 = vmatpush3.bf16.msra.mxu1 %v9967_v6 }
 0x90b   :  { %8382 = vmatprep.subr.bf16.mxu1 %v12750_v0 }
 0x911   :  { %8360 = vmatmul.mubr.msk.bf16.vlgmr.msra.gmra.mrb[16].mxu1 %vm504_vm3, %v9848_v1 }
 0x912   :  { %8386 = vmatprep.mubr.msk.bf16.mxu1 %vm9496_vm0, %v12750_v0 }
 0x97c   :  { %v880_v20 = vpop.xlane.xlu0 %879 }
 0x97e   :  { %v883_v21 = vpop.xlane.xlu1 %882 }
 0x9cb   :  { %v8334_v15 = vpop.f32.mrb[12].mxu0 }
 0x9cc   :  { %v959_v16 = vpop.f32.mrb[8].mxu1  ;;  %v1035_v17 = vpop.f32.mrb[13].mxu0  ;;  %v1051_v22 = vmul.f32 2.0, %v8334_v15  ;;  %v10018_v15 = vsub.s32 %v1254_v4, %v9978_v8 }
 0x9cd   :  { %v1047_v18 = vrot.slane %v959_v16, %v9981_v11  ;;  %v8327_v19 = vpop.f32.mrb[9].mxu1  ;;  %v1050_v25 = vmul.f32 2.0, %v1035_v17 }
 0x9ce   :  { %12972 = vst [vmem:[#allocation81_spill] sm:$0xff] %v10018_v15  ;;  %v10025_v19 = vsub.s32 2, %v9978_v8 }
 0x9cf   :  { %v1048_v23 = vadd.f32 %v1047_v18, %v880_v20  ;;  %v1049_v24 = vadd.f32 %v1047_v18, %v883_v21  ;;  %v10022_v18 = vsub.s32 5, %v9978_v8 }
 0x9d0   :  { %v1105_v26 = vpop.f32.mrb[12].mxu1  ;;  %12974 = vst [vmem:[#allocation83_spill] sm:$0xff] %v10025_v19 }
 0x9d1   :  { %v1053_v27 = vsub.f32 %v1049_v24, %v1051_v22  ;;  %v1052_v28 = vsub.f32 %v1048_v23, %v1050_v25  ;;  %v8339_v29 = vpop.f32.mrb[13].mxu1  ;;  %12973 = vst [vmem:[#allocation82_spill] sm:$0xff] %v10022_v18  ;;  %v10031_v23 = vsub.s32 6, %v9978_v8 }
 0x9d2   :  { %v1108_v30 = vpop.f32.mrb[14].mxu1 }
 0x9d3   :  { %v1055_v31 = vmax.f32 %v1053_v27, 0.0  ;;  %v1054_v32 = vmax.f32 %v1052_v28, 0.0  ;;  %v8340_v34 = vpop.f32.mrb[15].mxu1  ;;  %v1146_v37 = vpop.f32.mrb[16].mxu0  ;;  %12975 = vst [vmem:[#allocation84_spill] sm:$0xff] %v10031_v23  ;;  %v10035_v27 = vsub.s32 7, %v9978_v8 }
 0x9d4   :  { %v1147_v38 = vadd.f32 %v1146_v37, %v1105_v26  ;;  %v8347_v40 = vpop.f32.mrb[17].mxu0 }
 0x9d5   :  { %vm1057_vm14 = vcmp.le.f32.partialorder %v1055_v31, 1.0  ;;  %vm1056_vm15 = vcmp.le.f32.partialorder %v1054_v32, 1.0  ;;  %v1149_v45 = vpop.f32.mrb[18].mxu0  ;;  %12976 = vst [vmem:[#allocation85_spill] sm:$0xff] %v10035_v27 }
 0x9d6   :  { %v1059_v46 = vsel %vm1057_vm14, %v9990_v41, 0.0  ;;  %v1058_v47 = vsel %vm1056_vm15, %v9993_v44, 0.0  ;;  %v1159_v48 = vadd.f32 %v7952_v35, %v1147_v38  ;;  %v1150_v49 = vadd.f32 %v1149_v45, %v1108_v30  ;;  %v8348_v50 = vpop.f32.mrb[19].mxu0 }
 0x9d7   :  { %1062 = vst.msk [vmem:[#allocation2 + $0x8] sm:$0xff] %vm12835_vm13, %v1059_v46  ;;  %1061 = vst.msk [vmem:[#allocation2] sm:$0xff] %vm12835_vm13, %v1058_v47 }
 0x9d8   :  { %1161 = vst.msk [vmem:[#allocation3] sm:$0xff] %vm504_vm3, %v1159_v48  ;;  %v1160_v51 = vadd.f32 %v7952_v35, %v1150_v49 }
 0x9da   :  { %1162 = vst.msk [vmem:[#allocation3 + $0x8] sm:$0xff] %vm504_vm3, %v1160_v51 }
 0x9de   :  { %v1249_v52 = vld [vmem:[#allocation2] sm:$0xff]  ;;  %v10048_v32 = vld [vmem:[#allocation2 + $0x8] sm:$0xff] }
 0x9df   :  { %v1627_v57 = vrot.slane %v1249_v52, %v9981_v11  ;;  %v1660_v5 = vrot.slane %v1249_v52, %v10003_v63  ;;  %v1638_v7 = vrot.slane %v1249_v52, %v10006_v2  ;;  %v1671_v17 = vrot.slane %v1249_v52, %v10011_v9  ;;  %v1248_v50 = vld [vmem:[#allocation3] sm:$0xff] }
 0x9e0   :  { %v1682_v21 = vrot.slane %v1249_v52, %v10022_v18  ;;  %v1649_v22 = vrot.slane %v1249_v52, %v10025_v19  ;;  %v1693_v26 = vrot.slane %v1249_v52, %v10031_v23  ;;  %v1704_v30 = vrot.slane %v1249_v52, %v10035_v27 }
 0x9e1   :  { %1633 = vbcast.lane.b32.xlu0 %v1627_v57, 264  ;;  %1629 = vbcast.lane.b32.xlu1 %v1627_v57, 256  ;;  %v2437_v14 = vld [vmem:[#allocation3 + $0x8] sm:$0xff]  ;;  %v2804_v34 = vrot.slane %v10048_v32, %v9981_v11  ;;  %v2815_v46 = vrot.slane %v10048_v32, %v10006_v2  ;;  %v2826_v49 = vrot.slane %v10048_v32, %v10025_v19 }
 0x9e2   :  { %v2447_v20 = vrot.slane %v2437_v14, %v10018_v15  ;;  %v2440_v24 = vcombine.high %v2437_v14, %v2437_v14  ;;  %v1258_v51 = vrot.slane %v1248_v50, %v10018_v15  ;;  %v10077_v52 = vrot.slane %v10048_v32, %v10003_v63 }
 0x9e4   :  { %v10013_v10 = vpop.f32.mrb[16].mxu1  ;;  %v2455_v25 = vcombine.high %v2447_v20, %v2447_v20  ;;  %v10038_v28 = vrot.slane %v2440_v24, %v10018_v15  ;;  %v1274_v54 = vrot.slane %v1258_v51, %v10018_v15  ;;  %v1266_v55 = vcombine.high %v1258_v51, %v1258_v51 }
 0x9e5   :  { %v8361_v12 = vpop.f32.mrb[17].mxu1  ;;  %1666 = vbcast.lane.b32.xlu0 %v1660_v5, 264  ;;  %1640 = vbcast.lane.b32.xlu1 %v1638_v7, 256 }
 0x9e6   :  { %v10015_v13 = vpop.f32.mrb[18].mxu1  ;;  %v10041_v29 = vrot.slane %v2455_v25, %v10018_v15  ;;  %v10046_v31 = vrot.slane %v10038_v28, %v10018_v15  ;;  %v1303_v57 = vrot.slane %v1274_v54, %v9981_v11  ;;  %v1288_v4 = vrot.slane %v1266_v55, %v10018_v15 }
 0x9e7   :  { %v8362_v16 = vpop.f32.mrb[19].mxu1  ;;  %v1296_v14 = vcombine.high %v1274_v54, %v1274_v54 }
 0x9e8   :  { %v2487_v8 = vcombine.high %v10041_v29, %v10041_v29  ;;  %v2486_v37 = vcombine.high %v10046_v31, %v10046_v31  ;;  %v1307_v12 = vrot.slane %v1288_v4, %v9981_v11 }
 0x9e9   :  { %1677 = vbcast.lane.b32.xlu0 %v1671_v17, 264  ;;  %1644 = vbcast.lane.b32.xlu1 %v1638_v7, 264  ;;  %v10084_v7 = vadd.f32 %v1303_v57, %v10013_v10 }
 0x9ea   :  { %v2504_v35 = vrot.slane %v2487_v8, %v9981_v11  ;;  %v2516_v45 = vrot.slane %v2486_v37, %v9981_v11  ;;  %v2463_v8 = vrot.slane %v2447_v20, %v10018_v15 }
 0x9ec   :  { %v10058_v38 = vadd.f32 %v2504_v35, %v10013_v10  ;;  %v10061_v40 = vadd.f32 %v2504_v35, %v10015_v13  ;;  %v10067_v47 = vadd.f32 %v2516_v45, %v10013_v10  ;;  %v10070_v48 = vadd.f32 %v2516_v45, %v10015_v13 }
 0x9ed   :  { %1684 = vbcast.lane.b32.xlu0 %v1682_v21, 256  ;;  %1651 = vbcast.lane.b32.xlu1 %v1649_v22, 256  ;;  %v2492_v37 = vrot.slane %v2463_v8, %v9981_v11 }
 0x9ee   :  { %v2563_v6 = vsel %vm504_vm3, %v10058_v38, 0.0  ;;  %v2566_v3 = vsel %vm504_vm3, %v10061_v40, 0.0 }
 0x9ef   :  { %v10116_v51 = vadd.f32 %v2492_v37, %v10015_v13 }
 0x9f1   :  { %1695 = vbcast.lane.b32.xlu0 %v1693_v26, 256  ;;  %1655 = vbcast.lane.b32.xlu1 %v1649_v22, 264  ;;  %v1311_v22 = vrot.slane %v1296_v14, %v9981_v11 }
 0x9f5   :  { %1706 = vbcast.lane.b32.xlu0 %v1704_v30, 256  ;;  %1662 = vbcast.lane.b32.xlu1 %v1660_v5, 256  ;;  %v1251_v5 = vcombine.high %v1248_v50, %v1248_v50 }
 0x9f7   :  { %v1265_v16 = vrot.slane %v1251_v5, %v10018_v15  ;;  %v2548_v5 = vsel %vm504_vm3, %v10116_v51, 0.0 }
 0x9f9   :  { %2806 = vbcast.lane.b32.xlu0 %v2804_v34, 256  ;;  %1673 = vbcast.lane.b32.xlu1 %v1671_v17, 256  ;;  %v1356_v17 = vsel %vm504_vm3, %v10084_v7, 0.0  ;;  %v1281_v24 = vrot.slane %v1265_v16, %v10018_v15  ;;  %v1267_v50 = vcombine.high %v1265_v16, %v1265_v16 }
 0x9fb   :  { %v1295_v55 = vrot.slane %v1267_v50, %v10018_v15  ;;  %v1297_v16 = vcombine.high %v1281_v24, %v1281_v24  ;;  %v2496_v50 = vrot.slane %v10041_v29, %v9981_v11 }
 0x9fd   :  { %2821 = vbcast.lane.b32.xlu0 %v2815_v46, 264  ;;  %1688 = vbcast.lane.b32.xlu1 %v1682_v21, 264  ;;  %v10091_v21 = vadd.f32 %v1307_v12, %v10013_v10  ;;  %v1299_v58 = vcombine.high %v1295_v55, %v1295_v55 }
 0x9ff   :  { %v1362_v25 = vsel %vm504_vm3, %v10091_v21, 0.0 }
 0xa01   :  { %2832 = vbcast.lane.b32.xlu0 %v2826_v49, 264  ;;  %1699 = vbcast.lane.b32.xlu1 %v1693_v26, 264  ;;  %v10098_v26 = vadd.f32 %v1311_v22, %v10013_v10 }
 0xa05   :  { %1710 = vbcast.lane.b32.xlu1 %v1704_v30, 264  ;;  %v1319_v30 = vrot.slane %v1281_v24, %v9981_v11 }
 0xa07   :  { %v10105_v35 = vadd.f32 %v1319_v30, %v10013_v10  ;;  %v10160_v29 = vadd.f32 %v1319_v30, %v10015_v13 }
 0xa09   :  { %2810 = vbcast.lane.b32.xlu1 %v2804_v34, 264  ;;  %v1368_v34 = vsel %vm504_vm3, %v10098_v26, 0.0  ;;  %v1380_v45 = vsel %vm504_vm3, %v10105_v35, 0.0 }
 0xa0d   :  { %2817 = vbcast.lane.b32.xlu1 %v2815_v46, 256  ;;  %v10111_v46 = vadd.f32 %v2492_v37, %v10013_v10  ;;  %v1327_v37 = vrot.slane %v1297_v16, %v9981_v11  ;;  %v10155_v16 = vadd.f32 %v2496_v50, %v10013_v10 }
 0xa0f   :  { %v2545_v20 = vsel %vm504_vm3, %v10111_v46, 0.0  ;;  %v10143_v24 = vadd.f32 %v1327_v37, %v10013_v10 }
 0xa11   :  { %2828 = vbcast.lane.b32.xlu1 %v2826_v49, 256  ;;  %v1298_v49 = vcombine.high %v1288_v4, %v1288_v4  ;;  %v1323_v4 = vrot.slane %v1295_v55, %v9981_v11 }
 0xa13   :  { %v1315_v54 = vrot.slane %v1298_v49, %v9981_v11  ;;  %v10138_v49 = vadd.f32 %v1307_v12, %v10015_v13  ;;  %v1392_v12 = vsel %vm504_vm3, %v10143_v24, 0.0 }
 0xa15   :  { %2839 = vbcast.lane.b32.xlu1 %v10077_v52, 256  ;;  %v10123_v14 = vadd.f32 %v1315_v54, %v10013_v10 }
 0xa20   :  { %1357 = vadd.xlane.f32.xlu0 %v1356_v17  ;;  %v10127_v17 = vadd.f32 %v1303_v57, %v10015_v13 }
 0xa24   :  { %1363 = vadd.xlane.f32.xlu0 %v1362_v25  ;;  %v1374_v25 = vsel %vm504_vm3, %v10123_v14, 0.0 }
 0xa28   :  { %1369 = vadd.xlane.f32.xlu0 %v1368_v34  ;;  %v10132_v34 = vadd.f32 %v1323_v4, %v10013_v10 }
 0xa2a   :  { %v1386_v57 = vsel %vm504_vm3, %v10132_v34, 0.0 }
 0xa2c   :  { %1381 = vadd.xlane.f32.xlu0 %v1380_v45  ;;  %v1359_v45 = vsel %vm504_vm3, %v10127_v17, 0.0 }
 0xa30   :  { %2546 = vadd.xlane.f32.xlu0 %v2545_v20  ;;  %v1365_v20 = vsel %vm504_vm3, %v10138_v49, 0.0 }
 0xa34   :  { %2549 = vadd.xlane.f32.xlu0 %v2548_v5  ;;  %v10150_v5 = vadd.f32 %v1311_v22, %v10015_v13  ;;  %v2551_v22 = vsel %vm504_vm3, %v10155_v16, 0.0 }
 0xa38   :  { %1375 = vadd.xlane.f32.xlu0 %v1374_v25  ;;  %v2485_v25 = vcombine.high %v2463_v8, %v2463_v8  ;;  %v1383_v8 = vsel %vm504_vm3, %v10160_v29, 0.0 }
 0xa39   :  { %1360 = vadd.xlane.f32.xlu1 %v1359_v45  ;;  %v1371_v45 = vsel %vm504_vm3, %v10150_v5, 0.0 }
 0xa3c   :  { %1387 = vadd.xlane.f32.xlu0 %v1386_v57  ;;  %v10165_v57 = vadd.f32 %v2496_v50, %v10015_v13  ;;  %v2508_v50 = vrot.slane %v10046_v31, %v9981_v11  ;;  %v10193_v31 = vadd.f32 %v1327_v37, %v10015_v13 }
 0xa3d   :  { %1366 = vadd.xlane.f32.xlu1 %v1365_v20  ;;  %v2500_v20 = vrot.slane %v2485_v25, %v9981_v11 }
 0xa3e   :  { %v2554_v30 = vsel %vm504_vm3, %v10165_v57, 0.0  ;;  %v1395_v55 = vsel %vm504_vm3, %v10193_v31, 0.0 }
 0xa40   :  { %1393 = vadd.xlane.f32.xlu0 %v1392_v12  ;;  %v10171_v12 = vadd.f32 %v1315_v54, %v10015_v13 }
 0xa41   :  { %1372 = vadd.xlane.f32.xlu1 %v1371_v45  ;;  %v10176_v45 = vadd.f32 %v2500_v20, %v10015_v13 }
 0xa42   :  { %v1377_v25 = vsel %vm504_vm3, %v10171_v12, 0.0 }
 0xa43   :  { %v2560_v54 = vsel %vm504_vm3, %v10176_v45, 0.0 }
 0xa44   :  { %2552 = vadd.xlane.f32.xlu0 %v2551_v22  ;;  %v10183_v22 = vadd.f32 %v1323_v4, %v10015_v13 }
 0xa45   :  { %1384 = vadd.xlane.f32.xlu1 %v1383_v8  ;;  %v10188_v8 = vadd.f32 %v2508_v50, %v10013_v10 }
 0xa46   :  { %v1389_v33 = vsel %vm504_vm3, %v10183_v22, 0.0 }
 0xa47   :  { %v2569_v4 = vsel %vm504_vm3, %v10188_v8, 0.0 }
 0xa48   :  { %2555 = vadd.xlane.f32.xlu0 %v2554_v30  ;;  %v10198_v30 = vadd.f32 %v2508_v50, %v10015_v13 }
 0xa49   :  { %1378 = vadd.xlane.f32.xlu1 %v1377_v25  ;;  %v1331_v25 = vrot.slane %v1299_v58, %v9981_v11 }
 0xa4a   :  { %v2572_v37 = vsel %vm504_vm3, %v10198_v30, 0.0 }
 0xa4c   :  { %2561 = vadd.xlane.f32.xlu0 %v2560_v54  ;;  %v10204_v54 = vadd.f32 %v2500_v20, %v10013_v10  ;;  %v10217_v20 = vrot.slane %v10048_v32, %v10011_v9 }
 0xa4d   :  { %1390 = vadd.xlane.f32.xlu1 %v1389_v33  ;;  %v10209_v33 = vadd.f32 %v1331_v25, %v10013_v10 }
 0xa4e   :  { %v2557_v50 = vsel %vm504_vm3, %v10204_v54, 0.0 }
 0xa4f   :  { %v1398_v58 = vsel %vm504_vm3, %v10209_v33, 0.0 }
 0xa50   :  { %2570 = vadd.xlane.f32.xlu0 %v2569_v4 }
 0xa51   :  { %1396 = vadd.xlane.f32.xlu1 %v1395_v55 }
 0xa53   :  { %v10221_v4 = vpop.permute.xlu1 %1629  ;;  %v10223_v55 = vpop.permute.xlu0 %1633 }
 0xa54   :  { %2573 = vadd.xlane.f32.xlu0 %v2572_v37  ;;  %12977 = vst [vmem:[#allocation86_spill] sm:$0xff] %v10221_v4  ;;  %12978 = vst [vmem:[#allocation87_spill] sm:$0xff] %v10223_v55  ;;  %v2456_v37 = vcombine.high %v10038_v28, %v10038_v28 }
 0xa55   :  { %2558 = vadd.xlane.f32.xlu1 %v2557_v50 }
 0xa56   :  { %v2484_v0 = vrot.slane %v2456_v37, %v10018_v15 }
 0xa57   :  { %v10227_v50 = vpop.permute.xlu1 %1640 }
 0xa58   :  { %1399 = vadd.xlane.f32.xlu0 %v1398_v58  ;;  %12979 = vst [vmem:[#allocation88_spill] sm:$0xff] %v10227_v50  ;;  %v10230_v58 = vpop.permute.xlu0 %1666  ;;  %v2488_v9 = vcombine.high %v2484_v0, %v2484_v0 }
 0xa5a   :  { %v2520_v2 = vrot.slane %v2488_v9, %v9981_v11 }
 0xa5b   :  { %v10232_v63 = vpop.permute.xlu1 %1644 }
 0xa5c   :  { %12980 = vst [vmem:[#allocation89_spill] sm:$0xff] %v10232_v63  ;;  %v10234_v19 = vpop.permute.xlu0 %1677  ;;  %v10245_v41 = vadd.f32 %v2520_v2, %v10013_v10 }
 0xa5d   :  { %12981 = vst [vmem:[#allocation90_spill] sm:$0xff] %v10234_v19 }
 0xa5e   :  { %v2587_v9 = vsel %vm504_vm3, %v10245_v41, 0.0 }
 0xa5f   :  { %v10240_v44 = vpop.permute.xlu1 %1651 }
 0xa60   :  { %12982 = vst [vmem:[#allocation91_spill] sm:$0xff] %v10240_v44  ;;  %v10247_v37 = vpop.permute.xlu0 %1684 }
 0xa63   :  { %v10249_v15 = vpop.permute.xlu1 %1655 }
 0xa64   :  { %12983 = vst [vmem:[#allocation92_spill] sm:$0xff] %v10249_v15 }
 0xa66   :  { %2850 = vbcast.lane.b32.xlu1 %v10217_v20, 256 }
 0xa67   :  { %v10263_v59 = vpop.permute.xlu1 %1662 }
 0xa68   :  { %vm2270_vm2 = vcmp.gt.f32.partialorder %v10263_v59, 0.0 }
 0xa6e   :  { %2843 = vbcast.lane.b32.xlu0 %v10077_v52, 264  ;;  %v10237_v52 = vadd.f32 %v1331_v25, %v10015_v13  ;;  %v2512_v25 = vrot.slane %v2484_v0, %v9981_v11 }
 0xa70   :  { %v1401_v28 = vsel %vm504_vm3, %v10237_v52, 0.0  ;;  %v10259_v60 = vadd.f32 %v2512_v25, %v10013_v10  ;;  %v10268_v0 = vadd.f32 %v2512_v25, %v10015_v13  ;;  %v2584_v25 = vsel %vm504_vm3, %v10070_v48, 0.0 }
 0xa72   :  { %v2575_v61 = vsel %vm504_vm3, %v10259_v60, 0.0  ;;  %v2578_v10 = vsel %vm504_vm3, %v10268_v0, 0.0 }
 0xa8a   :  { %1402 = vadd.xlane.f32.xlu1 %v1401_v28  ;;  %v10261_v28 = vpop.permute.xlu0 %1695 }
 0xa8b   :  { %12984 = vst [vmem:[#allocation93_spill] sm:$0xff] %v10261_v28 }
 0xa8d   :  { %2564 = vadd.xlane.f32.xlu0 %v2563_v6 }
 0xa8e   :  { %2588 = vadd.xlane.f32.xlu1 %v2587_v9  ;;  %v10270_v6 = vpop.permute.xlu0 %1706  ;;  %v10272_v9 = vpop.permute.xlu1 %1673 }
 0xa8f   :  { %12985 = vst [vmem:[#allocation94_spill] sm:$0xff] %v10270_v6  ;;  %12986 = vst [vmem:[#allocation95_spill] sm:$0xff] %v10272_v9 }
 0xa91   :  { %2567 = vadd.xlane.f32.xlu0 %v2566_v3  ;;  %v2581_v3 = vsel %vm504_vm3, %v10067_v47, 0.0 }
 0xa92   :  { %v10278_v11 = vpop.permute.xlu0 %2806  ;;  %v10280_v56 = vpop.permute.xlu1 %1688 }
 0xa93   :  { %12987 = vst [vmem:[#allocation96_spill] sm:$0xff] %v10278_v11  ;;  %12988 = vst [vmem:[#allocation97_spill] sm:$0xff] %v10280_v56 }
 0xa95   :  { %2576 = vadd.xlane.f32.xlu0 %v2575_v61  ;;  %v10285_v61 = vadd.f32 %v2520_v2, %v10015_v13 }
 0xa96   :  { %v10287_v62 = vpop.permute.xlu0 %2821  ;;  %v10289_v53 = vpop.permute.xlu1 %1699 }
 0xa97   :  { %12989 = vst [vmem:[#allocation98_spill] sm:$0xff] %v10287_v62  ;;  %12990 = vst [vmem:[#allocation99_spill] sm:$0xff] %v10289_v53 }
 0xa99   :  { %2579 = vadd.xlane.f32.xlu0 %v2578_v10  ;;  %v2590_v10 = vsel %vm504_vm3, %v10285_v61, 0.0 }
 0xa9a   :  { %v10293_v42 = vpop.permute.xlu0 %2832 }
 0xa9b   :  { %12991 = vst [vmem:[#allocation100_spill] sm:$0xff] %v10293_v42 }
 0xa9d   :  { %2582 = vadd.xlane.f32.xlu0 %v2581_v3  ;;  %v10295_v3 = vpop.permute.xlu1 %1710 }
 0xa9e   :  { %12992 = vst [vmem:[#allocation101_spill] sm:$0xff] %v10295_v3 }
 0xaa1   :  { %2585 = vadd.xlane.f32.xlu0 %v2584_v25  ;;  %v10297_v43 = vpop.permute.xlu1 %2810 }
 0xaa2   :  { %12993 = vst [vmem:[#allocation102_spill] sm:$0xff] %v10297_v43 }
 0xaa5   :  { %2591 = vadd.xlane.f32.xlu0 %v2590_v10  ;;  %v10305_v10 = vpop.permute.xlu1 %2817 }
 0xaa6   :  { %12994 = vst [vmem:[#allocation103_spill] sm:$0xff] %v10305_v10 }
 0xaa9   :  { %v10307_v11 = vpop.permute.xlu1 %2828 }
 0xaaa   :  { %12995 = vst [vmem:[#allocation104_spill] sm:$0xff] %v10307_v11 }
 0xaad   :  { %v1358_v39 = vpop.xlane.xlu0 %1357  ;;  %v10309_v6 = vpop.permute.xlu1 %2839 }
 0xaae   :  { %v1404_v36 = vmul.f32 0.03125, %v1358_v39  ;;  %12996 = vst [vmem:[#allocation105_spill] sm:$0xff] %v10309_v6 }
 0xab0   :  { %v10300_v2 = vsub.f32 %v10084_v7, %v1404_v36 }
 0xab1   :  { %v1364_v13 = vpop.xlane.xlu0 %1363 }
 0xab2   :  { %v1436_v25 = vmul.f32 %v10300_v2, %v10300_v2  ;;  %v1406_v7 = vmul.f32 0.03125, %v1364_v13 }
 0xab4   :  { %v1452_v1 = vsel %vm504_vm3, %v1436_v25, 0.0  ;;  %v10318_v10 = vsub.f32 %v10091_v21, %v1406_v7 }
 0xab5   :  { %v1370_v62 = vpop.xlane.xlu0 %1369  ;;  %1453 = vadd.xlane.f32.xlu1 %v1452_v1 }
 0xab9   :  { %v1382_v42 = vpop.xlane.xlu0 %1381 }
 0xabd   :  { %v2547_v3 = vpop.xlane.xlu0 %2546 }
 0xabe   :  { %v2593_v53 = vmul.f32 0.03125, %v2547_v3 }
 0xac1   :  { %v2550_v39 = vpop.xlane.xlu0 %2549 }
 0xac2   :  { %v2594_v43 = vmul.f32 0.03125, %v2550_v39 }
 0xac4   :  { %v10312_v36 = vsub.f32 %v10116_v51, %v2594_v43  ;;  %v1408_v51 = vmul.f32 0.03125, %v1370_v62 }
 0xac5   :  { %v1376_v21 = vpop.xlane.xlu0 %1375 }
 0xac6   :  { %12997 = vst [vmem:[#allocation106_spill] sm:$0xff] %v10312_v36  ;;  %v1361_v28 = vpop.xlane.xlu1 %1360  ;;  %v2626_v25 = vmul.f32 %v10312_v36, %v10312_v36  ;;  %v1410_v3 = vmul.f32 0.03125, %v1376_v21 }
 0xac7   :  { %v1405_v56 = vmul.f32 0.03125, %v1361_v28 }
 0xac8   :  { %v2644_v1 = vsel %vm504_vm3, %v2626_v25, 0.0  ;;  %v1438_v25 = vmul.f32 %v10318_v10, %v10318_v10 }
 0xac9   :  { %v10321_v11 = vsub.f32 %v10127_v17, %v1405_v56  ;;  %2645 = vadd.xlane.f32.xlu0 %v2644_v1  ;;  %v10332_v56 = vsub.f32 %v10098_v26, %v1408_v51  ;;  %v1388_v1 = vpop.xlane.xlu0 %1387 }
 0xaca   :  { %v1367_v6 = vpop.xlane.xlu1 %1366  ;;  %v1414_v21 = vmul.f32 0.03125, %v1388_v1 }
 0xacb   :  { %v1407_v39 = vmul.f32 0.03125, %v1367_v6  ;;  %v1437_v43 = vmul.f32 %v10321_v11, %v10321_v11  ;;  %v1458_v6 = vsel %vm504_vm3, %v1438_v25, 0.0 }
 0xacd   :  { %v10326_v13 = vsub.f32 %v10138_v49, %v1407_v39  ;;  %v1455_v28 = vsel %vm504_vm3, %v1437_v43, 0.0  ;;  %v1412_v39 = vmul.f32 0.03125, %v1382_v42  ;;  %v1394_v42 = vpop.xlane.xlu0 %1393 }
 0xace   :  { %1456 = vadd.xlane.f32.xlu1 %v1455_v28  ;;  %v1373_v7 = vpop.xlane.xlu1 %1372  ;;  %v1440_v28 = vmul.f32 %v10332_v56, %v10332_v56 }
 0xacf   :  { %v1409_v17 = vmul.f32 0.03125, %v1373_v7  ;;  %v1439_v62 = vmul.f32 %v10326_v13, %v10326_v13  ;;  %v10344_v51 = vsub.f32 %v10105_v35, %v1412_v39 }
 0xad0   :  { %v1464_v7 = vsel %vm504_vm3, %v1440_v28, 0.0  ;;  %v10361_v28 = vsub.f32 %v10111_v46, %v2593_v53 }
 0xad1   :  { %v10338_v43 = vsub.f32 %v10150_v5, %v1409_v17  ;;  %v1461_v36 = vsel %vm504_vm3, %v1439_v62, 0.0 }
 0xad2   :  { %1459 = vadd.xlane.f32.xlu1 %v1458_v6  ;;  %v1385_v49 = vpop.xlane.xlu1 %1384  ;;  %v2625_v53 = vmul.f32 %v10361_v28, %v10361_v28 }
 0xad3   :  { %v1413_v25 = vmul.f32 0.03125, %v1385_v49  ;;  %v1441_v6 = vmul.f32 %v10338_v43, %v10338_v43  ;;  %v1444_v49 = vmul.f32 %v10344_v51, %v10344_v51 }
 0xad5   :  { %v10350_v62 = vsub.f32 %v10160_v29, %v1413_v25  ;;  %v1467_v35 = vsel %vm504_vm3, %v1441_v6, 0.0  ;;  %v1476_v29 = vsel %vm504_vm3, %v1444_v49, 0.0  ;;  %v10370_v6 = vsub.f32 %v10123_v14, %v1410_v3 }
 0xad6   :  { %1462 = vadd.xlane.f32.xlu1 %v1461_v36  ;;  %v1379_v26 = vpop.xlane.xlu1 %1378  ;;  %v2641_v49 = vsel %vm504_vm3, %v2625_v53, 0.0  ;;  %v1416_v3 = vmul.f32 0.03125, %v1394_v42 }
 0xad7   :  { %v1445_v25 = vmul.f32 %v10350_v62, %v10350_v62 }
 0xada   :  { %1465 = vadd.xlane.f32.xlu1 %v1464_v7  ;;  %v1391_v5 = vpop.xlane.xlu1 %1390  ;;  %v10363_v7 = vpop.xlane.xlu0 %2552 }
 0xadb   :  { %v1415_v17 = vmul.f32 0.03125, %v1391_v5  ;;  %v1411_v5 = vmul.f32 0.03125, %v1379_v26  ;;  %v10382_v26 = vsub.f32 %v10132_v34, %v1414_v21 }
 0xadd   :  { %v10353_v36 = vsub.f32 %v10183_v22, %v1415_v17  ;;  %v1479_v17 = vsel %vm504_vm3, %v1445_v25, 0.0 }
 0xade   :  { %1468 = vadd.xlane.f32.xlu1 %v1467_v35  ;;  %v2556_v46 = vpop.xlane.xlu0 %2555  ;;  %v10376_v35 = vsub.f32 %v10171_v12, %v1411_v5  ;;  %v1397_v1 = vpop.xlane.xlu1 %1396  ;;  %v10388_v12 = vsub.f32 %v10143_v24, %v1416_v3 }
 0xadf   :  { %v1447_v39 = vmul.f32 %v10353_v36, %v10353_v36  ;;  %v1417_v25 = vmul.f32 0.03125, %v1397_v1  ;;  %v2596_v34 = vmul.f32 0.03125, %v2556_v46 }
 0xae1   :  { %v1485_v22 = vsel %vm504_vm3, %v1447_v39, 0.0  ;;  %v1442_v39 = vmul.f32 %v10370_v6, %v10370_v6  ;;  %v10394_v42 = vsub.f32 %v10193_v31, %v1417_v25  ;;  %v10401_v3 = vsub.f32 %v10165_v57, %v2596_v34 }
 0xae2   :  { %1477 = vadd.xlane.f32.xlu1 %v1476_v29  ;;  %1486 = vadd.xlane.f32.xlu0 %v1485_v22  ;;  %v2562_v14 = vpop.xlane.xlu0 %2561  ;;  %v1443_v22 = vmul.f32 %v10376_v35, %v10376_v35 }
 0xae3   :  { %v1470_v29 = vsel %vm504_vm3, %v1442_v39, 0.0  ;;  %v2559_v39 = vpop.xlane.xlu1 %2558  ;;  %v1449_v31 = vmul.f32 %v10394_v42, %v10394_v42 }
 0xae4   :  { %v1473_v5 = vsel %vm504_vm3, %v1443_v22, 0.0 }
 0xae5   :  { %v1491_v25 = vsel %vm504_vm3, %v1449_v31, 0.0  ;;  %v351_v31 = vld [vmem:[%s12998_s22 + $0x10] sm:$0xff] }
 0xae6   :  { %1480 = vadd.xlane.f32.xlu1 %v1479_v17  ;;  %v1446_v17 = vmul.f32 %v10382_v26, %v10382_v26  ;;  %v2571_v53 = vpop.xlane.xlu0 %2570 }
 0xae7   :  { %v2601_v22 = vmul.f32 0.03125, %v2571_v53 }
 0xae8   :  { %v1482_v21 = vsel %vm504_vm3, %v1446_v17, 0.0 }
 0xaea   :  { %2642 = vadd.xlane.f32.xlu1 %v2641_v49  ;;  %v1448_v49 = vmul.f32 %v10388_v12, %v10388_v12  ;;  %v2574_v24 = vpop.xlane.xlu0 %2573 }
 0xaec   :  { %v1488_v46 = vsel %vm504_vm3, %v1448_v49, 0.0 }
 0xaee   :  { %1471 = vadd.xlane.f32.xlu1 %v1470_v29  ;;  %v2597_v29 = vmul.f32 0.03125, %v2559_v39  ;;  %v1400_v57 = vpop.xlane.xlu0 %1399 }
 0xaef   :  { %v1418_v17 = vmul.f32 0.03125, %v1400_v57 }
 0xaf0   :  { %v10407_v1 = vsub.f32 %v10204_v54, %v2597_v29  ;;  %v349_v54 = vld [vmem:[%s12998_s22] sm:$0xff] }
 0xaf1   :  { %v10423_v39 = vsub.f32 %v10209_v33, %v1418_v17  ;;  %v2595_v17 = vmul.f32 0.03125, %v10363_v7  ;;  %v2602_v7 = vmul.f32 0.03125, %v2574_v24 }
 0xaf2   :  { %1474 = vadd.xlane.f32.xlu1 %v1473_v5  ;;  %v10413_v5 = vsub.f32 %v10188_v8, %v2601_v22  ;;  %v2629_v53 = vmul.f32 %v10407_v1, %v10407_v1  ;;  %v352_v22 = vld [vmem:[%s12998_s22 + $0x18] sm:$0xff] }
 0xaf3   :  { %v1450_v57 = vmul.f32 %v10423_v39, %v10423_v39 }
 0xaf4   :  { %v2653_v29 = vsel %vm504_vm3, %v2629_v53, 0.0  ;;  %v2633_v8 = vmul.f32 %v10413_v5, %v10413_v5  ;;  %v10446_v53 = vsub.f32 %v10155_v16, %v2595_v17 }
 0xaf6   :  { %1483 = vadd.xlane.f32.xlu1 %v1482_v21  ;;  %v350_v21 = vld [vmem:[%s12998_s22 + $0x8] sm:$0xff]  ;;  %v2665_v33 = vsel %vm504_vm3, %v2633_v8, 0.0  ;;  %v10453_v8 = vpop.permute.xlu1 %2850 }
 0xaf7   :  { %v10420_v49 = vpack.c.bf16 %v350_v21, %v349_v54  ;;  %v2598_v54 = vmul.f32 0.03125, %v2562_v14  ;;  %13001 = vst [vmem:[#allocation107_spill] sm:$0xff] %v10453_v8 }
 0xaf8   :  { %2854 = vbcast.lane.b32.xlu0 %v10217_v20, 264  ;;  %v2628_v20 = vmul.f32 %v10401_v3, %v10401_v3 }
 0xaf9   :  { %8383 = vmatpush3.bf16.msra.mxu1 %v10420_v49  ;;  %8895 = vmatpush3.bf16.msra.mxu0 %v10420_v49  ;;  %v10449_v21 = vsub.f32 %v10176_v45, %v2598_v54 }
 0xafa   :  { %1489 = vadd.xlane.f32.xlu1 %v1488_v46  ;;  %v2650_v34 = vsel %vm504_vm3, %v2628_v20, 0.0  ;;  %v12999_v46 = vmov 0.0   ;;  %v13000_v20 = vmov 0.0|0.0  }
 0xafb   :  { %8384 = vmatprep.subr.bf16.mxu1 %v12999_v46  ;;  %8896 = vmatprep.subr.bf16.mxu0 %v13000_v20  ;;  %v2630_v16 = vmul.f32 %v10449_v21, %v10449_v21 }
 0xafd   :  { %v2656_v17 = vsel %vm504_vm3, %v2630_v16, 0.0 }
 0xafe   :  { %1492 = vadd.xlane.f32.xlu1 %v1491_v25  ;;  %v10433_v25 = vpack.c.bf16 %v352_v22, %v351_v31  ;;  %v10456_v31 = vsub.f32 %v10198_v30, %v2602_v7  ;;  %v10458_v22 = vpop.permute.xlu0 %2843 }
 0xaff   :  { %13002 = vst [vmem:[#allocation108_spill] sm:$0xff] %v10458_v22 }
 0xb00   :  { %8385 = vmatpush3.bf16.msra.mxu1 %v10433_v25  ;;  %8898 = vmatpush3.bf16.msra.mxu0 %v10433_v25  ;;  %v2634_v30 = vmul.f32 %v10456_v31, %v10456_v31 }
 0xb01   :  { %8398 = vmatprep.subr.bf16.mxu1 %v12999_v46  ;;  %8374 = vmatprep.subr.bf16.mxu0 %v12999_v46 }
 0xb02   :  { %2651 = vadd.xlane.f32.xlu1 %v2650_v34  ;;  %v1494_v34 = vsel %vm504_vm3, %v1450_v57, 0.0  ;;  %v2668_v7 = vsel %vm504_vm3, %v2634_v30, 0.0 }
 0xb06   :  { %2654 = vadd.xlane.f32.xlu1 %v2653_v29  ;;  %v2627_v29 = vmul.f32 %v10446_v53, %v10446_v53 }
 0xb0a   :  { %2666 = vadd.xlane.f32.xlu1 %v2665_v33  ;;  %v2647_v33 = vsel %vm504_vm3, %v2627_v29, 0.0 }
 0xb0e   :  { %1495 = vadd.xlane.f32.xlu1 %v1494_v34 }
 0xb17   :  { %2648 = vadd.xlane.f32.xlu0 %v2647_v33  ;;  %v1403_v14 = vpop.xlane.xlu1 %1402 }
 0xb18   :  { %v1419_v45 = vmul.f32 0.03125, %v1403_v14 }
 0xb1a   :  { %v10464_v24 = vsub.f32 %v10237_v52, %v1419_v45  ;;  %v2565_v57 = vpop.xlane.xlu0 %2564 }
 0xb1b   :  { %2657 = vadd.xlane.f32.xlu0 %v2656_v17  ;;  %v2589_v20 = vpop.xlane.xlu1 %2588 }
 0xb1c   :  { %v1451_v34 = vmul.f32 %v10464_v24, %v10464_v24 }
 0xb1e   :  { %v2568_v54 = vpop.xlane.xlu0 %2567  ;;  %v1497_v29 = vsel %vm504_vm3, %v1451_v34, 0.0 }
 0xb1f   :  { %v2600_v33 = vmul.f32 0.03125, %v2568_v54  ;;  %2669 = vadd.xlane.f32.xlu0 %v2668_v7  ;;  %1498 = vadd.xlane.f32.xlu1 %v1497_v29  ;;  %v2607_v54 = vmul.f32 0.03125, %v2589_v20 }
 0xb21   :  { %v10474_v52 = vsub.f32 %v10061_v40, %v2600_v33  ;;  %v10486_v33 = vsub.f32 %v10245_v41, %v2607_v54  ;;  %v2599_v41 = vmul.f32 0.03125, %v2565_v57  ;;  %v2881_v57 = vrot.slane %v10048_v32, %v10035_v27 }
 0xb22   :  { %v2577_v14 = vpop.xlane.xlu0 %2576 }
 0xb23   :  { %v2603_v16 = vmul.f32 0.03125, %v2577_v14  ;;  %v2632_v45 = vmul.f32 %v10474_v52, %v10474_v52  ;;  %13003 = vst [vmem:[#allocation109_spill] sm:$0xff] %v10486_v33  ;;  %v2859_v14 = vrot.slane %v10048_v32, %v10022_v18 }
 0xb25   :  { %v10479_v17 = vsub.f32 %v10259_v60, %v2603_v16  ;;  %v2662_v22 = vsel %vm504_vm3, %v2632_v45, 0.0  ;;  %v2639_v16 = vmul.f32 %v10486_v33, %v10486_v33 }
 0xb26   :  { %v2580_v30 = vpop.xlane.xlu0 %2579  ;;  %2663 = vadd.xlane.f32.xlu0 %v2662_v22 }
 0xb27   :  { %v2635_v34 = vmul.f32 %v10479_v17, %v10479_v17  ;;  %v2683_v45 = vsel %vm504_vm3, %v2639_v16, 0.0  ;;  %v2604_v54 = vmul.f32 0.03125, %v2580_v30 }
 0xb29   :  { %v2671_v40 = vsel %vm504_vm3, %v2635_v34, 0.0 }
 0xb2a   :  { %v2583_v7 = vpop.xlane.xlu0 %2582  ;;  %2672 = vadd.xlane.f32.xlu0 %v2671_v40  ;;  %v2870_v40 = vrot.slane %v10048_v32, %v10031_v23 }
 0xb2b   :  { %v2605_v29 = vmul.f32 0.03125, %v2583_v7  ;;  %v10505_v7 = vsub.f32 %v10268_v0, %v2604_v54 }
 0xb2d   :  { %v10489_v60 = vsub.f32 %v10067_v47, %v2605_v29  ;;  %v10500_v47 = vsub.f32 %v10058_v38, %v2599_v41  ;;  %13005 = vst [vmem:[#allocation111_spill] sm:$0xff] %v10505_v7  ;;  %v2636_v16 = vmul.f32 %v10505_v7, %v10505_v7 }
 0xb2e   :  { %v2586_v34 = vpop.xlane.xlu0 %2585 }
 0xb2f   :  { %v2637_v22 = vmul.f32 %v10489_v60, %v10489_v60  ;;  %13004 = vst [vmem:[#allocation110_spill] sm:$0xff] %v10500_v47  ;;  %v2606_v29 = vmul.f32 0.03125, %v2586_v34  ;;  %v2674_v41 = vsel %vm504_vm3, %v2636_v16, 0.0 }
 0xb30   :  { %2861 = vbcast.lane.b32.xlu1 %v2859_v14, 256 }
 0xb31   :  { %v2677_v20 = vsel %vm504_vm3, %v2637_v22, 0.0  ;;  %v2631_v22 = vmul.f32 %v10500_v47, %v10500_v47  ;;  %v10512_v38 = vsub.f32 %v10070_v48, %v2606_v29 }
 0xb32   :  { %2678 = vadd.xlane.f32.xlu0 %v2677_v20  ;;  %v2592_v20 = vpop.xlane.xlu0 %2591 }
 0xb33   :  { %13006 = vst [vmem:[#allocation112_spill] sm:$0xff] %v10512_v38  ;;  %v2608_v30 = vmul.f32 0.03125, %v2592_v20  ;;  %v2638_v34 = vmul.f32 %v10512_v38, %v10512_v38 }
 0xb35   :  { %v10518_v0 = vsub.f32 %v10285_v61, %v2608_v30  ;;  %v2680_v54 = vsel %vm504_vm3, %v2638_v34, 0.0 }
 0xb36   :  { %2684 = vadd.xlane.f32.xlu0 %v2683_v45 }
 0xb37   :  { %13007 = vst [vmem:[#allocation113_spill] sm:$0xff] %v10518_v0  ;;  %v2640_v29 = vmul.f32 %v10518_v0, %v10518_v0 }
 0xb39   :  { %v2686_v20 = vsel %vm504_vm3, %v2640_v29, 0.0 }
 0xb42   :  { %v1454_v45 = vpop.xlane.xlu1 %1453 }
 0xb4c   :  { %2865 = vbcast.lane.b32.xlu0 %v2859_v14, 264  ;;  %v2659_v14 = vsel %vm504_vm3, %v2631_v22, 0.0 }
 0xb50   :  { %2876 = vbcast.lane.b32.xlu0 %v2870_v40, 264 }
 0xb54   :  { %2660 = vadd.xlane.f32.xlu1 %v2659_v14  ;;  %2887 = vbcast.lane.b32.xlu0 %v2881_v57, 264 }
 0xb58   :  { %2675 = vadd.xlane.f32.xlu1 %v2674_v41 }
 0xb5b   :  { %v1457_v48 = vpop.xlane.xlu1 %1456 }
 0xb5c   :  { %2681 = vadd.xlane.f32.xlu1 %v2680_v54  ;;  %v10529_v54 = vld [vmem:[%s13008_s27] ss:$0 sm:$0xff] }
 0xb5f   :  { %v1460_v22 = vpop.xlane.xlu1 %1459 }
 0xb60   :  { %v1502_v61 = vmul.f32 0.03125, %v1460_v22  ;;  %2687 = vadd.xlane.f32.xlu1 %v2686_v20  ;;  %v10533_v22 = vld [vmem:[%s13009_s13] ss:$0 sm:$0xff]  ;;  %v2889_v20 = vsel %vm12835_vm13, %v10048_v32, 0.0 }
 0xb62   :  { %v1518_v30 = vadd.f32 1e-05, %v1502_v61 }
 0xb63   :  { %v1463_v14 = vpop.xlane.xlu1 %1462 }
 0xb64   :  { %9032 = vrsqrt.f32 %v1518_v30  ;;  %v1503_v16 = vmul.f32 0.03125, %v1463_v14  ;;  %v10539_v14 = vpop.xlane.xlu0 %2645 }
 0xb66   :  { %v1519_v27 = vadd.f32 1e-05, %v1503_v16 }
 0xb67   :  { %v1466_v41 = vpop.xlane.xlu1 %1465 }
 0xb68   :  { %9034 = vrsqrt.f32 %v1519_v27 }
 0xb6b   :  { %v1469_v23 = vpop.xlane.xlu1 %1468 }
 0xb6e   :  { %v9033_v34 = vpop.eup %9032 }
 0xb6f   :  { %v1550_v18 = vmul.f32 %v9033_v34, %v10318_v10  ;;  %v1478_v0 = vpop.xlane.xlu1 %1477  ;;  %v1487_v34 = vpop.xlane.xlu0 %1486 }
 0xb70   :  { %v1511_v7 = vmul.f32 0.03125, %v1487_v34  ;;  %v1500_v34 = vmul.f32 0.03125, %v1454_v45  ;;  %v1508_v47 = vmul.f32 0.03125, %v1478_v0 }
 0xb71   :  { %v1572_v38 = vmul.f32 %v10529_v54, %v1550_v18  ;;  %2872 = vbcast.lane.b32.xlu1 %v2870_v40, 256 }
 0xb72   :  { %v9035_v29 = vpop.eup %9034 }
 0xb73   :  { %v1551_v61 = vmul.f32 %v9035_v29, %v10326_v13  ;;  %2890 = vadd.xlane.f32.xlu0 %v2889_v20  ;;  %v1481_v27 = vpop.xlane.xlu1 %1480  ;;  %v1594_v30 = vadd.f32 %v10533_v22, %v1572_v38 }
 0xb75   :  { %v1573_v10 = vmul.f32 %v10529_v54, %v1551_v61  ;;  %2883 = vbcast.lane.b32.xlu1 %v2881_v57, 256  ;;  %v1610_v16 = vmax.f32 %v1594_v30, 0.0 }
 0xb77   :  { %v10542_v18 = vpop.xlane.xlu1 %2642  ;;  %v1595_v40 = vadd.f32 %v10533_v22, %v1573_v10  ;;  %v1717_v32 = vmul.f32 %v10227_v50, %v1610_v16  ;;  %v1527_v10 = vadd.f32 1e-05, %v1511_v7  ;;  %v1516_v7 = vadd.f32 1e-05, %v1500_v34 }
 0xb78   :  { %v1509_v50 = vmul.f32 0.03125, %v1481_v27 }
 0xb79   :  { %v1611_v33 = vmax.f32 %v1595_v40, 0.0  ;;  %v1740_v8 = vsel %vm504_vm3, %v1717_v32, 0.0 }
 0xb7a   :  { %v1525_v34 = vadd.f32 1e-05, %v1509_v50 }
 0xb7b   :  { %v1472_v13 = vpop.xlane.xlu1 %1471  ;;  %v1718_v29 = vmul.f32 %v10232_v63, %v1611_v33  ;;  %v1905_v20 = vpack.c.bf16 %v1611_v33, %v1610_v16 }
 0xb7c   :  { %v1506_v38 = vmul.f32 0.03125, %v1472_v13 }
 0xb7d   :  { %v1741_v61 = vsel %vm504_vm3, %v1718_v29, 0.0  ;;  %8387 = vmatmul.mubr.msk.bf16.vlgmr.msra.gmra.mrb[20].mxu1 %vm504_vm3, %v1905_v20  ;;  %v1505_v29 = vmul.f32 0.03125, %v1469_v23  ;;  %v1504_v20 = vmul.f32 0.03125, %v1466_v41 }
 0xb7e   :  { %v1522_v57 = vadd.f32 1e-05, %v1506_v38  ;;  %v10550_v30 = vadd.f32 %v1741_v61, %v1740_v8  ;;  %8399 = vmatpush3.bf16.msra.mxu1 %v10420_v49  ;;  %8402 = vmatprep.mubr.msk.bf16.mxu1 %vm9496_vm0, %v12999_v46  ;;  %v1501_v8 = vmul.f32 0.03125, %v1457_v48 }
 0xb7f   :  { %v1475_v40 = vpop.xlane.xlu1 %1474  ;;  %8400 = vmatprep.subr.bf16.mxu1 %v12999_v46 }
 0xb80   :  { %9036 = vrsqrt.f32 %v1522_v57  ;;  %v1507_v33 = vmul.f32 0.03125, %v1475_v40  ;;  %v1517_v63 = vadd.f32 1e-05, %v1501_v8  ;;  %v1521_v57 = vadd.f32 1e-05, %v1505_v29 }
 0xb81   :  { %9038 = vrsqrt.f32 %v1527_v10  ;;  %v1524_v29 = vadd.f32 1e-05, %v1508_v47 }
 0xb82   :  { %v1523_v16 = vadd.f32 1e-05, %v1507_v33  ;;  %8401 = vmatpush3.bf16.msra.mxu1 %v10433_v25  ;;  %v1520_v33 = vadd.f32 1e-05, %v1504_v20 }
 0xb83   :  { %v1484_v32 = vpop.xlane.xlu1 %1483  ;;  %8414 = vmatprep.subr.bf16.mxu1 %v12999_v46 }
 0xb84   :  { %9040 = vrsqrt.f32 %v1523_v16  ;;  %v1510_v13 = vmul.f32 0.03125, %v1484_v32 }
 0xb86   :  { %v1526_v38 = vadd.f32 1e-05, %v1510_v13 }
 0xb87   :  { %v1490_v61 = vpop.xlane.xlu1 %1489 }
 0xb88   :  { %9042 = vrsqrt.f32 %v1526_v38  ;;  %v1512_v8 = vmul.f32 0.03125, %v1490_v61 }
 0xb89   :  { %9044 = vrsqrt.f32 %v1516_v7 }
 0xb8a   :  { %v9037_v40 = vpop.eup %9036  ;;  %9046 = vrsqrt.f32 %v1517_v63  ;;  %v1528_v7 = vadd.f32 1e-05, %v1512_v8 }
 0xb8b   :  { %v1554_v45 = vmul.f32 %v9037_v40, %v10370_v6  ;;  %v1493_v10 = vpop.xlane.xlu1 %1492  ;;  %v9039_v48 = vpop.eup %9038  ;;  %9048 = vrsqrt.f32 %v1521_v57 }
 0xb8c   :  { %v1513_v41 = vmul.f32 0.03125, %v1493_v10  ;;  %9050 = vrsqrt.f32 %v1520_v33  ;;  %v1559_v27 = vmul.f32 %v9039_v48, %v10353_v36 }
 0xb8d   :  { %v1576_v23 = vmul.f32 %v10529_v54, %v1554_v45  ;;  %9052 = vrsqrt.f32 %v1525_v34 }
 0xb8e   :  { %v9041_v16 = vpop.eup %9040  ;;  %v1529_v63 = vadd.f32 1e-05, %v1513_v41  ;;  %v1581_v61 = vmul.f32 %v10529_v54, %v1559_v27  ;;  %9054 = vrsqrt.f32 %v1524_v29  ;;  %v9208_v41 = vld [vmem:[#allocation2] sm:$0xff] }
 0xb8f   :  { %v1555_v32 = vmul.f32 %v9041_v16, %v10376_v35  ;;  %v10561_v13 = vpop.xlane.xlu1 %2651  ;;  %v10566_v0 = vadd.f32 %v10533_v22, %v1576_v23  ;;  %v1712_v16 = vsel %vm12835_vm13, %v9208_v41, 0.0 }
 0xb90   :  { %9056 = vrsqrt.f32 %v1529_v63  ;;  %v10590_v34 = vadd.f32 %v10533_v22, %v1581_v61 }
 0xb91   :  { %v1577_v6 = vmul.f32 %v10529_v54, %v1555_v32  ;;  %v1614_v57 = vmax.f32 %v10566_v0, 0.0  ;;  %9058 = vrsqrt.f32 %v1528_v7 }
 0xb92   :  { %v9043_v20 = vpop.eup %9042 }
 0xb93   :  { %v1558_v38 = vmul.f32 %v9043_v20, %v10382_v26  ;;  %v10569_v50 = vpop.xlane.xlu1 %2654  ;;  %v10572_v35 = vadd.f32 %v10533_v22, %v1577_v6  ;;  %v9045_v36 = vpop.eup %9044 }
 0xb94   :  { %v9047_v33 = vpop.eup %9046  ;;  %v1548_v27 = vmul.f32 %v9045_v36, %v10300_v2 }
 0xb95   :  { %v1580_v47 = vmul.f32 %v10529_v54, %v1558_v38  ;;  %v1615_v40 = vmax.f32 %v10572_v35, 0.0  ;;  %v9049_v45 = vpop.eup %9048  ;;  %v1549_v32 = vmul.f32 %v9047_v33, %v10321_v11  ;;  %v12814_v38 = vmax.f32 %v10590_v34, 0.0 }
 0xb96   :  { %v9051_v23 = vpop.eup %9050  ;;  %v1553_v8 = vmul.f32 %v9049_v45, %v10338_v43  ;;  %v1570_v2 = vmul.f32 %v10529_v54, %v1548_v27  ;;  %v2690_v27 = vmul.f32 0.03125, %v10539_v14 }
 0xb97   :  { %v10578_v26 = vpop.xlane.xlu1 %2666  ;;  %v1907_v10 = vpack.c.bf16 %v1615_v40, %v1614_v57  ;;  %v10585_v48 = vadd.f32 %v10533_v22, %v1580_v47  ;;  %v1552_v29 = vmul.f32 %v9051_v23, %v10332_v56  ;;  %v9053_v20 = vpop.eup %9052  ;;  %v1571_v43 = vmul.f32 %v10529_v54, %v1549_v32 }
 0xb98   :  { %v9055_v11 = vpop.eup %9054  ;;  %v1575_v7 = vmul.f32 %v10529_v54, %v1553_v8  ;;  %v1557_v33 = vmul.f32 %v9053_v20, %v10350_v62  ;;  %v10626_v62 = vadd.f32 %v10533_v22, %v1570_v2  ;;  %v10631_v8 = vpop.permute.xlu0 %2854  ;;  %v2689_v20 = vmul.f32 0.03125, %v10542_v18 }
 0xb99   :  { %1713 = vadd.xlane.f32.xlu1 %v1712_v16  ;;  %8403 = vmatmul.mubr.msk.bf16.vlgmr.msra.gmra.mrb[24].mxu1 %vm504_vm3, %v1907_v10  ;;  %v12815_v63 = vmax.f32 %v10585_v48, 0.0  ;;  %v1574_v56 = vmul.f32 %v10529_v54, %v1552_v29  ;;  %v1556_v10 = vmul.f32 %v9055_v11, %v10344_v51  ;;  %v10616_v23 = vadd.f32 %v10533_v22, %v1571_v43 }
 0xb9a   :  { %8415 = vmatpush3.bf16.msra.mxu1 %v10420_v49  ;;  %8418 = vmatprep.mubr.msk.bf16.mxu1 %vm9496_vm0, %v12999_v46  ;;  %v9057_v47 = vpop.eup %9056  ;;  %v10619_v41 = vadd.f32 %v10533_v22, %v1575_v7  ;;  %vm3437_vm13 = vcmp.gt.f32.partialorder %v10631_v8, 0.0 }
 0xb9b   :  { %v1496_v6 = vpop.xlane.xlu1 %1495  ;;  %8416 = vmatprep.subr.bf16.mxu1 %v12999_v46  ;;  %v1909_v36 = vpack.c.bf16 %v12814_v38, %v12815_v63  ;;  %v9059_v45 = vpop.eup %9058  ;;  %v1561_v16 = vmul.f32 %v9057_v47, %v10394_v42  ;;  %v10629_v51 = vadd.f32 %v10533_v22, %v1574_v56  ;;  %v1579_v42 = vmul.f32 %v10529_v54, %v1557_v33 }
 0xb9c   :  { %v1514_v61 = vmul.f32 0.03125, %v1496_v6  ;;  %v1560_v29 = vmul.f32 %v9059_v45, %v10388_v12  ;;  %v1578_v6 = vmul.f32 %v10529_v54, %v1556_v10  ;;  %v12811_v11 = vmax.f32 %v10616_v23, 0.0 }
 0xb9d   :  { %v12810_v43 = vmax.f32 %v10619_v41, 0.0  ;;  %v1583_v7 = vmul.f32 %v10529_v54, %v1561_v16  ;;  %v12812_v14 = vmax.f32 %v10629_v51, 0.0  ;;  %v2706_v12 = vadd.f32 1e-05, %v2690_v27 }
 0xb9e   :  { %8417 = vmatpush3.bf16.msra.mxu1 %v10433_v25  ;;  %v1530_v32 = vadd.f32 1e-05, %v1514_v61  ;;  %v12813_v61 = vmax.f32 %v10626_v62, 0.0  ;;  %v10649_v18 = vadd.f32 %v10533_v22, %v1579_v42  ;;  %v1582_v2 = vmul.f32 %v10529_v54, %v1560_v29 }
 0xb9f   :  { %8430 = vmatprep.subr.bf16.mxu1 %v12999_v46  ;;  %v10653_v56 = vadd.f32 %v10533_v22, %v1578_v6  ;;  %v1716_v33 = vmul.f32 %v10223_v55, %v12811_v11  ;;  %v1720_v45 = vmul.f32 %v10249_v15, %v12810_v43  ;;  %v10662_v10 = vadd.f32 %v10533_v22, %v1583_v7 }
 0xba0   :  { %9060 = vrsqrt.f32 %v1530_v32  ;;  %v1715_v16 = vmul.f32 %v10221_v4, %v12813_v61  ;;  %v1719_v32 = vmul.f32 %v10240_v44, %v12812_v14  ;;  %v12817_v27 = vmax.f32 %v10649_v18, 0.0 }
 0xba1   :  { %8419 = vmatmul.mubr.msk.bf16.vlgmr.msra.gmra.mrb[28].mxu1 %vm504_vm3, %v1909_v36  ;;  %v2705_v36 = vadd.f32 1e-05, %v2689_v20  ;;  %9062 = vrsqrt.f32 %v2706_v12  ;;  %v10672_v42 = vadd.f32 %v10533_v22, %v1582_v2  ;;  %v1722_v29 = vmul.f32 %v10230_v58, %v1615_v40 }
 0xba2   :  { %8431 = vmatpush3.bf16.msra.mxu1 %v10420_v49  ;;  %8434 = vmatprep.mubr.msk.bf16.mxu1 %vm9496_vm0, %v12999_v46  ;;  %v12818_v20 = vmax.f32 %v10653_v56, 0.0  ;;  %v1732_v11 = vsel %vm504_vm3, %v1716_v33, 0.0  ;;  %v1750_v14 = vsel %vm504_vm3, %v1720_v45, 0.0  ;;  %v1721_v2 = vmul.f32 %v10263_v59, %v1614_v57  ;;  %v13058_v59 = vld [vmem:[#allocation97_spill] sm:$0xff] }
 0xba3   :  { %8432 = vmatprep.subr.bf16.mxu1 %v12999_v46  ;;  %9064 = vrsqrt.f32 %v2705_v36  ;;  %v1731_v35 = vsel %vm504_vm3, %v1715_v16, 0.0  ;;  %v1749_v40 = vsel %vm504_vm3, %v1719_v32, 0.0  ;;  %v1724_v36 = vmul.f32 %v10234_v19, %v12817_v27  ;;  %v13012_v32 = vld [vmem:[#allocation99_spill] sm:$0xff] }
 0xba4   :  { %v10645_v47 = vpop.xlane.xlu0 %2648  ;;  %v1759_v45 = vsel %vm504_vm3, %v1722_v29, 0.0  ;;  %v1733_v12 = vadd.f32 %v1732_v11, %v1731_v35  ;;  %v1751_v63 = vadd.f32 %v1750_v14, %v1749_v40  ;;  %v1723_v0 = vmul.f32 %v10272_v9, %v12818_v20 }
 0xba5   :  { %v13010_v57 = vmax.f32 %v10585_v48, 0.0  ;;  %v13011_v16 = vmax.f32 %v10662_v10, 0.0  ;;  %v2693_v27 = vmul.f32 0.03125, %v10569_v50  ;;  %v1758_v33 = vsel %vm504_vm3, %v1721_v2, 0.0 }
 0xba6   :  { %8433 = vmatpush3.bf16.msra.mxu1 %v10433_v25  ;;  %v1760_v29 = vadd.f32 %v1759_v45, %v1758_v33  ;;  %v13013_v14 = vmax.f32 %v10590_v34, 0.0  ;;  %v1768_v48 = vsel %vm504_vm3, %v1724_v36, 0.0  ;;  %v13015_v40 = vmax.f32 %v10672_v42, 0.0 }
 0xba7   :  { %8449 = vmatprep.subr.bf16.mxu1 %v12999_v46  ;;  %v1728_v15 = vmul.f32 %v13012_v32, %v13011_v16  ;;  %v1734_v16 = vrot.slane %v1733_v12, 4  ;;  %v1743_v50 = vrot.slane %v10550_v30, 4  ;;  %v1752_v45 = vrot.slane %v1751_v63, 4 }
 0xba8   :  { %v2658_v7 = vpop.xlane.xlu0 %2657  ;;  %v2709_v34 = vadd.f32 1e-05, %v2693_v27  ;;  %v1761_v36 = vrot.slane %v1760_v29, 4 }
 0xba9   :  { %v1735_v44 = vadd.f32 %v1734_v16, %v1733_v12  ;;  %v1744_v27 = vadd.f32 %v1743_v50, %v10550_v30 }
 0xbaa   :  { %v9061_v38 = vpop.eup %9060 }
 0xbab   :  { %v1562_v11 = vmul.f32 %v9061_v38, %v10423_v39  ;;  %v9063_v33 = vpop.eup %9062  ;;  %v1767_v39 = vsel %vm504_vm3, %v1723_v0, 0.0  ;;  %v1786_v38 = vsel %vm504_vm3, %v1728_v15, 0.0  ;;  %v2697_v15 = vmul.f32 0.03125, %v10578_v26  ;;  %v13017_v0 = vld [vmem:[#allocation106_spill] sm:$0xff] }
 0xbac   :  { %v1499_v6 = vpop.xlane.xlu1 %1498  ;;  %v1736_v16 = vrot.slane %v1735_v44, 2  ;;  %v1745_v30 = vrot.slane %v1744_v27, 2 }
 0xbad   :  { %v1515_v43 = vmul.f32 0.03125, %v1499_v6  ;;  %v2694_v6 = vmul.f32 0.03125, %v2658_v7  ;;  %v13014_v7 = vld [vmem:[#allocation97_spill] sm:$0xff]  ;;  %v1584_v32 = vmul.f32 %v10529_v54, %v1562_v11  ;;  %v1753_v11 = vadd.f32 %v1752_v45, %v1751_v63 }
 0xbae   :  { %v1726_v35 = vmul.f32 %v13014_v7, %v13013_v14  ;;  %v9065_v14 = vpop.eup %9064  ;;  %v2738_v7 = vmul.f32 %v9063_v33, %v13017_v0  ;;  %v2713_v50 = vadd.f32 1e-05, %v2697_v15 }
 0xbaf   :  { %v1531_v61 = vadd.f32 1e-05, %v1515_v43  ;;  %v1725_v43 = vmul.f32 %v10247_v37, %v13010_v57  ;;  %v13016_v57 = vld [vmem:[#allocation93_spill] sm:$0xff]  ;;  %v2710_v19 = vadd.f32 1e-05, %v2694_v6  ;;  %v1769_v6 = vadd.f32 %v1768_v48, %v1767_v39 }
 0xbb0   :  { %v1727_v20 = vmul.f32 %v13016_v57, %v13015_v40  ;;  %v1777_v40 = vsel %vm504_vm3, %v1726_v35, 0.0  ;;  %v2737_v4 = vmul.f32 %v9065_v14, %v10361_v28  ;;  %v1606_v35 = vadd.f32 %v10533_v22, %v1584_v32 }
 0xbb1   :  { %9066 = vrsqrt.f32 %v1531_v61  ;;  %v1776_v2 = vsel %vm504_vm3, %v1725_v43, 0.0  ;;  %v2670_v61 = vpop.xlane.xlu0 %2669  ;;  %v2754_v26 = vmul.f32 %v10529_v54, %v2738_v7  ;;  %v1754_v45 = vrot.slane %v1753_v11, 2  ;;  %v13018_v7 = vld [vmem:[#allocation94_spill] sm:$0xff] }
 0xbb2   :  { %v1778_v57 = vadd.f32 %v1777_v40, %v1776_v2  ;;  %9068 = vrsqrt.f32 %v2710_v19  ;;  %v2698_v9 = vmul.f32 0.03125, %v2670_v61  ;;  %v1785_v43 = vsel %vm504_vm3, %v1727_v20, 0.0 }
 0xbb3   :  { %v1787_v55 = vadd.f32 %v1786_v38, %v1785_v43  ;;  %9070 = vrsqrt.f32 %v2709_v34  ;;  %v1762_v2 = vadd.f32 %v1761_v36, %v1760_v29  ;;  %v1770_v61 = vrot.slane %v1769_v6, 4 }
 0xbb4   :  { %v2714_v19 = vadd.f32 1e-05, %v2698_v9  ;;  %v1779_v39 = vrot.slane %v1778_v57, 4  ;;  %v2753_v28 = vmul.f32 %v10529_v54, %v2737_v4  ;;  %v1622_v63 = vmax.f32 %v1606_v35, 0.0 }
 0xbb5   :  { %v1788_v12 = vrot.slane %v1787_v55, 4  ;;  %v1763_v32 = vrot.slane %v1762_v2, 2  ;;  %v1771_v29 = vadd.f32 %v1770_v61, %v1769_v6  ;;  %v1746_v14 = vadd.f32 %v1745_v30, %v1744_v27  ;;  %v13019_v27 = vld [vmem:[#allocation101_spill] sm:$0xff] }
 0xbb6   :  { %9072 = vrsqrt.f32 %v2714_v19  ;;  %v1780_v9 = vadd.f32 %v1779_v39, %v1778_v57  ;;  %v10728_v4 = vadd.f32 %v10533_v22, %v2753_v28  ;;  %v1737_v36 = vadd.f32 %v1736_v16, %v1735_v44 }
 0xbb7   :  { %v1789_v38 = vadd.f32 %v1788_v12, %v1787_v55  ;;  %9074 = vrsqrt.f32 %v2713_v50  ;;  %v1729_v43 = vmul.f32 %v13018_v7, %v1622_v63  ;;  %v1755_v15 = vadd.f32 %v1754_v45, %v1753_v11 }
 0xbb8   :  { %v10732_v35 = vadd.f32 %v10533_v22, %v2754_v26  ;;  %v1764_v57 = vadd.f32 %v1763_v32, %v1762_v2  ;;  %v1772_v6 = vrot.slane %v1771_v29, 2  ;;  %v1747_v44 = vrot.slane %v1746_v14, 1 }
 0xbb9   :  { %v1790_v39 = vrot.slane %v1789_v38, 2  ;;  %v2785_v11 = vmax.f32 %v10728_v4, 0.0  ;;  %v1738_v12 = vrot.slane %v1737_v36, 1  ;;  %v1756_v2 = vrot.slane %v1755_v15, 1  ;;  %v13027_v4 = vld [vmem:[#allocation100_spill] sm:$0xff] }
 0xbba   :  { %v1794_v28 = vsel %vm504_vm3, %v1729_v43, 0.0 }
 0xbbb   :  { %v9067_v48 = vpop.eup %9066  ;;  %v1791_v45 = vadd.f32 %v1790_v39, %v1789_v38  ;;  %v1739_v43 = vadd.f32 %v1738_v12, %v1737_v36 }
 0xbbc   :  { %v1563_v20 = vmul.f32 %v9067_v48, %v10464_v24  ;;  %v9069_v24 = vpop.eup %9068  ;;  %v1781_v48 = vrot.slane %v1780_v9, 2 }
 0xbbd   :  { %v9071_v0 = vpop.eup %9070  ;;  %v2742_v55 = vmul.f32 %v9069_v24, %v10449_v21  ;;  %v2692_v21 = vmul.f32 0.03125, %v10561_v13  ;;  %v1748_v24 = vadd.f32 %v1747_v44, %v1746_v14  ;;  %v1792_v39 = vrot.slane %v1791_v45, 1 }
 0xbbe   :  { %v1585_v33 = vmul.f32 %v10529_v54, %v1563_v20  ;;  %v2691_v20 = vmul.f32 0.03125, %v10645_v47  ;;  %v2741_v16 = vmul.f32 %v9071_v0, %v10407_v1  ;;  %v1765_v47 = vrot.slane %v1764_v57, 1 }
 0xbbf   :  { %v1782_v50 = vadd.f32 %v1781_v48, %v1780_v9  ;;  %v2786_v1 = vmax.f32 %v10732_v35, 0.0  ;;  %v1757_v0 = vadd.f32 %v1756_v2, %v1755_v15  ;;  %v1819_v15 = vsel %vm1818_vm1, %v1748_v24, %v1739_v43 }
 0xbc0   :  { %v1607_v34 = vadd.f32 %v10533_v22, %v1585_v33  ;;  %v2758_v33 = vmul.f32 %v10529_v54, %v2742_v55  ;;  %v9073_v32 = vpop.eup %9072  ;;  %v2708_v55 = vadd.f32 1e-05, %v2692_v21 }
 0xbc1   :  { %v3068_v9 = vpack.c.bf16 %v2786_v1, %v2785_v11  ;;  %v9075_v48 = vpop.eup %9074  ;;  %v1783_v38 = vrot.slane %v1782_v50, 1  ;;  %v2746_v14 = vmul.f32 %v9073_v32, %v10456_v31 }
 0xbc2   :  { %v1623_v40 = vmax.f32 %v1607_v34, 0.0  ;;  %v2707_v34 = vadd.f32 1e-05, %v2691_v20  ;;  %v10758_v44 = vadd.f32 %v10533_v22, %v2758_v33  ;;  %v2745_v20 = vmul.f32 %v9075_v48, %v10413_v5 }
 0xbc3   :  { %v1784_v12 = vadd.f32 %v1783_v38, %v1782_v50  ;;  %v2762_v5 = vmul.f32 %v10529_v54, %v2746_v14 }
 0xbc4   :  { %v1730_v19 = vmul.f32 %v13019_v27, %v1623_v40  ;;  %v1911_v61 = vpack.c.bf16 %v1623_v40, %v1622_v63  ;;  %v1773_v63 = vadd.f32 %v1772_v6, %v1771_v29  ;;  %v2757_v40 = vmul.f32 %v10529_v54, %v2741_v16 }
 0xbc5   :  { %v1766_v29 = vadd.f32 %v1765_v47, %v1764_v57  ;;  %9076 = vrsqrt.f32 %v2707_v34  ;;  %v1821_v57 = vsel %vm1820_vm7, %v1757_v0, %v1819_v15  ;;  %v2790_v21 = vmax.f32 %v10758_v44, 0.0  ;;  %v10808_v15 = vpop.permute.xlu1 %2861 }
 0xbc6   :  { %8435 = vmatmul.mubr.msk.bf16.vlgmr.msra.gmra.mrb[32].mxu1 %vm504_vm3, %v1911_v61  ;;  %v1795_v30 = vsel %vm504_vm3, %v1730_v19, 0.0  ;;  %v2664_v19 = vpop.xlane.xlu0 %2663  ;;  %v1774_v61 = vrot.slane %v1773_v63, 1  ;;  %v10765_v31 = vadd.f32 %v10533_v22, %v2757_v40  ;;  %9078 = vrsqrt.f32 %v2708_v55 }
 0xbc7   :  { %8450 = vmatpush3.bf16.msra.mxu1 %v10420_v49  ;;  %8453 = vmatprep.mubr.msk.bf16.mxu1 %vm9496_vm0, %v12999_v46  ;;  %v1796_v26 = vadd.f32 %v1795_v30, %v1794_v28  ;;  %v1823_v2 = vsel %vm1822_vm8, %v1766_v29, %v1821_v57  ;;  %v1793_v30 = vadd.f32 %v1792_v39, %v1791_v45  ;;  %v2696_v47 = vmul.f32 0.03125, %v2664_v19 }
 0xbc8   :  { %8451 = vmatprep.subr.bf16.mxu1 %v12999_v46  ;;  %v1775_v28 = vadd.f32 %v1774_v61, %v1773_v63  ;;  %v2761_v32 = vmul.f32 %v10529_v54, %v2745_v20  ;;  %v2789_v50 = vmax.f32 %v10765_v31, 0.0  ;;  %v13020_v57 = vmax.f32 %v10626_v62, 0.0 }
 0xbc9   :  { %v1797_v13 = vrot.slane %v1796_v26, 4  ;;  %v2712_v43 = vadd.f32 1e-05, %v2696_v47  ;;  %v13031_v44 = vmax.f32 %v10649_v18, 0.0 }
 0xbca   :  { %v1825_v34 = vsel %vm1824_vm9, %v1775_v28, %v1823_v2  ;;  %v3070_v40 = vpack.c.bf16 %v2790_v21, %v2789_v50  ;;  %v10792_v55 = vadd.f32 %v10533_v22, %v2761_v32 }
 0xbcb   :  { %8452 = vmatpush3.bf16.msra.mxu1 %v10433_v25  ;;  %v1798_v6 = vadd.f32 %v1797_v13, %v1796_v26  ;;  %v2673_v26 = vpop.xlane.xlu0 %2672  ;;  %v1827_v13 = vsel %vm1826_vm10, %v1784_v12, %v1825_v34  ;;  %9080 = vrsqrt.f32 %v2712_v43  ;;  %v13021_v12 = vmax.f32 %v10616_v23, 0.0 }
 0xbcc   :  { %8465 = vmatprep.subr.bf16.mxu1 %v12999_v46  ;;  %v2699_v63 = vmul.f32 0.03125, %v2673_v26  ;;  %v1829_v45 = vsel %vm1828_vm11, %v1793_v30, %v1827_v13  ;;  %v2793_v39 = vmax.f32 %v10792_v55, 0.0  ;;  %v13022_v34 = vmax.f32 %v10629_v51, 0.0  ;;  %v13036_v55 = vld [vmem:[#allocation111_spill] sm:$0xff] }
 0xbcd   :  { %v1799_v36 = vrot.slane %v1798_v6, 2 }
 0xbce   :  { %8454 = vmatmul.mubr.msk.bf16.vlgmr.msra.gmra.mrb[36].mxu1 %vm504_vm3, %v3068_v9  ;;  %v10786_v9 = vadd.f32 %v10533_v22, %v2762_v5  ;;  %v2715_v29 = vadd.f32 1e-05, %v2699_v63 }
 0xbcf   :  { %8466 = vmatpush3.bf16.msra.mxu1 %v10420_v49  ;;  %8469 = vmatprep.mubr.msk.bf16.mxu1 %vm9496_vm0, %v12999_v46  ;;  %v1800_v16 = vadd.f32 %v1799_v36, %v1798_v6  ;;  %v2679_v48 = vpop.xlane.xlu0 %2678  ;;  %v9077_v19 = vpop.eup %9076 }
 0xbd0   :  { %8467 = vmatprep.subr.bf16.mxu1 %v12999_v46  ;;  %v2794_v38 = vmax.f32 %v10786_v9, 0.0  ;;  %v9079_v6 = vpop.eup %9078  ;;  %v2739_v14 = vmul.f32 %v9077_v19, %v10446_v53  ;;  %v2701_v61 = vmul.f32 0.03125, %v2679_v48  ;;  %9082 = vrsqrt.f32 %v2715_v29  ;;  %v13024_v48 = vld [vmem:[#allocation96_spill] sm:$0xff] }
 0xbd1   :  { %v1801_v33 = vrot.slane %v1800_v16, 1  ;;  %v2740_v36 = vmul.f32 %v9079_v6, %v10401_v3  ;;  %v2892_v19 = vmul.f32 %v13024_v48, %v2785_v11  ;;  %v2897_v11 = vmul.f32 %v13027_v4, %v2790_v21 }
 0xbd2   :  { %v3072_v53 = vpack.c.bf16 %v2794_v38, %v2793_v39  ;;  %v2755_v3 = vmul.f32 %v10529_v54, %v2739_v14  ;;  %v2717_v2 = vadd.f32 1e-05, %v2701_v61  ;;  %v13025_v14 = vld [vmem:[#allocation103_spill] sm:$0xff] }
 0xbd3   :  { %8468 = vmatpush3.bf16.msra.mxu1 %v10433_v25  ;;  %v1802_v24 = vadd.f32 %v1801_v33, %v1800_v16  ;;  %v2685_v20 = vpop.xlane.xlu0 %2684  ;;  %v1904_v16 = vpack.c.bf16 %v13021_v12, %v13020_v57  ;;  %v2756_v23 = vmul.f32 %v10529_v54, %v2740_v36 }
 0xbd4   :  { %8481 = vmatprep.subr.bf16.mxu1 %v12999_v46  ;;  %v2703_v62 = vmul.f32 0.03125, %v2685_v20  ;;  %v10833_v30 = vadd.f32 %v10533_v22, %v2755_v3  ;;  %9084 = vrsqrt.f32 %v2717_v2  ;;  %v13026_v20 = vld [vmem:[#allocation102_spill] sm:$0xff]  ;;  %v2908_v3 = vsel %vm504_vm3, %v2892_v19, 0.0  ;;  %v13029_v2 = vld [vmem:[#allocation104_spill] sm:$0xff] }
 0xbd5   :  { %v1831_v0 = vsel %vm1830_vm12, %v1802_v24, %v1829_v45  ;;  %v9081_v47 = vpop.eup %9080  ;;  %v10837_v32 = vadd.f32 %v10533_v22, %v2756_v23  ;;  %v13023_v24 = vmax.f32 %v10619_v41, 0.0  ;;  %v2893_v57 = vmul.f32 %v13026_v20, %v2786_v1 }
 0xbd6   :  { %8372 = vmatmul.mubr.msk.f32.vlgmr.msra.gmra.mrb[14].mxu0 %vm504_vm3, %v1831_v0  ;;  %8470 = vmatmul.mubr.msk.bf16.vlgmr.msra.gmra.mrb[40].mxu1 %vm504_vm3, %v3070_v40  ;;  %v2719_v26 = vadd.f32 1e-05, %v2703_v62  ;;  %v12831_v43 = vmax.f32 %v10833_v30, 0.0  ;;  %v2744_v0 = vmul.f32 %v9081_v47, %v10474_v52  ;;  %v2896_v35 = vmul.f32 %v13029_v2, %v2789_v50 }
 0xbd7   :  { %8375 = vmatpush3.bf16.msra.mxu0 %v10420_v49  ;;  %8482 = vmatpush3.bf16.msra.mxu1 %v10420_v49  ;;  %v1906_v13 = vpack.c.bf16 %v13023_v24, %v13022_v34  ;;  %v12830_v41 = vmax.f32 %v10837_v32, 0.0  ;;  %v13030_v1 = vmax.f32 %v10653_v56, 0.0  ;;  %v2909_v31 = vsel %vm504_vm3, %v2893_v57, 0.0 }
 0xbd8   :  { %8376 = vmatprep.subr.bf16.mxu0 %v12999_v46  ;;  %8483 = vmatprep.subr.bf16.mxu1 %v12999_v46  ;;  %v2894_v61 = vmul.f32 %v13025_v14, %v12831_v43  ;;  %v2760_v36 = vmul.f32 %v10529_v54, %v2744_v0  ;;  %v2927_v50 = vsel %vm504_vm3, %v2897_v11, 0.0  ;;  %v2910_v56 = vadd.f32 %v2909_v31, %v2908_v3  ;;  %v10929_v31 = vpop.permute.xlu0 %2865 }
 0xbd9   :  { %8378 = vmatprep.mubr.msk.bf16.mxu0 %vm9496_vm0, %v12999_v46  ;;  %8485 = vmatprep.mubr.msk.bf16.mxu1 %vm9496_vm0, %v12999_v46  ;;  %v1908_v62 = vpack.c.bf16 %v13031_v44, %v13030_v1  ;;  %v2926_v24 = vsel %vm504_vm3, %v2896_v35, 0.0  ;;  %v13035_v57 = vmax.f32 %v10662_v10, 0.0  ;;  %v13038_v35 = vmov 0.0|0.0  }
 0xbda   :  { %v9083_v40 = vpop.eup %9082  ;;  %v10884_v47 = vadd.f32 %v10533_v22, %v2760_v36  ;;  %v13034_v36 = vmax.f32 %v10672_v42, 0.0  ;;  %v13039_v42 = vld [vmem:[#allocation108_spill] sm:$0xff] }
 0xbdb   :  { %8377 = vmatpush3.bf16.msra.mxu0 %v10433_v25  ;;  %8484 = vmatpush3.bf16.msra.mxu1 %v10433_v25  ;;  %v2747_v52 = vmul.f32 %v9083_v40, %v10479_v17 }
 0xbdc   :  { %8390 = vmatprep.subr.bf16.mxu0 %v12999_v46  ;;  %8497 = vmatprep.subr.bf16.mxu1 %v12999_v46  ;;  %v12826_v19 = vmax.f32 %v10884_v47, 0.0  ;;  %v1910_v11 = vpack.c.bf16 %v13035_v57, %v13034_v36 }
 0xbdd   :  { %v2763_v23 = vmul.f32 %v10529_v54, %v2747_v52 }
 0xbde   :  { %8379 = vmatmul.mubr.msk.bf16.vlgmr.msra.gmra.mrb[20].mxu0 %vm504_vm3, %v1904_v16  ;;  %8486 = vmatmul.mubr.msk.bf16.vlgmr.msra.gmra.mrb[44].mxu1 %vm504_vm3, %v3072_v53  ;;  %v9085_v17 = vpop.eup %9084  ;;  %v13028_v16 = vld [vmem:[#allocation98_spill] sm:$0xff]  ;;  %v2899_v10 = vmul.f32 %v13039_v42, %v12826_v19 }
 0xbdf   :  { %8391 = vmatpush3.bf16.msra.mxu0 %v10420_v49  ;;  %8394 = vmatprep.mubr.msk.bf16.mxu0 %vm9496_vm0, %v12999_v46  ;;  %v2895_v53 = vmul.f32 %v13028_v16, %v12830_v41 }
 0xbe0   :  { %8392 = vmatprep.subr.bf16.mxu0 %v12999_v46  ;;  %8498 = vmatpush3.bf16.msra.mxu1 %v10420_v49 }
 0xbe1   :  { %v2661_v5 = vpop.xlane.xlu1 %2660  ;;  %8499 = vmatprep.subr.bf16.mxu1 %v12999_v46  ;;  %8501 = vmatprep.mubr.msk.bf16.mxu1 %vm9496_vm0, %v12999_v46  ;;  %v2918_v34 = vsel %vm504_vm3, %v2895_v53, 0.0  ;;  %v13037_v53 = vld [vmem:[#allocation109_spill] sm:$0xff] }
 0xbe2   :  { %v2695_v28 = vmul.f32 0.03125, %v2661_v5 }
 0xbe3   :  { %8393 = vmatpush3.bf16.msra.mxu0 %v10433_v25 }
 0xbe4   :  { %v2711_v33 = vadd.f32 1e-05, %v2695_v28  ;;  %8406 = vmatprep.subr.bf16.mxu0 %v12999_v46  ;;  %8500 = vmatpush3.bf16.msra.mxu1 %v10433_v25  ;;  %v2917_v28 = vsel %vm504_vm3, %v2894_v61, 0.0 }
 0xbe5   :  { %v2676_v63 = vpop.xlane.xlu1 %2675  ;;  %8513 = vmatprep.subr.bf16.mxu1 %v12999_v46  ;;  %v2919_v0 = vadd.f32 %v2918_v34, %v2917_v28 }
 0xbe6   :  { %9086 = vrsqrt.f32 %v2711_v33  ;;  %v2700_v45 = vmul.f32 0.03125, %v2676_v63  ;;  %8395 = vmatmul.mubr.msk.bf16.vlgmr.msra.gmra.mrb[24].mxu0 %vm504_vm3, %v1906_v13  ;;  %v2749_v33 = vmul.f32 %v9085_v17, %v10489_v60  ;;  %v2901_v13 = vmul.f32 %v10631_v8, %v2794_v38  ;;  %v13032_v63 = vld [vmem:[#allocation110_spill] sm:$0xff] }
 0xbe7   :  { %9088 = vrsqrt.f32 %v2719_v26  ;;  %8407 = vmatpush3.bf16.msra.mxu0 %v10420_v49  ;;  %8410 = vmatprep.mubr.msk.bf16.mxu0 %vm9496_vm0, %v12999_v46  ;;  %v2928_v60 = vadd.f32 %v2927_v50, %v2926_v24  ;;  %v2920_v1 = vrot.slane %v2919_v0, 4 }
 0xbe8   :  { %v2716_v51 = vadd.f32 1e-05, %v2700_v45  ;;  %8408 = vmatprep.subr.bf16.mxu0 %v12999_v46  ;;  %v2765_v61 = vmul.f32 %v10529_v54, %v2749_v33  ;;  %v13040_v33 = vld [vmem:[#allocation105_spill] sm:$0xff] }
 0xbe9   :  { %v2682_v29 = vpop.xlane.xlu1 %2681 }
 0xbea   :  { %9090 = vrsqrt.f32 %v2716_v51  ;;  %v2702_v6 = vmul.f32 0.03125, %v2682_v29  ;;  %v10901_v51 = vadd.f32 %v10533_v22, %v2763_v23  ;;  %v13033_v29 = vld [vmem:[#allocation107_spill] sm:$0xff] }
 0xbeb   :  { %8409 = vmatpush3.bf16.msra.mxu0 %v10433_v25  ;;  %v2900_v52 = vmul.f32 %v13033_v29, %v2793_v39 }
 0xbec   :  { %v2718_v12 = vadd.f32 1e-05, %v2702_v6  ;;  %8422 = vmatprep.subr.bf16.mxu0 %v12999_v46  ;;  %v2911_v6 = vrot.slane %v2910_v56, 4  ;;  %v12825_v44 = vmax.f32 %v10901_v51, 0.0 }
 0xbed   :  { %v2688_v21 = vpop.xlane.xlu1 %2687 }
 0xbee   :  { %9092 = vrsqrt.f32 %v2718_v12  ;;  %v2704_v5 = vmul.f32 0.03125, %v2688_v21  ;;  %8411 = vmatmul.mubr.msk.bf16.vlgmr.msra.gmra.mrb[28].mxu0 %vm504_vm3, %v1908_v62  ;;  %v2945_v12 = vsel %vm504_vm3, %v2901_v13, 0.0  ;;  %v2929_v62 = vrot.slane %v2928_v60, 4  ;;  %v13041_v13 = vld [vmem:[#allocation112_spill] sm:$0xff] }
 0xbef   :  { %8423 = vmatpush3.bf16.msra.mxu0 %v10420_v49  ;;  %8426 = vmatprep.mubr.msk.bf16.mxu0 %vm9496_vm0, %v12999_v46  ;;  %v2944_v21 = vsel %vm504_vm3, %v2900_v52, 0.0  ;;  %v2912_v50 = vadd.f32 %v2911_v6, %v2910_v56  ;;  %v2921_v56 = vadd.f32 %v2920_v1, %v2919_v0 }
 0xbf0   :  { %v9087_v18 = vpop.eup %9086  ;;  %v2720_v26 = vadd.f32 1e-05, %v2704_v5  ;;  %8424 = vmatprep.subr.bf16.mxu0 %v12999_v46  ;;  %v2930_v52 = vadd.f32 %v2929_v62, %v2928_v60 }
 0xbf1   :  { %v2743_v45 = vmul.f32 %v9087_v18, %v13032_v63  ;;  %v9089_v40 = vpop.eup %9088  ;;  %v2946_v18 = vadd.f32 %v2945_v12, %v2944_v21  ;;  %v2922_v62 = vrot.slane %v2921_v56, 2 }
 0xbf2   :  { %9094 = vrsqrt.f32 %v2720_v26  ;;  %v2751_v3 = vmul.f32 %v9089_v40, %v13037_v53  ;;  %v2781_v26 = vadd.f32 %v10533_v22, %v2765_v61  ;;  %v2902_v40 = vmul.f32 %v10808_v15, %v12825_v44 }
 0xbf3   :  { %v2759_v9 = vmul.f32 %v10529_v54, %v2743_v45  ;;  %8425 = vmatpush3.bf16.msra.mxu0 %v10433_v25  ;;  %v2947_v12 = vrot.slane %v2946_v18, 4  ;;  %v2931_v21 = vrot.slane %v2930_v52, 2  ;;  %v2923_v19 = vadd.f32 %v2922_v62, %v2921_v56 }
 0xbf4   :  { %v9091_v38 = vpop.eup %9090  ;;  %8899 = vmatprep.subr.bf16.mxu0 %v13038_v35  ;;  %v2767_v45 = vmul.f32 %v10529_v54, %v2751_v3  ;;  %v2797_v0 = vmax.f32 %v2781_v26, 0.0 }
 0xbf5   :  { %v10916_v17 = vadd.f32 %v10533_v22, %v2759_v9  ;;  %v2748_v39 = vmul.f32 %v9091_v38, %v13036_v55  ;;  %v10947_v9 = vpop.permute.xlu1 %2872  ;;  %v2936_v38 = vsel %vm504_vm3, %v2899_v10, 0.0  ;;  %v10963_v10 = vpop.permute.xlu0 %2876  ;;  %v2924_v62 = vrot.slane %v2923_v19, 1 }
 0xbf6   :  { %8427 = vmatmul.mubr.msk.bf16.vlgmr.msra.gmra.mrb[32].mxu0 %vm504_vm3, %v1910_v11  ;;  %v2913_v11 = vrot.slane %v2912_v50, 2  ;;  %v10960_v1 = vadd.f32 %v10533_v22, %v2767_v45 }
 0xbf7   :  { %v12827_v23 = vmax.f32 %v10916_v17, 0.0  ;;  %v2764_v5 = vmul.f32 %v10529_v54, %v2748_v39  ;;  %8901 = vmatpush3.bf16.msra.mxu0 %v10420_v49  ;;  %8446 = vmatprep.mubr.msk.f32.mxu0 %vm9496_vm0, %v12999_v46  ;;  %v13042_v39 = vld [vmem:[#allocation113_spill] sm:$0xff] }
 0xbf8   :  { %v9093_v28 = vpop.eup %9092  ;;  %8902 = vmatprep.subr.bf16.mxu0 %v13038_v35 }
 0xbf9   :  { %v2898_v34 = vmul.f32 %v13040_v33, %v12827_v23  ;;  %v10939_v24 = vadd.f32 %v10533_v22, %v2764_v5  ;;  %v2750_v63 = vmul.f32 %v9093_v28, %v13041_v13  ;;  %v2953_v28 = vsel %vm504_vm3, %v2902_v40, 0.0 }
 0xbfa   :  { %v12829_v40 = vmax.f32 %v10960_v1, 0.0 }
 0xbfb   :  { %v2935_v6 = vsel %vm504_vm3, %v2898_v34, 0.0  ;;  %v12824_v61 = vmax.f32 %v10939_v24, 0.0  ;;  %v2766_v36 = vmul.f32 %v10529_v54, %v2750_v63  ;;  %8904 = vmatpush3.bf16.msra.mxu0 %v10433_v25  ;;  %v2904_v34 = vmul.f32 %v10947_v9, %v2797_v0 }
 0xbfc   :  { %v9095_v57 = vpop.eup %9094  ;;  %v2937_v55 = vadd.f32 %v2936_v38, %v2935_v6  ;;  %8457 = vmatprep.subr.bf16.mxu0 %v12999_v46  ;;  %v2914_v38 = vadd.f32 %v2913_v11, %v2912_v50  ;;  %v2948_v6 = vadd.f32 %v2947_v12, %v2946_v18 }
 0xbfd   :  { %v2903_v60 = vmul.f32 %v10929_v31, %v12824_v61  ;;  %v2752_v53 = vmul.f32 %v9095_v57, %v13042_v39  ;;  %v2782_v3 = vadd.f32 %v10533_v22, %v2766_v36  ;;  %v10969_v22 = vpop.permute.xlu1 %2883  ;;  %v9209_v61 = vld [vmem:[%s13009_s13] ss:$0 sm:$0xff]  ;;  %v2962_v50 = vsel %vm504_vm3, %v2904_v34, 0.0 }
 0xbfe   :  { %v2938_v5 = vrot.slane %v2937_v55, 4  ;;  %v2906_v18 = vmul.f32 %v10969_v22, %v12829_v40 }
 0xbff   :  { %v2798_v26 = vmax.f32 %v2782_v3, 0.0  ;;  %v2768_v13 = vmul.f32 %v10529_v54, %v2752_v53  ;;  %v2954_v63 = vsel %vm504_vm3, %v2903_v60, 0.0  ;;  %v2932_v3 = vadd.f32 %v2931_v21, %v2930_v52 }
 0xc00   :  { %v2939_v45 = vadd.f32 %v2938_v5, %v2937_v55  ;;  %v2955_v36 = vadd.f32 %v2954_v63, %v2953_v28  ;;  %v2915_v5 = vrot.slane %v2914_v38, 1 }
 0xc01   :  { %v2905_v57 = vmul.f32 %v10963_v10, %v2798_v26  ;;  %v3074_v39 = vpack.c.bf16 %v2798_v26, %v2797_v0  ;;  %v10973_v44 = vadd.f32 %v9209_v61, %v2768_v13  ;;  %v10983_v61 = vpop.permute.xlu0 %2887  ;;  %v2949_v0 = vrot.slane %v2948_v6, 2 }
 0xc02   :  { %v2940_v23 = vrot.slane %v2939_v45, 2  ;;  %v2956_v54 = vrot.slane %v2955_v36, 4  ;;  %13043 = vst [vmem:[#allocation106_spill] sm:$0xff] %v10983_v61  ;;  %v2971_v26 = vsel %vm504_vm3, %v2906_v18, 0.0  ;;  %v2933_v34 = vrot.slane %v2932_v3, 1 }
 0xc03   :  { %v2963_v60 = vsel %vm504_vm3, %v2905_v57, 0.0  ;;  %v12828_v11 = vmax.f32 %v10973_v44, 0.0  ;;  %8502 = vmatmul.mubr.msk.bf16.vlgmr.msra.gmra.mrb[48].mxu1 %vm504_vm3, %v3074_v39 }
 0xc04   :  { %v2964_v12 = vadd.f32 %v2963_v60, %v2962_v50  ;;  %v2941_v55 = vadd.f32 %v2940_v23, %v2939_v45  ;;  %v2957_v52 = vadd.f32 %v2956_v54, %v2955_v36  ;;  %8517 = vmatprep.mubr.msk.bf16.mxu1 %vm9496_vm0, %v12999_v46  ;;  %v2950_v36 = vadd.f32 %v2949_v0, %v2948_v6 }
 0xc05   :  { %v2907_v56 = vmul.f32 %v10983_v61, %v12828_v11  ;;  %v2925_v54 = vadd.f32 %v2924_v62, %v2923_v19  ;;  %v2916_v60 = vadd.f32 %v2915_v5, %v2914_v38  ;;  %v2934_v50 = vadd.f32 %v2933_v34, %v2932_v3  ;;  %v355_v5 = vld [vmem:[%s13046_s23 + $0x8] sm:$0xff] }
 0xc06   :  { %v2965_v53 = vrot.slane %v2964_v12, 4  ;;  %v2958_v21 = vrot.slane %v2957_v52, 2  ;;  %v2942_v63 = vrot.slane %v2941_v55, 1  ;;  %v2951_v35 = vrot.slane %v2950_v36, 1 }
 0xc07   :  { %v2972_v28 = vsel %vm504_vm3, %v2907_v56, 0.0  ;;  %v2989_v18 = vsel %vm1818_vm1, %v2925_v54, %v2916_v60  ;;  %v13057_v54 = vld [vmem:[#allocation89_spill] sm:$0xff] }
 0xc08   :  { %v2966_v13 = vadd.f32 %v2965_v53, %v2964_v12  ;;  %v2973_v23 = vadd.f32 %v2972_v28, %v2971_v26  ;;  %v2959_v45 = vadd.f32 %v2958_v21, %v2957_v52  ;;  %v2943_v41 = vadd.f32 %v2942_v63, %v2941_v55 }
 0xc09   :  { %v2990_v12 = vsel %vm1820_vm7, %v2934_v50, %v2989_v18  ;;  %v2952_v52 = vadd.f32 %v2951_v35, %v2950_v36  ;;  %vm2267_vm15 = vcmp.gt.f32.partialorder %v13057_v54, 0.0 }
 0xc0a   :  { %v2967_v57 = vrot.slane %v2966_v13, 2  ;;  %v2974_v39 = vrot.slane %v2973_v23, 4  ;;  %v2960_v43 = vrot.slane %v2959_v45, 1  ;;  %v2991_v6 = vsel %vm1822_vm8, %v2943_v41, %v2990_v12 }
 0xc0b   :  { %v2992_v38 = vsel %vm1824_vm9, %v2952_v52, %v2991_v6  ;;  %v13045_v41 = vmax.f32 %v10837_v32, 0.0  ;;  %v13048_v32 = vmax.f32 %v10884_v47, 0.0  ;;  %v13050_v47 = vmax.f32 %v10939_v24, 0.0 }
 0xc0c   :  { %v2968_v11 = vadd.f32 %v2967_v57, %v2966_v13  ;;  %v2975_v40 = vadd.f32 %v2974_v39, %v2973_v23  ;;  %v2961_v28 = vadd.f32 %v2960_v43, %v2959_v45  ;;  %v13044_v43 = vmax.f32 %v10833_v30, 0.0  ;;  %v356_v13 = vld [vmem:[%s13046_s23 + $0x10] sm:$0xff]  ;;  %v357_v23 = vld [vmem:[%s13046_s23 + $0x18] sm:$0xff] }
 0xc0d   :  { %v13047_v30 = vmax.f32 %v10916_v17, 0.0  ;;  %v13049_v17 = vmax.f32 %v10901_v51, 0.0  ;;  %v13052_v51 = vmax.f32 %v10960_v1, 0.0  ;;  %v13053_v24 = vmax.f32 %v10973_v44, 0.0  ;;  %v13055_v44 = vld [vmem:[#allocation64_spill] sm:$0xff] }
 0xc0e   :  { %v2969_v61 = vrot.slane %v2968_v11, 1  ;;  %v2976_v56 = vrot.slane %v2975_v40, 2  ;;  %v2993_v55 = vsel %vm1826_vm10, %v2961_v28, %v2992_v38  ;;  %v3069_v35 = vpack.c.bf16 %v13045_v41, %v13044_v43  ;;  %v13056_v45 = vld [vmem:[#allocation88_spill] sm:$0xff] }
 0xc0f   :  { %v3075_v34 = vpack.c.bf16 %v13053_v24, %v13052_v51  ;;  %v11051_v63 = vpack.c.bf16 %v357_v23, %v356_v13  ;;  %vm2266_vm14 = vcmp.gt.f32.partialorder %v13056_v45, 0.0  ;;  %v360_v45 = vld [vmem:[%s13046_s23 + $0x30] sm:$0xff] }
 0xc10   :  { %v2977_v53 = vadd.f32 %v2976_v56, %v2975_v40  ;;  %v2970_v0 = vadd.f32 %v2969_v61, %v2968_v11  ;;  %v3071_v40 = vpack.c.bf16 %v13048_v32, %v13047_v30  ;;  %v3073_v11 = vpack.c.bf16 %v13050_v47, %v13049_v17  ;;  %v354_v61 = vld [vmem:[%s13046_s23] sm:$0xff] }
 0xc11   :  { %v11040_v26 = vpack.c.bf16 %v355_v5, %v354_v61  ;;  %13054 = vst [vmem:[#allocation101_spill] sm:$0xff] %v11051_v63 }
 0xc12   :  { %v2978_v19 = vrot.slane %v2977_v53, 1  ;;  %v2994_v62 = vsel %vm1828_vm11, %v2970_v0, %v2993_v55 }
 0xc13   :  { %13051 = vst [vmem:[#allocation94_spill] sm:$0xff] %v11040_v26 }
 0xc14   :  { %v2979_v3 = vadd.f32 %v2978_v19, %v2977_v53 }
 0xc16   :  { %v2995_v21 = vsel %vm1830_vm12, %v2979_v3, %v2994_v62 }
 0xc17   :  { %8447 = vmatmul.mubr.msk.f32.vlgmr.msra.gmra.mrb[36].mxu0 %vm504_vm3, %v2995_v21 }
 0xc18   :  { %8458 = vmatpush3.bf16.msra.mxu0 %v10420_v49  ;;  %8461 = vmatprep.mubr.msk.bf16.mxu0 %vm9496_vm0, %v12999_v46 }
 0xc19   :  { %8459 = vmatprep.subr.bf16.mxu0 %v12999_v46 }
 0xc1c   :  { %8460 = vmatpush3.bf16.msra.mxu0 %v10433_v25 }
 0xc1d   :  { %8473 = vmatprep.subr.bf16.mxu0 %v12999_v46 }
 0xc1f   :  { %8462 = vmatmul.mubr.msk.bf16.vlgmr.msra.gmra.mrb[40].mxu0 %vm504_vm3, %v3069_v35 }
 0xc20   :  { %8474 = vmatpush3.bf16.msra.mxu0 %v10420_v49  ;;  %8477 = vmatprep.mubr.msk.bf16.mxu0 %vm9496_vm0, %v12999_v46 }
 0xc21   :  { %8475 = vmatprep.subr.bf16.mxu0 %v12999_v46 }
 0xc24   :  { %8476 = vmatpush3.bf16.msra.mxu0 %v10433_v25 }
 0xc25   :  { %8489 = vmatprep.subr.bf16.mxu0 %v12999_v46 }
 0xc27   :  { %8478 = vmatmul.mubr.msk.bf16.vlgmr.msra.gmra.mrb[44].mxu0 %vm504_vm3, %v3071_v40 }
 0xc28   :  { %8490 = vmatpush3.bf16.msra.mxu0 %v10420_v49  ;;  %8493 = vmatprep.mubr.msk.bf16.mxu0 %vm9496_vm0, %v12999_v46 }
 0xc29   :  { %8491 = vmatprep.subr.bf16.mxu0 %v12999_v46 }
 0xc2c   :  { %8492 = vmatpush3.bf16.msra.mxu0 %v10433_v25 }
 0xc2d   :  { %8505 = vmatprep.subr.bf16.mxu0 %v12999_v46 }
 0xc2f   :  { %8494 = vmatmul.mubr.msk.bf16.vlgmr.msra.gmra.mrb[48].mxu0 %vm504_vm3, %v3073_v11 }
 0xc30   :  { %8506 = vmatpush3.bf16.msra.mxu0 %v10420_v49  ;;  %8509 = vmatprep.mubr.msk.bf16.mxu0 %vm9496_vm0, %v12999_v46 }
 0xc31   :  { %8507 = vmatprep.subr.bf16.mxu0 %v12999_v46 }
 0xc34   :  { %8508 = vmatpush3.bf16.msra.mxu0 %v10433_v25 }
 0xc35   :  { %8521 = vmatprep.subr.bf16.mxu0 %v12999_v46 }
 0xc37   :  { %8510 = vmatmul.mubr.msk.bf16.vlgmr.msra.gmra.mrb[52].mxu0 %vm504_vm3, %v3075_v34 }
 0xc38   :  { %8522 = vmatpush3.bf16.msra.mxu0 %v11040_v26  ;;  %8525 = vmatprep.mubr.msk.bf16.mxu0 %vm9496_vm0, %v12999_v46 }
 0xc39   :  { %8523 = vmatprep.subr.bf16.mxu0 %v12999_v46 }
 0xc3c   :  { %8524 = vmatpush3.bf16.msra.mxu0 %v11051_v63 }
 0xc3d   :  { %8537 = vmatprep.subr.bf16.mxu0 %v12999_v46 }
 0xc3f   :  { %8526 = vmatmul.mubr.msk.bf16.vlgmr.msra.gmra.mrb[56].mxu0 %vm504_vm3, %v13055_v44  ;;  %v358_v44 = vld [vmem:[%s13046_s23 + $0x20] sm:$0xff] }
 0xc40   :  { %8541 = vmatprep.mubr.msk.bf16.mxu0 %vm9496_vm0, %v12999_v46 }
 0xc50   :  { %v1993_v1 = vpop.f32.mrb[20].mxu1 }
 0xc51   :  { %v2314_v36 = vsel %vm2266_vm14, %v1993_v1, -inf  ;;  %v8388_v57 = vpop.f32.mrb[21].mxu1  ;;  %vm2271_vm14 = vcmp.gt.f32.partialorder %v10230_v58, 0.0  ;;  %v359_v1 = vld [vmem:[%s13046_s23 + $0x28] sm:$0xff] }
 0xc52   :  { %v1996_v39 = vpop.f32.mrb[22].mxu1  ;;  %v2337_v56 = vsel %vm504_vm3, %v2314_v36, -inf  ;;  %v361_v57 = vld [vmem:[%s13046_s23 + $0x38] sm:$0xff] }
 0xc53   :  { %v2315_v60 = vsel %vm2267_vm15, %v1996_v39, -inf  ;;  %v8389_v50 = vpop.f32.mrb[23].mxu1  ;;  %vm2274_vm15 = vcmp.gt.f32.partialorder %v10247_v37, 0.0 }
 0xc54   :  { %v2338_v18 = vsel %vm504_vm3, %v2315_v60, -inf  ;;  %v11094_v60 = vpop.xlane.xlu1 %1713 }
 0xc55   :  { %v11066_v12 = vmax.f32 %v2337_v56, %v2338_v18  ;;  %v11099_v56 = vpack.c.bf16 %v361_v57, %v360_v45 }
 0xc57   :  { %13061 = vst [vmem:[#allocation103_spill] sm:$0xff] %v11099_v56 }
 0xc6c   :  { %v2081_v53 = vpop.f32.mrb[24].mxu1 }
 0xc6d   :  { %v2318_v28 = vsel %vm2270_vm2, %v2081_v53, -inf  ;;  %v8404_v6 = vpop.f32.mrb[25].mxu1  ;;  %vm2275_vm2 = vcmp.gt.f32.partialorder %v13058_v59, 0.0  ;;  %v2340_v53 = vrot.slane %v11066_v12, 4 }
 0xc6e   :  { %v2084_v52 = vpop.f32.mrb[26].mxu1  ;;  %v2355_v38 = vsel %vm504_vm3, %v2318_v28, -inf }
 0xc6f   :  { %v2319_v0 = vsel %vm2271_vm14, %v2084_v52, -inf  ;;  %v8405_v19 = vpop.f32.mrb[27].mxu1  ;;  %vm2278_vm14 = vcmp.gt.f32.partialorder %v13018_v7, 0.0 }
 0xc70   :  { %v2356_v3 = vsel %vm504_vm3, %v2319_v0, -inf }
 0xc71   :  { %v11072_v55 = vmax.f32 %v2355_v38, %v2356_v3 }
 0xc74   :  { %v2169_v62 = vpop.f32.mrb[28].mxu1 }
 0xc75   :  { %v2322_v21 = vsel %vm2274_vm15, %v2169_v62, -inf  ;;  %v8420_v43 = vpop.f32.mrb[29].mxu1  ;;  %vm2279_vm15 = vcmp.gt.f32.partialorder %v13019_v27, 0.0  ;;  %v11091_v27 = vpack.c.bf16 %v359_v1, %v358_v44 }
 0xc76   :  { %v2172_v41 = vpop.f32.mrb[30].mxu1  ;;  %v2373_v58 = vsel %vm504_vm3, %v2322_v21, -inf  ;;  %v2341_v21 = vmax.f32 %v11066_v12, %v2340_v53  ;;  %v13064_v53 = vld [vmem:[#allocation91_spill] sm:$0xff] }
 0xc77   :  { %v2323_v35 = vsel %vm2275_vm2, %v2172_v41, -inf  ;;  %v8421_v30 = vpop.f32.mrb[31].mxu1  ;;  %vm3428_vm2 = vcmp.gt.f32.partialorder %v13024_v48, 0.0  ;;  %13060 = vst [vmem:[#allocation96_spill] sm:$0xff] %v11091_v27  ;;  %8514 = vmatpush3.bf16.msra.mxu1 %v11091_v27 }
 0xc78   :  { %v2374_v32 = vsel %vm504_vm3, %v2323_v35, -inf  ;;  %8515 = vmatprep.subr.bf16.mxu1 %v12999_v46  ;;  %v2342_v30 = vrot.slane %v2341_v21, 2 }
 0xc79   :  { %v11078_v40 = vmax.f32 %v2373_v58, %v2374_v32  ;;  %v13062_v32 = vld [vmem:[#allocation86_spill] sm:$0xff] }
 0xc7b   :  { %8516 = vmatpush3.bf16.msra.mxu1 %v11099_v56 }
 0xc7c   :  { %8529 = vmatprep.subr.bf16.mxu1 %v12999_v46 }
 0xc99   :  { %v2257_v17 = vpop.f32.mrb[32].mxu1 }
 0xc9a   :  { %v2326_v37 = vsel %vm2278_vm14, %v2257_v17, -inf  ;;  %v8436_v47 = vpop.f32.mrb[33].mxu1  ;;  %vm3429_vm14 = vcmp.gt.f32.partialorder %v13026_v20, 0.0  ;;  %v11105_v20 = vld [vmem:[%s13059_s26] ss:$0 sm:$0xff] }
 0xc9b   :  { %v2260_v11 = vpop.f32.mrb[34].mxu1  ;;  %v2391_v51 = vsel %vm504_vm3, %v2326_v37, -inf  ;;  %v1809_v28 = vmul.f32 %v11105_v20, %v11094_v60 }
 0xc9c   :  { %v2327_v61 = vsel %vm2279_vm15, %v2260_v11, -inf  ;;  %v8437_v5 = vpop.f32.mrb[35].mxu1  ;;  %vm3432_vm15 = vcmp.gt.f32.partialorder %v13029_v2, 0.0  ;;  %v2358_v11 = vrot.slane %v11072_v55, 4 }
 0xc9d   :  { %v2392_v24 = vsel %vm504_vm3, %v2327_v61, -inf  ;;  %v13063_v5 = vld [vmem:[#allocation87_spill] sm:$0xff] }
 0xc9e   :  { %v11084_v34 = vmax.f32 %v2391_v51, %v2392_v24  ;;  %v2343_v24 = vmax.f32 %v2341_v21, %v2342_v30 }
 0xca1   :  { %v3113_v13 = vpop.f32.mrb[36].mxu1 }
 0xca2   :  { %v3476_v23 = vsel %vm3428_vm2, %v3113_v13, -inf  ;;  %v8455_v7 = vpop.f32.mrb[37].mxu1  ;;  %vm3433_vm2 = vcmp.gt.f32.partialorder %v13027_v4, 0.0 }
 0xca3   :  { %v3116_v36 = vpop.f32.mrb[38].mxu1  ;;  %v3492_v50 = vsel %vm504_vm3, %v3476_v23, -inf }
 0xca4   :  { %v3477_v39 = vsel %vm3429_vm14, %v3116_v36, -inf  ;;  %v8456_v54 = vpop.f32.mrb[39].mxu1  ;;  %vm2264_vm14 = vcmp.gt.f32.partialorder %v13062_v32, 0.0 }
 0xca5   :  { %v3493_v48 = vsel %vm504_vm3, %v3477_v39, -inf  ;;  %v2359_v54 = vmax.f32 %v11072_v55, %v2358_v11 }
 0xca6   :  { %v11101_v18 = vmax.f32 %v3492_v50, %v3493_v48  ;;  %v2344_v50 = vrot.slane %v2343_v24, 1 }
 0xca9   :  { %v1900_v6 = vpop.f32.mrb[14].mxu0  ;;  %v3201_v52 = vpop.f32.mrb[40].mxu1 }
 0xcaa   :  { %v1901_v0 = vadd.f32 %v1900_v6, %v1809_v28  ;;  %v3480_v19 = vsel %vm3432_vm15, %v3201_v52, -inf  ;;  %v8373_v38 = vpop.f32.mrb[15].mxu0  ;;  %v8471_v3 = vpop.f32.mrb[41].mxu1  ;;  %vm3436_vm15 = vcmp.gt.f32.partialorder %v13033_v29, 0.0 }
 0xcab   :  { %v3204_v62 = vpop.f32.mrb[42].mxu1  ;;  %v3510_v59 = vsel %vm504_vm3, %v3480_v19, -inf  ;;  %v2376_v19 = vrot.slane %v11078_v40, 4  ;;  %v13065_v3 = vld [vmem:[#allocation92_spill] sm:$0xff] }
 0xcac   :  { %2436 = vst.msk [vmem:[#allocation5] sm:$0xff] %vm504_vm3, %v1901_v0  ;;  %v3481_v43 = vsel %vm3433_vm2, %v3204_v62, -inf  ;;  %v8472_v41 = vpop.f32.mrb[43].mxu1  ;;  %vm2265_vm2 = vcmp.gt.f32.partialorder %v13063_v5, 0.0  ;;  %v2360_v0 = vrot.slane %v2359_v54, 2  ;;  %v2345_v62 = vmax.f32 %v2343_v24, %v2344_v50 }
 0xcad   :  { %v3511_v2 = vsel %vm504_vm3, %v3481_v43, -inf  ;;  %v2377_v32 = vmax.f32 %v11078_v40, %v2376_v19 }
 0xcae   :  { %v11118_v35 = vmax.f32 %v3510_v59, %v3511_v2 }
 0xcb1   :  { %v1949_v58 = vpop.f32.mrb[20].mxu0  ;;  %v3289_v17 = vpop.f32.mrb[44].mxu1 }
 0xcb2   :  { %v2312_v4 = vsel %vm2264_vm14, %v1949_v58, -inf  ;;  %v8380_v37 = vpop.f32.mrb[21].mxu0  ;;  %v3484_v12 = vsel %vm3436_vm15, %v3289_v17, -inf  ;;  %v8487_v47 = vpop.f32.mrb[45].mxu1  ;;  %vm2268_vm14 = vcmp.gt.f32.partialorder %v13064_v53, 0.0  ;;  %v2361_v58 = vmax.f32 %v2359_v54, %v2360_v0 }
 0xcb3   :  { %v1952_v61 = vpop.f32.mrb[22].mxu0  ;;  %v3292_v51 = vpop.f32.mrb[46].mxu1  ;;  %v2328_v1 = vsel %vm504_vm3, %v2312_v4, -inf  ;;  %v3528_v29 = vsel %vm504_vm3, %v3484_v12, -inf  ;;  %v2401_v17 = vadd.f32 %v11105_v20, %v2345_v62  ;;  %v13066_v47 = vld [vmem:[#allocation95_spill] sm:$0xff] }
 0xcb4   :  { %v2313_v13 = vsel %vm2265_vm2, %v1952_v61, -inf  ;;  %v8381_v23 = vpop.f32.mrb[23].mxu0  ;;  %v3485_v7 = vsel %vm3437_vm13, %v3292_v51, -inf  ;;  %v8488_v44 = vpop.f32.mrb[47].mxu1  ;;  %vm2269_vm13 = vcmp.gt.f32.partialorder %v13065_v3, 0.0  ;;  %vm2272_vm15 = vcmp.gt.f32.partialorder %v13066_v47, 0.0 }
 0xcb5   :  { %v2329_v45 = vsel %vm504_vm3, %v2313_v13, -inf  ;;  %v3529_v36 = vsel %vm504_vm3, %v3485_v7, -inf  ;;  %v2362_v24 = vrot.slane %v2361_v58, 1  ;;  %v2378_v13 = vrot.slane %v2377_v32, 2  ;;  %v13067_v44 = vld [vmem:[#allocation90_spill] sm:$0xff] }
 0xcb6   :  { %v2330_v57 = vmax.f32 %v2328_v1, %v2329_v45  ;;  %v11129_v39 = vmax.f32 %v3528_v29, %v3529_v36  ;;  %v2394_v23 = vrot.slane %v11084_v34, 4  ;;  %vm2273_vm2 = vcmp.gt.f32.partialorder %v13067_v44, 0.0 }
 0xcb7   :  { %v2419_v1 = vrot.slane %v2401_v17, 7  ;;  %v2363_v53 = vmax.f32 %v2361_v58, %v2362_v24 }
 0xcb8   :  { %v2331_v8 = vrot.slane %v2330_v57, 4 }
 0xcb9   :  { %v2037_v48 = vpop.f32.mrb[24].mxu0 }
 0xcba   :  { %v2332_v28 = vmax.f32 %v2330_v57, %v2331_v8  ;;  %v2316_v6 = vsel %vm2268_vm14, %v2037_v48, -inf  ;;  %v8396_v52 = vpop.f32.mrb[25].mxu0 }
 0xcbb   :  { %v2040_v38 = vpop.f32.mrb[26].mxu0  ;;  %v2346_v55 = vsel %vm504_vm3, %v2316_v6, -inf  ;;  %v2395_v6 = vmax.f32 %v11084_v34, %v2394_v23 }
 0xcbc   :  { %v2333_v21 = vrot.slane %v2332_v28, 2  ;;  %v2317_v43 = vsel %vm2269_vm13, %v2040_v38, -inf  ;;  %v8397_v41 = vpop.f32.mrb[27].mxu0  ;;  %v13068_v38 = vld [vmem:[#allocation93_spill] sm:$0xff] }
 0xcbd   :  { %v2347_v59 = vsel %vm504_vm3, %v2317_v43, -inf  ;;  %vm2276_vm14 = vcmp.gt.f32.partialorder %v13068_v38, 0.0  ;;  %v2403_v41 = vadd.f32 %v11105_v20, %v2363_v53 }
 0xcbe   :  { %v2334_v2 = vmax.f32 %v2332_v28, %v2333_v21  ;;  %v2348_v30 = vmax.f32 %v2346_v55, %v2347_v59  ;;  %v2379_v28 = vmax.f32 %v2377_v32, %v2378_v13  ;;  %v2396_v59 = vrot.slane %v2395_v6, 2 }
 0xcc0   :  { %v2335_v4 = vrot.slane %v2334_v2, 1  ;;  %v2349_v37 = vrot.slane %v2348_v30, 4  ;;  %v2380_v55 = vrot.slane %v2379_v28, 1 }
 0xcc1   :  { %v2125_v12 = vpop.f32.mrb[28].mxu0 }
 0xcc2   :  { %v2336_v11 = vmax.f32 %v2334_v2, %v2335_v4  ;;  %v2350_v61 = vmax.f32 %v2348_v30, %v2349_v37  ;;  %v2320_v5 = vsel %vm2272_vm15, %v2125_v12, -inf  ;;  %v8412_v51 = vpop.f32.mrb[29].mxu0  ;;  %v13069_v30 = vld [vmem:[#allocation99_spill] sm:$0xff]  ;;  %vm3440_vm15 = vcmp.gt.f32.partialorder %v10947_v9, 0.0 }
 0xcc3   :  { %v2128_v7 = vpop.f32.mrb[30].mxu0  ;;  %v2364_v57 = vsel %vm504_vm3, %v2320_v5, -inf  ;;  %vm2277_vm13 = vcmp.gt.f32.partialorder %v13069_v30, 0.0  ;;  %v2381_v5 = vmax.f32 %v2379_v28, %v2380_v55  ;;  %v2397_v51 = vmax.f32 %v2395_v6, %v2396_v59 }
 0xcc4   :  { %v2400_v40 = vadd.f32 %v11105_v20, %v2336_v11  ;;  %v2351_v29 = vrot.slane %v2350_v61, 2  ;;  %v2321_v45 = vsel %vm2273_vm2, %v2128_v7, -inf  ;;  %v8413_v36 = vpop.f32.mrb[31].mxu0  ;;  %vm3441_vm2 = vcmp.gt.f32.partialorder %v10963_v10, 0.0 }
 0xcc5   :  { %v2365_v54 = vsel %vm504_vm3, %v2321_v45, -inf }
 0xcc6   :  { %v2420_v50 = vsel %vm1818_vm1, %v2419_v1, %v2400_v40  ;;  %v2352_v8 = vmax.f32 %v2350_v61, %v2351_v29  ;;  %v2366_v48 = vmax.f32 %v2364_v57, %v2365_v54  ;;  %v2423_v61 = vrot.slane %v2403_v41, 5 }
 0xcc7   :  { %v2405_v40 = vadd.f32 %v11105_v20, %v2381_v5  ;;  %v2398_v29 = vrot.slane %v2397_v51, 1 }
 0xcc8   :  { %v2353_v52 = vrot.slane %v2352_v8, 1  ;;  %v2367_v0 = vrot.slane %v2366_v48, 4 }
 0xcc9   :  { %v2213_v19 = vpop.f32.mrb[32].mxu0  ;;  %v2399_v28 = vmax.f32 %v2397_v51, %v2398_v29 }
 0xcca   :  { %v2354_v3 = vmax.f32 %v2352_v8, %v2353_v52  ;;  %v2368_v62 = vmax.f32 %v2366_v48, %v2367_v0  ;;  %v2324_v21 = vsel %vm2276_vm14, %v2213_v19, -inf  ;;  %v8428_v43 = vpop.f32.mrb[33].mxu0  ;;  %vm2408_vm14 = vcmp.gt.f32.partialorder %v11094_v60, 0.0 }
 0xccb   :  { %v2216_v2 = vpop.f32.mrb[34].mxu0  ;;  %v2382_v4 = vsel %vm504_vm3, %v2324_v21, -inf  ;;  %v2407_v41 = vadd.f32 %v11105_v20, %v2399_v28 }
 0xccc   :  { %v2402_v58 = vadd.f32 %v11105_v20, %v2354_v3  ;;  %v2369_v32 = vrot.slane %v2368_v62, 2  ;;  %v2325_v34 = vsel %vm2277_vm13, %v2216_v2, -inf  ;;  %v8429_v17 = vpop.f32.mrb[35].mxu0  ;;  %vm3430_vm13 = vcmp.gt.f32.partialorder %v13025_v14, 0.0 }
 0xccd   :  { %v2383_v37 = vsel %vm504_vm3, %v2325_v34, -inf  ;;  %v2431_v2 = vrot.slane %v2407_v41, 1 }
 0xcce   :  { %v2421_v12 = vrot.slane %v2402_v58, 6  ;;  %v2370_v47 = vmax.f32 %v2368_v62, %v2369_v32  ;;  %v2384_v11 = vmax.f32 %v2382_v4, %v2383_v37  ;;  %v11169_v32 = vpop.xlane.xlu0 %2890 }
 0xccf   :  { %v2980_v34 = vmul.f32 %v11105_v20, %v11169_v32 }
 0xcd0   :  { %v2422_v24 = vsel %vm1820_vm7, %v2421_v12, %v2420_v50  ;;  %v2371_v13 = vrot.slane %v2370_v47, 1  ;;  %v2385_v23 = vrot.slane %v2384_v11, 4  ;;  %v2427_v50 = vrot.slane %v2405_v40, 3 }
 0xcd1   :  { %v2424_v7 = vsel %vm1822_vm8, %v2423_v61, %v2422_v24  ;;  %v3513_v12 = vrot.slane %v11118_v35, 4 }
 0xcd2   :  { %v2372_v44 = vmax.f32 %v2370_v47, %v2371_v13  ;;  %v2386_v1 = vmax.f32 %v2384_v11, %v2385_v23  ;;  %v3495_v47 = vrot.slane %v11101_v18, 4  ;;  %v3531_v13 = vrot.slane %v11129_v39, 4 }
 0xcd3   :  { %v3514_v60 = vmax.f32 %v11118_v35, %v3513_v12 }
 0xcd4   :  { %v2404_v45 = vadd.f32 %v11105_v20, %v2372_v44  ;;  %v2387_v36 = vrot.slane %v2386_v1, 2  ;;  %v3496_v61 = vmax.f32 %v11101_v18, %v3495_v47  ;;  %v3532_v14 = vmax.f32 %v11129_v39, %v3531_v13 }
 0xcd5   :  { %v3515_v24 = vrot.slane %v3514_v60, 2 }
 0xcd6   :  { %v3377_v57 = vpop.f32.mrb[48].mxu1  ;;  %v2425_v54 = vrot.slane %v2404_v45, 4  ;;  %v2388_v8 = vmax.f32 %v2386_v1, %v2387_v36  ;;  %v3497_v35 = vrot.slane %v3496_v61, 2 }
 0xcd7   :  { %v3488_v48 = vsel %vm3440_vm15, %v3377_v57, -inf  ;;  %v8503_v53 = vpop.f32.mrb[49].mxu1  ;;  %vm3431_vm15 = vcmp.gt.f32.partialorder %v13028_v16, 0.0  ;;  %v3516_v45 = vmax.f32 %v3514_v60, %v3515_v24 }
 0xcd8   :  { %v3380_v6 = vpop.f32.mrb[50].mxu1  ;;  %v2426_v52 = vsel %vm1824_vm9, %v2425_v54, %v2424_v7  ;;  %v2389_v0 = vrot.slane %v2388_v8, 1  ;;  %v3546_v62 = vsel %vm504_vm3, %v3488_v48, -inf  ;;  %v3498_v57 = vmax.f32 %v3496_v61, %v3497_v35 }
 0xcd9   :  { %v3489_v19 = vsel %vm3441_vm2, %v3380_v6, -inf  ;;  %v8504_v38 = vpop.f32.mrb[51].mxu1  ;;  %v2428_v3 = vsel %vm1826_vm10, %v2427_v50, %v2426_v52  ;;  %vm3434_vm2 = vcmp.gt.f32.partialorder %v13040_v33, 0.0  ;;  %v3517_v16 = vrot.slane %v3516_v45, 1 }
 0xcda   :  { %v3547_v9 = vsel %vm504_vm3, %v3489_v19, -inf  ;;  %v2390_v21 = vmax.f32 %v2388_v8, %v2389_v0  ;;  %v3533_v53 = vrot.slane %v3532_v14, 2  ;;  %v3499_v38 = vrot.slane %v3498_v57, 1 }
 0xcdb   :  { %v3548_v43 = vmax.f32 %v3546_v62, %v3547_v9  ;;  %v3518_v62 = vmax.f32 %v3516_v45, %v3517_v16 }
 0xcdc   :  { %v2406_v55 = vadd.f32 %v11105_v20, %v2390_v21  ;;  %v3534_v9 = vmax.f32 %v3532_v14, %v3533_v53 }
 0xcdd   :  { %v3549_v50 = vrot.slane %v3548_v43, 4 }
 0xcde   :  { %v2429_v59 = vrot.slane %v2406_v55, 2 }
 0xcdf   :  { %v3550_v21 = vmax.f32 %v3548_v43, %v3549_v50 }
 0xce0   :  { %v2430_v10 = vsel %vm1828_vm11, %v2429_v59, %v2428_v3 }
 0xce1   :  { %v2432_v30 = vsel %vm1830_vm12, %v2431_v2, %v2430_v10  ;;  %v3500_v2 = vmax.f32 %v3498_v57, %v3499_v38 }
 0xce2   :  { %v2434_v58 = vsel %vm2408_vm14, %v2432_v30, 0.0  ;;  %vm3435_vm14 = vcmp.gt.f32.partialorder %v13039_v42, 0.0 }
 0xce3   :  { %2435 = vst.msk [vmem:[#allocation4] sm:$0xff] %vm504_vm3, %v2434_v58  ;;  %v3564_v61 = vadd.f32 %v11105_v20, %v3500_v2 }
 0xcea   :  { %v3064_v17 = vpop.f32.mrb[36].mxu0 }
 0xceb   :  { %v3065_v4 = vadd.f32 %v3064_v17, %v2980_v34  ;;  %v8448_v37 = vpop.f32.mrb[37].mxu0  ;;  %v3566_v34 = vadd.f32 %v11105_v20, %v3518_v62  ;;  %v3535_v17 = vrot.slane %v3534_v9, 1 }
 0xced   :  { %3600 = vst.msk [vmem:[#allocation5 + $0x8] sm:$0xff] %vm504_vm3, %v3065_v4  ;;  %v3551_v4 = vrot.slane %v3550_v21, 2  ;;  %v3585_v13 = vrot.slane %v3566_v34, 6 }
 0xcf2   :  { %v3157_v11 = vpop.f32.mrb[40].mxu0 }
 0xcf3   :  { %v3478_v5 = vsel %vm3430_vm13, %v3157_v11, -inf  ;;  %v8463_v51 = vpop.f32.mrb[41].mxu0  ;;  %vm3438_vm13 = vcmp.gt.f32.partialorder %v10808_v15, 0.0 }
 0xcf4   :  { %v3160_v23 = vpop.f32.mrb[42].mxu0  ;;  %v3501_v1 = vsel %vm504_vm3, %v3478_v5, -inf }
 0xcf5   :  { %v3479_v7 = vsel %vm3431_vm15, %v3160_v23, -inf  ;;  %v8464_v44 = vpop.f32.mrb[43].mxu0  ;;  %vm3439_vm15 = vcmp.gt.f32.partialorder %v10929_v31, 0.0  ;;  %v3536_v23 = vmax.f32 %v3534_v9, %v3535_v17 }
 0xcf6   :  { %v3502_v40 = vsel %vm504_vm3, %v3479_v7, -inf  ;;  %v3552_v7 = vmax.f32 %v3550_v21, %v3551_v4 }
 0xcf7   :  { %v3503_v29 = vmax.f32 %v3501_v1, %v3502_v40 }
 0xcf8   :  { %v3553_v57 = vrot.slane %v3552_v7, 1 }
 0xcf9   :  { %v3504_v18 = vrot.slane %v3503_v29, 4 }
 0xcfa   :  { %v3245_v36 = vpop.f32.mrb[44].mxu0 }
 0xcfb   :  { %v3505_v54 = vmax.f32 %v3503_v29, %v3504_v18  ;;  %v3482_v8 = vsel %vm3434_vm2, %v3245_v36, -inf  ;;  %v8479_v48 = vpop.f32.mrb[45].mxu0  ;;  %vm3442_vm2 = vcmp.gt.f32.partialorder %v10969_v22, 0.0  ;;  %v3568_v36 = vadd.f32 %v11105_v20, %v3536_v23 }
 0xcfc   :  { %v3248_v28 = vpop.f32.mrb[46].mxu0  ;;  %v3519_v19 = vsel %vm504_vm3, %v3482_v8, -inf  ;;  %v13070_v8 = vld [vmem:[#allocation106_spill] sm:$0xff] }
 0xcfd   :  { %v3506_v6 = vrot.slane %v3505_v54, 2  ;;  %v3483_v52 = vsel %vm3435_vm14, %v3248_v28, -inf  ;;  %v8480_v0 = vpop.f32.mrb[47].mxu0  ;;  %vm3443_vm14 = vcmp.gt.f32.partialorder %v13070_v8, 0.0  ;;  %v381_v8 = vld [vmem:[%s13071_s20 + $0x38] sm:$0xff] }
 0xcfe   :  { %v3520_v39 = vsel %vm504_vm3, %v3483_v52, -inf }
 0xcff   :  { %v3507_v3 = vmax.f32 %v3505_v54, %v3506_v6  ;;  %v3521_v33 = vmax.f32 %v3519_v19, %v3520_v39  ;;  %v3589_v19 = vrot.slane %v3568_v36, 4  ;;  %v3554_v39 = vmax.f32 %v3552_v7, %v3553_v57  ;;  %v364_v7 = vld [vmem:[%s13046_s23 + $0x50] sm:$0xff]  ;;  %v379_v36 = vld [vmem:[%s13071_s20 + $0x28] sm:$0xff] }
 0xd00   :  { %v380_v57 = vld [vmem:[%s13071_s20 + $0x30] sm:$0xff] }
 0xd01   :  { %v3508_v41 = vrot.slane %v3507_v3, 1  ;;  %v3522_v55 = vrot.slane %v3521_v33, 4 }
 0xd02   :  { %v3333_v59 = vpop.f32.mrb[48].mxu0 }
 0xd03   :  { %v3509_v42 = vmax.f32 %v3507_v3, %v3508_v41  ;;  %v3523_v10 = vmax.f32 %v3521_v33, %v3522_v55  ;;  %v3486_v30 = vsel %vm3438_vm13, %v3333_v59, -inf  ;;  %v8495_v58 = vpop.f32.mrb[49].mxu0  ;;  %v3570_v59 = vadd.f32 %v11105_v20, %v3554_v39 }
 0xd04   :  { %v3336_v37 = vpop.f32.mrb[50].mxu0  ;;  %v3537_v11 = vsel %vm504_vm3, %v3486_v30, -inf  ;;  %vm3572_vm13 = vcmp.gt.f32.partialorder %v11169_v32, 0.0 }
 0xd05   :  { %v3565_v12 = vadd.f32 %v11105_v20, %v3509_v42  ;;  %v3524_v43 = vrot.slane %v3523_v10, 2  ;;  %v3487_v47 = vsel %vm3439_vm15, %v3336_v37, -inf  ;;  %v8496_v60 = vpop.f32.mrb[51].mxu0  ;;  %v3593_v17 = vrot.slane %v3570_v59, 2 }
 0xd06   :  { %v3538_v15 = vsel %vm504_vm3, %v3487_v47, -inf }
 0xd07   :  { %v3583_v5 = vrot.slane %v3565_v12, 7  ;;  %v3525_v51 = vmax.f32 %v3523_v10, %v3524_v43  ;;  %v3539_v24 = vmax.f32 %v3537_v11, %v3538_v15 }
 0xd09   :  { %v3584_v44 = vsel %vm1818_vm1, %v3583_v5, %v3564_v61  ;;  %v3526_v31 = vrot.slane %v3525_v51, 1  ;;  %v3540_v1 = vrot.slane %v3539_v24, 4  ;;  %v362_v61 = vld [vmem:[%s13046_s23 + $0x40] sm:$0xff]  ;;  %v363_v5 = vld [vmem:[%s13046_s23 + $0x48] sm:$0xff] }
 0xd0a   :  { %v3586_v40 = vsel %vm1820_vm7, %v3585_v13, %v3584_v44  ;;  %v3421_v35 = vpop.f32.mrb[52].mxu0  ;;  %v11219_v13 = vpack.c.bf16 %v363_v5, %v362_v61  ;;  %v375_v44 = vld [vmem:[%s13071_s20 + $0x8] sm:$0xff] }
 0xd0b   :  { %v3527_v29 = vmax.f32 %v3525_v51, %v3526_v31  ;;  %v3541_v45 = vmax.f32 %v3539_v24, %v3540_v1  ;;  %v3490_v14 = vsel %vm3442_vm2, %v3421_v35, -inf  ;;  %v8511_v18 = vpop.f32.mrb[53].mxu0  ;;  %v3601_v51 = vld [vmem:[#allocation4] sm:$0xff]  ;;  %v376_v31 = vld [vmem:[%s13071_s20 + $0x10] sm:$0xff]  ;;  %v3604_v1 = vld [vmem:[#allocation5 + $0x8] sm:$0xff] }
 0xd0c   :  { %v3424_v54 = vpop.f32.mrb[54].mxu0  ;;  %v3555_v28 = vsel %vm504_vm3, %v3490_v14, -inf  ;;  %13072 = vst [vmem:[#allocation102_spill] sm:$0xff] %v11219_v13  ;;  %v11233_v35 = vpack.c.bf16 %v376_v31, %v375_v44  ;;  %v378_v14 = vld [vmem:[%s13071_s20 + $0x20] sm:$0xff] }
 0xd0d   :  { %v3567_v48 = vadd.f32 %v11105_v20, %v3527_v29  ;;  %v3542_v16 = vrot.slane %v3541_v45, 2  ;;  %v3491_v53 = vsel %vm3443_vm14, %v3424_v54, -inf  ;;  %v8512_v50 = vpop.f32.mrb[55].mxu0  ;;  %v11248_v54 = vpack.c.bf16 %v380_v57, %v379_v36  ;;  %v7980_v57 = vld [vmem:[%s13081_s2] ss:$0 sm:$0xff] }
 0xd0e   :  { %v3556_v6 = vsel %vm504_vm3, %v3491_v53, -inf  ;;  %13074 = vst [vmem:[#allocation98_spill] sm:$0xff] %v11233_v35 }
 0xd0f   :  { %v3587_v22 = vrot.slane %v3567_v48, 5  ;;  %v3543_v52 = vmax.f32 %v3541_v45, %v3542_v16  ;;  %v3557_v0 = vmax.f32 %v3555_v28, %v3556_v6  ;;  %v377_v45 = vld [vmem:[%s13071_s20 + $0x18] sm:$0xff]  ;;  %13076 = vst [vmem:[#allocation110_spill] sm:$0xff] %v11248_v54  ;;  %v382_v48 = vld [vmem:[%s13071_s20 + $0x40] sm:$0xff] }
 0xd10   :  { %v11240_v18 = vpack.c.bf16 %v378_v14, %v377_v45  ;;  %v11255_v16 = vpack.c.bf16 %v382_v48, %v381_v8 }
 0xd11   :  { %v3588_v38 = vsel %vm1822_vm8, %v3587_v22, %v3586_v40  ;;  %v3544_v3 = vrot.slane %v3543_v52, 1  ;;  %v3558_v33 = vrot.slane %v3557_v0, 4  ;;  %v3603_v40 = vld [vmem:[#allocation5] sm:$0xff] }
 0xd12   :  { %v3590_v62 = vsel %vm1824_vm9, %v3589_v19, %v3588_v38  ;;  %v11205_v9 = vpop.f32.mrb[56].mxu0  ;;  %v3691_v29 = vpack.c.bf16 %v3604_v1, %v3603_v40  ;;  %13075 = vst [vmem:[#allocation104_spill] sm:$0xff] %v11240_v18  ;;  %13078 = vst [vmem:[#allocation107_spill] sm:$0xff] %v11255_v16 }
 0xd13   :  { %v3545_v21 = vmax.f32 %v3543_v52, %v3544_v3  ;;  %v3559_v41 = vmax.f32 %v3557_v0, %v3558_v33  ;;  %v8527_v55 = vpop.f32.mrb[57].mxu0  ;;  %v7979_v0 = vld [vmem:[%s13077_s28] ss:$0 sm:$0xff] }
 0xd14   :  { %v11208_v2 = vpop.f32.mrb[58].mxu0 }
 0xd15   :  { %v3569_v42 = vadd.f32 %v11105_v20, %v3545_v21  ;;  %v3560_v10 = vrot.slane %v3559_v41, 2  ;;  %v8528_v30 = vpop.f32.mrb[59].mxu0 }
 0xd17   :  { %v3591_v58 = vrot.slane %v3569_v42, 3  ;;  %v3561_v34 = vmax.f32 %v3559_v41, %v3560_v10 }
 0xd19   :  { %v3592_v4 = vsel %vm1826_vm10, %v3591_v58, %v3590_v62  ;;  %v3562_v37 = vrot.slane %v3561_v34, 1 }
 0xd1a   :  { %v3594_v12 = vsel %vm1828_vm11, %v3593_v17, %v3592_v4 }
 0xd1b   :  { %v3563_v43 = vmax.f32 %v3561_v34, %v3562_v37 }
 0xd1d   :  { %v3571_v47 = vadd.f32 %v11105_v20, %v3563_v43  ;;  %v365_v20 = vld [vmem:[%s13046_s23 + $0x58] sm:$0xff] }
 0xd1e   :  { %v11225_v32 = vpack.c.bf16 %v365_v20, %v364_v7  ;;  %v372_v20 = vld [vmem:[%s13079_s1 + $0x18] sm:$0xff] }
 0xd1f   :  { %v3595_v60 = vrot.slane %v3571_v47, 1 }
 0xd20   :  { %13073 = vst [vmem:[#allocation100_spill] sm:$0xff] %v11225_v32 }
 0xd21   :  { %v3596_v11 = vsel %vm1830_vm12, %v3595_v60, %v3594_v12 }
 0xd22   :  { %v3598_v15 = vsel %vm3572_vm13, %v3596_v11, 0.0 }
 0xd23   :  { %3599 = vst.msk [vmem:[#allocation4 + $0x8] sm:$0xff] %vm504_vm3, %v3598_v15 }
 0xd2a   :  { %v3602_v24 = vld [vmem:[#allocation4 + $0x8] sm:$0xff] }
 0xd2b   :  { %v3605_v23 = vpack.c.bf16 %v3602_v24, %v3601_v51  ;;  %v369_v51 = vld [vmem:[%s13079_s1] sm:$0xff]  ;;  %v370_v24 = vld [vmem:[%s13079_s1 + $0x8] sm:$0xff] }
 0xd2c   :  { %v11283_v7 = vpack.c.bf16 %v370_v24, %v369_v51 }
 0xd2d   :  { %8518 = vmatmul.mubr.msk.bf16.vlgmr.msra.gmra.mrb[52].mxu1 %vm504_vm3, %v3605_v23 }
 0xd2e   :  { %8530 = vmatpush3.bf16.msra.mxu1 %v11219_v13  ;;  %8533 = vmatprep.mubr.msk.bf16.mxu1 %vm9496_vm0, %v12999_v46  ;;  %13080 = vst [vmem:[#allocation111_spill] sm:$0xff] %v11283_v7 }
 0xd2f   :  { %8531 = vmatprep.subr.bf16.mxu1 %v12999_v46  ;;  %8538 = vmatpush3.bf16.msra.mxu0 %v11283_v7 }
 0xd30   :  { %8539 = vmatprep.subr.bf16.mxu0 %v12999_v46 }
 0xd32   :  { %8532 = vmatpush3.bf16.msra.mxu1 %v11225_v32 }
 0xd33   :  { %8545 = vmatprep.subr.bf16.mxu1 %v12999_v46 }
 0xd35   :  { %8534 = vmatmul.mubr.msk.bf16.vlgmr.msra.gmra.mrb[56].mxu1 %vm504_vm3, %v3691_v29 }
 0xd36   :  { %8546 = vmatpush3.bf16.msra.mxu1 %v11233_v35  ;;  %8549 = vmatprep.mubr.msk.bf16.mxu1 %vm9496_vm0, %v12999_v46 }
 0xd37   :  { %8547 = vmatprep.subr.bf16.mxu1 %v12999_v46 }
 0xd3a   :  { %8548 = vmatpush3.bf16.msra.mxu1 %v11240_v18 }
 0xd3b   :  { %8559 = vmatprep.subr.bf16.mxu1 %v12999_v46 }
 0xd3d   :  { %8550 = vmatmul.mubr.msk.bf16.vlgmr.msra.gmra.mrb[60].mxu1 %vm504_vm3, %v3605_v23  ;;  %v371_v23 = vld [vmem:[%s13079_s1 + $0x10] sm:$0xff] }
 0xd3e   :  { %8560 = vmatpush3.bf16.msra.mxu1 %v11248_v54  ;;  %8563 = vmatprep.mubr.msk.bf16.mxu1 %vm9496_vm0, %v12999_v46  ;;  %v11287_v44 = vpack.c.bf16 %v372_v20, %v371_v23 }
 0xd3f   :  { %8561 = vmatprep.subr.bf16.mxu1 %v12999_v46 }
 0xd40   :  { %13082 = vst [vmem:[#allocation109_spill] sm:$0xff] %v11287_v44  ;;  %8540 = vmatpush3.bf16.msra.mxu0 %v11287_v44 }
 0xd41   :  { %8553 = vmatprep.subr.bf16.mxu0 %v12999_v46 }
 0xd42   :  { %8562 = vmatpush3.bf16.msra.mxu1 %v11255_v16 }
 0xd43   :  { %8575 = vmatprep.subr.bf16.mxu1 %v12999_v46 }
 0xd45   :  { %8564 = vmatmul.mubr.msk.bf16.vlgmr.msra.gmra.mrb[64].mxu1 %vm504_vm3, %v3691_v29 }
 0xd46   :  { %8579 = vmatprep.mubr.msk.bf16.mxu1 %vm9496_vm0, %v12999_v46 }
 0xe00   :  { %v3643_v53 = vpop.f32.mrb[52].mxu1 }
 0xe01   :  { %v3685_v50 = vadd.f32 %v11205_v9, %v3643_v53  ;;  %v8519_v28 = vpop.f32.mrb[53].mxu1  ;;  %v7981_v53 = vld [vmem:[%s13083_s4] ss:$0 sm:$0xff] }
 0xe02   :  { %v3646_v6 = vpop.f32.mrb[54].mxu1 }
 0xe03   :  { %v3688_v22 = vadd.f32 %v11208_v2, %v3646_v6  ;;  %v8520_v52 = vpop.f32.mrb[55].mxu1  ;;  %v374_v6 = vld [vmem:[%s13071_s20] sm:$0xff] }
 0xe08   :  { %v3729_v19 = vpop.f32.mrb[56].mxu1 }
 0xe09   :  { %v3736_v39 = vadd.f32 %v3729_v19, %v3685_v50  ;;  %v8535_v38 = vpop.f32.mrb[57].mxu1  ;;  %v866_v19 = vpack.c.bf16 %v374_v6, %v374_v6 }
 0xe0a   :  { %v3732_v3 = vpop.f32.mrb[58].mxu1 }
 0xe0b   :  { %v3744_v33 = vadd.f32 %v7979_v0, %v3736_v39  ;;  %v3737_v62 = vadd.f32 %v3732_v3, %v3688_v22  ;;  %v8536_v21 = vpop.f32.mrb[59].mxu1 }
 0xe0d   :  { %v3745_v41 = vadd.f32 %v7979_v0, %v3737_v62  ;;  %v3746_v55 = vsel %vm504_vm3, %v3744_v33, 0.0  ;;  %v13086_v62 = vld [vmem:[#allocation68_spill] sm:$0xff] }
 0xe0e   :  { %3747 = vadd.xlane.f32.xlu0 %v3746_v55 }
 0xe0f   :  { %v3749_v59 = vsel %vm504_vm3, %v3745_v41, 0.0 }
 0xe10   :  { %3750 = vadd.xlane.f32.xlu1 %v3749_v59  ;;  %v11270_v9 = vpop.f32.mrb[60].mxu1 }
 0xe11   :  { %v8551_v42 = vpop.f32.mrb[61].mxu1 }
 0xe12   :  { %v11272_v2 = vpop.f32.mrb[62].mxu1 }
 0xe13   :  { %v8552_v10 = vpop.f32.mrb[63].mxu1 }
 0xe18   :  { %v11274_v30 = vpop.f32.mrb[64].mxu1 }
 0xe19   :  { %v8565_v58 = vpop.f32.mrb[65].mxu1 }
 0xe1a   :  { %v11276_v34 = vpop.f32.mrb[66].mxu1 }
 0xe1b   :  { %v8566_v17 = vpop.f32.mrb[67].mxu1 }
 0xe9b   :  { %v3748_v4 = vpop.xlane.xlu0 %3747 }
 0xe9c   :  { %v3752_v37 = vmul.f32 0.03125, %v3748_v4  ;;  %v7987_v4 = vld [vmem:[%s13084_s7] ss:$0 sm:$0xff] }
 0xe9d   :  { %v3751_v12 = vpop.xlane.xlu1 %3750 }
 0xe9e   :  { %v3754_v43 = vsub.f32 %v3744_v33, %v3752_v37  ;;  %v3753_v47 = vmul.f32 0.03125, %v3751_v12  ;;  %v11296_v33 = vsel %vm1067_vm6, %v866_v19, 0 }
 0xe9f   :  { %13085 = vst [vmem:[#allocation108_spill] sm:$0xff] %v11296_v33 }
 0xea0   :  { %v3755_v60 = vsub.f32 %v3745_v41, %v3753_v47  ;;  %v3756_v11 = vmul.f32 %v3754_v43, %v3754_v43 }
 0xea2   :  { %v3758_v15 = vsel %vm504_vm3, %v3756_v11, 0.0  ;;  %v3757_v61 = vmul.f32 %v3755_v60, %v3755_v60 }
 0xea3   :  { %3759 = vadd.xlane.f32.xlu0 %v3758_v15 }
 0xea4   :  { %v3761_v5 = vsel %vm504_vm3, %v3757_v61, 0.0 }
 0xea5   :  { %3762 = vadd.xlane.f32.xlu1 %v3761_v5 }
 0xf30   :  { %v3760_v31 = vpop.xlane.xlu0 %3759 }
 0xf31   :  { %v3764_v1 = vmul.f32 0.03125, %v3760_v31 }
 0xf32   :  { %v3763_v40 = vpop.xlane.xlu1 %3762 }
 0xf33   :  { %v3766_v29 = vadd.f32 1e-05, %v3764_v1  ;;  %v3765_v45 = vmul.f32 0.03125, %v3763_v40  ;;  %v386_v1 = vld [vmem:[%s13087_s12] sm:$0xff]  ;;  %v387_v40 = vld [vmem:[%s13087_s12 + $0x8] sm:$0xff] }
 0xf35   :  { %9096 = vrsqrt.f32 %v3766_v29  ;;  %v3767_v14 = vadd.f32 1e-05, %v3765_v45  ;;  %v388_v29 = vld [vmem:[%s13087_s12 + $0x10] sm:$0xff]  ;;  %v11323_v45 = vpack.c.bf16 %v387_v40, %v386_v1  ;;  %v394_v1 = vld [vmem:[%s13094_s17 + $0x8] sm:$0xff] }
 0xf36   :  { %v395_v40 = vld [vmem:[%s13094_s17 + $0x10] sm:$0xff] }
 0xf37   :  { %9098 = vrsqrt.f32 %v3767_v14  ;;  %13088 = vst [vmem:[#allocation105_spill] sm:$0xff] %v11323_v45  ;;  %v389_v14 = vld [vmem:[%s13087_s12 + $0x18] sm:$0xff] }
 0xf3f   :  { %v9097_v36 = vpop.eup %9096 }
 0xf40   :  { %v3770_v8 = vmul.f32 %v9097_v36, %v3754_v43  ;;  %v11327_v36 = vpack.c.bf16 %v389_v14, %v388_v29  ;;  %v396_v14 = vld [vmem:[%s13094_s17 + $0x18] sm:$0xff] }
 0xf41   :  { %v9099_v48 = vpop.eup %9098 }
 0xf42   :  { %v3778_v50 = vmul.f32 %v7980_v57, %v3770_v8  ;;  %v3771_v28 = vmul.f32 %v9099_v48, %v3755_v60  ;;  %13090 = vst [vmem:[#allocation112_spill] sm:$0xff] %v11327_v36 }
 0xf44   :  { %v3779_v22 = vmul.f32 %v7980_v57, %v3771_v28  ;;  %v3786_v52 = vadd.f32 %v7981_v53, %v3778_v50  ;;  %v13092_v57 = vmov 0.0|0.0  }
 0xf46   :  { %v3787_v0 = vadd.f32 %v7981_v53, %v3779_v22  ;;  %v3788_v39 = vmax.f32 %v3786_v52, 0.0  ;;  %v7988_v52 = vld [vmem:[%s13089_s10] ss:$0 sm:$0xff] }
 0xf48   :  { %v3789_v38 = vmax.f32 %v3787_v0, 0.0 }
 0xf4a   :  { %v3790_v3 = vpack.c.bf16 %v3789_v38, %v3788_v39  ;;  %v7989_v39 = vld [vmem:[%s13091_s0] ss:$0 sm:$0xff] }
 0xf4c   :  { %8542 = vmatmul.mubr.msk.bf16.vlgmr.msra.gmra.mrb[60].mxu0 %vm504_vm3, %v3790_v3 }
 0xf4d   :  { %8554 = vmatpush3.bf16.msra.mxu0 %v11296_v33  ;;  %8555 = vmatprep.mubr.msk.bf16.mxu0 %vm9496_vm0, %v12999_v46 }
 0xf4e   :  { %8567 = vmatprep.subr.bf16.mxu0 %v12999_v46 }
 0xf54   :  { %8556 = vmatmul.mubr.msk.bf16.vlgmr.msra.gmra.mrb[64].mxu0 %vm877_vm4, %v13086_v62 }
 0xf55   :  { %8571 = vmatprep.mubr.msk.bf16.mxu0 %vm9496_vm0, %v12999_v46  ;;  %8568 = vmatpush3.bf16.msra.mxu0 %v11323_v45 }
 0xf56   :  { %8569 = vmatprep.subr.bf16.mxu0 %v12999_v46 }
 0xf59   :  { %8570 = vmatpush3.bf16.msra.mxu0 %v11327_v36 }
 0xf5a   :  { %8905 = vmatprep.subr.bf16.mxu0 %v13092_v57 }
0x101f   :  { %v11307_v21 = vpop.f32.mrb[60].mxu0 }
0x1020   :  { %v8543_v41 = vpop.f32.mrb[61].mxu0 }
0x1021   :  { %v11309_v55 = vpop.f32.mrb[62].mxu0 }
0x1022   :  { %v8544_v59 = vpop.f32.mrb[63].mxu0 }
0x1027   :  { %v3919_v42 = vpop.f32.mrb[64].mxu0 }
0x1028   :  { %v3920_v10 = vadd.f32 %v3919_v42, %v11270_v9  ;;  %v8557_v58 = vpop.f32.mrb[65].mxu0 }
0x1029   :  { %v3922_v17 = vpop.f32.mrb[66].mxu0 }
0x102a   :  { %v3967_v37 = vadd.f32 %v11274_v30, %v3920_v10  ;;  %v3923_v12 = vadd.f32 %v3922_v17, %v11272_v2  ;;  %v8558_v43 = vpop.f32.mrb[67].mxu0  ;;  %v7990_v17 = vld [vmem:[%s13093_s5] ss:$0 sm:$0xff] }
0x102c   :  { %v3968_v47 = vadd.f32 %v11276_v34, %v3923_v12  ;;  %v3975_v60 = vadd.f32 %v7987_v4, %v3967_v37 }
0x102e   :  { %v3977_v11 = vsel %vm504_vm3, %v3975_v60, 0.0  ;;  %v3976_v15 = vadd.f32 %v7987_v4, %v3968_v47 }
0x102f   :  { %3978 = vadd.xlane.f32.xlu0 %v3977_v11 }
0x1030   :  { %v3980_v61 = vsel %vm504_vm3, %v3976_v15, 0.0 }
0x1031   :  { %3981 = vadd.xlane.f32.xlu1 %v3980_v61 }
0x10bc   :  { %v3979_v9 = vpop.xlane.xlu0 %3978 }
0x10bd   :  { %v3983_v5 = vmul.f32 0.03125, %v3979_v9 }
0x10be   :  { %v3982_v30 = vpop.xlane.xlu1 %3981 }
0x10bf   :  { %v3985_v51 = vsub.f32 %v3975_v60, %v3983_v5  ;;  %v3984_v2 = vmul.f32 0.03125, %v3982_v30 }
0x10c1   :  { %v3986_v24 = vsub.f32 %v3976_v15, %v3984_v2  ;;  %v3987_v23 = vmul.f32 %v3985_v51, %v3985_v51 }
0x10c3   :  { %v3989_v34 = vsel %vm504_vm3, %v3987_v23, 0.0  ;;  %v3988_v20 = vmul.f32 %v3986_v24, %v3986_v24 }
0x10c4   :  { %3990 = vadd.xlane.f32.xlu0 %v3989_v34 }
0x10c5   :  { %v3992_v31 = vsel %vm504_vm3, %v3988_v20, 0.0 }
0x10c6   :  { %3993 = vadd.xlane.f32.xlu1 %v3992_v31  ;;  %v393_v31 = vld [vmem:[%s13094_s17] sm:$0xff] }
0x10c7   :  { %v11345_v29 = vpack.c.bf16 %v394_v1, %v393_v31 }
0x10c9   :  { %13096 = vst [vmem:[#allocation113_spill] sm:$0xff] %v11345_v29  ;;  %8576 = vmatpush3.bf16.msra.mxu1 %v11345_v29 }
0x10ca   :  { %8577 = vmatprep.subr.bf16.mxu1 %v12999_v46 }
0x1151   :  { %v3991_v8 = vpop.xlane.xlu0 %3990 }
0x1152   :  { %v3995_v48 = vmul.f32 0.03125, %v3991_v8  ;;  %v11349_v8 = vpack.c.bf16 %v396_v14, %v395_v40 }
0x1153   :  { %v3994_v53 = vpop.xlane.xlu1 %3993 }
0x1154   :  { %v3997_v50 = vadd.f32 1e-05, %v3995_v48  ;;  %v3996_v28 = vmul.f32 0.03125, %v3994_v53  ;;  %13098 = vst [vmem:[#allocation64_spill] sm:$0xff] %v11349_v8  ;;  %8578 = vmatpush3.bf16.msra.mxu1 %v11349_v8 }
0x1156   :  { %9100 = vrsqrt.f32 %v3997_v50  ;;  %v3998_v6 = vadd.f32 1e-05, %v3996_v28 }
0x1158   :  { %9102 = vrsqrt.f32 %v3998_v6 }
0x1160   :  { %v9101_v22 = vpop.eup %9100 }
0x1161   :  { %v4001_v0 = vmul.f32 %v9101_v22, %v3985_v51 }
0x1162   :  { %v9103_v19 = vpop.eup %9102 }
0x1163   :  { %v4009_v38 = vmul.f32 %v7988_v52, %v4001_v0  ;;  %v4002_v3 = vmul.f32 %v9103_v19, %v3986_v24  ;;  %v7992_v0 = vld [vmem:[%s13095_s21] ss:$0 sm:$0xff] }
0x1165   :  { %v4010_v62 = vmul.f32 %v7988_v52, %v4002_v3  ;;  %v4017_v41 = vadd.f32 %v7989_v39, %v4009_v38  ;;  %v7993_v38 = vld [vmem:[%s13097_s25] ss:$0 sm:$0xff] }
0x1167   :  { %v4018_v59 = vadd.f32 %v7989_v39, %v4010_v62  ;;  %v4019_v42 = vmax.f32 %v4017_v41, 0.0 }
0x1169   :  { %v4020_v10 = vmax.f32 %v4018_v59, 0.0 }
0x116b   :  { %v4021_v58 = vpack.c.bf16 %v4020_v10, %v4019_v42 }
0x116d   :  { %8572 = vmatmul.mubr.msk.bf16.vlgmr.msra.gmra.mrb[68].mxu0 %vm504_vm3, %v4021_v58 }
0x116e   :  { %8587 = vmatprep.mubr.msk.f32.mxu0 %vm9496_vm0, %v12999_v46 }
0x1240   :  { %v4065_v4 = vpop.f32.mrb[68].mxu0 }
0x1241   :  { %v4066_v37 = vadd.f32 %v7990_v17, %v4065_v4  ;;  %v8573_v12 = vpop.f32.mrb[69].mxu0  ;;  %v7994_v4 = vld [vmem:[#allocation6] ss:$0 sm:$0xff] }
0x1242   :  { %v4068_v43 = vpop.f32.mrb[70].mxu0 }
0x1243   :  { %v4069_v47 = vadd.f32 %v7990_v17, %v4068_v43  ;;  %v8574_v60 = vpop.f32.mrb[71].mxu0  ;;  %v4072_v11 = vsel %vm504_vm3, %v4066_v37, 0.0 }
0x1244   :  { %4073 = vadd.xlane.f32.xlu0 %v4072_v11  ;;  %v13099_v60 = vld [vmem:[#allocation65_spill] sm:$0xff] }
0x1245   :  { %v4075_v15 = vsel %vm504_vm3, %v4069_v47, 0.0 }
0x1246   :  { %4076 = vadd.xlane.f32.xlu1 %v4075_v15 }
0x12d1   :  { %v4074_v61 = vpop.xlane.xlu0 %4073 }
0x12d2   :  { %v4078_v9 = vmul.f32 0.03125, %v4074_v61 }
0x12d3   :  { %v4077_v5 = vpop.xlane.xlu1 %4076 }
0x12d4   :  { %v4080_v30 = vsub.f32 %v4066_v37, %v4078_v9  ;;  %v4079_v51 = vmul.f32 0.03125, %v4077_v5  ;;  %v13100_v9 = vld [vmem:[#allocation66_spill] sm:$0xff] }
0x12d6   :  { %v4081_v2 = vsub.f32 %v4069_v47, %v4079_v51  ;;  %v4082_v24 = vmul.f32 %v4080_v30, %v4080_v30 }
0x12d8   :  { %v4084_v23 = vsel %vm504_vm3, %v4082_v24, 0.0  ;;  %v4083_v34 = vmul.f32 %v4081_v2, %v4081_v2 }
0x12d9   :  { %4085 = vadd.xlane.f32.xlu0 %v4084_v23 }
0x12da   :  { %v4087_v20 = vsel %vm504_vm3, %v4083_v34, 0.0 }
0x12db   :  { %4088 = vadd.xlane.f32.xlu1 %v4087_v20 }
0x1366   :  { %v4086_v48 = vpop.xlane.xlu0 %4085 }
0x1367   :  { %v4090_v53 = vmul.f32 0.03125, %v4086_v48 }
0x1368   :  { %v4089_v50 = vpop.xlane.xlu1 %4088 }
0x1369   :  { %v4092_v28 = vadd.f32 1e-05, %v4090_v53  ;;  %v4091_v6 = vmul.f32 0.03125, %v4089_v50 }
0x136b   :  { %9104 = vrsqrt.f32 %v4092_v28  ;;  %v4093_v22 = vadd.f32 1e-05, %v4091_v6 }
0x136d   :  { %9106 = vrsqrt.f32 %v4093_v22 }
0x1375   :  { %v9105_v52 = vpop.eup %9104 }
0x1376   :  { %v4096_v19 = vmul.f32 %v9105_v52, %v4080_v30 }
0x1377   :  { %v9107_v39 = vpop.eup %9106 }
0x1378   :  { %v4104_v3 = vmul.f32 %v7992_v0, %v4096_v19  ;;  %v4097_v62 = vmul.f32 %v9107_v39, %v4081_v2 }
0x137a   :  { %v4105_v41 = vmul.f32 %v7992_v0, %v4097_v62  ;;  %v4112_v59 = vadd.f32 %v7993_v38, %v4104_v3 }
0x137c   :  { %v4113_v42 = vadd.f32 %v7993_v38, %v4105_v41  ;;  %v4114_v10 = vmax.f32 %v4112_v59, 0.0 }
0x137e   :  { %v4115_v58 = vmax.f32 %v4113_v42, 0.0 }
0x1380   :  { %v4116_v17 = vpack.c.bf16 %v4115_v58, %v4114_v10 }
0x1382   :  { %8580 = vmatmul.mubr.msk.bf16.vlgmr.msra.gmra.mrb[68].mxu1 %vm504_vm3, %v4116_v17  ;;  %v7982_v17 = vld [vmem:[%s13102_s29] ss:$0 sm:$0xff] }
0x1455   :  { %v4160_v37 = vpop.f32.mrb[68].mxu1 }
0x1456   :  { %v4161_v12 = vadd.f32 %v7994_v4, %v4160_v37  ;;  %v8581_v43 = vpop.f32.mrb[69].mxu1  ;;  %v3835_v37 = vadd.f32 %v7982_v17, %v11307_v21  ;;  %v13111_v21 = vld [vmem:[#allocation62_spill] sm:$0xff] }
0x1457   :  { %v4163_v47 = vpop.f32.mrb[70].mxu1  ;;  %v13107_v43 = vld [vmem:[#allocation69_spill] sm:$0xff] }
0x1458   :  { %v4169_v11 = vadd.f32 %v4161_v12, %v13099_v60  ;;  %v4164_v15 = vadd.f32 %v7994_v4, %v4163_v47  ;;  %v8582_v61 = vpop.f32.mrb[71].mxu1  ;;  %v3838_v4 = vadd.f32 %v7982_v17, %v11309_v55  ;;  %v13106_v12 = vmov 1.0   ;;  %v13108_v47 = vld [vmem:[#allocation63_spill] sm:$0xff]  ;;  %v13119_v17 = vld [vmem:[#allocation76_spill] sm:$0xff] }
0x1459   :  { %v11404_v55 = vadd.f32 %v3835_v37, %v13111_v21  ;;  %v13120_v37 = vld [vmem:[#allocation77_spill] sm:$0xff] }
0x145a   :  { %v4170_v5 = vadd.f32 %v4164_v15, %v13100_v9  ;;  %v4171_v30 = vmul.f32 %v4169_v11, %v4169_v11  ;;  %v11395_v60 = vadd.f32 %v3838_v4, %v13108_v47  ;;  %v13113_v15 = vld [vmem:[#allocation71_spill] sm:$0xff]  ;;  %v13115_v9 = vld [vmem:[#allocation72_spill] sm:$0xff]  ;;  %v9210_v47 = vld [vmem:[%s12966_s18] ss:$0 sm:$0xff] }
0x145b   :  { %13112 = vst [vmem:[#allocation87_spill] sm:$0xff] %v11404_v55 }
0x145c   :  { %v4173_v51 = vsel %vm877_vm4, %v4171_v30, 0.0  ;;  %v4172_v2 = vmul.f32 %v4170_v5, %v4170_v5  ;;  %13109 = vst [vmem:[#allocation86_spill] sm:$0xff] %v11395_v60  ;;  %v11412_v61 = vpack.c.bf16 %v11395_v60, %v11404_v55  ;;  %v13117_v30 = vld [vmem:[#allocation74_spill] sm:$0xff] }
0x145d   :  { %4174 = vadd.xlane.f32.xlu0 %v4173_v51 }
0x145e   :  { %v4176_v24 = vsel %vm877_vm4, %v4172_v2, 0.0  ;;  %13114 = vst [vmem:[#allocation91_spill] sm:$0xff] %v11412_v61 }
0x145f   :  { %4177 = vadd.xlane.f32.xlu1 %v4176_v24 }
0x14ea   :  { %v4175_v23 = vpop.xlane.xlu0 %4174 }
0x14eb   :  { %9108 = vrsqrt.f32 %v4175_v23  ;;  %vm4181_vm6 = vcmp.eq.f32.partialorder %v4175_v23, inf  ;;  %v4184_v40 = vand.u32 2147483648, %v4175_v23  ;;  %vm4183_vm15 = vcmp.eq.f32.partialorder %v4175_v23, 0.0 }
0x14ec   :  { %v4178_v34 = vpop.xlane.xlu1 %4177 }
0x14ed   :  { %9110 = vrsqrt.f32 %v4178_v34  ;;  %vm4188_vm2 = vcmp.eq.f32.partialorder %v4178_v34, inf  ;;  %v4191_v50 = vand.u32 2147483648, %v4178_v34  ;;  %vm4190_vm14 = vcmp.eq.f32.partialorder %v4178_v34, 0.0 }
0x14f5   :  { %v9109_v20 = vpop.eup %9108 }
0x14f6   :  { %v4180_v31 = vmul.f32 %v9109_v20, %v4175_v23 }
0x14f7   :  { %v9111_v1 = vpop.eup %9110 }
0x14f8   :  { %v4182_v14 = vsel %vm4181_vm6, %v4175_v23, %v4180_v31  ;;  %v4187_v48 = vmul.f32 %v9111_v1, %v4178_v34  ;;  %v13118_v23 = vld [vmem:[#allocation75_spill] sm:$0xff] }
0x14f9   :  { %v4185_v53 = vsel %vm4183_vm15, %v4184_v40, %v4182_v14  ;;  %vm13121_vm15 = vcmask 130048  }
0x14fa   :  { %v4193_v28 = vmax.f32 %v4185_v53, 1e-12  ;;  %v4189_v6 = vsel %vm4188_vm2, %v4178_v34, %v4187_v48  ;;  %vm13122_vm2 = vmmov %vm13121_vm15 }
0x14fb   :  { %v4192_v22 = vsel %vm4190_vm14, %v4191_v50, %v4189_v6  ;;  %vm13156_vm14 = vmmov %vm13122_vm2 }
0x14fc   :  { %v4194_v52 = vmax.f32 %v4192_v22, 1e-12  ;;  %9112 = vrcp.f32 %v4193_v28 }
0x14fe   :  { %9114 = vrcp.f32 %v4194_v52 }
0x1506   :  { %v9113_v0 = vpop.eup %9112 }
0x1507   :  { %v11360_v19 = vmul.f32 %v9113_v0, %v4169_v11  ;;  %v13110_v11 = vld [vmem:[#allocation70_spill] sm:$0xff] }
0x1508   :  { %v9115_v39 = vpop.eup %9114 }
0x1509   :  { %13101 = vst [vmem:[#allocation88_spill] sm:$0xff] %v11360_v19  ;;  %8594 = vmatprep.mubr.msk.f32.mxu1 %vm877_vm4, %v11360_v19  ;;  %v4199_v38 = vmul.f32 %v11360_v19, %v11360_v19  ;;  %v11366_v3 = vmul.f32 %v9115_v39, %v4170_v5  ;;  %v13116_v5 = vld [vmem:[#allocation73_spill] sm:$0xff] }
0x150b   :  { %13103 = vst [vmem:[#allocation89_spill] sm:$0xff] %v11366_v3  ;;  %v4201_v62 = vsel %vm877_vm4, %v4199_v38, 0.0  ;;  %v11371_v41 = vpack.c.bf16 %v11366_v3, %v11360_v19  ;;  %v4200_v59 = vmul.f32 %v11366_v3, %v11366_v3 }
0x150c   :  { %4202 = vadd.xlane.f32.xlu0 %v4201_v62 }
0x150d   :  { %13104 = vst [vmem:[#allocation97_spill] sm:$0xff] %v11371_v41  ;;  %8911 = vmatprep.subr.msk.bf16.mxu1 %vm9896_vm5, %v11371_v41  ;;  %v4204_v10 = vsel %vm877_vm4, %v4200_v59, 0.0  ;;  %v8906_v58 = vpack.c.bf16 %v4200_v59, %v4199_v38 }
0x150e   :  { %8914 = vmatpush3.bf16.xpose.msk.msra.mxu1 %vm9896_vm5, %v11371_v41  ;;  %4205 = vadd.xlane.f32.xlu1 %v4204_v10 }
0x150f   :  { %8908 = vmatpush3.bf16.xpose.msk.msra.mxu0 %vm9896_vm5, %v8906_v58  ;;  %8603 = vmatprep.subr.bf16.mxu1 %v12999_v46 }
0x1510   :  { %8597 = vmatprep.subr.bf16.mxu0 %v12999_v46 }
0x1515   :  { %8595 = vmatmul.mubr.msk.f32.vlgmr.msra.gmra.mrb[10].mxu1 %vm877_vm4, %v11366_v3 }
0x1516   :  { %8588 = vmatmul.mubr.msk.f32.vlgmr.msra.gmra.mrb[38].mxu0 %vm877_vm4, %v13106_v12  ;;  %8604 = vmatpush3.bf16.msra.mxu1 %v13107_v43 }
0x1517   :  { %8598 = vmatpush3.bf16.msra.mxu0 %v13110_v11  ;;  %8599 = vmatprep.mubr.msk.bf16.mxu0 %vm9496_vm0, %v12999_v46 }
0x1518   :  { %8605 = vmatprep.subr.bf16.mxu1 %v12999_v46  ;;  %8607 = vmatprep.mubr.msk.bf16.mxu1 %vm9496_vm0, %v12999_v46 }
0x1519   :  { %8611 = vmatprep.subr.bf16.mxu0 %v12999_v46 }
0x151a   :  { %8600 = vmatmul.mubr.msk.bf16.vlgmr.msra.gmra.mrb[72].mxu0 %vm877_vm4, %v11371_v41  ;;  %8606 = vmatpush3.bf16.msra.mxu1 %v13113_v15 }
0x151b   :  { %8612 = vmatpush3.bf16.msra.mxu0 %v13115_v9  ;;  %8613 = vmatprep.mubr.msk.bf16.mxu0 %vm9496_vm0, %v12999_v46 }
0x151c   :  { %8617 = vmatprep.subr.bf16.mxu0 %v12999_v46  ;;  %8915 = vmatprep.subr.bf16.mxu1 %v13092_v57 }
0x151d   :  { %8608 = vmatmul.mubr.msk.bf16.vlgmr.msra.gmra.mrb[72].mxu1 %vm504_vm3, %v11412_v61 }
0x151e   :  { %8917 = vmatpush3.bf16.msra.mxu1 %v10420_v49  ;;  %8633 = vmatprep.mubr.msk.f32.mxu1 %vm9496_vm0, %v12999_v46 }
0x151f   :  { %8918 = vmatprep.subr.bf16.mxu1 %v13092_v57 }
0x1522   :  { %8614 = vmatmul.mubr.msk.bf16.vlgmr.msra.gmra.mrb[76].mxu0 %vm877_vm4, %v11371_v41  ;;  %8920 = vmatpush3.bf16.msra.mxu1 %v10433_v25 }
0x1523   :  { %8618 = vmatpush3.bf16.msra.mxu0 %v13116_v5  ;;  %8621 = vmatprep.mubr.msk.bf16.mxu0 %vm9496_vm0, %v12999_v46 }
0x1524   :  { %8619 = vmatprep.subr.bf16.mxu0 %v12999_v46  ;;  %8636 = vmatprep.subr.bf16.mxu1 %v12999_v46 }
0x1527   :  { %8620 = vmatpush3.bf16.msra.mxu0 %v13117_v30 }
0x1528   :  { %8644 = vmatprep.subr.bf16.mxu0 %v12999_v46 }
0x152e   :  { %8622 = vmatmul.mubr.msk.bf16.vlgmr.msra.gmra.mrb[76].mxu0 %vm504_vm3, %v11412_v61 }
0x152f   :  { %8645 = vmatpush3.bf16.msra.mxu0 %v10420_v49  ;;  %8648 = vmatprep.mubr.msk.bf16.mxu0 %vm9496_vm0, %v12999_v46 }
0x1530   :  { %8646 = vmatprep.subr.bf16.mxu0 %v12999_v46 }
0x1533   :  { %8647 = vmatpush3.bf16.msra.mxu0 %v10433_v25 }
0x1534   :  { %8660 = vmatprep.subr.bf16.mxu0 %v12999_v46 }
0x1599   :  { %v4203_v31 = vpop.xlane.xlu0 %4202 }
0x159b   :  { %v4206_v1 = vpop.xlane.xlu1 %4205 }
0x15e8   :  { %v8596_v51 = vpop.f32.mrb[10].mxu1 }
0x15e9   :  { %v4279_v2 = vpop.f32.mrb[38].mxu0  ;;  %v4355_v24 = vpop.f32.mrb[11].mxu1  ;;  %v4371_v40 = vmul.f32 2.0, %v8596_v51  ;;  %v13123_v51 = vld [vmem:[#allocation79_spill] sm:$0xff] }
0x15ea   :  { %v4367_v34 = vrot.slane %v4279_v2, %v13118_v23  ;;  %v8589_v20 = vpop.f32.mrb[39].mxu0  ;;  %v4370_v53 = vmul.f32 2.0, %v4355_v24 }
0x15ec   :  { %v4368_v14 = vadd.f32 %v4367_v34, %v4203_v31  ;;  %v4369_v48 = vadd.f32 %v4367_v34, %v4206_v1  ;;  %v13124_v1 = vld [vmem:[#allocation83_spill] sm:$0xff] }
0x15ed   :  { %v4421_v50 = vpop.f32.mrb[72].mxu0 }
0x15ee   :  { %v4373_v28 = vsub.f32 %v4369_v48, %v4371_v40  ;;  %v4372_v6 = vsub.f32 %v4368_v14, %v4370_v53  ;;  %v8601_v22 = vpop.f32.mrb[73].mxu0  ;;  %v13125_v14 = vld [vmem:[#allocation78_spill] sm:$0xff]  ;;  %v13126_v53 = vld [vmem:[#allocation80_spill] sm:$0xff] }
0x15ef   :  { %v4424_v52 = vpop.f32.mrb[74].mxu0  ;;  %v13128_v22 = vld [vmem:[#allocation84_spill] sm:$0xff] }
0x15f0   :  { %v4375_v0 = vmax.f32 %v4373_v28, 0.0  ;;  %v4374_v39 = vmax.f32 %v4372_v6, 0.0  ;;  %v8602_v38 = vpop.f32.mrb[75].mxu0  ;;  %v4465_v62 = vpop.f32.mrb[72].mxu1  ;;  %v13127_v28 = vld [vmem:[#allocation82_spill] sm:$0xff] }
0x15f1   :  { %v4466_v59 = vadd.f32 %v4465_v62, %v4421_v50  ;;  %v8609_v10 = vpop.f32.mrb[73].mxu1 }
0x15f2   :  { %vm4377_vm13 = vcmp.le.f32.partialorder %v4375_v0, 1.0  ;;  %vm4376_vm6 = vcmp.le.f32.partialorder %v4374_v39, 1.0  ;;  %v4468_v58 = vpop.f32.mrb[74].mxu1  ;;  %v13129_v0 = vld [vmem:[#allocation85_spill] sm:$0xff] }
0x15f3   :  { %v4379_v4 = vsel %vm4377_vm13, %v13119_v17, 0.0  ;;  %v4378_v43 = vsel %vm4376_vm6, %v13120_v37, 0.0  ;;  %v4472_v11 = vadd.f32 %v9210_v47, %v4466_v59  ;;  %v4469_v21 = vadd.f32 %v4468_v58, %v4424_v52  ;;  %v8610_v15 = vpop.f32.mrb[75].mxu1  ;;  %vm13157_vm13 = vmmov %vm13122_vm2 }
0x15f4   :  { %4381 = vst.msk [vmem:[#allocation2 + $0x8] sm:$0xff] %vm13121_vm15, %v4379_v4 }
0x15f5   :  { %4380 = vst.msk [vmem:[#allocation2] sm:$0xff] %vm13122_vm2, %v4378_v43  ;;  %v4473_v9 = vadd.f32 %v9210_v47, %v4469_v21  ;;  %v13130_v47 = vld [vmem:[#allocation81_spill] sm:$0xff] }
0x15f6   :  { %4474 = vst.msk [vmem:[#allocation3] sm:$0xff] %vm504_vm3, %v4472_v11 }
0x15f7   :  { %4475 = vst.msk [vmem:[#allocation3 + $0x8] sm:$0xff] %vm504_vm3, %v4473_v9 }
0x15fb   :  { %v11473_v38 = vld [vmem:[#allocation2 + $0x8] sm:$0xff] }
0x15fc   :  { %v11451_v5 = vld [vmem:[#allocation2] sm:$0xff]  ;;  %v6089_v62 = vrot.slane %v11473_v38, %v13118_v23  ;;  %v6100_v59 = vrot.slane %v11473_v38, %v13123_v51  ;;  %v6111_v10 = vrot.slane %v11473_v38, %v13124_v1  ;;  %v6122_v58 = vrot.slane %v11473_v38, %v13125_v14 }
0x15fd   :  { %v4925_v30 = vrot.slane %v11451_v5, %v13118_v23  ;;  %v4936_v2 = vrot.slane %v11451_v5, %v13123_v51  ;;  %v4947_v40 = vrot.slane %v11451_v5, %v13124_v1  ;;  %v4958_v48 = vrot.slane %v11451_v5, %v13125_v14  ;;  %v4558_v43 = vld [vmem:[#allocation3] sm:$0xff] }
0x15fe   :  { %v4969_v50 = vrot.slane %v11451_v5, %v13126_v53  ;;  %v4980_v6 = vrot.slane %v11451_v5, %v13127_v28  ;;  %v4991_v52 = vrot.slane %v11451_v5, %v13128_v22  ;;  %v5002_v39 = vrot.slane %v11451_v5, %v13129_v0 }
0x15ff   :  { %4931 = vbcast.lane.b32.xlu1 %v4925_v30, 264  ;;  %4927 = vbcast.lane.b32.xlu0 %v4925_v30, 256  ;;  %v11485_v4 = vrot.slane %v11473_v38, %v13126_v53  ;;  %v4568_v11 = vrot.slane %v4558_v43, %v13130_v47  ;;  %v4561_v51 = vcombine.high %v4558_v43, %v4558_v43 }
0x1601   :  { %v11457_v24 = vpop.f32.mrb[76].mxu0  ;;  %v4584_v21 = vrot.slane %v4568_v11, %v13130_v47  ;;  %v4576_v15 = vcombine.high %v4568_v11, %v4568_v11  ;;  %v4575_v1 = vrot.slane %v4561_v51, %v13130_v47 }
0x1602   :  { %v8623_v34 = vpop.f32.mrb[77].mxu0 }
0x1603   :  { %4938 = vbcast.lane.b32.xlu1 %v4936_v2, 256  ;;  %4942 = vbcast.lane.b32.xlu0 %v4936_v2, 264  ;;  %v11459_v20 = vpop.f32.mrb[78].mxu0  ;;  %v4613_v9 = vrot.slane %v4584_v21, %v13118_v23  ;;  %v4598_v30 = vrot.slane %v4576_v15, %v13130_v47  ;;  %v4577_v15 = vcombine.high %v4575_v1, %v4575_v1 }
0x1604   :  { %v8624_v31 = vpop.f32.mrb[79].mxu0 }
0x1605   :  { %v11493_v2 = vadd.f32 %v4613_v9, %v11457_v24  ;;  %v4617_v34 = vrot.slane %v4598_v30, %v13118_v23  ;;  %v4606_v31 = vcombine.high %v4584_v21, %v4584_v21  ;;  %v4608_v21 = vcombine.high %v4598_v30, %v4598_v30 }
0x1606   :  { %v4605_v37 = vrot.slane %v4577_v15, %v13130_v47 }
0x1607   :  { %4949 = vbcast.lane.b32.xlu1 %v4947_v40, 256  ;;  %4953 = vbcast.lane.b32.xlu0 %v4947_v40, 264  ;;  %v5722_v40 = vld [vmem:[#allocation3 + $0x8] sm:$0xff]  ;;  %v11501_v53 = vadd.f32 %v4617_v34, %v11457_v24 }
0x1608   :  { %v5732_v14 = vrot.slane %v5722_v40, %v13130_v47  ;;  %v4633_v17 = vrot.slane %v4605_v37, %v13118_v23  ;;  %v4609_v60 = vcombine.high %v4605_v37, %v4605_v37 }
0x160a   :  { %v4641_v36 = vrot.slane %v4609_v60, %v13118_v23 }
0x160b   :  { %4960 = vbcast.lane.b32.xlu1 %v4958_v48, 256  ;;  %4964 = vbcast.lane.b32.xlu0 %v4958_v48, 264  ;;  %v4666_v48 = vsel %vm504_vm3, %v11493_v2, 0.0 }
0x160f   :  { %4971 = vbcast.lane.b32.xlu1 %v4969_v50, 256  ;;  %4975 = vbcast.lane.b32.xlu0 %v4969_v50, 264  ;;  %v4621_v50 = vrot.slane %v4606_v31, %v13118_v23  ;;  %v11524_v31 = vadd.f32 %v4617_v34, %v11459_v20  ;;  %v5740_v34 = vcombine.high %v5732_v14, %v5732_v14 }
0x1611   :  { %v4675_v30 = vsel %vm504_vm3, %v11524_v31, 0.0  ;;  %v5762_v42 = vrot.slane %v5740_v34, %v13130_v47 }
0x1613   :  { %4986 = vbcast.lane.b32.xlu1 %v4980_v6, 264  ;;  %4982 = vbcast.lane.b32.xlu0 %v4980_v6, 256  ;;  %v4591_v6 = vrot.slane %v4575_v1, %v13130_v47  ;;  %v11536_v1 = vadd.f32 %v4621_v50, %v11459_v20  ;;  %v5781_v3 = vrot.slane %v5762_v42, %v13118_v23 }
0x1614   :  { %v5772_v45 = vcombine.high %v5762_v42, %v5762_v42 }
0x1615   :  { %v4681_v15 = vsel %vm504_vm3, %v11536_v1, 0.0 }
0x1616   :  { %v5789_v33 = vrot.slane %v5772_v45, %v13118_v23 }
0x1617   :  { %4997 = vbcast.lane.b32.xlu1 %v4991_v52, 264  ;;  %4993 = vbcast.lane.b32.xlu0 %v4991_v52, 256  ;;  %v5748_v52 = vrot.slane %v5732_v14, %v13130_v47 }
0x161b   :  { %5008 = vbcast.lane.b32.xlu1 %v5002_v39, 264  ;;  %5004 = vbcast.lane.b32.xlu0 %v5002_v39, 256  ;;  %v4672_v39 = vsel %vm504_vm3, %v11501_v53, 0.0 }
0x161f   :  { %6095 = vbcast.lane.b32.xlu1 %v6089_v62, 264  ;;  %6091 = vbcast.lane.b32.xlu0 %v6089_v62, 256  ;;  %v11509_v62 = vadd.f32 %v4621_v50, %v11457_v24  ;;  %v5725_v50 = vcombine.high %v5722_v40, %v5722_v40 }
0x1621   :  { %v4678_v43 = vsel %vm504_vm3, %v11509_v62, 0.0 }
0x1623   :  { %6102 = vbcast.lane.b32.xlu1 %v6100_v59, 256  ;;  %6106 = vbcast.lane.b32.xlu0 %v6100_v59, 264  ;;  %v4629_v59 = vrot.slane %v4591_v6, %v13118_v23 }
0x1625   :  { %v11519_v11 = vadd.f32 %v4629_v59, %v11457_v24 }
0x1627   :  { %6113 = vbcast.lane.b32.xlu1 %v6111_v10, 256  ;;  %6117 = vbcast.lane.b32.xlu0 %v6111_v10, 264  ;;  %v11513_v10 = vadd.f32 %v4613_v9, %v11459_v20  ;;  %v4690_v9 = vsel %vm504_vm3, %v11519_v11, 0.0 }
0x1629   :  { %v4669_v51 = vsel %vm504_vm3, %v11513_v10, 0.0 }
0x162b   :  { %6124 = vbcast.lane.b32.xlu1 %v6122_v58, 256  ;;  %6128 = vbcast.lane.b32.xlu0 %v6122_v58, 264  ;;  %v5777_v58 = vrot.slane %v5748_v52, %v13118_v23 }
0x162f   :  { %6135 = vbcast.lane.b32.xlu1 %v11485_v4, 256 }
0x164a   :  { %4667 = vadd.xlane.f32.xlu0 %v4666_v48  ;;  %v11529_v48 = vadd.f32 %v5777_v58, %v11459_v20 }
0x164e   :  { %4673 = vadd.xlane.f32.xlu0 %v4672_v39  ;;  %v4625_v39 = vrot.slane %v4608_v21, %v13118_v23  ;;  %v4607_v21 = vcombine.high %v4591_v6, %v4591_v6 }
0x1650   :  { %v4637_v12 = vrot.slane %v4607_v21, %v13118_v23  ;;  %v5739_v21 = vrot.slane %v5725_v50, %v13130_v47 }
0x1652   :  { %4679 = vadd.xlane.f32.xlu0 %v4678_v43  ;;  %v5833_v43 = vsel %vm504_vm3, %v11529_v48, 0.0  ;;  %v5755_v19 = vrot.slane %v5739_v21, %v13130_v47  ;;  %v11594_v55 = vadd.f32 %v4637_v12, %v11459_v20  ;;  %v5741_v41 = vcombine.high %v5739_v21, %v5739_v21 }
0x1653   :  { %4670 = vadd.xlane.f32.xlu1 %v4669_v51  ;;  %v11541_v51 = vadd.f32 %v4625_v39, %v11457_v24 }
0x1654   :  { %v4705_v37 = vsel %vm504_vm3, %v11594_v55, 0.0  ;;  %v5769_v60 = vrot.slane %v5741_v41, %v13130_v47  ;;  %v5771_v8 = vcombine.high %v5755_v19, %v5755_v19 }
0x1655   :  { %v4684_v14 = vsel %vm504_vm3, %v11541_v51, 0.0 }
0x1656   :  { %4691 = vadd.xlane.f32.xlu0 %v4690_v9  ;;  %v11547_v9 = vadd.f32 %v4629_v59, %v11459_v20  ;;  %v5770_v59 = vcombine.high %v5748_v52, %v5748_v52 }
0x1657   :  { %4676 = vadd.xlane.f32.xlu1 %v4675_v30  ;;  %v11552_v30 = vadd.f32 %v4633_v17, %v11457_v24 }
0x1658   :  { %v4693_v6 = vsel %vm504_vm3, %v11547_v9, 0.0  ;;  %v5785_v52 = vrot.slane %v5770_v59, %v13118_v23 }
0x1659   :  { %v4696_v40 = vsel %vm504_vm3, %v11552_v30, 0.0 }
0x165a   :  { %5834 = vadd.xlane.f32.xlu0 %v5833_v43  ;;  %v11559_v43 = vadd.f32 %v5777_v58, %v11457_v24  ;;  %v11617_v21 = vadd.f32 %v5785_v52, %v11457_v24 }
0x165b   :  { %4682 = vadd.xlane.f32.xlu1 %v4681_v15  ;;  %v11564_v15 = vadd.f32 %v4637_v12, %v11457_v24 }
0x165c   :  { %v5830_v34 = vsel %vm504_vm3, %v11559_v43, 0.0  ;;  %v5842_v45 = vsel %vm504_vm3, %v11617_v21, 0.0 }
0x165d   :  { %v4702_v58 = vsel %vm504_vm3, %v11564_v15, 0.0 }
0x165e   :  { %4685 = vadd.xlane.f32.xlu0 %v4684_v14  ;;  %v11571_v14 = vadd.f32 %v4625_v39, %v11459_v20  ;;  %v11586_v39 = vadd.f32 %v5785_v52, %v11459_v20 }
0x165f   :  { %4694 = vadd.xlane.f32.xlu1 %v4693_v6  ;;  %v11577_v6 = vadd.f32 %v5781_v3, %v11459_v20 }
0x1660   :  { %v4687_v50 = vsel %vm504_vm3, %v11571_v14, 0.0 }
0x1661   :  { %v5839_v59 = vsel %vm504_vm3, %v11577_v6, 0.0 }
0x1662   :  { %4697 = vadd.xlane.f32.xlu0 %v4696_v40  ;;  %v11583_v40 = vadd.f32 %v4633_v17, %v11459_v20  ;;  %v5845_v17 = vsel %vm504_vm3, %v11586_v39, 0.0 }
0x1663   :  { %5831 = vadd.xlane.f32.xlu1 %v5830_v34  ;;  %v5793_v34 = vrot.slane %v5755_v19, %v13118_v23 }
0x1665   :  { %v11628_v41 = vadd.f32 %v5793_v34, %v11457_v24 }
0x1666   :  { %4703 = vadd.xlane.f32.xlu0 %v4702_v58  ;;  %v4699_v58 = vsel %vm504_vm3, %v11583_v40, 0.0 }
0x1667   :  { %4688 = vadd.xlane.f32.xlu1 %v4687_v50  ;;  %v11599_v50 = vadd.f32 %v5793_v34, %v11459_v20  ;;  %v5854_v19 = vsel %vm504_vm3, %v11628_v41, 0.0 }
0x1669   :  { %v5857_v12 = vsel %vm504_vm3, %v11599_v50, 0.0 }
0x166a   :  { %5840 = vadd.xlane.f32.xlu0 %v5839_v59  ;;  %v11605_v59 = vadd.f32 %v5781_v3, %v11457_v24 }
0x166b   :  { %4700 = vadd.xlane.f32.xlu1 %v4699_v58  ;;  %v11610_v58 = vadd.f32 %v4641_v36, %v11457_v24 }
0x166c   :  { %v5836_v42 = vsel %vm504_vm3, %v11605_v59, 0.0 }
0x166d   :  { %v4708_v3 = vsel %vm504_vm3, %v11610_v58, 0.0 }
0x166e   :  { %5846 = vadd.xlane.f32.xlu0 %v5845_v17  ;;  %v11622_v17 = vadd.f32 %v5789_v33, %v11459_v20 }
0x166f   :  { %4706 = vadd.xlane.f32.xlu1 %v4705_v37  ;;  %v5797_v37 = vrot.slane %v5769_v60, %v13118_v23 }
0x1670   :  { %v5851_v47 = vsel %vm504_vm3, %v11622_v17, 0.0 }
0x1671   :  { %v11633_v52 = vadd.f32 %v5797_v37, %v11459_v20 }
0x1672   :  { %5858 = vadd.xlane.f32.xlu0 %v5857_v12  ;;  %v5801_v12 = vrot.slane %v5771_v8, %v13118_v23 }
0x1673   :  { %5837 = vadd.xlane.f32.xlu1 %v5836_v42  ;;  %v5773_v42 = vcombine.high %v5769_v60, %v5769_v60  ;;  %v5863_v34 = vsel %vm504_vm3, %v11633_v52, 0.0  ;;  %v11650_v60 = vadd.f32 %v5789_v33, %v11457_v24 }
0x1675   :  { %v5805_v29 = vrot.slane %v5773_v42, %v13118_v23  ;;  %v11660_v42 = vadd.f32 %v5797_v37, %v11457_v24 }
0x1676   :  { %4709 = vadd.xlane.f32.xlu0 %v4708_v3  ;;  %v11639_v3 = vadd.f32 %v4641_v36, %v11459_v20 }
0x1677   :  { %5843 = vadd.xlane.f32.xlu1 %v5842_v45  ;;  %v11644_v45 = vadd.f32 %v5801_v12, %v11459_v20  ;;  %v5860_v33 = vsel %vm504_vm3, %v11660_v42, 0.0 }
0x1678   :  { %v4711_v8 = vsel %vm504_vm3, %v11639_v3, 0.0 }
0x1679   :  { %v5869_v36 = vsel %vm504_vm3, %v11644_v45, 0.0 }
0x167a   :  { %5852 = vadd.xlane.f32.xlu0 %v5851_v47  ;;  %v11655_v47 = vadd.f32 %v5805_v29, %v11459_v20 }
0x167b   :  { %5855 = vadd.xlane.f32.xlu1 %v5854_v19  ;;  %v5848_v19 = vsel %vm504_vm3, %v11650_v60, 0.0 }
0x167e   :  { %5864 = vadd.xlane.f32.xlu0 %v5863_v34  ;;  %v5875_v34 = vsel %vm504_vm3, %v11655_v47, 0.0 }
0x167f   :  { %4712 = vadd.xlane.f32.xlu1 %v4711_v8  ;;  %v11667_v8 = vadd.f32 %v5801_v12, %v11457_v24 }
0x1681   :  { %v5866_v20 = vsel %vm504_vm3, %v11667_v8, 0.0 }
0x1682   :  { %5870 = vadd.xlane.f32.xlu0 %v5869_v36  ;;  %v11672_v36 = vadd.f32 %v5805_v29, %v11457_v24 }
0x1683   :  { %5849 = vadd.xlane.f32.xlu1 %v5848_v19  ;;  %v11676_v19 = vpop.permute.xlu0 %4927 }
0x1684   :  { %v5872_v37 = vsel %vm504_vm3, %v11672_v36, 0.0  ;;  %13131 = vst [vmem:[#allocation92_spill] sm:$0xff] %v11676_v19 }
0x1686   :  { %5876 = vadd.xlane.f32.xlu0 %v5875_v34  ;;  %v11678_v34 = vpop.permute.xlu1 %4931 }
0x1687   :  { %5861 = vadd.xlane.f32.xlu1 %v5860_v33  ;;  %13132 = vst [vmem:[#allocation95_spill] sm:$0xff] %v11678_v34  ;;  %v11680_v23 = vpop.permute.xlu0 %4942 }
0x1688   :  { %13133 = vst [vmem:[#allocation90_spill] sm:$0xff] %v11680_v23 }
0x168a   :  { %v11682_v12 = vpop.permute.xlu1 %4938 }
0x168b   :  { %5867 = vadd.xlane.f32.xlu1 %v5866_v20  ;;  %13134 = vst [vmem:[#allocation93_spill] sm:$0xff] %v11682_v12  ;;  %v11684_v33 = vpop.permute.xlu0 %4953 }
0x168c   :  { %13135 = vst [vmem:[#allocation99_spill] sm:$0xff] %v11684_v33 }
0x168e   :  { %v11686_v16 = vpop.permute.xlu1 %4949 }
0x168f   :  { %5873 = vadd.xlane.f32.xlu1 %v5872_v37  ;;  %13136 = vst [vmem:[#allocation106_spill] sm:$0xff] %v11686_v16  ;;  %v11688_v54 = vpop.permute.xlu0 %4964 }
0x1692   :  { %v11690_v29 = vpop.permute.xlu1 %4960 }
0x1693   :  { %v11692_v24 = vpop.permute.xlu0 %4975  ;;  %vm5555_vm2 = vcmp.gt.f32.partialorder %v11690_v29, 0.0 }
0x1694   :  { %13137 = vst [vmem:[#allocation68_spill] sm:$0xff] %v11692_v24 }
0x1696   :  { %v11694_v20 = vpop.permute.xlu1 %4971 }
0x1697   :  { %13138 = vst [vmem:[#allocation65_spill] sm:$0xff] %v11694_v20  ;;  %v11696_v37 = vpop.permute.xlu0 %4982 }
0x1698   :  { %13139 = vst [vmem:[#allocation66_spill] sm:$0xff] %v11696_v37 }
0x169a   :  { %v11698_v18 = vpop.permute.xlu1 %4986 }
0x169b   :  { %13140 = vst [vmem:[#allocation69_spill] sm:$0xff] %v11698_v18  ;;  %v11700_v35 = vpop.permute.xlu0 %4993 }
0x169c   :  { %13141 = vst [vmem:[#allocation63_spill] sm:$0xff] %v11700_v35 }
0x169e   :  { %v11702_v32 = vpop.permute.xlu1 %4997 }
0x169f   :  { %13142 = vst [vmem:[#allocation70_spill] sm:$0xff] %v11702_v32  ;;  %v11704_v13 = vpop.permute.xlu0 %5004 }
0x16a0   :  { %13143 = vst [vmem:[#allocation62_spill] sm:$0xff] %v11704_v13 }
0x16a2   :  { %v11706_v44 = vpop.permute.xlu1 %5008 }
0x16a3   :  { %13144 = vst [vmem:[#allocation71_spill] sm:$0xff] %v11706_v44  ;;  %v11708_v7 = vpop.permute.xlu0 %6091 }
0x16a4   :  { %13145 = vst [vmem:[#allocation72_spill] sm:$0xff] %v11708_v7 }
0x16a6   :  { %v11710_v61 = vpop.permute.xlu1 %6095 }
0x16a7   :  { %13146 = vst [vmem:[#allocation73_spill] sm:$0xff] %v11710_v61  ;;  %v11712_v63 = vpop.permute.xlu0 %6106 }
0x16a8   :  { %13147 = vst [vmem:[#allocation74_spill] sm:$0xff] %v11712_v63 }
0x16aa   :  { %v11714_v26 = vpop.permute.xlu1 %6102 }
0x16ab   :  { %13148 = vst [vmem:[#allocation79_spill] sm:$0xff] %v11714_v26  ;;  %v11716_v56 = vpop.permute.xlu0 %6117 }
0x16ac   :  { %13149 = vst [vmem:[#allocation83_spill] sm:$0xff] %v11716_v56 }
0x16ae   :  { %v11718_v27 = vpop.permute.xlu1 %6113 }
0x16af   :  { %13150 = vst [vmem:[#allocation78_spill] sm:$0xff] %v11718_v27  ;;  %v11720_v57 = vpop.permute.xlu0 %6128 }
0x16b0   :  { %13151 = vst [vmem:[#allocation80_spill] sm:$0xff] %v11720_v57 }
0x16b2   :  { %v11722_v35 = vpop.permute.xlu1 %6124 }
0x16b3   :  { %13152 = vst [vmem:[#allocation82_spill] sm:$0xff] %v11722_v35 }
0x16b6   :  { %v11727_v37 = vpop.permute.xlu1 %6135 }
0x16b7   :  { %13153 = vst [vmem:[#allocation84_spill] sm:$0xff] %v11727_v37 }
0x16d7   :  { %v4668_v32 = vpop.xlane.xlu0 %4667 }
0x16d8   :  { %v4714_v13 = vmul.f32 0.03125, %v4668_v32 }
0x16da   :  { %v11725_v44 = vsub.f32 %v11493_v2, %v4714_v13 }
0x16db   :  { %v4674_v7 = vpop.xlane.xlu0 %4673 }
0x16dc   :  { %v4716_v61 = vmul.f32 0.03125, %v4674_v7  ;;  %v4746_v18 = vmul.f32 %v11725_v44, %v11725_v44 }
0x16de   :  { %v11732_v56 = vsub.f32 %v11501_v53, %v4716_v61  ;;  %v4762_v27 = vsel %vm504_vm3, %v4746_v18, 0.0 }
0x16df   :  { %4763 = vadd.xlane.f32.xlu0 %v4762_v27  ;;  %v4680_v57 = vpop.xlane.xlu0 %4679 }
0x16e0   :  { %v4718_v35 = vmul.f32 0.03125, %v4680_v57  ;;  %v4671_v26 = vpop.xlane.xlu1 %4670  ;;  %v4748_v13 = vmul.f32 %v11732_v56, %v11732_v56 }
0x16e1   :  { %v4715_v32 = vmul.f32 0.03125, %v4671_v26 }
0x16e2   :  { %v11738_v2 = vsub.f32 %v11509_v62, %v4718_v35  ;;  %v4768_v7 = vsel %vm504_vm3, %v4748_v13, 0.0 }
0x16e3   :  { %v11742_v37 = vsub.f32 %v11513_v10, %v4715_v32  ;;  %4769 = vadd.xlane.f32.xlu0 %v4768_v7  ;;  %v4692_v61 = vpop.xlane.xlu0 %4691 }
0x16e4   :  { %v4722_v53 = vmul.f32 0.03125, %v4692_v61  ;;  %v4677_v18 = vpop.xlane.xlu1 %4676  ;;  %v4750_v27 = vmul.f32 %v11738_v2, %v11738_v2 }
0x16e5   :  { %v4717_v57 = vmul.f32 0.03125, %v4677_v18  ;;  %v4747_v24 = vmul.f32 %v11742_v37, %v11742_v37 }
0x16e6   :  { %v11749_v26 = vsub.f32 %v11519_v11, %v4722_v53  ;;  %v4774_v35 = vsel %vm504_vm3, %v4750_v27, 0.0 }
0x16e7   :  { %v11753_v62 = vsub.f32 %v11524_v31, %v4717_v57  ;;  %4775 = vadd.xlane.f32.xlu0 %v4774_v35  ;;  %v5835_v10 = vpop.xlane.xlu0 %5834  ;;  %v4765_v13 = vsel %vm504_vm3, %v4747_v24, 0.0 }
0x16e8   :  { %v5879_v32 = vmul.f32 0.03125, %v5835_v10  ;;  %4766 = vadd.xlane.f32.xlu1 %v4765_v13  ;;  %v4683_v7 = vpop.xlane.xlu1 %4682  ;;  %v4754_v61 = vmul.f32 %v11749_v26, %v11749_v26 }
0x16e9   :  { %v4719_v18 = vmul.f32 0.03125, %v4683_v7  ;;  %v4749_v11 = vmul.f32 %v11753_v62, %v11753_v62 }
0x16ea   :  { %v11761_v53 = vsub.f32 %v11529_v48, %v5879_v32  ;;  %v4786_v31 = vsel %vm504_vm3, %v4754_v61, 0.0 }
0x16eb   :  { %v11765_v27 = vsub.f32 %v11536_v1, %v4719_v18  ;;  %4787 = vadd.xlane.f32.xlu0 %v4786_v31  ;;  %v4686_v24 = vpop.xlane.xlu0 %4685  ;;  %v4771_v57 = vsel %vm504_vm3, %v4749_v11, 0.0 }
0x16ec   :  { %v4720_v35 = vmul.f32 0.03125, %v4686_v24  ;;  %4772 = vadd.xlane.f32.xlu1 %v4771_v57  ;;  %v4695_v10 = vpop.xlane.xlu1 %4694  ;;  %v5911_v13 = vmul.f32 %v11761_v53, %v11761_v53 }
0x16ed   :  { %v4723_v7 = vmul.f32 0.03125, %v4695_v10  ;;  %v4751_v48 = vmul.f32 %v11765_v27, %v11765_v27 }
0x16ee   :  { %v11773_v32 = vsub.f32 %v11541_v51, %v4720_v35  ;;  %v5929_v1 = vsel %vm504_vm3, %v5911_v13, 0.0 }
0x16ef   :  { %v11777_v61 = vsub.f32 %v11547_v9, %v4723_v7  ;;  %5930 = vadd.xlane.f32.xlu0 %v5929_v1  ;;  %v4698_v18 = vpop.xlane.xlu0 %4697  ;;  %v4777_v11 = vsel %vm504_vm3, %v4751_v48, 0.0 }
0x16f0   :  { %v4724_v31 = vmul.f32 0.03125, %v4698_v18  ;;  %4778 = vadd.xlane.f32.xlu1 %v4777_v11  ;;  %v5832_v24 = vpop.xlane.xlu1 %5831  ;;  %v4752_v57 = vmul.f32 %v11773_v32, %v11773_v32 }
0x16f1   :  { %v5878_v10 = vmul.f32 0.03125, %v5832_v24  ;;  %v4755_v51 = vmul.f32 %v11777_v61, %v11777_v61 }
0x16f2   :  { %v11785_v35 = vsub.f32 %v11552_v30, %v4724_v31  ;;  %v4780_v9 = vsel %vm504_vm3, %v4752_v57, 0.0 }
0x16f3   :  { %v11789_v13 = vsub.f32 %v11559_v43, %v5878_v10  ;;  %4781 = vadd.xlane.f32.xlu0 %v4780_v9  ;;  %v4704_v7 = vpop.xlane.xlu0 %4703  ;;  %v4789_v48 = vsel %vm504_vm3, %v4755_v51, 0.0 }
0x16f4   :  { %v4726_v1 = vmul.f32 0.03125, %v4704_v7  ;;  %4790 = vadd.xlane.f32.xlu1 %v4789_v48  ;;  %v4689_v18 = vpop.xlane.xlu1 %4688  ;;  %v4756_v11 = vmul.f32 %v11785_v35, %v11785_v35 }
0x16f5   :  { %v4721_v24 = vmul.f32 0.03125, %v4689_v18  ;;  %v5910_v30 = vmul.f32 %v11789_v13, %v11789_v13 }
0x16f6   :  { %v11797_v31 = vsub.f32 %v11564_v15, %v4726_v1  ;;  %v4792_v43 = vsel %vm504_vm3, %v4756_v11, 0.0 }
0x16f7   :  { %v11801_v57 = vsub.f32 %v11571_v14, %v4721_v24  ;;  %4793 = vadd.xlane.f32.xlu0 %v4792_v43  ;;  %v5841_v10 = vpop.xlane.xlu0 %5840  ;;  %v5926_v51 = vsel %vm504_vm3, %v5910_v30, 0.0 }
0x16f8   :  { %5927 = vadd.xlane.f32.xlu1 %v5926_v51  ;;  %v4701_v9 = vpop.xlane.xlu1 %4700  ;;  %v4758_v7 = vmul.f32 %v11797_v31, %v11797_v31  ;;  %v5881_v15 = vmul.f32 0.03125, %v5841_v10 }
0x16f9   :  { %v4725_v48 = vmul.f32 0.03125, %v4701_v9  ;;  %v4753_v18 = vmul.f32 %v11801_v57, %v11801_v57 }
0x16fa   :  { %v4798_v1 = vsel %vm504_vm3, %v4758_v7, 0.0  ;;  %v11816_v9 = vsub.f32 %v11577_v6, %v5881_v15 }
0x16fb   :  { %v11810_v11 = vsub.f32 %v11583_v40, %v4725_v48  ;;  %4799 = vadd.xlane.f32.xlu0 %v4798_v1  ;;  %v5847_v14 = vpop.xlane.xlu0 %5846  ;;  %v4783_v24 = vsel %vm504_vm3, %v4753_v18, 0.0 }
0x16fc   :  { %4784 = vadd.xlane.f32.xlu1 %v4783_v24  ;;  %v4707_v30 = vpop.xlane.xlu1 %4706  ;;  %v5883_v63 = vmul.f32 0.03125, %v5847_v14  ;;  %v5913_v6 = vmul.f32 %v11816_v9, %v11816_v9 }
0x16fd   :  { %v4727_v43 = vmul.f32 0.03125, %v4707_v30  ;;  %v4757_v51 = vmul.f32 %v11810_v11, %v11810_v11 }
0x16fe   :  { %v11825_v24 = vsub.f32 %v11586_v39, %v5883_v63 }
0x16ff   :  { %v11819_v10 = vsub.f32 %v11594_v55, %v4727_v43  ;;  %v5859_v7 = vpop.xlane.xlu0 %5858  ;;  %v4795_v40 = vsel %vm504_vm3, %v4757_v51, 0.0 }
0x1700   :  { %4796 = vadd.xlane.f32.xlu1 %v4795_v40  ;;  %v5838_v48 = vpop.xlane.xlu1 %5837  ;;  %13154 = vst [vmem:[#allocation85_spill] sm:$0xff] %v11825_v24  ;;  %v5887_v15 = vmul.f32 0.03125, %v5859_v7  ;;  %v5915_v63 = vmul.f32 %v11825_v24, %v11825_v24 }
0x1701   :  { %v5880_v1 = vmul.f32 0.03125, %v5838_v48  ;;  %v4759_v18 = vmul.f32 %v11819_v10, %v11819_v10  ;;  %v5935_v48 = vsel %vm504_vm3, %v5913_v6, 0.0 }
0x1702   :  { %v11839_v39 = vsub.f32 %v11599_v50, %v5887_v15  ;;  %v5941_v6 = vsel %vm504_vm3, %v5915_v63, 0.0 }
0x1703   :  { %v11830_v14 = vsub.f32 %v11605_v59, %v5880_v1  ;;  %v4801_v55 = vsel %vm504_vm3, %v4759_v18, 0.0  ;;  %v4710_v30 = vpop.xlane.xlu0 %4709 }
0x1704   :  { %4802 = vadd.xlane.f32.xlu1 %v4801_v55  ;;  %v5844_v43 = vpop.xlane.xlu1 %5843  ;;  %v4728_v7 = vmul.f32 0.03125, %v4710_v30  ;;  %v5919_v15 = vmul.f32 %v11839_v39, %v11839_v39 }
0x1705   :  { %v5882_v51 = vmul.f32 0.03125, %v5844_v43  ;;  %v5912_v40 = vmul.f32 %v11830_v14, %v11830_v14 }
0x1706   :  { %v11849_v24 = vsub.f32 %v11610_v58, %v4728_v7 }
0x1707   :  { %v11842_v59 = vsub.f32 %v11617_v21, %v5882_v51  ;;  %v5932_v1 = vsel %vm504_vm3, %v5912_v40, 0.0 }
0x1708   :  { %v5856_v18 = vpop.xlane.xlu1 %5855  ;;  %5933 = vadd.xlane.f32.xlu0 %v5932_v1  ;;  %5936 = vadd.xlane.f32.xlu1 %v5935_v48  ;;  %v4760_v63 = vmul.f32 %v11849_v24, %v11849_v24 }
0x1709   :  { %v5886_v55 = vmul.f32 0.03125, %v5856_v18  ;;  %v5914_v43 = vmul.f32 %v11842_v59, %v11842_v59 }
0x170a   :  { %v4804_v18 = vsel %vm504_vm3, %v4760_v63, 0.0 }
0x170b   :  { %v11852_v50 = vsub.f32 %v11628_v41, %v5886_v55  ;;  %v5938_v21 = vsel %vm504_vm3, %v5914_v43, 0.0  ;;  %v5953_v41 = vsel %vm504_vm3, %v5919_v15, 0.0  ;;  %v5853_v55 = vpop.xlane.xlu0 %5852 }
0x170c   :  { %v4713_v30 = vpop.xlane.xlu1 %4712  ;;  %5939 = vadd.xlane.f32.xlu1 %v5938_v21  ;;  %5942 = vadd.xlane.f32.xlu0 %v5941_v6  ;;  %v5885_v15 = vmul.f32 0.03125, %v5853_v55 }
0x170d   :  { %v4729_v51 = vmul.f32 0.03125, %v4713_v30  ;;  %v5918_v40 = vmul.f32 %v11852_v50, %v11852_v50 }
0x170f   :  { %v11860_v48 = vsub.f32 %v11639_v3, %v4729_v51  ;;  %v5950_v58 = vsel %vm504_vm3, %v5918_v40, 0.0  ;;  %v6144_v3 = vrot.slane %v11473_v38, %v13127_v28  ;;  %v5865_v6 = vpop.xlane.xlu0 %5864  ;;  %v11874_v40 = vsub.f32 %v11622_v17, %v5885_v15 }
0x1710   :  { %5951 = vadd.xlane.f32.xlu1 %v5950_v58  ;;  %5954 = vadd.xlane.f32.xlu0 %v5953_v41  ;;  %v5850_v43 = vpop.xlane.xlu1 %5849  ;;  %v5889_v58 = vmul.f32 0.03125, %v5865_v6 }
0x1711   :  { %v4761_v7 = vmul.f32 %v11860_v48, %v11860_v48  ;;  %v5884_v30 = vmul.f32 0.03125, %v5850_v43 }
0x1712   :  { %v11880_v28 = vsub.f32 %v11633_v52, %v5889_v58 }
0x1713   :  { %v4807_v1 = vsel %vm504_vm3, %v4761_v7, 0.0  ;;  %v5871_v51 = vpop.xlane.xlu0 %5870  ;;  %v11877_v63 = vsub.f32 %v11650_v60, %v5884_v30 }
0x1714   :  { %4808 = vadd.xlane.f32.xlu1 %v4807_v1  ;;  %4805 = vadd.xlane.f32.xlu0 %v4804_v18  ;;  %v5862_v21 = vpop.xlane.xlu1 %5861  ;;  %v5917_v1 = vmul.f32 %v11874_v40, %v11874_v40  ;;  %v5921_v15 = vmul.f32 %v11880_v28, %v11880_v28 }
0x1715   :  { %v5888_v7 = vmul.f32 0.03125, %v5862_v21  ;;  %v5916_v17 = vmul.f32 %v11877_v63, %v11877_v63 }
0x1716   :  { %v5947_v52 = vsel %vm504_vm3, %v5917_v1, 0.0 }
0x1717   :  { %v5877_v18 = vpop.xlane.xlu0 %5876  ;;  %v11885_v55 = vsub.f32 %v11660_v42, %v5888_v7  ;;  %v5944_v42 = vsel %vm504_vm3, %v5916_v17, 0.0 }
0x1718   :  { %v5868_v41 = vpop.xlane.xlu1 %5867  ;;  %v5893_v21 = vmul.f32 0.03125, %v5877_v18 }
0x1719   :  { %v5890_v43 = vmul.f32 0.03125, %v5868_v41  ;;  %v5920_v58 = vmul.f32 %v11885_v55, %v11885_v55 }
0x171a   :  { %v11905_v7 = vsub.f32 %v11655_v47, %v5893_v21  ;;  %v6155_v21 = vrot.slane %v11473_v38, %v13128_v22 }
0x171b   :  { %v11896_v30 = vsub.f32 %v11667_v8, %v5890_v43  ;;  %v5956_v8 = vsel %vm504_vm3, %v5920_v58, 0.0 }
0x171c   :  { %v5874_v6 = vpop.xlane.xlu1 %5873  ;;  %v5925_v47 = vmul.f32 %v11905_v7, %v11905_v7 }
0x171d   :  { %v5922_v1 = vmul.f32 %v11896_v30, %v11896_v30 }
0x171f   :  { %v5962_v18 = vsel %vm504_vm3, %v5922_v1, 0.0 }
0x1725   :  { %6146 = vbcast.lane.b32.xlu1 %v6144_v3, 256 }
0x172a   :  { %6139 = vbcast.lane.b32.xlu0 %v11485_v4, 264  ;;  %v5891_v4 = vmul.f32 0.03125, %v5871_v51  ;;  %v5892_v51 = vmul.f32 0.03125, %v5874_v6  ;;  %v5971_v6 = vsel %vm504_vm3, %v5925_v47, 0.0 }
0x172c   :  { %v11890_v60 = vsub.f32 %v11644_v45, %v5891_v4  ;;  %v5959_v45 = vsel %vm504_vm3, %v5921_v15, 0.0  ;;  %v11908_v4 = vsub.f32 %v11672_v36, %v5892_v51 }
0x172e   :  { %v5923_v41 = vmul.f32 %v11890_v60, %v11890_v60  ;;  %13155 = vst [vmem:[#allocation81_spill] sm:$0xff] %v11908_v4  ;;  %v5924_v17 = vmul.f32 %v11908_v4, %v11908_v4 }
0x1730   :  { %v5965_v43 = vsel %vm504_vm3, %v5923_v41, 0.0  ;;  %v5968_v36 = vsel %vm504_vm3, %v5924_v17, 0.0 }
0x1749   :  { %5945 = vadd.xlane.f32.xlu1 %v5944_v42  ;;  %5948 = vadd.xlane.f32.xlu0 %v5947_v52  ;;  %v6166_v52 = vrot.slane %v11473_v38, %v13129_v0 }
0x174d   :  { %5957 = vadd.xlane.f32.xlu0 %v5956_v8  ;;  %5960 = vadd.xlane.f32.xlu1 %v5959_v45 }
0x1751   :  { %5963 = vadd.xlane.f32.xlu0 %v5962_v18  ;;  %5966 = vadd.xlane.f32.xlu1 %v5965_v43 }
0x1755   :  { %5969 = vadd.xlane.f32.xlu0 %v5968_v36  ;;  %5972 = vadd.xlane.f32.xlu1 %v5971_v6 }
0x1766   :  { %6157 = vbcast.lane.b32.xlu1 %v6155_v21, 256 }
0x176a   :  { %6168 = vbcast.lane.b32.xlu1 %v6166_v52, 256 }
0x176b   :  { %6150 = vbcast.lane.b32.xlu0 %v6144_v3, 264 }
0x176c   :  { %v4764_v15 = vpop.xlane.xlu0 %4763 }
0x176d   :  { %v4810_v51 = vmul.f32 0.03125, %v4764_v15 }
0x176f   :  { %6161 = vbcast.lane.b32.xlu0 %v6155_v21, 264  ;;  %v4826_v45 = vadd.f32 1e-05, %v4810_v51 }
0x1770   :  { %v4770_v42 = vpop.xlane.xlu0 %4769 }
0x1771   :  { %v4812_v58 = vmul.f32 0.03125, %v4770_v42  ;;  %9116 = vrsqrt.f32 %v4826_v45 }
0x1773   :  { %6172 = vbcast.lane.b32.xlu0 %v6166_v52, 264  ;;  %v4828_v8 = vadd.f32 1e-05, %v4812_v58 }
0x1774   :  { %v4776_v41 = vpop.xlane.xlu0 %4775 }
0x1775   :  { %v4814_v1 = vmul.f32 0.03125, %v4776_v41  ;;  %v4767_v18 = vpop.xlane.xlu1 %4766  ;;  %9118 = vrsqrt.f32 %v4828_v8 }
0x1776   :  { %v4811_v43 = vmul.f32 0.03125, %v4767_v18 }
0x1777   :  { %v4830_v22 = vadd.f32 1e-05, %v4814_v1 }
0x1778   :  { %v4827_v17 = vadd.f32 1e-05, %v4811_v43  ;;  %v4788_v47 = vpop.xlane.xlu0 %4787 }
0x1779   :  { %v4773_v0 = vpop.xlane.xlu1 %4772  ;;  %v4818_v21 = vmul.f32 0.03125, %v4788_v47 }
0x177a   :  { %9120 = vrsqrt.f32 %v4827_v17  ;;  %v4813_v3 = vmul.f32 0.03125, %v4773_v0 }
0x177b   :  { %9122 = vrsqrt.f32 %v4830_v22  ;;  %v9117_v58 = vpop.eup %9116  ;;  %v4834_v41 = vadd.f32 1e-05, %v4818_v21 }
0x177c   :  { %v4829_v36 = vadd.f32 1e-05, %v4813_v3  ;;  %v5931_v6 = vpop.xlane.xlu0 %5930  ;;  %v4858_v43 = vmul.f32 %v9117_v58, %v11725_v44 }
0x177d   :  { %v4779_v15 = vpop.xlane.xlu1 %4778 }
0x177e   :  { %9124 = vrsqrt.f32 %v4829_v36  ;;  %v4815_v52 = vmul.f32 0.03125, %v4779_v15 }
0x177f   :  { %v9119_v18 = vpop.eup %9118 }
0x1780   :  { %v4831_v51 = vadd.f32 1e-05, %v4815_v52  ;;  %v4782_v42 = vpop.xlane.xlu0 %4781  ;;  %v4860_v15 = vmul.f32 %v9119_v18, %v11732_v56  ;;  %v11929_v52 = vld [vmem:[%s13008_s27] ss:$0 sm:$0xff] }
0x1781   :  { %v4816_v45 = vmul.f32 0.03125, %v4782_v42  ;;  %v4791_v1 = vpop.xlane.xlu1 %4790  ;;  %v5975_v42 = vmul.f32 0.03125, %v5931_v6  ;;  %v4874_v4 = vmul.f32 %v11929_v52, %v4858_v43  ;;  %v11937_v56 = vld [vmem:[%s13009_s13] ss:$0 sm:$0xff] }
0x1782   :  { %9126 = vrsqrt.f32 %v4831_v51  ;;  %v4819_v47 = vmul.f32 0.03125, %v4791_v1 }
0x1783   :  { %v4832_v17 = vadd.f32 1e-05, %v4816_v45  ;;  %9128 = vrsqrt.f32 %v4834_v41  ;;  %v11944_v43 = vadd.f32 %v11937_v56, %v4874_v4 }
0x1784   :  { %v9121_v8 = vpop.eup %9120  ;;  %v4794_v3 = vpop.xlane.xlu0 %4793  ;;  %v4835_v41 = vadd.f32 1e-05, %v4819_v47 }
0x1785   :  { %v9123_v22 = vpop.eup %9122  ;;  %v4859_v0 = vmul.f32 %v9121_v8, %v11742_v37  ;;  %v5928_v36 = vpop.xlane.xlu1 %5927  ;;  %9130 = vrsqrt.f32 %v4832_v17  ;;  %v4820_v58 = vmul.f32 0.03125, %v4794_v3  ;;  %v4876_v8 = vmul.f32 %v11929_v52, %v4860_v15 }
0x1786   :  { %v4862_v44 = vmul.f32 %v9123_v22, %v11738_v2  ;;  %9132 = vrsqrt.f32 %v4835_v41  ;;  %v5010_v3 = vsel %vm13156_vm14, %v11451_v5, 0.0  ;;  %vm5556_vm14 = vcmp.gt.f32.partialorder %v11688_v54, 0.0 }
0x1787   :  { %v4875_v21 = vmul.f32 %v11929_v52, %v4859_v0  ;;  %v5991_v0 = vadd.f32 1e-05, %v5975_v42  ;;  %v4836_v17 = vadd.f32 1e-05, %v4820_v58  ;;  %v4892_v58 = vadd.f32 %v11937_v56, %v4876_v8 }
0x1788   :  { %v9125_v51 = vpop.eup %9124  ;;  %v4878_v2 = vmul.f32 %v11929_v52, %v4862_v44 }
0x1789   :  { %v4861_v37 = vmul.f32 %v9125_v51, %v11753_v62  ;;  %v4785_v45 = vpop.xlane.xlu1 %4784  ;;  %v11940_v18 = vadd.f32 %v11937_v56, %v4875_v21  ;;  %v5974_v21 = vmul.f32 0.03125, %v5928_v36  ;;  %v4800_v51 = vpop.xlane.xlu0 %4799 }
0x178a   :  { %v4817_v1 = vmul.f32 0.03125, %v4785_v45  ;;  %v11956_v41 = vadd.f32 %v11937_v56, %v4878_v2  ;;  %v4822_v45 = vmul.f32 0.03125, %v4800_v51 }
0x178b   :  { %v4877_v6 = vmul.f32 %v11929_v52, %v4861_v37  ;;  %v12880_v4 = vmax.f32 %v11940_v18, 0.0  ;;  %v12881_v37 = vmax.f32 %v11944_v43, 0.0  ;;  %v5990_v8 = vadd.f32 1e-05, %v5974_v21 }
0x178c   :  { %v4833_v62 = vadd.f32 1e-05, %v4817_v1  ;;  %v9127_v22 = vpop.eup %9126 }
0x178d   :  { %v4797_v47 = vpop.xlane.xlu1 %4796  ;;  %v11950_v15 = vadd.f32 %v11937_v56, %v4877_v6  ;;  %v9129_v42 = vpop.eup %9128  ;;  %v4863_v5 = vmul.f32 %v9127_v22, %v11765_v27  ;;  %v6174_v6 = vsel %vm13157_vm13, %v11473_v38, 0.0  ;;  %v5014_v2 = vmul.f32 %v11678_v34, %v12880_v4 }
0x178e   :  { %9134 = vrsqrt.f32 %v4833_v62  ;;  %5011 = vadd.xlane.f32.xlu1 %v5010_v3  ;;  %v4821_v44 = vmul.f32 0.03125, %v4797_v47  ;;  %v4866_v47 = vmul.f32 %v9129_v42, %v11749_v26  ;;  %v4908_v27 = vmax.f32 %v4892_v58, 0.0 }
0x178f   :  { %9136 = vrsqrt.f32 %v5991_v0  ;;  %v4909_v62 = vmax.f32 %v11950_v15, 0.0  ;;  %v9131_v0 = vpop.eup %9130  ;;  %v12882_v38 = vmax.f32 %v11956_v41, 0.0  ;;  %v4879_v22 = vmul.f32 %v11929_v52, %v4863_v5 }
0x1790   :  { %9138 = vrsqrt.f32 %v4836_v17  ;;  %v4837_v36 = vadd.f32 1e-05, %v4821_v44  ;;  %v5013_v17 = vmul.f32 %v11676_v19, %v12881_v37  ;;  %v4864_v15 = vmul.f32 %v9131_v0, %v11773_v32 }
0x1791   :  { %v4803_v1 = vpop.xlane.xlu1 %4802  ;;  %v4838_v26 = vadd.f32 1e-05, %v4822_v45  ;;  %v5190_v21 = vpack.c.bf16 %v4909_v62, %v4908_v27  ;;  %v4882_v44 = vmul.f32 %v11929_v52, %v4866_v47  ;;  %v5030_v58 = vsel %vm504_vm3, %v5014_v2, 0.0 }
0x1792   :  { %v4823_v3 = vmul.f32 0.03125, %v4803_v1  ;;  %6175 = vadd.xlane.f32.xlu0 %v6174_v6  ;;  %9140 = vrsqrt.f32 %v4837_v36  ;;  %v9133_v36 = vpop.eup %9132  ;;  %v5029_v37 = vsel %vm504_vm3, %v5013_v17, 0.0  ;;  %v5017_v32 = vmul.f32 %v11686_v16, %v12882_v38 }
0x1793   :  { %9142 = vrsqrt.f32 %v5990_v8  ;;  %8649 = vmatmul.mubr.msk.bf16.vlgmr.msra.gmra.mrb[80].mxu0 %vm504_vm3, %v5190_v21  ;;  %v11980_v5 = vadd.f32 %v11937_v56, %v4879_v22  ;;  %v4880_v47 = vmul.f32 %v11929_v52, %v4864_v15  ;;  %v5031_v22 = vadd.f32 %v5030_v58, %v5029_v37 }
0x1794   :  { %v4839_v1 = vadd.f32 1e-05, %v4823_v3  ;;  %8661 = vmatpush3.bf16.msra.mxu0 %v10420_v49  ;;  %8664 = vmatprep.mubr.msk.bf16.mxu0 %vm9496_vm0, %v12999_v46  ;;  %9144 = vrsqrt.f32 %v4838_v26  ;;  %v4867_v38 = vmul.f32 %v9133_v36, %v11777_v61  ;;  %v5016_v15 = vmul.f32 %v11680_v23, %v4909_v62 }
0x1795   :  { %v5937_v51 = vpop.xlane.xlu1 %5936  ;;  %v5934_v42 = vpop.xlane.xlu0 %5933  ;;  %8662 = vmatprep.subr.bf16.mxu0 %v12999_v46  ;;  %v5015_v26 = vmul.f32 %v11682_v12, %v4908_v27  ;;  %v4896_v61 = vadd.f32 %v11937_v56, %v4880_v47  ;;  %v5047_v27 = vsel %vm504_vm3, %v5017_v32, 0.0 }
0x1796   :  { %v5977_v6 = vmul.f32 0.03125, %v5937_v51  ;;  %v5976_v45 = vmul.f32 0.03125, %v5934_v42  ;;  %v11989_v51 = vadd.f32 %v11937_v56, %v4882_v44  ;;  %9146 = vrsqrt.f32 %v4839_v1 }
0x1797   :  { %v5038_v47 = vsel %vm504_vm3, %v5015_v26, 0.0 }
0x1798   :  { %v9135_v4 = vpop.eup %9134  ;;  %v5993_v3 = vadd.f32 1e-05, %v5977_v6  ;;  %v5992_v42 = vadd.f32 1e-05, %v5976_v45  ;;  %8663 = vmatpush3.bf16.msra.mxu0 %v10433_v25  ;;  %v5032_v6 = vrot.slane %v5031_v22, 4  ;;  %v4883_v45 = vmul.f32 %v11929_v52, %v4867_v38 }
0x1799   :  { %v9137_v0 = vpop.eup %9136  ;;  %v4865_v8 = vmul.f32 %v9135_v4, %v11801_v57  ;;  %v5940_v2 = vpop.xlane.xlu1 %5939  ;;  %v12887_v4 = vmax.f32 %v11980_v5, 0.0  ;;  %8676 = vmatprep.subr.bf16.mxu0 %v12999_v46 }
0x179a   :  { %v5943_v17 = vpop.xlane.xlu0 %5942  ;;  %v9139_v21 = vpop.eup %9138  ;;  %9148 = vrsqrt.f32 %v5993_v3  ;;  %v6023_v57 = vmul.f32 %v9137_v0, %v11761_v53  ;;  %v12890_v53 = vmax.f32 %v11989_v51, 0.0  ;;  %v12024_v26 = vadd.f32 %v11937_v56, %v4883_v45 }
0x179b   :  { %v4881_v16 = vmul.f32 %v11929_v52, %v4865_v8  ;;  %v4868_v44 = vmul.f32 %v9139_v21, %v11785_v35  ;;  %9150 = vrsqrt.f32 %v5992_v42  ;;  %v5039_v35 = vsel %vm504_vm3, %v5016_v15, 0.0 }
0x179c   :  { %v9141_v37 = vpop.eup %9140  ;;  %v12010_v8 = vmul.f32 %v11929_v52, %v6023_v57  ;;  %v5978_v21 = vmul.f32 0.03125, %v5940_v2  ;;  %v5021_v15 = vmul.f32 %v11694_v20, %v12890_v53  ;;  %v5040_v57 = vadd.f32 %v5039_v35, %v5038_v47 }
0x179d   :  { %v5952_v1 = vpop.xlane.xlu1 %5951  ;;  %v4897_v62 = vadd.f32 %v11937_v56, %v4881_v16  ;;  %v4869_v36 = vmul.f32 %v9141_v37, %v11810_v11  ;;  %v9143_v0 = vpop.eup %9142  ;;  %v5018_v16 = vmul.f32 %v11684_v33, %v12887_v4  ;;  %v4884_v11 = vmul.f32 %v11929_v52, %v4868_v44 }
0x179e   :  { %v11999_v58 = vpop.xlane.xlu0 %5954  ;;  %v4912_v37 = vmax.f32 %v4896_v61, 0.0  ;;  %v9145_v23 = vpop.eup %9144  ;;  %v12021_v4 = vadd.f32 %v5032_v6, %v5031_v22  ;;  %v6022_v44 = vmul.f32 %v9143_v0, %v11789_v13  ;;  %v5994_v35 = vadd.f32 1e-05, %v5978_v21 }
0x179f   :  { %v4913_v3 = vmax.f32 %v4897_v62, 0.0  ;;  %v4885_v32 = vmul.f32 %v11929_v52, %v4869_v36  ;;  %v5048_v36 = vsel %vm504_vm3, %v5018_v16, 0.0  ;;  %v5979_v47 = vmul.f32 0.03125, %v5943_v17 }
0x17a0   :  { %v9147_v2 = vpop.eup %9146  ;;  %v12031_v22 = vadd.f32 %v11937_v56, %v4884_v11  ;;  %v5041_v45 = vrot.slane %v5040_v57, 4  ;;  %v5019_v0 = vmul.f32 %v11690_v29, %v4912_v37  ;;  %v4870_v17 = vmul.f32 %v9145_v23, %v11797_v31 }
0x17a1   :  { %v4809_v42 = vpop.xlane.xlu1 %4808  ;;  %v5192_v62 = vpack.c.bf16 %v4913_v3, %v4912_v37  ;;  %v5020_v12 = vmul.f32 %v11688_v54, %v4913_v3  ;;  %v4901_v6 = vadd.f32 %v11937_v56, %v4885_v32  ;;  %v4871_v3 = vmul.f32 %v9147_v2, %v11819_v10 }
0x17a2   :  { %v4806_v38 = vpop.xlane.xlu0 %4805  ;;  %v4825_v34 = vmul.f32 0.03125, %v4809_v42  ;;  %v5995_v32 = vadd.f32 1e-05, %v5979_v47  ;;  %v5982_v21 = vmul.f32 0.03125, %v5952_v1  ;;  %v4916_v42 = vmax.f32 %v12031_v22, 0.0 }
0x17a3   :  { %v4824_v19 = vmul.f32 0.03125, %v4806_v38  ;;  %8665 = vmatmul.mubr.msk.bf16.vlgmr.msra.gmra.mrb[84].mxu0 %vm504_vm3, %v5192_v62  ;;  %v4917_v16 = vmax.f32 %v4901_v6, 0.0  ;;  %v5057_v11 = vsel %vm504_vm3, %v5020_v12, 0.0  ;;  %v5056_v31 = vsel %vm504_vm3, %v5019_v0, 0.0  ;;  %v13159_v6 = vld [vmem:[#allocation68_spill] sm:$0xff] }
0x17a4   :  { %v4841_v61 = vadd.f32 1e-05, %v4825_v34  ;;  %v9149_v53 = vpop.eup %9148  ;;  %8677 = vmatpush3.bf16.msra.mxu0 %v10420_v49  ;;  %8680 = vmatprep.mubr.msk.bf16.mxu0 %vm9496_vm0, %v12999_v46  ;;  %v5049_v34 = vadd.f32 %v5048_v36, %v5047_v27  ;;  %v12891_v10 = vmax.f32 %v12024_v26, 0.0  ;;  %v5058_v12 = vadd.f32 %v5057_v11, %v5056_v31 }
0x17a5   :  { %v4840_v33 = vadd.f32 1e-05, %v4824_v19  ;;  %v6025_v13 = vmul.f32 %v9149_v53, %v11816_v9  ;;  %v9151_v19 = vpop.eup %9150  ;;  %8678 = vmatprep.subr.bf16.mxu0 %v12999_v46  ;;  %v5194_v38 = vpack.c.bf16 %v4917_v16, %v4916_v42  ;;  %v5065_v1 = vsel %vm504_vm3, %v5021_v15, 0.0 }
0x17a6   :  { %9152 = vrsqrt.f32 %v4841_v61  ;;  %v6024_v53 = vmul.f32 %v9151_v19, %v11830_v14  ;;  %v5042_v14 = vadd.f32 %v5041_v45, %v5040_v57  ;;  %v4887_v37 = vmul.f32 %v11929_v52, %v4871_v3 }
0x17a7   :  { %9154 = vrsqrt.f32 %v4840_v33  ;;  %v6041_v9 = vmul.f32 %v11929_v52, %v6025_v13  ;;  %v5983_v33 = vmul.f32 0.03125, %v11999_v58  ;;  %v5050_v58 = vrot.slane %v5049_v34, 4 }
0x17a8   :  { %9156 = vrsqrt.f32 %v5994_v35  ;;  %v6040_v23 = vmul.f32 %v11929_v52, %v6024_v53  ;;  %8679 = vmatpush3.bf16.msra.mxu0 %v10433_v25  ;;  %v4886_v36 = vmul.f32 %v11929_v52, %v4870_v17  ;;  %v5998_v61 = vadd.f32 1e-05, %v5982_v21  ;;  %v13158_v35 = vld [vmem:[#allocation74_spill] sm:$0xff]  ;;  %v13160_v53 = vld [vmem:[#allocation79_spill] sm:$0xff] }
0x17a9   :  { %v12047_v27 = vadd.f32 %v11937_v56, %v6041_v9  ;;  %8692 = vmatprep.subr.bf16.mxu0 %v12999_v46  ;;  %9158 = vrsqrt.f32 %v5995_v32  ;;  %v5034_v57 = vrot.slane %v12021_v4, 2  ;;  %v5999_v22 = vadd.f32 1e-05, %v5983_v33  ;;  %v13161_v32 = vld [vmem:[#allocation69_spill] sm:$0xff] }
0x17aa   :  { %v12059_v2 = vadd.f32 %v11937_v56, %v6040_v23  ;;  %v5022_v45 = vmul.f32 %v13159_v6, %v12891_v10  ;;  %v6038_v13 = vmul.f32 %v11929_v52, %v6022_v44  ;;  %v5043_v0 = vrot.slane %v5042_v14, 2 }
0x17ab   :  { %v12892_v62 = vmax.f32 %v12047_v27, 0.0  ;;  %8681 = vmatmul.mubr.msk.bf16.vlgmr.msra.gmra.mrb[88].mxu0 %vm504_vm3, %v5194_v38  ;;  %v5059_v19 = vrot.slane %v5058_v12, 4  ;;  %v12077_v3 = vadd.f32 %v11937_v56, %v4887_v37  ;;  %v5024_v21 = vmul.f32 %v13161_v32, %v4917_v16 }
0x17ac   :  { %v12893_v47 = vmax.f32 %v12059_v2, 0.0  ;;  %8693 = vmatpush3.bf16.msra.mxu0 %v10420_v49  ;;  %8696 = vmatprep.mubr.msk.bf16.mxu0 %vm9496_vm0, %v12999_v46  ;;  %v5051_v33 = vadd.f32 %v5050_v58, %v5049_v34  ;;  %v12085_v44 = vadd.f32 %v11937_v56, %v4886_v36  ;;  %9160 = vrsqrt.f32 %v5998_v61 }
0x17ad   :  { %v6180_v15 = vmul.f32 %v13158_v35, %v12892_v62  ;;  %8694 = vmatprep.subr.bf16.mxu0 %v12999_v46  ;;  %9162 = vrsqrt.f32 %v5999_v22  ;;  %v5066_v16 = vsel %vm504_vm3, %v5022_v45, 0.0  ;;  %v5060_v58 = vadd.f32 %v5059_v19, %v5058_v12 }
0x17ae   :  { %v6179_v11 = vmul.f32 %v13160_v53, %v12893_v47  ;;  %v5044_v36 = vadd.f32 %v5043_v0, %v5042_v14  ;;  %v12103_v45 = vadd.f32 %v11937_v56, %v6038_v13  ;;  %v12109_v14 = vadd.f32 %v11937_v56, %v12010_v8  ;;  %v13163_v13 = vld [vmem:[#allocation70_spill] sm:$0xff]  ;;  %v13165_v8 = vld [vmem:[#allocation71_spill] sm:$0xff] }
0x17af   :  { %v6203_v9 = vsel %vm504_vm3, %v6180_v15, 0.0  ;;  %v13162_v15 = vld [vmem:[#allocation66_spill] sm:$0xff] }
0x17b0   :  { %v9153_v17 = vpop.eup %9152  ;;  %v6202_v38 = vsel %vm504_vm3, %v6179_v11, 0.0  ;;  %v5023_v10 = vmul.f32 %v13162_v15, %v4916_v42  ;;  %8695 = vmatpush3.bf16.msra.mxu0 %v10433_v25  ;;  %v12896_v42 = vmax.f32 %v12085_v44, 0.0  ;;  %vm5559_vm13 = vcmp.gt.f32.partialorder %v13162_v15, 0.0 }
0x17b1   :  { %v9155_v23 = vpop.eup %9154  ;;  %v4873_v31 = vmul.f32 %v9153_v17, %v11860_v48  ;;  %v12093_v47 = vadd.f32 %v6203_v9, %v6202_v38  ;;  %8711 = vmatprep.subr.bf16.mxu0 %v12999_v46  ;;  %v12894_v48 = vmax.f32 %v12077_v3, 0.0  ;;  %v5052_v17 = vrot.slane %v5051_v33, 2 }
0x17b2   :  { %v4872_v37 = vmul.f32 %v9155_v23, %v11849_v24  ;;  %v9157_v62 = vpop.eup %9156  ;;  %v5075_v24 = vsel %vm504_vm3, %v5024_v21, 0.0  ;;  %v5067_v9 = vadd.f32 %v5066_v16, %v5065_v1  ;;  %v5074_v12 = vsel %vm504_vm3, %v5023_v10, 0.0  ;;  %v13164_v16 = vld [vmem:[#allocation63_spill] sm:$0xff] }
0x17b3   :  { %v4889_v34 = vmul.f32 %v11929_v52, %v4873_v31  ;;  %v9159_v0 = vpop.eup %9158  ;;  %v6026_v11 = vmul.f32 %v9157_v62, %v11842_v59  ;;  %v5061_v21 = vrot.slane %v5060_v58, 2  ;;  %v5076_v23 = vadd.f32 %v5075_v24, %v5074_v12  ;;  %v13166_v62 = vld [vmem:[#allocation85_spill] sm:$0xff] }
0x17b4   :  { %v4888_v61 = vmul.f32 %v11929_v52, %v4872_v37  ;;  %v5026_v38 = vmul.f32 %v13163_v13, %v12894_v48  ;;  %v5045_v37 = vrot.slane %v5044_v36, 1  ;;  %v5035_v10 = vadd.f32 %v5034_v57, %v12021_v4 }
0x17b5   :  { %v4905_v22 = vadd.f32 %v11937_v56, %v4889_v34  ;;  %v5025_v34 = vmul.f32 %v13164_v16, %v12896_v42  ;;  %v5053_v59 = vadd.f32 %v5052_v17, %v5051_v33  ;;  %v6027_v24 = vmul.f32 %v9159_v0, %v13166_v62 }
0x17b6   :  { %v4904_v19 = vadd.f32 %v11937_v56, %v4888_v61  ;;  %v9161_v13 = vpop.eup %9160  ;;  %v5062_v4 = vadd.f32 %v5061_v21, %v5060_v58  ;;  %v5068_v57 = vrot.slane %v5067_v9, 4  ;;  %v5077_v6 = vrot.slane %v5076_v23, 4 }
0x17b7   :  { %v4921_v31 = vmax.f32 %v4905_v22, 0.0  ;;  %v13167_v22 = vld [vmem:[#allocation62_spill] sm:$0xff]  ;;  %v9163_v20 = vpop.eup %9162  ;;  %v5036_v42 = vrot.slane %v5035_v10, 1  ;;  %v5084_v35 = vsel %vm504_vm3, %v5026_v38, 0.0  ;;  %v5054_v0 = vrot.slane %v5053_v59, 1 }
0x17b8   :  { %v4920_v1 = vmax.f32 %v4904_v19, 0.0  ;;  %v6042_v19 = vmul.f32 %v11929_v52, %v6026_v11  ;;  %v5069_v11 = vadd.f32 %v5068_v57, %v5067_v9  ;;  %v5078_v58 = vadd.f32 %v5077_v6, %v5076_v23 }
0x17b9   :  { %v5028_v61 = vmul.f32 %v13165_v8, %v4921_v31  ;;  %v5083_v21 = vsel %vm504_vm3, %v5025_v34, 0.0  ;;  %v5063_v62 = vrot.slane %v5062_v4, 1  ;;  %v13168_v16 = vmax.f32 %v12103_v45, 0.0 }
0x17ba   :  { %v5027_v12 = vmul.f32 %v13167_v22, %v4920_v1  ;;  %v5196_v53 = vpack.c.bf16 %v4921_v31, %v4920_v1  ;;  %v6043_v31 = vmul.f32 %v11929_v52, %v6027_v24  ;;  %v5085_v38 = vadd.f32 %v5084_v35, %v5083_v21 }
0x17bb   :  { %v5093_v17 = vsel %vm504_vm3, %v5028_v61, 0.0  ;;  %v6031_v61 = vmul.f32 %v9163_v20, %v11839_v39  ;;  %v5079_v48 = vrot.slane %v5078_v58, 2  ;;  %v13169_v9 = vmax.f32 %v12109_v14, 0.0 }
0x17bc   :  { %8697 = vmatmul.mubr.msk.bf16.vlgmr.msra.gmra.mrb[92].mxu0 %vm504_vm3, %v5196_v53  ;;  %v5092_v33 = vsel %vm504_vm3, %v5027_v12, 0.0  ;;  %v6030_v53 = vmul.f32 %v9161_v13, %v11852_v50  ;;  %v5070_v12 = vrot.slane %v5069_v11, 2  ;;  %v5046_v23 = vadd.f32 %v5045_v37, %v5044_v36 }
0x17bd   :  { %8712 = vmatpush3.bf16.msra.mxu0 %v10420_v49  ;;  %8715 = vmatprep.mubr.msk.bf16.mxu0 %vm9496_vm0, %v12999_v46  ;;  %v5094_v1 = vadd.f32 %v5093_v17, %v5092_v33  ;;  %v6353_v6 = vpack.c.bf16 %v13169_v9, %v13168_v16  ;;  %v5086_v34 = vrot.slane %v5085_v38, 4  ;;  %v5037_v50 = vadd.f32 %v5036_v42, %v5035_v10 }
0x17be   :  { %8713 = vmatprep.subr.bf16.mxu0 %v12999_v46  ;;  %v5055_v13 = vadd.f32 %v5054_v0, %v5053_v59  ;;  %v5071_v24 = vadd.f32 %v5070_v12, %v5069_v11  ;;  %v5080_v35 = vadd.f32 %v5079_v48, %v5078_v58  ;;  %v12144_v33 = vadd.f32 %v11937_v56, %v6042_v19 }
0x17bf   :  { %v5095_v57 = vrot.slane %v5094_v1, 4  ;;  %v5087_v20 = vadd.f32 %v5086_v34, %v5085_v38  ;;  %v12147_v17 = vadd.f32 %v11937_v56, %v6043_v31  ;;  %v5064_v16 = vadd.f32 %v5063_v62, %v5062_v4 }
0x17c0   :  { %v5081_v36 = vrot.slane %v5080_v35, 1  ;;  %v5072_v37 = vrot.slane %v5071_v24, 1  ;;  %v5110_v10 = vsel %vm1818_vm1, %v5046_v23, %v5037_v50  ;;  %v6046_v48 = vmul.f32 %v11929_v52, %v6030_v53 }
0x17c1   :  { %8714 = vmatpush3.bf16.msra.mxu0 %v10433_v25  ;;  %v5096_v39 = vadd.f32 %v5095_v57, %v5094_v1  ;;  %v5088_v21 = vrot.slane %v5087_v20, 2  ;;  %v6047_v59 = vmul.f32 %v11929_v52, %v6031_v61  ;;  %v5111_v19 = vsel %vm1820_vm7, %v5055_v13, %v5110_v10 }
0x17c2   :  { %8727 = vmatprep.subr.bf16.mxu0 %v12999_v46  ;;  %v6074_v11 = vmax.f32 %v12144_v33, 0.0  ;;  %v6075_v58 = vmax.f32 %v12147_v17, 0.0  ;;  %v5082_v31 = vadd.f32 %v5081_v36, %v5080_v35  ;;  %v5112_v53 = vsel %vm1822_vm8, %v5064_v16, %v5111_v19  ;;  %v12202_v36 = vpop.permute.xlu0 %6139 }
0x17c3   :  { %v5097_v42 = vrot.slane %v5096_v39, 2  ;;  %v5089_v4 = vadd.f32 %v5088_v21, %v5087_v20  ;;  %v5073_v38 = vadd.f32 %v5072_v37, %v5071_v24  ;;  %v12162_v62 = vadd.f32 %v11937_v56, %v6046_v48 }
0x17c4   :  { %8716 = vmatmul.mubr.msk.bf16.vlgmr.msra.gmra.mrb[96].mxu0 %vm504_vm3, %v6353_v6  ;;  %v12165_v12 = vadd.f32 %v11937_v56, %v6047_v59  ;;  %v13170_v9 = vmax.f32 %v12059_v2, 0.0  ;;  %v13171_v6 = vmax.f32 %v12047_v27, 0.0  ;;  %v6355_v13 = vpack.c.bf16 %v6075_v58, %v6074_v11 }
0x17c5   :  { %8728 = vmatpush3.bf16.msra.mxu0 %v10420_v49  ;;  %8731 = vmatprep.mubr.msk.bf16.mxu0 %vm9496_vm0, %v12999_v46  ;;  %v5098_v0 = vadd.f32 %v5097_v42, %v5096_v39  ;;  %v5090_v1 = vrot.slane %v5089_v4, 1  ;;  %v5113_v50 = vsel %vm1824_vm9, %v5073_v38, %v5112_v53  ;;  %v6078_v2 = vmax.f32 %v12162_v62, 0.0  ;;  %v12196_v39 = vpop.permute.xlu1 %6146  ;;  %v13175_v53 = vld [vmem:[#allocation72_spill] sm:$0xff] }
0x17c6   :  { %8729 = vmatprep.subr.bf16.mxu0 %v12999_v46  ;;  %v12172_v23 = vpack.c.bf16 %v13171_v6, %v13170_v9  ;;  %v5114_v24 = vsel %vm1826_vm10, %v5082_v31, %v5113_v50  ;;  %v6079_v20 = vmax.f32 %v12165_v12, 0.0  ;;  %v13172_v37 = vmax.f32 %v11944_v43, 0.0  ;;  %v13179_v50 = vld [vmem:[#allocation73_spill] sm:$0xff] }
0x17c7   :  { %v5099_v61 = vrot.slane %v5098_v0, 1  ;;  %v5091_v34 = vadd.f32 %v5090_v1, %v5089_v4  ;;  %v13173_v21 = vmax.f32 %v11940_v18, 0.0  ;;  %v13174_v31 = vmax.f32 %v12103_v45, 0.0 }
0x17c8   :  { %v6357_v16 = vpack.c.bf16 %v6079_v20, %v6078_v2  ;;  %v13176_v9 = vmax.f32 %v11956_v41, 0.0  ;;  %v13177_v6 = vmax.f32 %v11980_v5, 0.0  ;;  %v6186_v33 = vmul.f32 %v12202_v36, %v6079_v20 }
0x17c9   :  { %8730 = vmatpush3.bf16.msra.mxu0 %v10433_v25  ;;  %v5100_v57 = vadd.f32 %v5099_v61, %v5098_v0  ;;  %v5115_v35 = vsel %vm1828_vm11, %v5091_v34, %v5114_v24  ;;  %v5189_v42 = vpack.c.bf16 %v13173_v21, %v13172_v37  ;;  %v6177_v38 = vmul.f32 %v13175_v53, %v13174_v31  ;;  %v13182_v31 = vld [vmem:[#allocation84_spill] sm:$0xff] }
0x17ca   :  { %8743 = vmatprep.subr.bf16.mxu0 %v12999_v46  ;;  %v5191_v34 = vpack.c.bf16 %v13177_v6, %v13176_v9  ;;  %v13183_v17 = vmax.f32 %v11989_v51, 0.0  ;;  %v6205_v51 = vrot.slane %v12093_v47, 4 }
0x17cb   :  { %v5116_v27 = vsel %vm1830_vm12, %v5100_v57, %v5115_v35  ;;  %v13178_v57 = vmax.f32 %v12109_v14, 0.0 }
0x17cc   :  { %8732 = vmatmul.mubr.msk.bf16.vlgmr.msra.gmra.mrb[100].mxu0 %vm504_vm3, %v6355_v13  ;;  %8634 = vmatmul.mubr.msk.f32.vlgmr.msra.gmra.mrb[76].mxu1 %vm504_vm3, %v5116_v27 }
0x17cd   :  { %8744 = vmatpush3.bf16.msra.mxu0 %v10420_v49  ;;  %8747 = vmatprep.mubr.msk.bf16.mxu0 %vm9496_vm0, %v12999_v46  ;;  %v6178_v13 = vmul.f32 %v13179_v50, %v13178_v57  ;;  %v6230_v57 = vsel %vm504_vm3, %v6186_v33, 0.0 }
0x17ce   :  { %8745 = vmatprep.subr.bf16.mxu0 %v12999_v46  ;;  %8637 = vmatpush3.bf16.msra.mxu1 %v10420_v49 }
0x17cf   :  { %8640 = vmatprep.mubr.msk.bf16.mxu1 %vm9496_vm0, %v12999_v46  ;;  %8638 = vmatprep.subr.bf16.mxu1 %v12999_v46  ;;  %v6194_v14 = vsel %vm504_vm3, %v6178_v13, 0.0 }
0x17d1   :  { %8746 = vmatpush3.bf16.msra.mxu0 %v10433_v25 }
0x17d2   :  { %8759 = vmatprep.subr.bf16.mxu0 %v12999_v46  ;;  %8639 = vmatpush3.bf16.msra.mxu1 %v10433_v25 }
0x17d3   :  { %8652 = vmatprep.subr.bf16.mxu1 %v12999_v46 }
0x17d4   :  { %8748 = vmatmul.mubr.msk.bf16.vlgmr.msra.gmra.mrb[104].mxu0 %vm504_vm3, %v6357_v16  ;;  %v6193_v16 = vsel %vm504_vm3, %v6177_v38, 0.0  ;;  %v6185_v38 = vmul.f32 %v13182_v31, %v6078_v2 }
0x17d5   :  { %8760 = vmatpush3.bf16.msra.mxu0 %v10420_v49  ;;  %8763 = vmatprep.mubr.msk.bf16.mxu0 %vm9496_vm0, %v12999_v46 }
0x17d6   :  { %8641 = vmatmul.mubr.msk.bf16.vlgmr.msra.gmra.mrb[80].mxu1 %vm504_vm3, %v5189_v42  ;;  %v5946_v10 = vpop.xlane.xlu1 %5945  ;;  %v5949_v48 = vpop.xlane.xlu0 %5948  ;;  %8761 = vmatprep.subr.bf16.mxu0 %v12999_v46  ;;  %v6195_v42 = vadd.f32 %v6194_v14, %v6193_v16  ;;  %v6229_v20 = vsel %vm504_vm3, %v6185_v38, 0.0 }
0x17d7   :  { %8653 = vmatpush3.bf16.msra.mxu1 %v10420_v49  ;;  %v5980_v43 = vmul.f32 0.03125, %v5946_v10  ;;  %v5981_v18 = vmul.f32 0.03125, %v5949_v48  ;;  %8656 = vmatprep.mubr.msk.bf16.mxu1 %vm9496_vm0, %v12999_v46  ;;  %v13180_v10 = vld [vmem:[#allocation78_spill] sm:$0xff] }
0x17d8   :  { %8654 = vmatprep.subr.bf16.mxu1 %v12999_v46  ;;  %v6181_v48 = vmul.f32 %v13180_v10, %v6074_v11  ;;  %v13184_v11 = vmax.f32 %v12024_v26, 0.0 }
0x17d9   :  { %v5996_v59 = vadd.f32 1e-05, %v5980_v43  ;;  %v5997_v19 = vadd.f32 1e-05, %v5981_v18  ;;  %8762 = vmatpush3.bf16.msra.mxu0 %v10433_v25  ;;  %v13181_v43 = vld [vmem:[#allocation83_spill] sm:$0xff] }
0x17da   :  { %v5961_v4 = vpop.xlane.xlu1 %5960  ;;  %v5958_v0 = vpop.xlane.xlu0 %5957  ;;  %8775 = vmatprep.subr.bf16.mxu0 %v12999_v46  ;;  %v6182_v18 = vmul.f32 %v13181_v43, %v6075_v58  ;;  %v5193_v58 = vpack.c.bf16 %v13184_v11, %v13183_v17  ;;  %v6211_v62 = vsel %vm504_vm3, %v6181_v48, 0.0  ;;  %v13185_v48 = vmax.f32 %v12085_v44, 0.0  ;;  %v13188_v17 = vld [vmem:[#allocation82_spill] sm:$0xff] }
0x17db   :  { %9164 = vrsqrt.f32 %v5996_v59  ;;  %8655 = vmatpush3.bf16.msra.mxu1 %v10433_v25  ;;  %v5985_v1 = vmul.f32 0.03125, %v5961_v4  ;;  %v5984_v61 = vmul.f32 0.03125, %v5958_v0 }
0x17dc   :  { %9166 = vrsqrt.f32 %v5997_v19  ;;  %8668 = vmatprep.subr.bf16.mxu1 %v12999_v46  ;;  %v6212_v2 = vsel %vm504_vm3, %v6182_v18, 0.0  ;;  %v13186_v18 = vmax.f32 %v12077_v3, 0.0 }
0x17dd   :  { %v6001_v45 = vadd.f32 1e-05, %v5985_v1  ;;  %v6000_v24 = vadd.f32 1e-05, %v5984_v61 }
0x17de   :  { %8657 = vmatmul.mubr.msk.bf16.vlgmr.msra.gmra.mrb[84].mxu1 %vm504_vm3, %v5191_v34  ;;  %v5967_v35 = vpop.xlane.xlu1 %5966  ;;  %v5964_v27 = vpop.xlane.xlu0 %5963  ;;  %v6196_v34 = vrot.slane %v6195_v42, 4 }
0x17df   :  { %9168 = vrsqrt.f32 %v6001_v45  ;;  %8669 = vmatpush3.bf16.msra.mxu1 %v10420_v49  ;;  %v5987_v41 = vmul.f32 0.03125, %v5967_v35  ;;  %v5986_v5 = vmul.f32 0.03125, %v5964_v27  ;;  %8672 = vmatprep.mubr.msk.bf16.mxu1 %vm9496_vm0, %v12999_v46  ;;  %v6213_v45 = vadd.f32 %v6212_v2, %v6211_v62 }
0x17e0   :  { %9170 = vrsqrt.f32 %v6000_v24  ;;  %8670 = vmatprep.subr.bf16.mxu1 %v12999_v46  ;;  %v12274_v35 = vadd.f32 %v6196_v34, %v6195_v42 }
0x17e1   :  { %v6003_v37 = vadd.f32 1e-05, %v5987_v41  ;;  %v6002_v21 = vadd.f32 1e-05, %v5986_v5  ;;  %v6231_v41 = vadd.f32 %v6230_v57, %v6229_v20 }
0x17e2   :  { %v5973_v59 = vpop.xlane.xlu1 %5972  ;;  %v5970_v19 = vpop.xlane.xlu0 %5969  ;;  %v6198_v33 = vrot.slane %v12274_v35, 2 }
0x17e3   :  { %9172 = vrsqrt.f32 %v6003_v37  ;;  %8671 = vmatpush3.bf16.msra.mxu1 %v10433_v25  ;;  %v5989_v4 = vmul.f32 0.03125, %v5973_v59  ;;  %v5988_v0 = vmul.f32 0.03125, %v5970_v19  ;;  %v6206_v37 = vadd.f32 %v6205_v51, %v12093_v47 }
0x17e4   :  { %9174 = vrsqrt.f32 %v6002_v21  ;;  %8684 = vmatprep.subr.bf16.mxu1 %v12999_v46  ;;  %v5195_v59 = vpack.c.bf16 %v13186_v18, %v13185_v48 }
0x17e5   :  { %v9165_v1 = vpop.eup %9164  ;;  %v6005_v61 = vadd.f32 1e-05, %v5989_v4  ;;  %v6004_v9 = vadd.f32 1e-05, %v5988_v0  ;;  %v6214_v4 = vrot.slane %v6213_v45, 4  ;;  %v6207_v34 = vrot.slane %v6206_v37, 2 }
0x17e6   :  { %v9167_v6 = vpop.eup %9166  ;;  %v6028_v12 = vmul.f32 %v9165_v1, %v11877_v63  ;;  %8673 = vmatmul.mubr.msk.bf16.vlgmr.msra.gmra.mrb[88].mxu1 %vm504_vm3, %v5193_v58  ;;  %v12295_v38 = vpop.permute.xlu0 %6150  ;;  %v6232_v58 = vrot.slane %v6231_v41, 4  ;;  %v13189_v1 = vld [vmem:[#allocation80_spill] sm:$0xff] }
0x17e7   :  { %v6029_v26 = vmul.f32 %v9167_v6, %v11874_v40  ;;  %9176 = vrsqrt.f32 %v6005_v61  ;;  %8685 = vmatpush3.bf16.msra.mxu1 %v10420_v49  ;;  %8688 = vmatprep.mubr.msk.bf16.mxu1 %vm9496_vm0, %v12999_v46  ;;  %v6215_v51 = vadd.f32 %v6214_v4, %v6213_v45 }
0x17e8   :  { %v6044_v13 = vmul.f32 %v11929_v52, %v6028_v12  ;;  %9178 = vrsqrt.f32 %v6004_v9  ;;  %8686 = vmatprep.subr.bf16.mxu1 %v12999_v46 }
0x17e9   :  { %v9169_v63 = vpop.eup %9168  ;;  %v6045_v24 = vmul.f32 %v11929_v52, %v6029_v26 }
0x17ea   :  { %v9171_v40 = vpop.eup %9170  ;;  %v12277_v27 = vadd.f32 %v11937_v56, %v6044_v13  ;;  %v6033_v16 = vmul.f32 %v9169_v63, %v11880_v28  ;;  %v13187_v28 = vmov 0.0|0.0   ;;  %v12333_v18 = vpop.permute.xlu0 %6161 }
0x17eb   :  { %v12281_v5 = vadd.f32 %v11937_v56, %v6045_v24  ;;  %v6032_v14 = vmul.f32 %v9171_v40, %v11885_v55  ;;  %8687 = vmatpush3.bf16.msra.mxu1 %v10433_v25 }
0x17ec   :  { %v6076_v21 = vmax.f32 %v12277_v27, 0.0  ;;  %v6049_v42 = vmul.f32 %v11929_v52, %v6033_v16  ;;  %8921 = vmatprep.subr.bf16.mxu1 %v13187_v28  ;;  %v6233_v16 = vadd.f32 %v6232_v58, %v6231_v41  ;;  %v6216_v41 = vrot.slane %v6215_v51, 2 }
0x17ed   :  { %v9173_v19 = vpop.eup %9172  ;;  %v12901_v0 = vmax.f32 %v12281_v5, 0.0  ;;  %v6048_v55 = vmul.f32 %v11929_v52, %v6032_v14 }
0x17ee   :  { %v9175_v47 = vpop.eup %9174  ;;  %v6183_v44 = vmul.f32 %v13188_v17, %v6076_v21  ;;  %v12302_v3 = vadd.f32 %v11937_v56, %v6049_v42  ;;  %8689 = vmatmul.mubr.msk.bf16.vlgmr.msra.gmra.mrb[92].mxu1 %vm504_vm3, %v5195_v59  ;;  %v6035_v11 = vmul.f32 %v9173_v19, %v11890_v60  ;;  %v13190_v42 = vld [vmem:[#allocation81_spill] sm:$0xff]  ;;  %v12336_v19 = vpop.permute.xlu1 %6157 }
0x17ef   :  { %v6184_v61 = vmul.f32 %v13189_v1, %v12901_v0  ;;  %v6034_v9 = vmul.f32 %v9175_v47, %v11896_v30  ;;  %v12311_v6 = vadd.f32 %v11937_v56, %v6048_v55  ;;  %8923 = vmatpush3.bf16.msra.mxu1 %v10420_v49  ;;  %8708 = vmatprep.mubr.msk.f32.mxu1 %vm9496_vm0, %v12999_v46 }
0x17f0   :  { %v6220_v62 = vsel %vm504_vm3, %v6183_v44, 0.0  ;;  %v12899_v60 = vmax.f32 %v12302_v3, 0.0  ;;  %v6051_v2 = vmul.f32 %v11929_v52, %v6035_v11  ;;  %8924 = vmatprep.subr.bf16.mxu1 %v13187_v28  ;;  %v13195_v27 = vmax.f32 %v12302_v3, 0.0  ;;  %v13198_v3 = vld [vmem:[#allocation94_spill] sm:$0xff] }
0x17f1   :  { %v9177_v12 = vpop.eup %9176  ;;  %v6221_v30 = vsel %vm504_vm3, %v6184_v61, 0.0  ;;  %v6050_v26 = vmul.f32 %v11929_v52, %v6034_v9  ;;  %v12900_v20 = vmax.f32 %v12311_v6, 0.0 }
0x17f2   :  { %v9179_v57 = vpop.eup %9178  ;;  %v6222_v13 = vadd.f32 %v6221_v30, %v6220_v62  ;;  %v6188_v63 = vmul.f32 %v12295_v38, %v12899_v60  ;;  %v6067_v24 = vadd.f32 %v11937_v56, %v6051_v2  ;;  %v6037_v40 = vmul.f32 %v9177_v12, %v11905_v7 }
0x17f3   :  { %v6066_v14 = vadd.f32 %v11937_v56, %v6050_v26  ;;  %v6187_v45 = vmul.f32 %v12196_v39, %v12900_v20  ;;  %v6036_v48 = vmul.f32 %v9179_v57, %v13190_v42  ;;  %8926 = vmatpush3.bf16.msra.mxu1 %v10433_v25  ;;  %v6208_v26 = vadd.f32 %v6207_v34, %v6206_v37  ;;  %v12356_v42 = vpop.permute.xlu0 %6172 }
0x17f4   :  { %v6223_v59 = vrot.slane %v6222_v13, 4  ;;  %v6239_v4 = vsel %vm504_vm3, %v6188_v63, 0.0  ;;  %v6083_v55 = vmax.f32 %v6067_v24, 0.0  ;;  %v6053_v7 = vmul.f32 %v11929_v52, %v6037_v40  ;;  %8719 = vmatprep.subr.bf16.mxu1 %v12999_v46 }
0x17f5   :  { %v6082_v47 = vmax.f32 %v6066_v14, 0.0  ;;  %v6238_v44 = vsel %vm504_vm3, %v6187_v45, 0.0  ;;  %v6052_v11 = vmul.f32 %v11929_v52, %v6036_v48  ;;  %v6199_v40 = vadd.f32 %v6198_v33, %v12274_v35  ;;  %v12359_v48 = vpop.permute.xlu1 %6168 }
0x17f6   :  { %v6240_v58 = vadd.f32 %v6239_v4, %v6238_v44  ;;  %v6190_v61 = vmul.f32 %v12333_v18, %v6083_v55  ;;  %v12345_v9 = vadd.f32 %v11937_v56, %v6053_v7  ;;  %v6224_v62 = vadd.f32 %v6223_v59, %v6222_v13  ;;  %v13191_v4 = vld [vmem:[#allocation96_spill] sm:$0xff] }
0x17f7   :  { %v6189_v2 = vmul.f32 %v12336_v19, %v6082_v47  ;;  %v12349_v12 = vadd.f32 %v11937_v56, %v6052_v11  ;;  %v6359_v30 = vpack.c.bf16 %v6083_v55, %v6082_v47  ;;  %v6217_v14 = vadd.f32 %v6216_v41, %v6215_v51 }
0x17f8   :  { %v6241_v57 = vrot.slane %v6240_v58, 4  ;;  %v6248_v63 = vsel %vm504_vm3, %v6190_v61, 0.0  ;;  %v12897_v24 = vmax.f32 %v12345_v9, 0.0  ;;  %v6225_v52 = vrot.slane %v6224_v62, 2 }
0x17f9   :  { %v6247_v45 = vsel %vm504_vm3, %v6189_v2, 0.0  ;;  %v12898_v13 = vmax.f32 %v12349_v12, 0.0  ;;  %8764 = vmatmul.mubr.msk.bf16.vlgmr.msra.gmra.mrb[108].mxu0 %vm504_vm3, %v6359_v30  ;;  %v6234_v35 = vrot.slane %v6233_v16, 2  ;;  %v6209_v41 = vrot.slane %v6208_v26, 1  ;;  %v13192_v30 = vld [vmem:[#allocation103_spill] sm:$0xff] }
0x17fa   :  { %v6242_v56 = vadd.f32 %v6241_v57, %v6240_v58  ;;  %v6249_v37 = vadd.f32 %v6248_v63, %v6247_v45  ;;  %v6192_v34 = vmul.f32 %v12356_v42, %v12897_v24  ;;  %v6226_v59 = vadd.f32 %v6225_v52, %v6224_v62  ;;  %8776 = vmatpush3.bf16.msra.mxu0 %v13191_v4 }
0x17fb   :  { %v6191_v33 = vmul.f32 %v12359_v48, %v12898_v13  ;;  %8777 = vmatprep.subr.bf16.mxu0 %v12999_v46  ;;  %8779 = vmatprep.mubr.msk.bf16.mxu0 %vm9496_vm0, %v12999_v46  ;;  %v6200_v47 = vrot.slane %v6199_v40, 1  ;;  %v6218_v11 = vrot.slane %v6217_v14, 1  ;;  %v6235_v57 = vadd.f32 %v6234_v35, %v6233_v16 }
0x17fc   :  { %v6243_v51 = vrot.slane %v6242_v56, 2  ;;  %v6250_v55 = vrot.slane %v6249_v37, 4  ;;  %v6257_v7 = vsel %vm504_vm3, %v6192_v34, 0.0  ;;  %v6227_v2 = vrot.slane %v6226_v59, 1 }
0x17fd   :  { %v6256_v44 = vsel %vm504_vm3, %v6191_v33, 0.0  ;;  %v6210_v45 = vadd.f32 %v6209_v41, %v6208_v26  ;;  %v6201_v4 = vadd.f32 %v6200_v47, %v6199_v40  ;;  %v6219_v24 = vadd.f32 %v6218_v11, %v6217_v14 }
0x17fe   :  { %v6244_v58 = vadd.f32 %v6243_v51, %v6242_v56  ;;  %v6251_v61 = vadd.f32 %v6250_v55, %v6249_v37  ;;  %v6258_v62 = vadd.f32 %v6257_v7, %v6256_v44  ;;  %8778 = vmatpush3.bf16.msra.mxu0 %v13192_v30  ;;  %v6228_v20 = vadd.f32 %v6227_v2, %v6226_v59 }
0x17ff   :  { %8791 = vmatprep.subr.bf16.mxu0 %v12999_v46  ;;  %v6236_v33 = vrot.slane %v6235_v57, 1  ;;  %v6274_v37 = vsel %vm1818_vm1, %v6210_v45, %v6201_v4 }
0x1800   :  { %v6252_v63 = vrot.slane %v6251_v61, 2  ;;  %v6259_v52 = vrot.slane %v6258_v62, 4  ;;  %v6245_v34 = vrot.slane %v6244_v58, 1  ;;  %v6275_v51 = vsel %vm1820_vm7, %v6219_v24, %v6274_v37 }
0x1801   :  { %v6276_v35 = vsel %vm1822_vm8, %v6228_v20, %v6275_v51  ;;  %v6237_v7 = vadd.f32 %v6236_v33, %v6235_v57 }
0x1802   :  { %v6253_v13 = vadd.f32 %v6252_v63, %v6251_v61  ;;  %v6260_v60 = vadd.f32 %v6259_v52, %v6258_v62  ;;  %v6246_v55 = vadd.f32 %v6245_v34, %v6244_v58  ;;  %v13204_v62 = vld [vmem:[#allocation90_spill] sm:$0xff] }
0x1803   :  { %v6277_v40 = vsel %vm1824_vm9, %v6237_v7, %v6276_v35  ;;  %vm5552_vm15 = vcmp.gt.f32.partialorder %v13204_v62, 0.0 }
0x1804   :  { %v6254_v0 = vrot.slane %v6253_v13, 1  ;;  %v6261_v56 = vrot.slane %v6260_v60, 2  ;;  %v6278_v41 = vsel %vm1826_vm10, %v6246_v55, %v6277_v40 }
0x1806   :  { %v6262_v16 = vadd.f32 %v6261_v56, %v6260_v60  ;;  %v6255_v44 = vadd.f32 %v6254_v0, %v6253_v13  ;;  %v13193_v0 = vmax.f32 %v12281_v5, 0.0  ;;  %v13196_v5 = vmax.f32 %v12349_v12, 0.0  ;;  %v13202_v12 = vld [vmem:[#allocation109_spill] sm:$0xff] }
0x1807   :  { %v13203_v13 = vld [vmem:[#allocation93_spill] sm:$0xff] }
0x1808   :  { %v6263_v26 = vrot.slane %v6262_v16, 1  ;;  %v6279_v59 = vsel %vm1828_vm11, %v6255_v44, %v6278_v41  ;;  %v6356_v60 = vpack.c.bf16 %v13193_v0, %v6076_v21  ;;  %v13197_v21 = vmax.f32 %v12345_v9, 0.0  ;;  %v13201_v9 = vld [vmem:[#allocation111_spill] sm:$0xff] }
0x1809   :  { %vm5551_vm6 = vcmp.gt.f32.partialorder %v13203_v13, 0.0  ;;  %v12470_v13 = vld [vmem:[%s13059_s26] ss:$0 sm:$0xff] }
0x180a   :  { %v6264_v14 = vadd.f32 %v6263_v26, %v6262_v16 }
0x180c   :  { %v6280_v47 = vsel %vm1830_vm12, %v6264_v14, %v6279_v59 }
0x180d   :  { %8709 = vmatmul.mubr.msk.f32.vlgmr.msra.gmra.mrb[78].mxu1 %vm504_vm3, %v6280_v47 }
0x180e   :  { %8720 = vmatpush3.bf16.msra.mxu1 %v10420_v49  ;;  %8723 = vmatprep.mubr.msk.bf16.mxu1 %vm9496_vm0, %v12999_v46 }
0x180f   :  { %8721 = vmatprep.subr.bf16.mxu1 %v12999_v46 }
0x1812   :  { %8722 = vmatpush3.bf16.msra.mxu1 %v10433_v25 }
0x1813   :  { %8735 = vmatprep.subr.bf16.mxu1 %v12999_v46 }
0x1815   :  { %8724 = vmatmul.mubr.msk.bf16.vlgmr.msra.gmra.mrb[96].mxu1 %vm504_vm3, %v12172_v23  ;;  %v13194_v23 = vmax.f32 %v12311_v6, 0.0  ;;  %v6360_v6 = vpack.c.bf16 %v13197_v21, %v13196_v5 }
0x1816   :  { %8736 = vmatpush3.bf16.msra.mxu1 %v10420_v49  ;;  %8739 = vmatprep.mubr.msk.bf16.mxu1 %vm9496_vm0, %v12999_v46 }
0x1817   :  { %8737 = vmatprep.subr.bf16.mxu1 %v12999_v46  ;;  %v6358_v20 = vpack.c.bf16 %v13195_v27, %v13194_v23 }
0x181a   :  { %8738 = vmatpush3.bf16.msra.mxu1 %v10433_v25 }
0x181b   :  { %8751 = vmatprep.subr.bf16.mxu1 %v12999_v46 }
0x181d   :  { %8740 = vmatmul.mubr.msk.bf16.vlgmr.msra.gmra.mrb[100].mxu1 %vm504_vm3, %v6356_v60 }
0x181e   :  { %8752 = vmatpush3.bf16.msra.mxu1 %v10420_v49  ;;  %8755 = vmatprep.mubr.msk.bf16.mxu1 %vm9496_vm0, %v12999_v46 }
0x181f   :  { %8753 = vmatprep.subr.bf16.mxu1 %v12999_v46 }
0x1822   :  { %8754 = vmatpush3.bf16.msra.mxu1 %v10433_v25 }
0x1823   :  { %8767 = vmatprep.subr.bf16.mxu1 %v12999_v46 }
0x1825   :  { %8756 = vmatmul.mubr.msk.bf16.vlgmr.msra.gmra.mrb[104].mxu1 %vm504_vm3, %v6358_v20 }
0x1826   :  { %8768 = vmatpush3.bf16.msra.mxu1 %v10420_v49  ;;  %8771 = vmatprep.mubr.msk.bf16.mxu1 %vm9496_vm0, %v12999_v46  ;;  %v13199_v49 = vld [vmem:[#allocation101_spill] sm:$0xff] }
0x1827   :  { %8769 = vmatprep.subr.bf16.mxu1 %v12999_v46 }
0x182a   :  { %8770 = vmatpush3.bf16.msra.mxu1 %v10433_v25  ;;  %v13200_v25 = vld [vmem:[#allocation91_spill] sm:$0xff] }
0x182b   :  { %8783 = vmatprep.subr.bf16.mxu1 %v12999_v46 }
0x182d   :  { %8772 = vmatmul.mubr.msk.bf16.vlgmr.msra.gmra.mrb[108].mxu1 %vm504_vm3, %v6360_v6 }
0x182e   :  { %8784 = vmatpush3.bf16.msra.mxu1 %v13198_v3  ;;  %8787 = vmatprep.mubr.msk.bf16.mxu1 %vm9496_vm0, %v12999_v46 }
0x182f   :  { %8785 = vmatprep.subr.bf16.mxu1 %v12999_v46 }
0x1832   :  { %8786 = vmatpush3.bf16.msra.mxu1 %v13199_v49 }
0x1833   :  { %8799 = vmatprep.subr.bf16.mxu1 %v12999_v46 }
0x1835   :  { %8788 = vmatmul.mubr.msk.bf16.vlgmr.msra.gmra.mrb[112].mxu1 %vm504_vm3, %v13200_v25 }
0x1836   :  { %8800 = vmatpush3.bf16.msra.mxu1 %v13201_v9  ;;  %8803 = vmatprep.mubr.msk.bf16.mxu1 %vm9496_vm0, %v12999_v46 }
0x1837   :  { %8801 = vmatprep.subr.bf16.mxu1 %v12999_v46 }
0x183a   :  { %8802 = vmatpush3.bf16.msra.mxu1 %v13202_v12  ;;  %v12466_v12 = vpop.xlane.xlu1 %5011 }
0x183b   :  { %8815 = vmatprep.subr.bf16.mxu1 %v12999_v46 }
0x1866   :  { %v5278_v24 = vpop.f32.mrb[80].mxu0 }
0x1867   :  { %v5599_v11 = vsel %vm5551_vm6, %v5278_v24, -inf  ;;  %v8650_v58 = vpop.f32.mrb[81].mxu0  ;;  %vm5560_vm6 = vcmp.gt.f32.partialorder %v13161_v32, 0.0 }
0x1868   :  { %v5281_v61 = vpop.f32.mrb[82].mxu0  ;;  %v5622_v57 = vsel %vm504_vm3, %v5599_v11, -inf }
0x1869   :  { %v5600_v2 = vsel %vm5552_vm15, %v5281_v61, -inf  ;;  %v8651_v30 = vpop.f32.mrb[83].mxu0  ;;  %vm5563_vm15 = vcmp.gt.f32.partialorder %v13167_v22, 0.0 }
0x186a   :  { %v5623_v63 = vsel %vm504_vm3, %v5600_v2, -inf }
0x186b   :  { %v5624_v52 = vmax.f32 %v5622_v57, %v5623_v63 }
0x186d   :  { %v5625_v11 = vrot.slane %v5624_v52, 4 }
0x1876   :  { %v5366_v45 = vpop.f32.mrb[84].mxu0 }
0x1877   :  { %v5603_v4 = vsel %vm5555_vm2, %v5366_v45, -inf  ;;  %v8666_v34 = vpop.f32.mrb[85].mxu0  ;;  %vm5564_vm2 = vcmp.gt.f32.partialorder %v13165_v8, 0.0 }
0x1878   :  { %v5369_v33 = vpop.f32.mrb[86].mxu0  ;;  %v5640_v51 = vsel %vm504_vm3, %v5603_v4, -inf  ;;  %v5626_v4 = vmax.f32 %v5624_v52, %v5625_v11 }
0x1879   :  { %v5604_v56 = vsel %vm5556_vm14, %v5369_v33, -inf  ;;  %v8667_v37 = vpop.f32.mrb[87].mxu0  ;;  %vm6713_vm14 = vcmp.gt.f32.partialorder %v13175_v53, 0.0  ;;  %v5101_v53 = vmul.f32 %v12470_v13, %v12466_v12 }
0x187a   :  { %v5641_v55 = vsel %vm504_vm3, %v5604_v56, -inf  ;;  %v5627_v56 = vrot.slane %v5626_v4, 2 }
0x187b   :  { %v12446_v16 = vmax.f32 %v5640_v51, %v5641_v55  ;;  %v13205_v55 = vld [vmem:[#allocation92_spill] sm:$0xff] }
0x187e   :  { %v5454_v35 = vpop.f32.mrb[88].mxu0 }
0x187f   :  { %v5607_v7 = vsel %vm5559_vm13, %v5454_v35, -inf  ;;  %v8682_v44 = vpop.f32.mrb[89].mxu0  ;;  %vm6714_vm13 = vcmp.gt.f32.partialorder %v13179_v50, 0.0 }
0x1880   :  { %v5457_v26 = vpop.f32.mrb[90].mxu0  ;;  %v5658_v54 = vsel %vm504_vm3, %v5607_v7, -inf }
0x1881   :  { %v5608_v29 = vsel %vm5560_vm6, %v5457_v26, -inf  ;;  %v8683_v40 = vpop.f32.mrb[91].mxu0  ;;  %vm6717_vm6 = vcmp.gt.f32.partialorder %v13180_v10, 0.0 }
0x1882   :  { %v5659_v14 = vsel %vm504_vm3, %v5608_v29, -inf  ;;  %v5643_v29 = vrot.slane %v12446_v16, 4 }
0x1883   :  { %v12452_v41 = vmax.f32 %v5658_v54, %v5659_v14  ;;  %v13206_v14 = vld [vmem:[#allocation95_spill] sm:$0xff] }
0x188f   :  { %v5542_v59 = vpop.f32.mrb[92].mxu0 }
0x1890   :  { %v5611_v47 = vsel %vm5563_vm15, %v5542_v59, -inf  ;;  %v8698_v0 = vpop.f32.mrb[93].mxu0  ;;  %vm6718_vm15 = vcmp.gt.f32.partialorder %v13181_v43, 0.0  ;;  %v5628_v59 = vmax.f32 %v5626_v4, %v5627_v56  ;;  %v13209_v56 = vld [vmem:[#allocation65_spill] sm:$0xff] }
0x1891   :  { %v5545_v60 = vpop.f32.mrb[94].mxu0  ;;  %v5676_v32 = vsel %vm504_vm3, %v5611_v47, -inf }
0x1892   :  { %v5612_v15 = vsel %vm5564_vm2, %v5545_v60, -inf  ;;  %v8699_v23 = vpop.f32.mrb[95].mxu0  ;;  %vm6721_vm2 = vcmp.gt.f32.partialorder %v13182_v31, 0.0 }
0x1893   :  { %v5677_v27 = vsel %vm504_vm3, %v5612_v15, -inf }
0x1894   :  { %v12458_v20 = vmax.f32 %v5676_v32, %v5677_v27  ;;  %v5644_v32 = vmax.f32 %v12446_v16, %v5643_v29  ;;  %v5629_v27 = vrot.slane %v5628_v59, 1 }
0x1896   :  { %v5630_v11 = vmax.f32 %v5628_v59, %v5629_v27 }
0x1897   :  { %v6398_v5 = vpop.f32.mrb[96].mxu0 }
0x1898   :  { %v6761_v21 = vsel %vm6713_vm14, %v6398_v5, -inf  ;;  %v8717_v6 = vpop.f32.mrb[97].mxu0  ;;  %vm5549_vm14 = vcmp.gt.f32.partialorder %v13205_v55, 0.0 }
0x1899   :  { %v6401_v22 = vpop.f32.mrb[98].mxu0  ;;  %v6777_v8 = vsel %vm504_vm3, %v6761_v21, -inf  ;;  %v13207_v6 = vld [vmem:[#allocation106_spill] sm:$0xff] }
0x189a   :  { %v6762_v3 = vsel %vm6714_vm13, %v6401_v22, -inf  ;;  %v8718_v49 = vpop.f32.mrb[99].mxu0  ;;  %vm6722_vm13 = vcmp.gt.f32.partialorder %v12202_v36, 0.0 }
0x189b   :  { %v6778_v25 = vsel %vm504_vm3, %v6762_v3, -inf }
0x189c   :  { %v12464_v9 = vmax.f32 %v6777_v8, %v6778_v25  ;;  %v5645_v8 = vrot.slane %v5644_v32, 2  ;;  %v5661_v25 = vrot.slane %v12452_v41, 4 }
0x189f   :  { %v6486_v24 = vpop.f32.mrb[100].mxu0  ;;  %v5185_v61 = vpop.f32.mrb[76].mxu1 }
0x18a0   :  { %v6765_v50 = vsel %vm6717_vm6, %v6486_v24, -inf  ;;  %v8733_v58 = vpop.f32.mrb[101].mxu0  ;;  %v5186_v2 = vadd.f32 %v5185_v61, %v5101_v53  ;;  %v8635_v30 = vpop.f32.mrb[77].mxu1  ;;  %vm5550_vm6 = vcmp.gt.f32.partialorder %v13206_v14, 0.0  ;;  %v13208_v53 = vld [vmem:[#allocation99_spill] sm:$0xff] }
0x18a1   :  { %v6489_v62 = vpop.f32.mrb[102].mxu0  ;;  %v6795_v45 = vsel %vm504_vm3, %v6765_v50, -inf }
0x18a2   :  { %v6766_v57 = vsel %vm6718_vm15, %v6489_v62, -inf  ;;  %v8734_v63 = vpop.f32.mrb[103].mxu0  ;;  %5721 = vst.msk [vmem:[#allocation5] sm:$0xff] %vm504_vm3, %v5186_v2  ;;  %vm5553_vm15 = vcmp.gt.f32.partialorder %v13207_v6, 0.0  ;;  %v13211_v6 = vld [vmem:[#allocation63_spill] sm:$0xff] }
0x18a3   :  { %v6796_v10 = vsel %vm504_vm3, %v6766_v57, -inf  ;;  %v5646_v57 = vmax.f32 %v5644_v32, %v5645_v8  ;;  %v5662_v63 = vmax.f32 %v12452_v41, %v5661_v25 }
0x18a4   :  { %v12478_v34 = vmax.f32 %v6795_v45, %v6796_v10  ;;  %v5686_v45 = vadd.f32 %v12470_v13, %v5630_v11 }
0x18a6   :  { %v5704_v29 = vrot.slane %v5686_v45, 7 }
0x18a7   :  { %v6574_v33 = vpop.f32.mrb[104].mxu0 }
0x18a8   :  { %v6769_v37 = vsel %vm6721_vm2, %v6574_v33, -inf  ;;  %v8749_v51 = vpop.f32.mrb[105].mxu0  ;;  %vm5554_vm2 = vcmp.gt.f32.partialorder %v13208_v53, 0.0 }
0x18a9   :  { %v5234_v43 = vpop.f32.mrb[80].mxu1  ;;  %v6577_v35 = vpop.f32.mrb[106].mxu0  ;;  %v6813_v40 = vsel %vm504_vm3, %v6769_v37, -inf }
0x18aa   :  { %v5597_v7 = vsel %vm5549_vm14, %v5234_v43, -inf  ;;  %v8642_v44 = vpop.f32.mrb[81].mxu1  ;;  %v6770_v26 = vsel %vm6722_vm13, %v6577_v35, -inf  ;;  %v8750_v52 = vpop.f32.mrb[107].mxu0  ;;  %vm5557_vm14 = vcmp.gt.f32.partialorder %v13209_v56, 0.0  ;;  %v5647_v35 = vrot.slane %v5646_v57, 1 }
0x18ab   :  { %v5237_v54 = vpop.f32.mrb[82].mxu1  ;;  %v6814_v31 = vsel %vm504_vm3, %v6770_v26, -inf  ;;  %v5613_v36 = vsel %vm504_vm3, %v5597_v7, -inf  ;;  %v5663_v7 = vrot.slane %v5662_v63, 2  ;;  %v5679_v44 = vrot.slane %v12458_v20, 4  ;;  %v13210_v52 = vld [vmem:[#allocation68_spill] sm:$0xff] }
0x18ac   :  { %v5598_v47 = vsel %vm5550_vm6, %v5237_v54, -inf  ;;  %v8643_v0 = vpop.f32.mrb[83].mxu1  ;;  %v12487_v60 = vmax.f32 %v6813_v40, %v6814_v31  ;;  %vm5558_vm13 = vcmp.gt.f32.partialorder %v13210_v52, 0.0  ;;  %vm5561_vm6 = vcmp.gt.f32.partialorder %v13211_v6, 0.0 }
0x18ad   :  { %v5614_v15 = vsel %vm504_vm3, %v5598_v47, -inf  ;;  %v5680_v32 = vmax.f32 %v12458_v20, %v5679_v44 }
0x18ae   :  { %v5615_v23 = vmax.f32 %v5613_v36, %v5614_v15  ;;  %v5648_v15 = vmax.f32 %v5646_v57, %v5647_v35 }
0x18af   :  { %v5681_v53 = vrot.slane %v5680_v32, 2 }
0x18b0   :  { %v5616_v5 = vrot.slane %v5615_v23, 4  ;;  %v5688_v25 = vadd.f32 %v12470_v13, %v5648_v15 }
0x18b1   :  { %v5322_v21 = vpop.f32.mrb[84].mxu1 }
0x18b2   :  { %v5617_v22 = vmax.f32 %v5615_v23, %v5616_v5  ;;  %v5601_v3 = vsel %vm5553_vm15, %v5322_v21, -inf  ;;  %v8658_v49 = vpop.f32.mrb[85].mxu1  ;;  %v5664_v23 = vmax.f32 %v5662_v63, %v5663_v7  ;;  %v5708_v45 = vrot.slane %v5688_v25, 5  ;;  %v12529_v25 = vpop.xlane.xlu0 %6175 }
0x18b3   :  { %v5325_v24 = vpop.f32.mrb[86].mxu1  ;;  %v5631_v16 = vsel %vm504_vm3, %v5601_v3, -inf }
0x18b4   :  { %v5618_v50 = vrot.slane %v5617_v22, 2  ;;  %v5602_v58 = vsel %vm5554_vm2, %v5325_v24, -inf  ;;  %v8659_v61 = vpop.f32.mrb[87].mxu1  ;;  %v5665_v24 = vrot.slane %v5664_v23, 1  ;;  %vm6725_vm2 = vcmp.gt.f32.partialorder %v12336_v19, 0.0 }
0x18b5   :  { %v5632_v62 = vsel %vm504_vm3, %v5602_v58, -inf }
0x18b6   :  { %v5619_v2 = vmax.f32 %v5617_v22, %v5618_v50  ;;  %v5633_v30 = vmax.f32 %v5631_v16, %v5632_v62  ;;  %v13212_v50 = vld [vmem:[#allocation70_spill] sm:$0xff] }
0x18b7   :  { %vm5562_vm15 = vcmp.gt.f32.partialorder %v13212_v50, 0.0 }
0x18b8   :  { %v5620_v10 = vrot.slane %v5619_v2, 1  ;;  %v5634_v4 = vrot.slane %v5633_v30, 4 }
0x18b9   :  { %v5410_v33 = vpop.f32.mrb[88].mxu1 }
0x18ba   :  { %v5621_v37 = vmax.f32 %v5619_v2, %v5620_v10  ;;  %v5635_v51 = vmax.f32 %v5633_v30, %v5634_v4  ;;  %v5605_v43 = vsel %vm5557_vm14, %v5410_v33, -inf  ;;  %v8674_v55 = vpop.f32.mrb[89].mxu1  ;;  %v5666_v10 = vmax.f32 %v5664_v23, %v5665_v24 }
0x18bb   :  { %v5413_v26 = vpop.f32.mrb[90].mxu1  ;;  %v5649_v31 = vsel %vm504_vm3, %v5605_v43, -inf  ;;  %v5682_v4 = vmax.f32 %v5680_v32, %v5681_v53  ;;  %vm6726_vm14 = vcmp.gt.f32.partialorder %v12333_v18, 0.0  ;;  %v6265_v24 = vmul.f32 %v12470_v13, %v12529_v25 }
0x18bc   :  { %v5685_v41 = vadd.f32 %v12470_v13, %v5621_v37  ;;  %v5636_v40 = vrot.slane %v5635_v51, 2  ;;  %v5606_v54 = vsel %vm5558_vm13, %v5413_v26, -inf  ;;  %v8675_v14 = vpop.f32.mrb[91].mxu1  ;;  %v5690_v35 = vadd.f32 %v12470_v13, %v5666_v10  ;;  %v13214_v10 = vld [vmem:[#allocation74_spill] sm:$0xff] }
0x18bd   :  { %v5650_v59 = vsel %vm504_vm3, %v5606_v54, -inf  ;;  %v5683_v7 = vrot.slane %v5682_v4, 1  ;;  %vm5693_vm13 = vcmp.gt.f32.partialorder %v12466_v12, 0.0 }
0x18be   :  { %v5705_v47 = vsel %vm1818_vm1, %v5704_v29, %v5685_v41  ;;  %v5637_v0 = vmax.f32 %v5635_v51, %v5636_v40  ;;  %v5651_v36 = vmax.f32 %v5649_v31, %v5650_v59  ;;  %v5712_v31 = vrot.slane %v5690_v35, 3 }
0x18bf   :  { %v5684_v59 = vmax.f32 %v5682_v4, %v5683_v7 }
0x18c0   :  { %v5638_v27 = vrot.slane %v5637_v0, 1  ;;  %v5652_v5 = vrot.slane %v5651_v36, 4 }
0x18c1   :  { %v5498_v21 = vpop.f32.mrb[92].mxu1 }
0x18c2   :  { %v5639_v22 = vmax.f32 %v5637_v0, %v5638_v27  ;;  %v5653_v3 = vmax.f32 %v5651_v36, %v5652_v5  ;;  %v5609_v49 = vsel %vm5561_vm6, %v5498_v21, -inf  ;;  %v8690_v8 = vpop.f32.mrb[93].mxu1  ;;  %v5692_v21 = vadd.f32 %v12470_v13, %v5684_v59 }
0x18c3   :  { %v5501_v11 = vpop.f32.mrb[94].mxu1  ;;  %v5667_v62 = vsel %vm504_vm3, %v5609_v49, -inf }
0x18c4   :  { %v5687_v58 = vadd.f32 %v12470_v13, %v5639_v22  ;;  %v5654_v61 = vrot.slane %v5653_v3, 2  ;;  %v5610_v20 = vsel %vm5562_vm15, %v5501_v11, -inf  ;;  %v8691_v16 = vpop.f32.mrb[95].mxu1  ;;  %v5716_v22 = vrot.slane %v5692_v21, 1 }
0x18c5   :  { %v5668_v2 = vsel %vm504_vm3, %v5610_v20, -inf  ;;  %v13213_v16 = vld [vmem:[#allocation79_spill] sm:$0xff]  ;;  %vm6716_vm15 = vcmp.gt.f32.partialorder %v13214_v10, 0.0 }
0x18c6   :  { %v5706_v30 = vrot.slane %v5687_v58, 6  ;;  %v5655_v57 = vmax.f32 %v5653_v3, %v5654_v61  ;;  %v5669_v63 = vmax.f32 %v5667_v62, %v5668_v2  ;;  %v6798_v58 = vrot.slane %v12478_v34, 4 }
0x18c7   :  { %v6780_v61 = vrot.slane %v12464_v9, 4  ;;  %vm6715_vm6 = vcmp.gt.f32.partialorder %v13213_v16, 0.0 }
0x18c8   :  { %v5707_v33 = vsel %vm1820_vm7, %v5706_v30, %v5705_v47  ;;  %v5656_v56 = vrot.slane %v5655_v57, 1  ;;  %v5670_v37 = vrot.slane %v5669_v63, 4  ;;  %v6799_v12 = vmax.f32 %v12478_v34, %v6798_v58 }
0x18c9   :  { %v5709_v51 = vsel %vm1822_vm8, %v5708_v45, %v5707_v33  ;;  %v6781_v62 = vmax.f32 %v12464_v9, %v6780_v61 }
0x18ca   :  { %v5657_v43 = vmax.f32 %v5655_v57, %v5656_v56  ;;  %v5671_v55 = vmax.f32 %v5669_v63, %v5670_v37  ;;  %v6800_v57 = vrot.slane %v6799_v12, 2  ;;  %v6816_v63 = vrot.slane %v12487_v60, 4 }
0x18cb   :  { %v6782_v34 = vrot.slane %v6781_v62, 2 }
0x18cc   :  { %v5689_v44 = vadd.f32 %v12470_v13, %v5657_v43  ;;  %v5672_v26 = vrot.slane %v5671_v55, 2  ;;  %v6662_v52 = vpop.f32.mrb[108].mxu0  ;;  %v6801_v43 = vmax.f32 %v6799_v12, %v6800_v57 }
0x18cd   :  { %v6773_v29 = vsel %vm6725_vm2, %v6662_v52, -inf  ;;  %v8765_v41 = vpop.f32.mrb[109].mxu0  ;;  %vm6719_vm2 = vcmp.gt.f32.partialorder %v13188_v17, 0.0  ;;  %v6783_v7 = vmax.f32 %v6781_v62, %v6782_v34 }
0x18ce   :  { %v5710_v40 = vrot.slane %v5689_v44, 4  ;;  %v5673_v54 = vmax.f32 %v5671_v55, %v5672_v26  ;;  %v6665_v14 = vpop.f32.mrb[110].mxu0  ;;  %v6831_v23 = vsel %vm504_vm3, %v6773_v29, -inf  ;;  %v6817_v55 = vmax.f32 %v12487_v60, %v6816_v63 }
0x18cf   :  { %v6774_v47 = vsel %vm6726_vm14, %v6665_v14, -inf  ;;  %v8766_v0 = vpop.f32.mrb[111].mxu0  ;;  %v6802_v29 = vrot.slane %v6801_v43, 1  ;;  %vm6720_vm14 = vcmp.gt.f32.partialorder %v13189_v1, 0.0 }
0x18d0   :  { %v5711_v36 = vsel %vm1824_vm9, %v5710_v40, %v5709_v51  ;;  %v5674_v15 = vrot.slane %v5673_v54, 1  ;;  %v6832_v32 = vsel %vm504_vm3, %v6774_v47, -inf  ;;  %v6818_v41 = vrot.slane %v6817_v55, 2 }
0x18d1   :  { %v5713_v19 = vsel %vm1826_vm10, %v5712_v31, %v5711_v36  ;;  %v6833_v27 = vmax.f32 %v6831_v23, %v6832_v32  ;;  %v6784_v0 = vrot.slane %v6783_v7, 1 }
0x18d2   :  { %v5675_v5 = vmax.f32 %v5673_v54, %v5674_v15  ;;  %v6803_v15 = vmax.f32 %v6801_v43, %v6802_v29  ;;  %v6819_v23 = vmax.f32 %v6817_v55, %v6818_v41 }
0x18d3   :  { %v6834_v40 = vrot.slane %v6833_v27, 4 }
0x18d4   :  { %v5691_v6 = vadd.f32 %v12470_v13, %v5675_v5 }
0x18d5   :  { %v6835_v32 = vmax.f32 %v6833_v27, %v6834_v40 }
0x18d6   :  { %v5714_v18 = vrot.slane %v5691_v6, 2  ;;  %v6785_v6 = vmax.f32 %v6783_v7, %v6784_v0 }
0x18d8   :  { %v5715_v3 = vsel %vm1828_vm11, %v5714_v18, %v5713_v19  ;;  %v6849_v12 = vadd.f32 %v12470_v13, %v6785_v6 }
0x18d9   :  { %v5717_v49 = vsel %vm1830_vm12, %v5716_v22, %v5715_v3 }
0x18da   :  { %v5719_v8 = vsel %vm5693_vm13, %v5717_v49, 0.0  ;;  %vm6723_vm13 = vcmp.gt.f32.partialorder %v12196_v39, 0.0  ;;  %v6851_v49 = vadd.f32 %v12470_v13, %v6803_v15 }
0x18db   :  { %5720 = vst.msk [vmem:[#allocation4] sm:$0xff] %vm504_vm3, %v5719_v8  ;;  %v6820_v8 = vrot.slane %v6819_v23, 1 }
0x18e0   :  { %v6349_v53 = vpop.f32.mrb[78].mxu1 }
0x18e1   :  { %v6350_v11 = vadd.f32 %v6349_v53, %v6265_v24  ;;  %v8710_v50 = vpop.f32.mrb[79].mxu1  ;;  %v6836_v24 = vrot.slane %v6835_v32, 2 }
0x18e3   :  { %6885 = vst.msk [vmem:[#allocation5 + $0x8] sm:$0xff] %vm504_vm3, %v6350_v11  ;;  %v6837_v57 = vmax.f32 %v6835_v32, %v6836_v24 }
0x18e5   :  { %v6838_v43 = vrot.slane %v6837_v57, 1 }
0x18e8   :  { %v6442_v20 = vpop.f32.mrb[96].mxu1 }
0x18e9   :  { %v6763_v2 = vsel %vm6715_vm6, %v6442_v20, -inf  ;;  %v8725_v30 = vpop.f32.mrb[97].mxu1  ;;  %vm6724_vm6 = vcmp.gt.f32.partialorder %v12295_v38, 0.0 }
0x18ea   :  { %v6445_v45 = vpop.f32.mrb[98].mxu1  ;;  %v6786_v56 = vsel %vm504_vm3, %v6763_v2, -inf  ;;  %v6870_v2 = vrot.slane %v6851_v49, 6  ;;  %v6821_v30 = vmax.f32 %v6819_v23, %v6820_v8 }
0x18eb   :  { %v6764_v4 = vsel %vm6716_vm15, %v6445_v45, -inf  ;;  %v8726_v33 = vpop.f32.mrb[99].mxu1  ;;  %vm6727_vm15 = vcmp.gt.f32.partialorder %v12359_v48, 0.0 }
0x18ec   :  { %v6787_v37 = vsel %vm504_vm3, %v6764_v4, -inf }
0x18ed   :  { %v6788_v51 = vmax.f32 %v6786_v56, %v6787_v37 }
0x18ef   :  { %v6789_v9 = vrot.slane %v6788_v51, 4 }
0x18f0   :  { %v6530_v35 = vpop.f32.mrb[100].mxu1 }
0x18f1   :  { %v6790_v44 = vmax.f32 %v6788_v51, %v6789_v9  ;;  %v6767_v26 = vsel %vm6719_vm2, %v6530_v35, -inf  ;;  %v8741_v52 = vpop.f32.mrb[101].mxu1  ;;  %v6853_v51 = vadd.f32 %v12470_v13, %v6821_v30  ;;  %vm6728_vm2 = vcmp.gt.f32.partialorder %v12356_v42, 0.0  ;;  %v13222_v30 = vld [vmem:[#allocation64_spill] sm:$0xff] }
0x18f2   :  { %v6533_v54 = vpop.f32.mrb[102].mxu1  ;;  %v6804_v47 = vsel %vm504_vm3, %v6767_v26, -inf }
0x18f3   :  { %v6791_v14 = vrot.slane %v6790_v44, 2  ;;  %v6768_v31 = vsel %vm6720_vm14, %v6533_v54, -inf  ;;  %v8742_v59 = vpop.f32.mrb[103].mxu1  ;;  %v6874_v40 = vrot.slane %v6853_v51, 4  ;;  %v6839_v54 = vmax.f32 %v6837_v57, %v6838_v43  ;;  %v9214_v51 = vld [vmem:[%s13077_s28] ss:$0 sm:$0xff] }
0x18f4   :  { %v6805_v60 = vsel %vm504_vm3, %v6768_v31, -inf }
0x18f5   :  { %v6792_v36 = vmax.f32 %v6790_v44, %v6791_v14  ;;  %v6806_v17 = vmax.f32 %v6804_v47, %v6805_v60 }
0x18f7   :  { %v6793_v19 = vrot.slane %v6792_v36, 1  ;;  %v6807_v5 = vrot.slane %v6806_v17, 4 }
0x18f8   :  { %v6618_v21 = vpop.f32.mrb[104].mxu1 }
0x18f9   :  { %v6794_v1 = vmax.f32 %v6792_v36, %v6793_v19  ;;  %v6808_v18 = vmax.f32 %v6806_v17, %v6807_v5  ;;  %v6771_v22 = vsel %vm6723_vm13, %v6618_v21, -inf  ;;  %v8757_v3 = vpop.f32.mrb[105].mxu1  ;;  %v6855_v17 = vadd.f32 %v12470_v13, %v6839_v54 }
0x18fa   :  { %v6621_v53 = vpop.f32.mrb[106].mxu1  ;;  %v6822_v61 = vsel %vm504_vm3, %v6771_v22, -inf }
0x18fb   :  { %v6850_v11 = vadd.f32 %v12470_v13, %v6794_v1  ;;  %v6809_v27 = vrot.slane %v6808_v18, 2  ;;  %v6772_v50 = vsel %vm6724_vm6, %v6621_v53, -inf  ;;  %v8758_v58 = vpop.f32.mrb[107].mxu1  ;;  %v6878_v6 = vrot.slane %v6855_v17, 2 }
0x18fc   :  { %v6823_v39 = vsel %vm504_vm3, %v6772_v50, -inf  ;;  %v13215_v58 = vld [vmem:[#allocation102_spill] sm:$0xff] }
0x18fd   :  { %v6868_v20 = vrot.slane %v6850_v11, 7  ;;  %v6810_v16 = vmax.f32 %v6808_v18, %v6809_v27  ;;  %v6824_v62 = vmax.f32 %v6822_v61, %v6823_v39  ;;  %v6886_v11 = vld [vmem:[#allocation4] sm:$0xff]  ;;  %v13216_v61 = vld [vmem:[#allocation100_spill] sm:$0xff] }
0x18ff   :  { %v6869_v63 = vsel %vm1818_vm1, %v6868_v20, %v6849_v12  ;;  %v6811_v38 = vrot.slane %v6810_v16, 1  ;;  %v6825_v45 = vrot.slane %v6824_v62, 4  ;;  %vm6857_vm1 = vcmp.gt.f32.partialorder %v12529_v25, 0.0  ;;  %v6888_v25 = vld [vmem:[#allocation5] sm:$0xff]  ;;  %v13217_v12 = vld [vmem:[#allocation98_spill] sm:$0xff] }
0x1900   :  { %v6871_v10 = vsel %vm1820_vm7, %v6870_v2, %v6869_v63  ;;  %v6706_v4 = vpop.f32.mrb[108].mxu1  ;;  %v13218_v20 = vld [vmem:[#allocation104_spill] sm:$0xff]  ;;  %v13221_v2 = vld [vmem:[#allocation113_spill] sm:$0xff] }
0x1901   :  { %v6812_v33 = vmax.f32 %v6810_v16, %v6811_v38  ;;  %v6826_v56 = vmax.f32 %v6824_v62, %v6825_v45  ;;  %v6775_v37 = vsel %vm6727_vm15, %v6706_v4, -inf  ;;  %v8773_v34 = vpop.f32.mrb[109].mxu1  ;;  %v13219_v16 = vld [vmem:[#allocation110_spill] sm:$0xff]  ;;  %v13220_v62 = vld [vmem:[#allocation107_spill] sm:$0xff] }
0x1902   :  { %v6709_v55 = vpop.f32.mrb[110].mxu1  ;;  %v6840_v26 = vsel %vm504_vm3, %v6775_v37, -inf }
0x1903   :  { %v6852_v9 = vadd.f32 %v12470_v13, %v6812_v33  ;;  %v6827_v35 = vrot.slane %v6826_v56, 2  ;;  %v6776_v7 = vsel %vm6728_vm2, %v6709_v55, -inf  ;;  %v8774_v44 = vpop.f32.mrb[111].mxu1 }
0x1904   :  { %v6841_v52 = vsel %vm504_vm3, %v6776_v7, -inf }
0x1905   :  { %v6872_v48 = vrot.slane %v6852_v9, 5  ;;  %v6828_v29 = vmax.f32 %v6826_v56, %v6827_v35  ;;  %v6842_v41 = vmax.f32 %v6840_v26, %v6841_v52 }
0x1907   :  { %v6873_v14 = vsel %vm1822_vm8, %v6872_v48, %v6871_v10  ;;  %v6829_v31 = vrot.slane %v6828_v29, 1  ;;  %v6843_v59 = vrot.slane %v6842_v41, 4 }
0x1908   :  { %v6875_v42 = vsel %vm1824_vm9, %v6874_v40, %v6873_v14  ;;  %v6969_v47 = vpop.f32.mrb[112].mxu1 }
0x1909   :  { %v6830_v60 = vmax.f32 %v6828_v29, %v6829_v31  ;;  %v6844_v0 = vmax.f32 %v6842_v41, %v6843_v59  ;;  %v8789_v36 = vpop.f32.mrb[113].mxu1 }
0x190a   :  { %v6972_v15 = vpop.f32.mrb[114].mxu1 }
0x190b   :  { %v6854_v23 = vadd.f32 %v12470_v13, %v6830_v60  ;;  %v6845_v32 = vrot.slane %v6844_v0, 2  ;;  %v8790_v19 = vpop.f32.mrb[115].mxu1 }
0x190d   :  { %v6876_v5 = vrot.slane %v6854_v23, 3  ;;  %v6846_v21 = vmax.f32 %v6844_v0, %v6845_v32 }
0x190f   :  { %v6877_v1 = vsel %vm1826_vm10, %v6876_v5, %v6875_v42  ;;  %v6847_v18 = vrot.slane %v6846_v21, 1  ;;  %vm13235_vm10 = vcmask 31744  }
0x1910   :  { %v6879_v22 = vsel %vm1828_vm11, %v6878_v6, %v6877_v1  ;;  %vm13239_vm11 = vcmask 130048  }
0x1911   :  { %v6848_v3 = vmax.f32 %v6846_v21, %v6847_v18 }
0x1913   :  { %v6856_v49 = vadd.f32 %v12470_v13, %v6848_v3  ;;  %v6889_v13 = vld [vmem:[#allocation5 + $0x8] sm:$0xff] }
0x1914   :  { %v6976_v39 = vpack.c.bf16 %v6889_v13, %v6888_v25  ;;  %v13223_v25 = vld [vmem:[#allocation108_spill] sm:$0xff] }
0x1915   :  { %v6880_v8 = vrot.slane %v6856_v49, 1  ;;  %v9215_v49 = vld [vmem:[%s13081_s2] ss:$0 sm:$0xff] }
0x1917   :  { %v6881_v24 = vsel %vm1830_vm12, %v6880_v8, %v6879_v22  ;;  %vm13241_vm12 = vmmov %vm13239_vm11 }
0x1918   :  { %v6883_v53 = vsel %vm6857_vm1, %v6881_v24, 0.0 }
0x1919   :  { %6884 = vst.msk [vmem:[#allocation4 + $0x8] sm:$0xff] %vm504_vm3, %v6883_v53 }
0x1920   :  { %v6887_v27 = vld [vmem:[#allocation4 + $0x8] sm:$0xff] }
0x1921   :  { %v6890_v50 = vpack.c.bf16 %v6887_v27, %v6886_v11  ;;  %v9216_v11 = vld [vmem:[%s13083_s4] ss:$0 sm:$0xff] }
0x1923   :  { %8780 = vmatmul.mubr.msk.bf16.vlgmr.msra.gmra.mrb[112].mxu0 %vm504_vm3, %v6890_v50 }
0x1924   :  { %8792 = vmatpush3.bf16.msra.mxu0 %v13215_v58  ;;  %8795 = vmatprep.mubr.msk.bf16.mxu0 %vm9496_vm0, %v12999_v46 }
0x1925   :  { %8793 = vmatprep.subr.bf16.mxu0 %v12999_v46 }
0x1928   :  { %8794 = vmatpush3.bf16.msra.mxu0 %v13216_v61 }
0x1929   :  { %8807 = vmatprep.subr.bf16.mxu0 %v12999_v46 }
0x192b   :  { %8796 = vmatmul.mubr.msk.bf16.vlgmr.msra.gmra.mrb[116].mxu0 %vm504_vm3, %v6976_v39 }
0x192c   :  { %8808 = vmatpush3.bf16.msra.mxu0 %v13217_v12  ;;  %8811 = vmatprep.mubr.msk.bf16.mxu0 %vm9496_vm0, %v12999_v46  ;;  %v13225_v12 = vld [vmem:[#allocation105_spill] sm:$0xff] }
0x192d   :  { %8809 = vmatprep.subr.bf16.mxu0 %v12999_v46 }
0x1930   :  { %8810 = vmatpush3.bf16.msra.mxu0 %v13218_v20  ;;  %v13226_v20 = vld [vmem:[#allocation112_spill] sm:$0xff] }
0x1931   :  { %8821 = vmatprep.subr.bf16.mxu0 %v12999_v46 }
0x1933   :  { %8812 = vmatmul.mubr.msk.bf16.vlgmr.msra.gmra.mrb[120].mxu0 %vm504_vm3, %v6890_v50 }
0x1934   :  { %8822 = vmatpush3.bf16.msra.mxu0 %v13219_v16  ;;  %8825 = vmatprep.mubr.msk.bf16.mxu0 %vm9496_vm0, %v12999_v46 }
0x1935   :  { %8823 = vmatprep.subr.bf16.mxu0 %v12999_v46 }
0x1938   :  { %8824 = vmatpush3.bf16.msra.mxu0 %v13220_v62  ;;  %v9217_v62 = vld [vmem:[%s13102_s29] ss:$0 sm:$0xff] }
0x1939   :  { %8837 = vmatprep.subr.bf16.mxu0 %v12999_v46 }
0x193b   :  { %8826 = vmatmul.mubr.msk.bf16.vlgmr.msra.gmra.mrb[124].mxu0 %vm504_vm3, %v6976_v39  ;;  %v13224_v39 = vld [vmem:[#allocation97_spill] sm:$0xff] }
0x193c   :  { %8838 = vmatpush3.bf16.msra.mxu0 %v13221_v2  ;;  %8841 = vmatprep.mubr.msk.bf16.mxu0 %vm9496_vm0, %v12999_v46 }
0x193d   :  { %8839 = vmatprep.subr.bf16.mxu0 %v12999_v46 }
0x1940   :  { %8840 = vmatpush3.bf16.msra.mxu0 %v13222_v30 }
0x1941   :  { %8853 = vmatprep.subr.bf16.mxu0 %v12999_v46 }
0x19f6   :  { %v6928_v57 = vpop.f32.mrb[112].mxu0 }
0x19f7   :  { %v6970_v63 = vadd.f32 %v6969_v47, %v6928_v57  ;;  %v8781_v38 = vpop.f32.mrb[113].mxu0 }
0x19f8   :  { %v6931_v45 = vpop.f32.mrb[114].mxu0 }
0x19f9   :  { %v6973_v10 = vadd.f32 %v6972_v15, %v6931_v45  ;;  %v8782_v4 = vpop.f32.mrb[115].mxu0  ;;  %v13227_v45 = vld [vmem:[#allocation87_spill] sm:$0xff] }
0x19fa   :  { %v13228_v4 = vld [vmem:[#allocation86_spill] sm:$0xff] }
0x19fe   :  { %v7014_v33 = vpop.f32.mrb[116].mxu0 }
0x19ff   :  { %v7021_v56 = vadd.f32 %v7014_v33, %v6970_v63  ;;  %v8797_v37 = vpop.f32.mrb[117].mxu0 }
0x1a00   :  { %v7017_v34 = vpop.f32.mrb[118].mxu0 }
0x1a01   :  { %v7023_v43 = vadd.f32 %v9214_v51, %v7021_v56  ;;  %v7022_v55 = vadd.f32 %v7017_v34, %v6973_v10  ;;  %v8798_v9 = vpop.f32.mrb[119].mxu0 }
0x1a03   :  { %v7024_v35 = vadd.f32 %v9214_v51, %v7022_v55  ;;  %v7025_v7 = vsel %vm504_vm3, %v7023_v43, 0.0 }
0x1a04   :  { %7026 = vadd.xlane.f32.xlu0 %v7025_v7 }
0x1a05   :  { %v7028_v44 = vsel %vm504_vm3, %v7024_v35, 0.0 }
0x1a06   :  { %7029 = vadd.xlane.f32.xlu1 %v7028_v44  ;;  %v7136_v26 = vpop.f32.mrb[120].mxu0  ;;  %v9218_v44 = vld [vmem:[%s13084_s7] ss:$0 sm:$0xff] }
0x1a07   :  { %v8813_v52 = vpop.f32.mrb[121].mxu0 }
0x1a08   :  { %v12604_v48 = vpop.f32.mrb[122].mxu0 }
0x1a09   :  { %v8814_v29 = vpop.f32.mrb[123].mxu0 }
0x1a0e   :  { %v7218_v41 = vpop.f32.mrb[124].mxu0 }
0x1a0f   :  { %v8827_v40 = vpop.f32.mrb[125].mxu0 }
0x1a10   :  { %v7221_v54 = vpop.f32.mrb[126].mxu0 }
0x1a11   :  { %v8828_v14 = vpop.f32.mrb[127].mxu0 }
0x1a91   :  { %v7027_v31 = vpop.xlane.xlu0 %7026 }
0x1a92   :  { %v7031_v59 = vmul.f32 0.03125, %v7027_v31 }
0x1a93   :  { %v7030_v42 = vpop.xlane.xlu1 %7029 }
0x1a94   :  { %v7033_v47 = vsub.f32 %v7023_v43, %v7031_v59  ;;  %v7032_v60 = vmul.f32 0.03125, %v7030_v42 }
0x1a96   :  { %v7034_v0 = vsub.f32 %v7024_v35, %v7032_v60  ;;  %v7035_v36 = vmul.f32 %v7033_v47, %v7033_v47 }
0x1a98   :  { %v7037_v17 = vsel %vm504_vm3, %v7035_v36, 0.0  ;;  %v7036_v15 = vmul.f32 %v7034_v0, %v7034_v0 }
0x1a99   :  { %7038 = vadd.xlane.f32.xlu0 %v7037_v17 }
0x1a9a   :  { %v7040_v23 = vsel %vm504_vm3, %v7036_v15, 0.0 }
0x1a9b   :  { %7041 = vadd.xlane.f32.xlu1 %v7040_v23 }
0x1b26   :  { %v7039_v32 = vpop.xlane.xlu0 %7038 }
0x1b27   :  { %v7043_v19 = vmul.f32 0.03125, %v7039_v32 }
0x1b28   :  { %v7042_v5 = vpop.xlane.xlu1 %7041 }
0x1b29   :  { %v7045_v21 = vadd.f32 1e-05, %v7043_v19  ;;  %v7044_v6 = vmul.f32 0.03125, %v7042_v5 }
0x1b2b   :  { %9180 = vrsqrt.f32 %v7045_v21  ;;  %v7046_v1 = vadd.f32 1e-05, %v7044_v6 }
0x1b2d   :  { %9182 = vrsqrt.f32 %v7046_v1  ;;  %v9219_v1 = vld [vmem:[%s13089_s10] ss:$0 sm:$0xff] }
0x1b35   :  { %v9181_v18 = vpop.eup %9180 }
0x1b36   :  { %v7049_v22 = vmul.f32 %v9181_v18, %v7033_v47 }
0x1b37   :  { %v9183_v3 = vpop.eup %9182 }
0x1b38   :  { %v7051_v8 = vmul.f32 %v9215_v49, %v7049_v22  ;;  %v7050_v24 = vmul.f32 %v9183_v3, %v7034_v0 }
0x1b3a   :  { %v7052_v53 = vmul.f32 %v9215_v49, %v7050_v24  ;;  %v7053_v27 = vadd.f32 %v9216_v11, %v7051_v8  ;;  %v9220_v49 = vld [vmem:[%s13091_s0] ss:$0 sm:$0xff] }
0x1b3c   :  { %v7054_v50 = vadd.f32 %v9216_v11, %v7052_v53  ;;  %v7055_v58 = vmax.f32 %v7053_v27, 0.0  ;;  %v398_v53 = vld [vmem:[%s13229_s3] sm:$0xff]  ;;  %v399_v11 = vld [vmem:[%s13229_s3 + $0x8] sm:$0xff] }
0x1b3e   :  { %v7056_v13 = vmax.f32 %v7054_v50, 0.0 }
0x1b40   :  { %v7057_v61 = vpack.c.bf16 %v7056_v13, %v7055_v58  ;;  %v7415_v58 = vpack.c.bf16 %v399_v11, %v398_v53  ;;  %v9222_v53 = vld [vmem:[%s13095_s21] ss:$0 sm:$0xff] }
0x1b42   :  { %8804 = vmatmul.mubr.msk.bf16.vlgmr.msra.gmra.mrb[116].mxu1 %vm504_vm3, %v7057_v61  ;;  %v400_v61 = vld [vmem:[%s13229_s3 + $0x10] sm:$0xff] }
0x1b43   :  { %8816 = vmatpush3.bf16.msra.mxu1 %v13223_v25  ;;  %8817 = vmatprep.mubr.msk.bf16.mxu1 %vm9496_vm0, %v12999_v46  ;;  %v401_v25 = vld [vmem:[%s13229_s3 + $0x18] sm:$0xff] }
0x1b44   :  { %8829 = vmatprep.subr.bf16.mxu1 %v12999_v46 }
0x1b4a   :  { %8818 = vmatmul.mubr.msk.bf16.vlgmr.msra.gmra.mrb[120].mxu1 %vm877_vm4, %v13224_v39  ;;  %v7416_v39 = vpack.c.bf16 %v401_v25, %v400_v61  ;;  %v405_v25 = vld [vmem:[%s13230_s14] sm:$0xff] }
0x1b4b   :  { %8830 = vmatpush3.bf16.msra.mxu1 %v13225_v12  ;;  %8833 = vmatprep.mubr.msk.bf16.mxu1 %vm9496_vm0, %v12999_v46 }
0x1b4c   :  { %8831 = vmatprep.subr.bf16.mxu1 %v12999_v46 }
0x1b4f   :  { %8832 = vmatpush3.bf16.msra.mxu1 %v13226_v20  ;;  %v9221_v20 = vld [vmem:[%s13093_s5] ss:$0 sm:$0xff] }
0x1b50   :  { %8845 = vmatprep.subr.bf16.mxu1 %v12999_v46 }
0x1c15   :  { %v7095_v16 = vpop.f32.mrb[116].mxu1 }
0x1c16   :  { %v7096_v2 = vadd.f32 %v9217_v62, %v7095_v16  ;;  %v8805_v30 = vpop.f32.mrb[117].mxu1 }
0x1c17   :  { %v7098_v57 = vpop.f32.mrb[118].mxu1 }
0x1c18   :  { %v7099_v63 = vadd.f32 %v9217_v62, %v7098_v57  ;;  %v8806_v38 = vpop.f32.mrb[119].mxu1  ;;  %v12625_v10 = vadd.f32 %v7096_v2, %v13227_v45  ;;  %v8034_v45 = vld [vmem:[#allocation9] ss:$0 sm:$0xff] }
0x1c1a   :  { %v12628_v33 = vadd.f32 %v7099_v63, %v13228_v4 }
0x1c1c   :  { %v7417_v56 = vpack.c.bf16 %v12628_v33, %v12625_v10 }
0x1c1d   :  { %v7177_v37 = vpop.f32.mrb[120].mxu1 }
0x1c1e   :  { %v7178_v34 = vadd.f32 %v7177_v37, %v7136_v26  ;;  %v8819_v51 = vpop.f32.mrb[121].mxu1 }
0x1c1f   :  { %v7180_v43 = vpop.f32.mrb[122].mxu1 }
0x1c20   :  { %v7225_v55 = vadd.f32 %v7218_v41, %v7178_v34  ;;  %v7181_v9 = vadd.f32 %v7180_v43, %v12604_v48  ;;  %v8820_v35 = vpop.f32.mrb[123].mxu1 }
0x1c22   :  { %v7226_v7 = vadd.f32 %v7221_v54, %v7181_v9  ;;  %v7227_v52 = vadd.f32 %v9218_v44, %v7225_v55 }
0x1c24   :  { %v7229_v29 = vsel %vm504_vm3, %v7227_v52, 0.0  ;;  %v7228_v40 = vadd.f32 %v9218_v44, %v7226_v7 }
0x1c25   :  { %7230 = vadd.xlane.f32.xlu0 %v7229_v29 }
0x1c26   :  { %v7232_v14 = vsel %vm504_vm3, %v7228_v40, 0.0 }
0x1c27   :  { %7233 = vadd.xlane.f32.xlu1 %v7232_v14 }
0x1cb2   :  { %v7231_v31 = vpop.xlane.xlu0 %7230 }
0x1cb3   :  { %v7235_v59 = vmul.f32 0.03125, %v7231_v31 }
0x1cb4   :  { %v7234_v42 = vpop.xlane.xlu1 %7233 }
0x1cb5   :  { %v7237_v26 = vsub.f32 %v7227_v52, %v7235_v59  ;;  %v7236_v47 = vmul.f32 0.03125, %v7234_v42 }
0x1cb7   :  { %v7238_v60 = vsub.f32 %v7228_v40, %v7236_v47  ;;  %v7239_v41 = vmul.f32 %v7237_v26, %v7237_v26 }
0x1cb9   :  { %v7241_v48 = vsel %vm504_vm3, %v7239_v41, 0.0  ;;  %v7240_v54 = vmul.f32 %v7238_v60, %v7238_v60 }
0x1cba   :  { %7242 = vadd.xlane.f32.xlu0 %v7241_v48 }
0x1cbb   :  { %v7244_v0 = vsel %vm504_vm3, %v7240_v54, 0.0 }
0x1cbc   :  { %7245 = vadd.xlane.f32.xlu1 %v7244_v0 }
0x1d47   :  { %v7243_v36 = vpop.xlane.xlu0 %7242 }
0x1d48   :  { %v7247_v17 = vmul.f32 0.03125, %v7243_v36 }
0x1d49   :  { %v7246_v15 = vpop.xlane.xlu1 %7245 }
0x1d4a   :  { %v7249_v23 = vadd.f32 1e-05, %v7247_v17  ;;  %v7248_v32 = vmul.f32 0.03125, %v7246_v15 }
0x1d4c   :  { %9184 = vrsqrt.f32 %v7249_v23  ;;  %v7250_v19 = vadd.f32 1e-05, %v7248_v32 }
0x1d4e   :  { %9186 = vrsqrt.f32 %v7250_v19 }
0x1d56   :  { %v9185_v5 = vpop.eup %9184 }
0x1d57   :  { %v7253_v21 = vmul.f32 %v9185_v5, %v7237_v26 }
0x1d58   :  { %v9187_v6 = vpop.eup %9186 }
0x1d59   :  { %v7255_v18 = vmul.f32 %v9219_v1, %v7253_v21  ;;  %v7254_v22 = vmul.f32 %v9187_v6, %v7238_v60 }
0x1d5b   :  { %v7256_v3 = vmul.f32 %v9219_v1, %v7254_v22  ;;  %v7257_v8 = vadd.f32 %v9220_v49, %v7255_v18 }
0x1d5d   :  { %v7258_v24 = vadd.f32 %v9220_v49, %v7256_v3  ;;  %v7259_v27 = vmax.f32 %v7257_v8, 0.0 }
0x1d5f   :  { %v7260_v50 = vmax.f32 %v7258_v24, 0.0 }
0x1d61   :  { %v7261_v13 = vpack.c.bf16 %v7260_v50, %v7259_v27 }
0x1d63   :  { %8834 = vmatmul.mubr.msk.bf16.vlgmr.msra.gmra.mrb[124].mxu1 %vm504_vm3, %v7261_v13 }
0x1d64   :  { %8846 = vmatpush3.bf16.msra.mxu1 %v7415_v58  ;;  %8849 = vmatprep.mubr.msk.bf16.mxu1 %vm9496_vm0, %v12999_v46  ;;  %v9223_v58 = vld [vmem:[%s13097_s25] ss:$0 sm:$0xff] }
0x1d65   :  { %8847 = vmatprep.subr.bf16.mxu1 %v12999_v46 }
0x1d68   :  { %8848 = vmatpush3.bf16.msra.mxu1 %v7416_v39  ;;  %v406_v39 = vld [vmem:[%s13230_s14 + $0x8] sm:$0xff] }
0x1d69   :  { %8861 = vmatprep.subr.bf16.mxu1 %v12999_v46 }
0x1d6b   :  { %8850 = vmatmul.mubr.msk.bf16.vlgmr.msra.gmra.mrb[128].mxu1 %vm504_vm3, %v7417_v56 }
0x1d6c   :  { %8865 = vmatprep.mubr.msk.bf16.mxu1 %vm9496_vm0, %v12999_v46 }
0x1e36   :  { %v7299_v12 = vpop.f32.mrb[124].mxu1 }
0x1e37   :  { %v7300_v16 = vadd.f32 %v9221_v20, %v7299_v12  ;;  %v8835_v62 = vpop.f32.mrb[125].mxu1 }
0x1e38   :  { %v7302_v2 = vpop.f32.mrb[126].mxu1 }
0x1e39   :  { %v7303_v30 = vadd.f32 %v9221_v20, %v7302_v2  ;;  %v8836_v57 = vpop.f32.mrb[127].mxu1  ;;  %v7306_v63 = vsel %vm504_vm3, %v7300_v16, 0.0  ;;  %v8036_v20 = vld [vmem:[#allocation11] ss:$0 sm:$0xff] }
0x1e3a   :  { %7307 = vadd.xlane.f32.xlu0 %v7306_v63  ;;  %v7512_v57 = vpack.c.bf16 %v406_v39, %v405_v25  ;;  %v8037_v63 = vld [vmem:[#allocation12] ss:$0 sm:$0xff] }
0x1e3b   :  { %v7309_v38 = vsel %vm504_vm3, %v7303_v30, 0.0 }
0x1e3c   :  { %7310 = vadd.xlane.f32.xlu1 %v7309_v38 }
0x1e3e   :  { %v7461_v10 = vpop.f32.mrb[128].mxu1 }
0x1e3f   :  { %v7462_v4 = vadd.f32 %v8034_v45, %v7461_v10  ;;  %v8851_v33 = vpop.f32.mrb[129].mxu1 }
0x1e40   :  { %v7464_v56 = vpop.f32.mrb[130].mxu1  ;;  %v408_v33 = vld [vmem:[%s13230_s14 + $0x18] sm:$0xff] }
0x1e41   :  { %v7465_v37 = vadd.f32 %v8034_v45, %v7464_v56  ;;  %v8852_v34 = vpop.f32.mrb[131].mxu1  ;;  %v7468_v51 = vsel %vm504_vm3, %v7462_v4, 0.0 }
0x1e42   :  { %7469 = vadd.xlane.f32.xlu0 %v7468_v51 }
0x1e43   :  { %v7471_v43 = vsel %vm504_vm3, %v7465_v37, 0.0 }
0x1e44   :  { %7472 = vadd.xlane.f32.xlu1 %v7471_v43 }
0x1ec7   :  { %v7308_v55 = vpop.xlane.xlu0 %7307 }
0x1ec8   :  { %v7312_v9 = vmul.f32 0.03125, %v7308_v55 }
0x1ec9   :  { %v7311_v35 = vpop.xlane.xlu1 %7310 }
0x1eca   :  { %v7314_v7 = vsub.f32 %v7300_v16, %v7312_v9  ;;  %v7313_v44 = vmul.f32 0.03125, %v7311_v35 }
0x1ecc   :  { %v7315_v52 = vsub.f32 %v7303_v30, %v7313_v44  ;;  %v7316_v29 = vmul.f32 %v7314_v7, %v7314_v7 }
0x1ece   :  { %v7318_v40 = vsel %vm504_vm3, %v7316_v29, 0.0  ;;  %v7317_v14 = vmul.f32 %v7315_v52, %v7315_v52 }
0x1ecf   :  { %7319 = vadd.xlane.f32.xlu0 %v7318_v40  ;;  %v7470_v31 = vpop.xlane.xlu0 %7469 }
0x1ed0   :  { %v7474_v59 = vmul.f32 0.03125, %v7470_v31  ;;  %v7321_v42 = vsel %vm504_vm3, %v7317_v14, 0.0  ;;  %v8038_v31 = vld [vmem:[#allocation14] ss:$0 sm:$0xff] }
0x1ed1   :  { %7322 = vadd.xlane.f32.xlu1 %v7321_v42  ;;  %v7473_v26 = vpop.xlane.xlu1 %7472 }
0x1ed2   :  { %v7476_v47 = vsub.f32 %v7462_v4, %v7474_v59  ;;  %v7475_v60 = vmul.f32 0.03125, %v7473_v26  ;;  %v407_v4 = vld [vmem:[%s13230_s14 + $0x10] sm:$0xff] }
0x1ed3   :  { %v7513_v34 = vpack.c.bf16 %v408_v33, %v407_v4  ;;  %v13231_v59 = vld [vmem:[#allocation88_spill] sm:$0xff] }
0x1ed4   :  { %v7477_v41 = vsub.f32 %v7465_v37, %v7475_v60  ;;  %v7478_v48 = vmul.f32 %v7476_v47, %v7476_v47 }
0x1ed6   :  { %v7480_v54 = vsel %vm504_vm3, %v7478_v48, 0.0  ;;  %v7479_v0 = vmul.f32 %v7477_v41, %v7477_v41 }
0x1ed7   :  { %7481 = vadd.xlane.f32.xlu0 %v7480_v54 }
0x1ed8   :  { %v7483_v36 = vsel %vm504_vm3, %v7479_v0, 0.0 }
0x1ed9   :  { %7484 = vadd.xlane.f32.xlu1 %v7483_v36 }
0x1f5c   :  { %v7320_v17 = vpop.xlane.xlu0 %7319 }
0x1f5d   :  { %v7324_v15 = vmul.f32 0.03125, %v7320_v17 }
0x1f5e   :  { %v7323_v23 = vpop.xlane.xlu1 %7322 }
0x1f5f   :  { %v7326_v32 = vadd.f32 1e-05, %v7324_v15  ;;  %v7325_v19 = vmul.f32 0.03125, %v7323_v23 }
0x1f61   :  { %9188 = vrsqrt.f32 %v7326_v32  ;;  %v7327_v5 = vadd.f32 1e-05, %v7325_v19 }
0x1f63   :  { %9190 = vrsqrt.f32 %v7327_v5  ;;  %v412_v5 = vld [vmem:[%s9757_s9] sm:$0xff] }
0x1f64   :  { %v7482_v21 = vpop.xlane.xlu0 %7481 }
0x1f65   :  { %v7486_v6 = vmul.f32 0.03125, %v7482_v21  ;;  %v413_v21 = vld [vmem:[%s9757_s9 + $0x8] sm:$0xff] }
0x1f66   :  { %v7485_v1 = vpop.xlane.xlu1 %7484 }
0x1f67   :  { %v7488_v18 = vadd.f32 1e-05, %v7486_v6  ;;  %v7487_v22 = vmul.f32 0.03125, %v7485_v1  ;;  %v414_v6 = vld [vmem:[%s9757_s9 + $0x10] sm:$0xff]  ;;  %v7609_v1 = vpack.c.bf16 %v413_v21, %v412_v5 }
0x1f69   :  { %9192 = vrsqrt.f32 %v7488_v18  ;;  %v7489_v3 = vadd.f32 1e-05, %v7487_v22  ;;  %v415_v18 = vld [vmem:[%s9757_s9 + $0x18] sm:$0xff]  ;;  %8862 = vmatpush3.bf16.msra.mxu1 %v7609_v1  ;;  %s9501_s9 = smov [#allocation20]  }
0x1f6a   :  { %v7610_v22 = vpack.c.bf16 %v415_v18, %v414_v6  ;;  %8863 = vmatprep.subr.bf16.mxu1 %v12999_v46  ;;  %s7854_s24 = sshll.u32 %s9501_s9, 4  ;;  %s7855_s24 = int_to_ptr.vmem [resolvable:$true] %s7854_s24 }
0x1f6b   :  { %v9189_v49 = vpop.eup %9188  ;;  %9194 = vrsqrt.f32 %v7489_v3  ;;  %p9406_p9 = scmp.lt.s32.totalorder %s7855_s24, %s7855_s24 }
0x1f6c   :  { %v7330_v8 = vmul.f32 %v9189_v49, %v7314_v7 }
0x1f6d   :  { %v9191_v24 = vpop.eup %9190  ;;  %8864 = vmatpush3.bf16.msra.mxu1 %v7610_v22 }
0x1f6e   :  { %v7332_v11 = vmul.f32 %v9222_v53, %v7330_v8  ;;  %v7331_v27 = vmul.f32 %v9191_v24, %v7315_v52  ;;  %v9224_v52 = vld [vmem:[#allocation6] ss:$0 sm:$0xff] }
0x1f70   :  { %v7333_v50 = vmul.f32 %v9222_v53, %v7331_v27  ;;  %v7334_v13 = vadd.f32 %v9223_v58, %v7332_v11 }
0x1f72   :  { %v7335_v61 = vadd.f32 %v9223_v58, %v7333_v50  ;;  %v7336_v62 = vmax.f32 %v7334_v13, 0.0 }
0x1f73   :  { %v9193_v12 = vpop.eup %9192 }
0x1f74   :  { %v7492_v16 = vmul.f32 %v9193_v12, %v7476_v47  ;;  %v7337_v2 = vmax.f32 %v7335_v61, 0.0  ;;  %v13232_v47 = vld [vmem:[#allocation89_spill] sm:$0xff] }
0x1f75   :  { %v9195_v30 = vpop.eup %9194 }
0x1f76   :  { %v7500_v38 = vmul.f32 %v8036_v20, %v7492_v16  ;;  %v7493_v45 = vmul.f32 %v9195_v30, %v7477_v41  ;;  %v7338_v10 = vpack.c.bf16 %v7337_v2, %v7336_v62 }
0x1f78   :  { %v7501_v56 = vmul.f32 %v8036_v20, %v7493_v45  ;;  %8842 = vmatmul.mubr.msk.bf16.vlgmr.msra.gmra.mrb[128].mxu0 %vm504_vm3, %v7338_v10  ;;  %v7508_v37 = vadd.f32 %v8037_v63, %v7500_v38 }
0x1f79   :  { %8854 = vmatpush3.bf16.msra.mxu0 %v7512_v57  ;;  %8857 = vmatprep.mubr.msk.bf16.mxu0 %vm9496_vm0, %v12999_v46 }
0x1f7a   :  { %8855 = vmatprep.subr.bf16.mxu0 %v12999_v46  ;;  %v7509_v51 = vadd.f32 %v8037_v63, %v7501_v56  ;;  %v7510_v43 = vmax.f32 %v7508_v37, 0.0 }
0x1f7c   :  { %v7511_v55 = vmax.f32 %v7509_v51, 0.0 }
0x1f7d   :  { %8856 = vmatpush3.bf16.msra.mxu0 %v7513_v34 }
0x1f7e   :  { %v7514_v9 = vpack.c.bf16 %v7511_v55, %v7510_v43  ;;  %8927 = vmatprep.subr.bf16.mxu0 %v13187_v28 }
0x1f80   :  { %8858 = vmatmul.mubr.msk.bf16.vlgmr.msra.gmra.mrb[132].mxu0 %vm504_vm3, %v7514_v9 }
0x1f81   :  { %8873 = vmatprep.mubr.msk.f32.mxu0 %vm9496_vm0, %v12999_v46 }
0x204b   :  { %v7376_v35 = vpop.f32.mrb[128].mxu0 }
0x204c   :  { %v8843_v7 = vpop.f32.mrb[129].mxu0  ;;  %v7377_v29 = vadd.f32 %v9224_v52, %v7376_v35 }
0x204d   :  { %v7379_v44 = vpop.f32.mrb[130].mxu0  ;;  %v13234_v7 = vmov 1.0  }
0x204e   :  { %v8844_v40 = vpop.f32.mrb[131].mxu0  ;;  %v7380_v14 = vadd.f32 %v9224_v52, %v7379_v44  ;;  %v7385_v42 = vadd.f32 %v7377_v29, %v13231_v59 }
0x2050   :  { %v12677_v60 = vadd.f32 %v7380_v14, %v13232_v47  ;;  %v7387_v17 = vmul.f32 %v7385_v42, %v7385_v42 }
0x2052   :  { %v7388_v23 = vmul.f32 %v12677_v60, %v12677_v60  ;;  %v7389_v32 = vsel %vm877_vm4, %v7387_v17, 0.0 }
0x2053   :  { %v7558_v26 = vpop.f32.mrb[132].mxu0 }
0x2054   :  { %v7559_v28 = vadd.f32 %v8038_v31, %v7558_v26  ;;  %v8859_v41 = vpop.f32.mrb[133].mxu0  ;;  %v7392_v19 = vsel %vm877_vm4, %v7388_v23, 0.0 }
0x2055   :  { %v7561_v48 = vpop.f32.mrb[134].mxu0 }
0x2056   :  { %v7562_v54 = vadd.f32 %v8038_v31, %v7561_v48  ;;  %v8860_v0 = vpop.f32.mrb[135].mxu0  ;;  %v7565_v36 = vsel %vm504_vm3, %v7559_v28, 0.0 }
0x2057   :  { %7566 = vadd.xlane.f32.xlu0 %v7565_v36 }
0x2058   :  { %v7568_v15 = vsel %vm504_vm3, %v7562_v54, 0.0 }
0x2059   :  { %7569 = vadd.xlane.f32.xlu1 %v7568_v15 }
0x205b   :  { %7390 = vadd.xlane.f32.xlu0 %v7389_v32 }
0x205d   :  { %7393 = vadd.xlane.f32.xlu1 %v7392_v19  ;;  %v8042_v19 = vld [vmem:[#allocation18] ss:$0 sm:$0xff] }
0x20e4   :  { %v7567_v3 = vpop.xlane.xlu0 %7566 }
0x20e5   :  { %v7571_v49 = vmul.f32 0.03125, %v7567_v3  ;;  %v13236_v3 = vld [vmem:[#allocation75_spill] sm:$0xff] }
0x20e6   :  { %v7570_v8 = vpop.xlane.xlu1 %7569 }
0x20e7   :  { %v7573_v24 = vsub.f32 %v7559_v28, %v7571_v49  ;;  %v7572_v53 = vmul.f32 0.03125, %v7570_v8 }
0x20e8   :  { %v7391_v11 = vpop.xlane.xlu0 %7390 }
0x20e9   :  { %v7574_v27 = vsub.f32 %v7562_v54, %v7572_v53  ;;  %9196 = vrsqrt.f32 %v7391_v11  ;;  %v7575_v58 = vmul.f32 %v7573_v24, %v7573_v24  ;;  %vm7397_vm0 = vcmp.eq.f32.partialorder %v7391_v11, inf }
0x20ea   :  { %v7394_v50 = vpop.xlane.xlu1 %7393  ;;  %v7400_v20 = vand.u32 2147483648, %v7391_v11  ;;  %vm7399_vm7 = vcmp.eq.f32.partialorder %v7391_v11, 0.0 }
0x20eb   :  { %9198 = vrsqrt.f32 %v7394_v50  ;;  %v7577_v13 = vsel %vm504_vm3, %v7575_v58, 0.0  ;;  %v7576_v61 = vmul.f32 %v7574_v27, %v7574_v27  ;;  %vm7404_vm8 = vcmp.eq.f32.partialorder %v7394_v50, inf }
0x20ec   :  { %7578 = vadd.xlane.f32.xlu0 %v7577_v13  ;;  %v7407_v30 = vand.u32 2147483648, %v7394_v50  ;;  %vm7406_vm9 = vcmp.eq.f32.partialorder %v7394_v50, 0.0 }
0x20ed   :  { %v7580_v25 = vsel %vm504_vm3, %v7576_v61, 0.0 }
0x20ee   :  { %7581 = vadd.xlane.f32.xlu1 %v7580_v25 }
0x20f3   :  { %v9197_v46 = vpop.eup %9196 }
0x20f4   :  { %v7396_v39 = vmul.f32 %v9197_v46, %v7391_v11 }
0x20f5   :  { %v9199_v12 = vpop.eup %9198 }
0x20f6   :  { %v7398_v16 = vsel %vm7397_vm0, %v7391_v11, %v7396_v39  ;;  %v7403_v62 = vmul.f32 %v9199_v12, %v7394_v50  ;;  %v13238_v12 = vld [vmem:[#allocation76_spill] sm:$0xff] }
0x20f7   :  { %v7401_v2 = vsel %vm7399_vm7, %v7400_v20, %v7398_v16  ;;  %v13240_v16 = vld [vmem:[#allocation77_spill] sm:$0xff] }
0x20f8   :  { %v7409_v57 = vmax.f32 %v7401_v2, 1e-12  ;;  %v7405_v63 = vsel %vm7404_vm8, %v7394_v50, %v7403_v62 }
0x20f9   :  { %v7408_v38 = vsel %vm7406_vm9, %v7407_v30, %v7405_v63 }
0x20fa   :  { %9200 = vrcp.f32 %v7409_v57  ;;  %v7410_v45 = vmax.f32 %v7408_v38, 1e-12 }
0x20fc   :  { %9202 = vrcp.f32 %v7410_v45 }
0x2104   :  { %v9201_v10 = vpop.eup %9200 }
0x2105   :  { %v7412_v4 = vmul.f32 %v9201_v10, %v7385_v42  ;;  %v8040_v42 = vld [vmem:[#allocation15] ss:$0 sm:$0xff] }
0x2106   :  { %v9203_v33 = vpop.eup %9202 }
0x2107   :  { %v7664_v56 = vmul.f32 %v7412_v4, %v7412_v4  ;;  %v7414_v37 = vmul.f32 %v9203_v33, %v12677_v60  ;;  %v8041_v60 = vld [vmem:[#allocation17] ss:$0 sm:$0xff] }
0x2109   :  { %v7666_v34 = vsel %vm877_vm4, %v7664_v56, 0.0  ;;  %v8931_v51 = vpack.c.bf16 %v7414_v37, %v7412_v4  ;;  %v7665_v43 = vmul.f32 %v7414_v37, %v7414_v37 }
0x210a   :  { %7667 = vadd.xlane.f32.xlu0 %v7666_v34 }
0x210b   :  { %8933 = vmatprep.subr.msk.bf16.mxu1 %vm9896_vm5, %v8931_v51  ;;  %v7669_v9 = vsel %vm877_vm4, %v7665_v43, 0.0  ;;  %v8928_v35 = vpack.c.bf16 %v7665_v43, %v7664_v56 }
0x210c   :  { %7670 = vadd.xlane.f32.xlu1 %v7669_v9 }
0x210d   :  { %8930 = vmatpush3.bf16.xpose.msk.msra.mxu0 %vm9896_vm5, %v8928_v35 }
0x2114   :  { %8874 = vmatmul.mubr.msk.f32.vlgmr.msra.gmra.mrb[136].mxu0 %vm877_vm4, %v13234_v7 }
0x2179   :  { %v7579_v44 = vpop.xlane.xlu0 %7578 }
0x217a   :  { %v7583_v52 = vmul.f32 0.03125, %v7579_v44 }
0x217b   :  { %v7582_v29 = vpop.xlane.xlu1 %7581 }
0x217c   :  { %v7585_v40 = vadd.f32 1e-05, %v7583_v52  ;;  %v7584_v14 = vmul.f32 0.03125, %v7582_v29 }
0x217e   :  { %9204 = vrsqrt.f32 %v7585_v40  ;;  %v7586_v31 = vadd.f32 1e-05, %v7584_v14 }
0x2180   :  { %9206 = vrsqrt.f32 %v7586_v31 }
0x2188   :  { %v9205_v59 = vpop.eup %9204 }
0x2189   :  { %v7589_v26 = vmul.f32 %v9205_v59, %v7573_v24 }
0x218a   :  { %v9207_v47 = vpop.eup %9206 }
0x218b   :  { %v7597_v28 = vmul.f32 %v8040_v42, %v7589_v26  ;;  %v7590_v41 = vmul.f32 %v9207_v47, %v7574_v27 }
0x218d   :  { %v7598_v48 = vmul.f32 %v8040_v42, %v7590_v41  ;;  %v7605_v54 = vadd.f32 %v8041_v60, %v7597_v28 }
0x218f   :  { %v7606_v0 = vadd.f32 %v8041_v60, %v7598_v48  ;;  %v7607_v36 = vmax.f32 %v7605_v54, 0.0 }
0x2191   :  { %v7608_v17 = vmax.f32 %v7606_v0, 0.0 }
0x2193   :  { %v7611_v15 = vpack.c.bf16 %v7608_v17, %v7607_v36 }
0x2195   :  { %8866 = vmatmul.mubr.msk.bf16.vlgmr.msra.gmra.mrb[132].mxu1 %vm504_vm3, %v7611_v15  ;;  %vm13237_vm3 = vmmov %vm13235_vm10 }
0x2196   :  { %8936 = vmatpush3.bf16.xpose.msk.msra.mxu1 %vm9896_vm5, %v8931_v51  ;;  %8880 = vmatprep.mubr.msk.f32.mxu1 %vm877_vm4, %v7412_v4 }
0x2197   :  { %v7668_v53 = vpop.xlane.xlu0 %7667 }
0x2199   :  { %v7671_v8 = vpop.xlane.xlu1 %7670 }
0x219d   :  { %8881 = vmatmul.mubr.msk.f32.vlgmr.msra.gmra.mrb[136].mxu1 %vm877_vm4, %v7414_v37 }
0x21e7   :  { %v7744_v23 = vpop.f32.mrb[136].mxu0 }
0x21e8   :  { %v8875_v32 = vpop.f32.mrb[137].mxu0  ;;  %v7832_v49 = vrot.slane %v7744_v23, %v13236_v3 }
0x21ea   :  { %v7834_v11 = vadd.f32 %v7832_v49, %v7671_v8  ;;  %v7833_v58 = vadd.f32 %v7832_v49, %v7668_v53 }
0x2268   :  { %v7655_v5 = vpop.f32.mrb[132].mxu1 }
0x2269   :  { %v7656_v21 = vadd.f32 %v8042_v19, %v7655_v5  ;;  %v8867_v6 = vpop.f32.mrb[133].mxu1 }
0x226a   :  { %v7658_v1 = vpop.f32.mrb[134].mxu1 }
0x226b   :  { %7662 = vst.msk [vmem:[%s9767_s19] sm:$0xff] %vm13235_vm10, %v7656_v21  ;;  %v7659_v18 = vadd.f32 %v8042_v19, %v7658_v1  ;;  %v8868_v22 = vpop.f32.mrb[135].mxu1 }
0x226d   :  { %7663 = vst.msk [vmem:[%s9767_s19 + $0x8] sm:$0xff] %vm13237_vm3, %v7659_v18  ;;  %s9401_s19 = scalar_lea.vmem %s7855_s24, 256 }
0x226e   :  { %p9402_p8 = scmp.ne.s32.totalorder %s7855_s24, %s9401_s19  ;;  %p9407_p10 = scmp.lt.s32.totalorder %s9401_s19, %s9401_s19 }
0x2270   :  { %v8882_v24 = vpop.f32.mrb[136].mxu1  ;;  %p9408_p11 = por %p9407_p10, %p9406_p9 }
0x2271   :  { %v7836_v27 = vmul.f32 2.0, %v8882_v24  ;;  %v7820_v50 = vpop.f32.mrb[137].mxu1 }
0x2272   :  { %v7835_v13 = vmul.f32 2.0, %v7820_v50  ;;  %p9409_p12 = pnand %p9408_p11, %p9402_p8 }
0x2273   :  { %v7838_v61 = vsub.f32 %v7834_v11, %v7836_v27 }
0x2274   :  { %v7837_v25 = vsub.f32 %v7833_v58, %v7835_v13 }
0x2275   :  { %v7840_v46 = vmax.f32 %v7838_v61, 0.0 }
0x2276   :  { %v7839_v39 = vmax.f32 %v7837_v25, 0.0 }
0x2277   :  { %vm7842_vm4 = vcmp.le.f32.partialorder %v7840_v46, 1.0 }
0x2278   :  { %v7844_v20 = vsel %vm7842_vm4, %v13238_v12, 0.0  ;;  %vm7841_vm5 = vcmp.le.f32.partialorder %v7839_v39, 1.0 }
0x2279   :  { %7846 = vst.msk [vmem:[#allocation20 + $0x8] sm:$0xff] %vm13239_vm11, %v7844_v20  ;;  %v7843_v62 = vsel %vm7841_vm5, %v13240_v16, 0.0 }
0x227a   :  { %7845 = vst.msk [vmem:[#allocation20] sm:$0xff] %vm13241_vm12, %v7843_v62 }
0x227b   :  { %9412 = shalt.err (!%p9409_p12)
}
0x227c   :  { %s9413_s6 = scalar_lea.hbm %s9772_s8, 256 }
0x227d   :  { %p9414_p13 = scmp.ne.s32.totalorder %s9772_s8, %s9413_s6  ;;  %p9417_p0 = scmp.lt.u32.totalorder %s9413_s6, %s9772_s8 }
0x227f   :  { %p9419_p1 = pnand %p9417_p0, %p9414_p13 }
0x2281   :  { %9422 = shalt.err (!%p9419_p1)
}
0x2282   :  { %s9502_s30 = smov 128   ;;  %s9503_s11 = smov 8  }
0x2283   :  { %7860 = dma.vmem_to_hbm [thread:$0]  %s7855_s24, 256, %s9772_s8, [#allocation8], %s9502_s30, %s9502_s30, %s9503_s11  }
0x2284   :  { %9433 = dma.done.wait [#allocation8], 256  }
0x2285   :  { %9434 = vsyncadd [#allocation8], 4294967040 }
0x2286   :  { %7866 = vsyncpa [#allocation7], 1 }
0x2287   :  { %7867 = vsyncpa [#allocation10], 1 }
0x2288   :  { %7868 = vsyncpa [#allocation13], 1 }
0x2289   :  { %7869 = vsyncpa [#allocation16], 1 }
0x228a   :  { %7870 = vsyncpa [#allocation19], 1 }
0x228b   :  { %7871 = vsyncpa [#allocation8], 1 }

</bundles_post_ra>
